<compile_context>
chip_gen: v5e
topology: v5e:2x2
jax: 0.10.0
libtpu: 0.0.40
codegen_flags: <defaults>
</compile_context>

<pallas_src>
import functools

import jax
import jax.numpy as jnp
from jax.experimental import pallas as pl
from jax.experimental.pallas import tpu as pltpu


_LANES = 128
_MB = 1024 * 1024


# ----------------------------------------------------------------------------
# Per-generation static configuration (tile targets, VMEM limit, megacore).
# ----------------------------------------------------------------------------
def _detect_hw():
    kind = ""
    try:
        kind = (jax.devices()[0].device_kind or "").lower()
    except Exception:
        pass
    if "v7" in kind:
        # v7x: 64 MiB physical VMEM per TC, 2 TensorCores -> force >=2 grid
        # steps so dimension_semantics=("parallel",) shards across both cores.
        return {"vmem": 44 * _MB, "lin_tile": 8192, "head_tile": 8192,
                "min_steps": 2}
    if "v6" in kind or "v5" in kind:
        # v5e/v6e: 128 MiB physical VMEM, single TensorCore.
        return {"vmem": 64 * _MB, "lin_tile": 16384, "head_tile": 16384,
                "min_steps": 1}
    # Unknown backend (v4 / interpret / ...): conservative defaults.
    return {"vmem": 32 * _MB, "lin_tile": 4096, "head_tile": 4096,
            "min_steps": 1}


_HW = _detect_hw()


def _compiler_params(n_axes=1):
    return pltpu.CompilerParams(
        dimension_semantics=("parallel",) * n_axes,
        vmem_limit_bytes=_HW["vmem"],
    )


# ----------------------------------------------------------------------------
# In-kernel GELU (tanh form -> EUP slot).
# ----------------------------------------------------------------------------
_SQRT_2_OVER_PI = 0.7978845608028654
_GELU_C = 0.044715


def _gelu(x):
    # tanh-approximate GELU; cheaper than the erf polynomial (EUP, ~6 VALU ops).
    return 0.5 * x * (1.0 + jnp.tanh(_SQRT_2_OVER_PI * (x + _GELU_C * x * x * x)))


# ----------------------------------------------------------------------------
# Row-tile selection: prefer a divisor of N (no padding copy), else pad.
# ----------------------------------------------------------------------------
def _choose_row_tile(n, target, multiple, min_steps=1):
    """Largest row tile <= target that divides n; optionally guarantees at
    least `min_steps` grid steps (v7x megacore sharding)."""
    if min_steps > 1:
        cap = (n // min_steps) // multiple * multiple
        if cap >= multiple:
            target = min(target, cap)
    target = max(target, multiple)
    best = 0
    d = multiple
    limit = min(n, target)
    while d <= limit:
        if n % d == 0:
            best = d
        d += multiple
    if best:
        return best, 0
    # Fallback: pad rows.  NOTE: this costs a full extra HBM read+write of the
    # activation -- choose B*X*Y divisible by `multiple` to avoid it.
    tile = min(target, n)
    tile = ((tile + multiple - 1) // multiple) * multiple
    pad = (-n) % tile
    return tile, pad


def _largest_divisor(n, cap):
    best = 1
    for d in range(1, min(n, cap) + 1):
        if n % d == 0:
            best = d
    return best


# ----------------------------------------------------------------------------
# Pallas kernel 1: pointwise linear (matmul over channels) with fused bias,
# optional second matmul (fc0 grid features), optional residual, optional GELU.
# All elementwise math in f32; operands may be bf16 (MXU-native).
# ----------------------------------------------------------------------------
def _linear_kernel(*refs, apply_gelu, has_aux, has_residual):
    it = iter(refs)
    x_ref = next(it)
    w_ref = next(it)
    b_ref = next(it)
    xa_ref = next(it) if has_aux else None
    wa_ref = next(it) if has_aux else None
    res_ref = next(it) if has_residual else None
    o_ref = next(it)

    acc = jnp.dot(x_ref[...], w_ref[...], preferred_element_type=jnp.float32)
    acc = acc + b_ref[...]
    if has_aux:
        acc = acc + jnp.dot(xa_ref[...], wa_ref[...],
                            preferred_element_type=jnp.float32)
    if has_residual:
        acc = acc + res_ref[...].astype(jnp.float32)
    if apply_gelu:
        acc = _gelu(acc)
    o_ref[...] = acc.astype(o_ref.dtype)


def pallas_linear(x2d, w, b, *, aux=None, residual=None, apply_gelu=False,
                  out_dtype=jnp.bfloat16):
    """out = [gelu]( x2d @ w + b [+ xa @ wa] [+ residual] ), row-tiled grid."""
    n, cin = x2d.shape
    cout = w.shape[1]
    # Sublane multiple 16 keeps bf16 blocks aligned to the (16,128) tiling.
    tile, pad = _choose_row_tile(n, _HW["lin_tile"], 16, _HW["min_steps"])
    if pad:
        x2d = jnp.pad(x2d, ((0, pad), (0, 0)))
        if aux is not None:
            aux = (jnp.pad(aux[0], ((0, pad), (0, 0))), aux[1])
        if residual is not None:
            residual = jnp.pad(residual, ((0, pad), (0, 0)))
    n_pad = n + pad

    args = [x2d, w, b.reshape(1, cout)]
    in_specs = [
        pl.BlockSpec((tile, cin), lambda i: (i, 0)),
        pl.BlockSpec((cin, cout), lambda i: (0, 0)),
        pl.BlockSpec((1, cout), lambda i: (0, 0)),
    ]
    has_aux = aux is not None
    if has_aux:
        xa, wa = aux
        ca = xa.shape[1]
        args += [xa, wa]
        in_specs += [
            pl.BlockSpec((tile, ca), lambda i: (i, 0)),
            pl.BlockSpec((ca, cout), lambda i: (0, 0)),
        ]
    has_residual = residual is not None
    if has_residual:
        args.append(residual)
        in_specs.append(pl.BlockSpec((tile, cout), lambda i: (i, 0)))

    out = pl.pallas_call(
        functools.partial(_linear_kernel, apply_gelu=apply_gelu,
                          has_aux=has_aux, has_residual=has_residual),
        out_shape=jax.ShapeDtypeStruct((n_pad, cout), out_dtype),
        grid=(n_pad // tile,),
        in_specs=in_specs,
        out_specs=pl.BlockSpec((tile, cout), lambda i: (i, 0)),
        compiler_params=_compiler_params(),
    )(*args)
    return out[:n] if pad else out


# ----------------------------------------------------------------------------
# Pallas kernel 2: fused projection head  out = gelu(x @ W1 + b1) @ W2 + b2.
# The fc1 activation never touches HBM; the 1-wide fc2 result is written as
# lane-dense (g, 128) slabs instead of a masked (N, 1) store.
# ----------------------------------------------------------------------------
def _head_kernel(x_ref, w1_ref, b1_ref, w2_ref, b2_ref, o_ref):
    h = jnp.dot(x_ref[...], w1_ref[...], preferred_element_type=jnp.float32)
    h = _gelu(h + b1_ref[...])                              # (tile, hidden) f32
    tile, hidden = h.shape
    h3 = h.reshape(tile // _LANES, _LANES, hidden)          # row-major regroup
    # TODO(synk): if the XLU cross-lane reduce becomes the binding vext slot
    # after the GELU cheapening, switch to an MXU matvec + single relayout and
    # measure (review item); keep the reduce until profiled.
    out = jnp.sum(h3 * w2_ref[...], axis=-1) + b2_ref[...]  # (tile/128, 128)
    o_ref[...] = out.reshape(o_ref.shape).astype(o_ref.dtype)


def pallas_head(x2d, w1, b1, w2, b2):
    n, cin = x2d.shape
    hidden = w1.shape[1]
    tile, pad = _choose_row_tile(n, _HW["head_tile"], _LANES, _HW["min_steps"])
    if pad:
        x2d = jnp.pad(x2d, ((0, pad), (0, 0)))
    n_pad = n + pad
    grid = n_pad // tile
    g = tile // _LANES

    out = pl.pallas_call(
        _head_kernel,
        out_shape=jax.ShapeDtypeStruct((grid, g, _LANES), jnp.float32),
        grid=(grid,),
        in_specs=[
            pl.BlockSpec((tile, cin), lambda i: (i, 0)),
            pl.BlockSpec((cin, hidden), lambda i: (0, 0)),
            pl.BlockSpec((1, hidden), lambda i: (0, 0)),
            pl.BlockSpec((1, 1, hidden), lambda i: (0, 0, 0)),
            pl.BlockSpec((1, 1), lambda i: (0, 0)),
        ],
        out_specs=pl.BlockSpec((1, g, _LANES), lambda i: (i, 0, 0)),
        compiler_params=_compiler_params(),
    )(x2d, w1, b1.reshape(1, hidden), w2.reshape(1, 1, hidden),
      jnp.reshape(b2, (1, 1)))
    out = out.reshape(n_pad, 1)
    return out[:n] if pad else out


# ----------------------------------------------------------------------------
# Pallas kernel 3: per-mode complex channel mixing as one real batched matmul
#   z_m = [Re(x_m), Im(x_m)]  (B, 2Cin)
#   W_m = [[Wr, Wi], [-Wi, Wr]]  (2Cin, 2Cout)   (pre-packed at init)
#   z_m @ W_m = [Re(out_m), Im(out_m)]
# Runs the whole mode axis in a single grid step when it fits VMEM.
# ----------------------------------------------------------------------------
def _mode_mix_kernel(z_ref, w_ref, o_ref):
    o_ref[...] = jnp.einsum("mbi,mio->mbo", z_ref[...], w_ref[...],
                            preferred_element_type=jnp.float32)


def pallas_mode_mix(zc, spec_w):
    m, bsz, cin2 = zc.shape
    cout2 = spec_w.shape[2]
    per_mode = 4 * (bsz * cin2 + cin2 * cout2 + bsz * cout2)
    budget = 12 * _MB
    bm = m
    if 2 * per_mode * m > budget:           # x2 for double-buffering headroom
        bm = _largest_divisor(m, max(1, budget // max(1, 2 * per_mode)))
    return pl.pallas_call(
        _mode_mix_kernel,
        out_shape=jax.ShapeDtypeStruct((m, bsz, cout2), jnp.float32),
        grid=(m // bm,),
        in_specs=[
            pl.BlockSpec((bm, bsz, cin2), lambda i: (i, 0, 0)),
            pl.BlockSpec((bm, cin2, cout2), lambda i: (i, 0, 0)),
        ],
        out_specs=pl.BlockSpec((bm, bsz, cout2), lambda i: (i, 0, 0)),
        compiler_params=_compiler_params(),
    )(zc, spec_w)


# ----------------------------------------------------------------------------
# SpectralConv2d_fast (channels-last layout, pre-packed weights).
# ----------------------------------------------------------------------------
def spectral_conv2d(h_bf16, spec_w, m1, m2):
    """h_bf16: (B, X, Y, Cin).  spec_w: (2*m1*m2, 2*Cin, 2*Cout) packed."""
    b, x_dim, y_dim, cin = h_bf16.shape
    cout = spec_w.shape[2] // 2

    # TODO(synk): rfft2/irfft2 (and their FFT-adjacent full-array transposes)
    # have no Pallas TPU equivalent; they stay in plain JAX/XLA.
    hf = jnp.fft.rfft2(h_bf16.astype(jnp.float32), axes=(1, 2))

    z = jnp.concatenate([hf[:, :m1, :m2, :], hf[:, -m1:, :m2, :]], axis=1)
    z = jnp.transpose(z, (1, 2, 0, 3)).reshape(2 * m1 * m2, b, cin)
    zc = jnp.concatenate([jnp.real(z), jnp.imag(z)], axis=-1)   # (M, B, 2Cin)

    out = pallas_mode_mix(zc, spec_w)                # (M, B, 2Cout)
    oc = jax.lax.complex(out[..., :cout], out[..., cout:])      # (M, B, Cout)
    oc = jnp.transpose(oc.reshape(2 * m1, m2, b, cout), (2, 0, 1, 3))

    out_ft = jnp.zeros((b, x_dim, y_dim // 2 + 1, cout), dtype=jnp.complex64)
    out_ft = out_ft.at[:, :m1, :m2, :].set(oc[:, :m1])
    out_ft = out_ft.at[:, -m1:, :m2, :].set(oc[:, m1:])
    return jnp.fft.irfft2(out_ft, s=(x_dim, y_dim), axes=(1, 2))


# ----------------------------------------------------------------------------
# FNO2d forward pass.
# ----------------------------------------------------------------------------
def fno2d_forward(x, params, modes1, modes2):
    """x: (B, X, Y, t_in) f32, channels-last.  Returns (B, X, Y, 1) f32."""
    b, x_dim, y_dim, t_in = x.shape
    n = b * x_dim * y_dim
    width = params["fc0_b"].shape[0]

    # get_grid: normalized x / y coordinates as a tiny (N, 2) feature array
    # fused into fc0 as a second matmul (no (B,X,Y,t_in+2) concat pass).
    gridx = jnp.broadcast_to(
        jnp.linspace(0.0, 1.0, x_dim, dtype=jnp.float32).reshape(1, x_dim, 1, 1),
        (b, x_dim, y_dim, 1))
    gridy = jnp.broadcast_to(
        jnp.linspace(0.0, 1.0, y_dim, dtype=jnp.float32).reshape(1, 1, y_dim, 1),
        (b, x_dim, y_dim, 1))
    grid_feats = jnp.concatenate([gridx, gridy], axis=-1).reshape(n, 2)

    # fc0: lift to `width` channels (output streamed as bf16).
    h2d = pallas_linear(
        x.reshape(n, t_in), params["fc0_w_main"], params["fc0_b"],
        aux=(grid_feats, params["fc0_w_grid"]), out_dtype=jnp.bfloat16)

    stacks = params["stacks"]
    n_stacks = len(stacks)
    for i, st in enumerate(stacks):
        h = h2d.reshape(b, x_dim, y_dim, width)
        x1 = spectral_conv2d(h, st["spec_w"], modes1, modes2)
        # 1x1 conv ("w" path) with fused spectral residual and fused GELU
        # (no GELU after the last stack):  x = gelu(conv(x) + spectral(x)).
        h2d = pallas_linear(
            h2d, st["conv_w"], st["conv_b"],
            residual=x1.reshape(n, width).astype(jnp.bfloat16),
            apply_gelu=(i != n_stacks - 1), out_dtype=jnp.bfloat16)

    # Fused projection head fc1 -> GELU -> fc2 (f32 output).
    out2d = pallas_head(h2d, params["fc1_w"], params["fc1_b"],
                        params["fc2_w"], params["fc2_b"])
    return out2d.reshape(b, x_dim, y_dim, 1)


# ----------------------------------------------------------------------------
# Parameter initialization (shapes follow the PyTorch module).  Spectral
# weights are packed once here; pointwise-mix weights stored in bf16.
# ----------------------------------------------------------------------------
def _pack_complex_weight(wr, wi):
    """(Cin, Cout, m1, m2) real/imag -> (m1*m2, 2Cin, 2Cout) block matrix
    [[Wr, Wi], [-Wi, Wr]] so that [Re(x), Im(x)] @ W == the complex multiply."""
    cin, cout, m1, m2 = wr.shape
    r = jnp.transpose(wr, (2, 3, 0, 1)).reshape(m1 * m2, cin, cout)
    i = jnp.transpose(wi, (2, 3, 0, 1)).reshape(m1 * m2, cin, cout)
    top = jnp.concatenate([r, i], axis=2)
    bot = jnp.concatenate([-i, r], axis=2)
    return jnp.concatenate([top, bot], axis=1)


def init_params(key, t_in, width, m1, m2, stacks):
    keys = iter(jax.random.split(key, 6 + 6 * stacks))

    def u(shape, lo, hi):
        return jax.random.uniform(next(keys), shape, jnp.float32, lo, hi)

    spec_scale = 1.0 / (width * width)
    fc0_w = u((t_in + 2, width), -0.1, 0.1)
    params = {
        "fc0_w_main": fc0_w[:t_in],                 # applied to t_in channels
        "fc0_w_grid": fc0_w[t_in:],                 # applied to (gridx, gridy)
        "fc0_b": u((width,), -0.1, 0.1),
        "fc1_w": u((width, 128), -0.1, 0.1).astype(jnp.bfloat16),
        "fc1_b": u((128,), -0.1, 0.1),
        "fc2_w": u((128, 1), -0.1, 0.1),
        "fc2_b": u((1,), -0.1, 0.1),
        "stacks": [],
    }
    for _ in range(stacks):
        w1r = u((width, width, m1, m2), 0.0, spec_scale)
        w1i = u((width, width, m1, m2), 0.0, spec_scale)
        w2r = u((width, width, m1, m2), 0.0, spec_scale)
        w2i = u((width, width, m1, m2), 0.0, spec_scale)
        params["stacks"].append({
            "spec_w": jnp.concatenate(
                [_pack_complex_weight(w1r, w1i), _pack_complex_weight(w2r, w2i)],
                axis=0),
            # 1x1 conv stored as (in, out) bf16; bias (out,) f32.
            "conv_w": u((width, width), -0.1, 0.1).astype(jnp.bfloat16),
            "conv_b": u((width,), -0.1, 0.1),
        })
    return params


if __name__ == "__main__":
    # Small, forward-consistent shapes: input (B, x, y, t_in), output (B, x, y, 1).
    B, X, Y = 2, 16, 16
    T_IN = 4
    WIDTH = 32
    MODES = 4
    STACKS = 4

    params = init_params(jax.random.PRNGKey(0), T_IN, WIDTH, MODES, MODES, STACKS)
    x = jax.random.normal(jax.random.PRNGKey(1), (B, X, Y, T_IN), dtype=jnp.float32)

    fwd = jax.jit(lambda inp, p: fno2d_forward(inp, p, MODES, MODES))
    out = fwd(x, params)
    jax.block_until_ready(out)

    assert out.shape == (B, X, Y, 1), out.shape
    assert out.dtype == jnp.float32
    assert bool(jnp.all(jnp.isfinite(out)))
    print("KERNEL_OK")
</pallas_src>

<mosaic_0001>
module attributes {stable_mosaic.version = 11 : i64} {
  func.func @_linear_kernel(%arg0: i32, %arg1: memref<512x4xf32, #tpu.memory_space<vmem>>, %arg2: memref<4x32xf32, #tpu.memory_space<vmem>>, %arg3: memref<1x32xf32, #tpu.memory_space<vmem>>, %arg4: memref<512x2xf32, #tpu.memory_space<vmem>>, %arg5: memref<2x32xf32, #tpu.memory_space<vmem>>, %arg6: memref<512x32xbf16, #tpu.memory_space<vmem>>) attributes {dimension_semantics = [#tpu.dimension_semantics<parallel>], iteration_bounds = array<i64: 1>, scalar_prefetch = 0 : i64, scratch_operands = 0 : i64, tpu.core_type = #tpu.core_type<tc>, window_params = [{transform_indices = @transform_0, window_bounds = array<i64: 512, 4>}, {pipeline_mode = #tpu.pipeline_mode<synchronous>, transform_indices = @transform_1, window_bounds = array<i64: 4, 32>}, {pipeline_mode = #tpu.pipeline_mode<synchronous>, transform_indices = @transform_2, window_bounds = array<i64: 1, 32>}, {transform_indices = @transform_3, window_bounds = array<i64: 512, 2>}, {pipeline_mode = #tpu.pipeline_mode<synchronous>, transform_indices = @transform_4, window_bounds = array<i64: 2, 32>}, {transform_indices = @transform_5, window_bounds = array<i64: 512, 32>}]} {
    %c0 = arith.constant 0 : index
    %c0_0 = arith.constant 0 : index
    %0 = vector.load %arg1[%c0, %c0_0] : memref<512x4xf32, #tpu.memory_space<vmem>>, vector<512x4xf32>
    %c0_1 = arith.constant 0 : index
    %c0_2 = arith.constant 0 : index
    %1 = vector.load %arg2[%c0_1, %c0_2] : memref<4x32xf32, #tpu.memory_space<vmem>>, vector<4x32xf32>
    %cst = arith.constant dense<0.000000e+00> : vector<512x32xf32>
    %2 = tpu.matmul %0, %1, %cst {dimension_numbers = #tpu.dot_dimension_numbers<[1], [0], [0], [1], [0, 0, 1, 1], [], []>} : vector<512x4xf32>, vector<4x32xf32>, vector<512x32xf32> -> vector<512x32xf32>
    %c0_3 = arith.constant 0 : index
    %c0_4 = arith.constant 0 : index
    %3 = vector.load %arg3[%c0_3, %c0_4] : memref<1x32xf32, #tpu.memory_space<vmem>>, vector<1x32xf32>
    %4 = vector.broadcast %3 : vector<1x32xf32> to vector<512x32xf32>
    %5 = arith.addf %2, %4 : vector<512x32xf32>
    %c0_5 = arith.constant 0 : index
    %c0_6 = arith.constant 0 : index
    %6 = vector.load %arg4[%c0_5, %c0_6] : memref<512x2xf32, #tpu.memory_space<vmem>>, vector<512x2xf32>
    %c0_7 = arith.constant 0 : index
    %c0_8 = arith.constant 0 : index
    %7 = vector.load %arg5[%c0_7, %c0_8] : memref<2x32xf32, #tpu.memory_space<vmem>>, vector<2x32xf32>
    %cst_9 = arith.constant dense<0.000000e+00> : vector<512x32xf32>
    %8 = tpu.matmul %6, %7, %cst_9 {dimension_numbers = #tpu.dot_dimension_numbers<[1], [0], [0], [1], [0, 0, 1, 1], [], []>} : vector<512x2xf32>, vector<2x32xf32>, vector<512x32xf32> -> vector<512x32xf32>
    %9 = arith.addf %5, %8 : vector<512x32xf32>
    %10 = arith.truncf %9 : vector<512x32xf32> to vector<512x32xbf16>
    %c0_10 = arith.constant 0 : index
    %c0_11 = arith.constant 0 : index
    %11 = vector.load %arg6[%c0_10, %c0_11] : memref<512x32xbf16, #tpu.memory_space<vmem>>, vector<512x32xbf16>
    tpu.vector_store %arg6[%c0_10, %c0_11], %10 {strides = array<i32>} : memref<512x32xbf16, #tpu.memory_space<vmem>>, vector<512x32xbf16>,
    return
  }
  func.func @transform_0(%arg0: i32) -> (i32, i32) {
    %c0_i32 = arith.constant 0 : i32
    %c0_i32_0 = arith.constant 0 : i32
    return %arg0, %c0_i32 : i32, i32
  }
  func.func @transform_1(%arg0: i32) -> (i32, i32) {
    %c0_i32 = arith.constant 0 : i32
    %c0_i32_0 = arith.constant 0 : i32
    %c0_i32_1 = arith.constant 0 : i32
    return %c0_i32, %c0_i32_0 : i32, i32
  }
  func.func @transform_2(%arg0: i32) -> (i32, i32) {
    %c0_i32 = arith.constant 0 : i32
    %c0_i32_0 = arith.constant 0 : i32
    %c0_i32_1 = arith.constant 0 : i32
    return %c0_i32, %c0_i32_0 : i32, i32
  }
  func.func @transform_3(%arg0: i32) -> (i32, i32) {
    %c0_i32 = arith.constant 0 : i32
    %c0_i32_0 = arith.constant 0 : i32
    return %arg0, %c0_i32 : i32, i32
  }
  func.func @transform_4(%arg0: i32) -> (i32, i32) {
    %c0_i32 = arith.constant 0 : i32
    %c0_i32_0 = arith.constant 0 : i32
    %c0_i32_1 = arith.constant 0 : i32
    return %c0_i32, %c0_i32_0 : i32, i32
  }
  func.func @transform_5(%arg0: i32) -> (i32, i32) {
    %c0_i32 = arith.constant 0 : i32
    %c0_i32_0 = arith.constant 0 : i32
    return %arg0, %c0_i32 : i32, i32
  }
}

module attributes {stable_mosaic.version = 11 : i64} {
  func.func @_mode_mix_kernel(%arg0: i32, %arg1: memref<32x2x64xf32, #tpu.memory_space<vmem>>, %arg2: memref<32x64x64xf32, #tpu.memory_space<vmem>>, %arg3: memref<32x2x64xf32, #tpu.memory_space<vmem>>) attributes {dimension_semantics = [#tpu.dimension_semantics<parallel>], iteration_bounds = array<i64: 1>, scalar_prefetch = 0 : i64, scratch_operands = 0 : i64, tpu.core_type = #tpu.core_type<tc>, window_params = [{transform_indices = @transform_0, window_bounds = array<i64: 32, 2, 64>}, {transform_indices = @transform_1, window_bounds = array<i64: 32, 64, 64>}, {transform_indices = @transform_2, window_bounds = array<i64: 32, 2, 64>}]} {
    %c0 = arith.constant 0 : index
    %c0_0 = arith.constant 0 : index
    %c0_1 = arith.constant 0 : index
    %0 = vector.load %arg1[%c0, %c0_0, %c0_1] : memref<32x2x64xf32, #tpu.memory_space<vmem>>, vector<32x2x64xf32>
    %c0_2 = arith.constant 0 : index
    %c0_3 = arith.constant 0 : index
    %c0_4 = arith.constant 0 : index
    %1 = vector.load %arg2[%c0_2, %c0_3, %c0_4] : memref<32x64x64xf32, #tpu.memory_space<vmem>>, vector<32x64x64xf32>
    "tpu.trace_start"() <{level = 10 : i32, message = "mbi,mio->mbo"}> : () -> ()
    %cst = arith.constant dense<0.000000e+00> : vector<32x2x64xf32>
    %2 = tpu.matmul %0, %1, %cst {dimension_numbers = #tpu.dot_dimension_numbers<[2], [1], [1], [2], [0, 0, 0, 1, 1, 2], [0], [0]>} : vector<32x2x64xf32>, vector<32x64x64xf32>, vector<32x2x64xf32> -> vector<32x2x64xf32>
    "tpu.trace_stop"() : () -> ()
    %c0_5 = arith.constant 0 : index
    %c0_6 = arith.constant 0 : index
    %c0_7 = arith.constant 0 : index
    %3 = vector.load %arg3[%c0_5, %c0_6, %c0_7] : memref<32x2x64xf32, #tpu.memory_space<vmem>>, vector<32x2x64xf32>
    tpu.vector_store %arg3[%c0_5, %c0_6, %c0_7], %2 {strides = array<i32>} : memref<32x2x64xf32, #tpu.memory_space<vmem>>, vector<32x2x64xf32>,
    return
  }
  func.func @transform_0(%arg0: i32) -> (i32, i32, i32) {
    %c0_i32 = arith.constant 0 : i32
    %c0_i32_0 = arith.constant 0 : i32
    %c0_i32_1 = arith.constant 0 : i32
    return %arg0, %c0_i32, %c0_i32_0 : i32, i32, i32
  }
  func.func @transform_1(%arg0: i32) -> (i32, i32, i32) {
    %c0_i32 = arith.constant 0 : i32
    %c0_i32_0 = arith.constant 0 : i32
    %c0_i32_1 = arith.constant 0 : i32
    return %arg0, %c0_i32, %c0_i32_0 : i32, i32, i32
  }
  func.func @transform_2(%arg0: i32) -> (i32, i32, i32) {
    %c0_i32 = arith.constant 0 : i32
    %c0_i32_0 = arith.constant 0 : i32
    %c0_i32_1 = arith.constant 0 : i32
    return %arg0, %c0_i32, %c0_i32_0 : i32, i32, i32
  }
}

module attributes {stable_mosaic.version = 11 : i64} {
  func.func @_linear_kernel(%arg0: i32, %arg1: memref<512x32xbf16, #tpu.memory_space<vmem>>, %arg2: memref<32x32xbf16, #tpu.memory_space<vmem>>, %arg3: memref<1x32xf32, #tpu.memory_space<vmem>>, %arg4: memref<512x32xbf16, #tpu.memory_space<vmem>>, %arg5: memref<512x32xbf16, #tpu.memory_space<vmem>>) attributes {dimension_semantics = [#tpu.dimension_semantics<parallel>], iteration_bounds = array<i64: 1>, scalar_prefetch = 0 : i64, scratch_operands = 0 : i64, tpu.core_type = #tpu.core_type<tc>, window_params = [{transform_indices = @transform_0, window_bounds = array<i64: 512, 32>}, {pipeline_mode = #tpu.pipeline_mode<synchronous>, transform_indices = @transform_1, window_bounds = array<i64: 32, 32>}, {pipeline_mode = #tpu.pipeline_mode<synchronous>, transform_indices = @transform_2, window_bounds = array<i64: 1, 32>}, {transform_indices = @transform_3, window_bounds = array<i64: 512, 32>}, {transform_indices = @transform_4, window_bounds = array<i64: 512, 32>}]} {
    %c0 = arith.constant 0 : index
    %c0_0 = arith.constant 0 : index
    %0 = vector.load %arg1[%c0, %c0_0] : memref<512x32xbf16, #tpu.memory_space<vmem>>, vector<512x32xbf16>
    %c0_1 = arith.constant 0 : index
    %c0_2 = arith.constant 0 : index
    %1 = vector.load %arg2[%c0_1, %c0_2] : memref<32x32xbf16, #tpu.memory_space<vmem>>, vector<32x32xbf16>
    %cst = arith.constant dense<0.000000e+00> : vector<512x32xf32>
    %2 = tpu.matmul %0, %1, %cst {dimension_numbers = #tpu.dot_dimension_numbers<[1], [0], [0], [1], [0, 0, 1, 1], [], []>} : vector<512x32xbf16>, vector<32x32xbf16>, vector<512x32xf32> -> vector<512x32xf32>
    %c0_3 = arith.constant 0 : index
    %c0_4 = arith.constant 0 : index
    %3 = vector.load %arg3[%c0_3, %c0_4] : memref<1x32xf32, #tpu.memory_space<vmem>>, vector<1x32xf32>
    %4 = vector.broadcast %3 : vector<1x32xf32> to vector<512x32xf32>
    %5 = arith.addf %2, %4 : vector<512x32xf32>
    %c0_5 = arith.constant 0 : index
    %c0_6 = arith.constant 0 : index
    %6 = vector.load %arg4[%c0_5, %c0_6] : memref<512x32xbf16, #tpu.memory_space<vmem>>, vector<512x32xbf16>
    %7 = arith.extf %6 : vector<512x32xbf16> to vector<512x32xf32>
    %8 = arith.addf %5, %7 : vector<512x32xf32>
    %cst_7 = arith.constant 5.000000e-01 : f32
    %9 = vector.broadcast %cst_7 : f32 to vector<512x32xf32>
    %10 = arith.mulf %9, %8 : vector<512x32xf32>
    %cst_8 = arith.constant 4.471500e-02 : f32
    %11 = vector.broadcast %cst_8 : f32 to vector<512x32xf32>
    %12 = arith.mulf %11, %8 : vector<512x32xf32>
    %13 = arith.mulf %12, %8 : vector<512x32xf32>
    %14 = arith.mulf %13, %8 : vector<512x32xf32>
    %15 = arith.addf %8, %14 : vector<512x32xf32>
    %cst_9 = arith.constant 0.797884583 : f32
    %16 = vector.broadcast %cst_9 : f32 to vector<512x32xf32>
    %17 = arith.mulf %16, %15 : vector<512x32xf32>
    %18 = math.tanh %17 : vector<512x32xf32>
    %cst_10 = arith.constant 1.000000e+00 : f32
    %19 = vector.broadcast %cst_10 : f32 to vector<512x32xf32>
    %20 = arith.addf %19, %18 : vector<512x32xf32>
    %21 = arith.mulf %10, %20 : vector<512x32xf32>
    %22 = arith.truncf %21 : vector<512x32xf32> to vector<512x32xbf16>
    %c0_11 = arith.constant 0 : index
    %c0_12 = arith.constant 0 : index
    %23 = vector.load %arg5[%c0_11, %c0_12] : memref<512x32xbf16, #tpu.memory_space<vmem>>, vector<512x32xbf16>
    tpu.vector_store %arg5[%c0_11, %c0_12], %22 {strides = array<i32>} : memref<512x32xbf16, #tpu.memory_space<vmem>>, vector<512x32xbf16>,
    return
  }
  func.func @transform_0(%arg0: i32) -> (i32, i32) {
    %c0_i32 = arith.constant 0 : i32
    %c0_i32_0 = arith.constant 0 : i32
    return %arg0, %c0_i32 : i32, i32
  }
  func.func @transform_1(%arg0: i32) -> (i32, i32) {
    %c0_i32 = arith.constant 0 : i32
    %c0_i32_0 = arith.constant 0 : i32
    %c0_i32_1 = arith.constant 0 : i32
    return %c0_i32, %c0_i32_0 : i32, i32
  }
  func.func @transform_2(%arg0: i32) -> (i32, i32) {
    %c0_i32 = arith.constant 0 : i32
    %c0_i32_0 = arith.constant 0 : i32
    %c0_i32_1 = arith.constant 0 : i32
    return %c0_i32, %c0_i32_0 : i32, i32
  }
  func.func @transform_3(%arg0: i32) -> (i32, i32) {
    %c0_i32 = arith.constant 0 : i32
    %c0_i32_0 = arith.constant 0 : i32
    return %arg0, %c0_i32 : i32, i32
  }
  func.func @transform_4(%arg0: i32) -> (i32, i32) {
    %c0_i32 = arith.constant 0 : i32
    %c0_i32_0 = arith.constant 0 : i32
    return %arg0, %c0_i32 : i32, i32
  }
}

module attributes {stable_mosaic.version = 11 : i64} {
  func.func @_linear_kernel(%arg0: i32, %arg1: memref<512x32xbf16, #tpu.memory_space<vmem>>, %arg2: memref<32x32xbf16, #tpu.memory_space<vmem>>, %arg3: memref<1x32xf32, #tpu.memory_space<vmem>>, %arg4: memref<512x32xbf16, #tpu.memory_space<vmem>>, %arg5: memref<512x32xbf16, #tpu.memory_space<vmem>>) attributes {dimension_semantics = [#tpu.dimension_semantics<parallel>], iteration_bounds = array<i64: 1>, scalar_prefetch = 0 : i64, scratch_operands = 0 : i64, tpu.core_type = #tpu.core_type<tc>, window_params = [{transform_indices = @transform_0, window_bounds = array<i64: 512, 32>}, {pipeline_mode = #tpu.pipeline_mode<synchronous>, transform_indices = @transform_1, window_bounds = array<i64: 32, 32>}, {pipeline_mode = #tpu.pipeline_mode<synchronous>, transform_indices = @transform_2, window_bounds = array<i64: 1, 32>}, {transform_indices = @transform_3, window_bounds = array<i64: 512, 32>}, {transform_indices = @transform_4, window_bounds = array<i64: 512, 32>}]} {
    %c0 = arith.constant 0 : index
    %c0_0 = arith.constant 0 : index
    %0 = vector.load %arg1[%c0, %c0_0] : memref<512x32xbf16, #tpu.memory_space<vmem>>, vector<512x32xbf16>
    %c0_1 = arith.constant 0 : index
    %c0_2 = arith.constant 0 : index
    %1 = vector.load %arg2[%c0_1, %c0_2] : memref<32x32xbf16, #tpu.memory_space<vmem>>, vector<32x32xbf16>
    %cst = arith.constant dense<0.000000e+00> : vector<512x32xf32>
    %2 = tpu.matmul %0, %1, %cst {dimension_numbers = #tpu.dot_dimension_numbers<[1], [0], [0], [1], [0, 0, 1, 1], [], []>} : vector<512x32xbf16>, vector<32x32xbf16>, vector<512x32xf32> -> vector<512x32xf32>
    %c0_3 = arith.constant 0 : index
    %c0_4 = arith.constant 0 : index
    %3 = vector.load %arg3[%c0_3, %c0_4] : memref<1x32xf32, #tpu.memory_space<vmem>>, vector<1x32xf32>
    %4 = vector.broadcast %3 : vector<1x32xf32> to vector<512x32xf32>
    %5 = arith.addf %2, %4 : vector<512x32xf32>
    %c0_5 = arith.constant 0 : index
    %c0_6 = arith.constant 0 : index
    %6 = vector.load %arg4[%c0_5, %c0_6] : memref<512x32xbf16, #tpu.memory_space<vmem>>, vector<512x32xbf16>
    %7 = arith.extf %6 : vector<512x32xbf16> to vector<512x32xf32>
    %8 = arith.addf %5, %7 : vector<512x32xf32>
    %9 = arith.truncf %8 : vector<512x32xf32> to vector<512x32xbf16>
    %c0_7 = arith.constant 0 : index
    %c0_8 = arith.constant 0 : index
    %10 = vector.load %arg5[%c0_7, %c0_8] : memref<512x32xbf16, #tpu.memory_space<vmem>>, vector<512x32xbf16>
    tpu.vector_store %arg5[%c0_7, %c0_8], %9 {strides = array<i32>} : memref<512x32xbf16, #tpu.memory_space<vmem>>, vector<512x32xbf16>,
    return
  }
  func.func @transform_0(%arg0: i32) -> (i32, i32) {
    %c0_i32 = arith.constant 0 : i32
    %c0_i32_0 = arith.constant 0 : i32
    return %arg0, %c0_i32 : i32, i32
  }
  func.func @transform_1(%arg0: i32) -> (i32, i32) {
    %c0_i32 = arith.constant 0 : i32
    %c0_i32_0 = arith.constant 0 : i32
    %c0_i32_1 = arith.constant 0 : i32
    return %c0_i32, %c0_i32_0 : i32, i32
  }
  func.func @transform_2(%arg0: i32) -> (i32, i32) {
    %c0_i32 = arith.constant 0 : i32
    %c0_i32_0 = arith.constant 0 : i32
    %c0_i32_1 = arith.constant 0 : i32
    return %c0_i32, %c0_i32_0 : i32, i32
  }
  func.func @transform_3(%arg0: i32) -> (i32, i32) {
    %c0_i32 = arith.constant 0 : i32
    %c0_i32_0 = arith.constant 0 : i32
    return %arg0, %c0_i32 : i32, i32
  }
  func.func @transform_4(%arg0: i32) -> (i32, i32) {
    %c0_i32 = arith.constant 0 : i32
    %c0_i32_0 = arith.constant 0 : i32
    return %arg0, %c0_i32 : i32, i32
  }
}

module attributes {stable_mosaic.version = 11 : i64} {
  func.func @_head_kernel(%arg0: i32, %arg1: memref<512x32xbf16, #tpu.memory_space<vmem>>, %arg2: memref<32x128xbf16, #tpu.memory_space<vmem>>, %arg3: memref<1x128xf32, #tpu.memory_space<vmem>>, %arg4: memref<1x1x128xf32, #tpu.memory_space<vmem>>, %arg5: memref<1x1xf32, #tpu.memory_space<vmem>>, %arg6: memref<1x4x128xf32, #tpu.memory_space<vmem>>) attributes {dimension_semantics = [#tpu.dimension_semantics<parallel>], iteration_bounds = array<i64: 1>, scalar_prefetch = 0 : i64, scratch_operands = 0 : i64, tpu.core_type = #tpu.core_type<tc>, window_params = [{transform_indices = @transform_0, window_bounds = array<i64: 512, 32>}, {pipeline_mode = #tpu.pipeline_mode<synchronous>, transform_indices = @transform_1, window_bounds = array<i64: 32, 128>}, {pipeline_mode = #tpu.pipeline_mode<synchronous>, transform_indices = @transform_2, window_bounds = array<i64: 1, 128>}, {pipeline_mode = #tpu.pipeline_mode<synchronous>, transform_indices = @transform_3, window_bounds = array<i64: 1, 1, 128>}, {pipeline_mode = #tpu.pipeline_mode<synchronous>, transform_indices = @transform_4, window_bounds = array<i64: 1, 1>}, {transform_indices = @transform_5, window_bounds = array<i64: 1, 4, 128>}]} {
    %c0 = arith.constant 0 : index
    %c0_0 = arith.constant 0 : index
    %0 = vector.load %arg1[%c0, %c0_0] : memref<512x32xbf16, #tpu.memory_space<vmem>>, vector<512x32xbf16>
    %c0_1 = arith.constant 0 : index
    %c0_2 = arith.constant 0 : index
    %1 = vector.load %arg2[%c0_1, %c0_2] : memref<32x128xbf16, #tpu.memory_space<vmem>>, vector<32x128xbf16>
    %cst = arith.constant dense<0.000000e+00> : vector<512x128xf32>
    %2 = tpu.matmul %0, %1, %cst {dimension_numbers = #tpu.dot_dimension_numbers<[1], [0], [0], [1], [0, 0, 1, 1], [], []>} : vector<512x32xbf16>, vector<32x128xbf16>, vector<512x128xf32> -> vector<512x128xf32>
    %c0_3 = arith.constant 0 : index
    %c0_4 = arith.constant 0 : index
    %3 = vector.load %arg3[%c0_3, %c0_4] : memref<1x128xf32, #tpu.memory_space<vmem>>, vector<1x128xf32>
    %4 = vector.broadcast %3 : vector<1x128xf32> to vector<512x128xf32>
    %5 = arith.addf %2, %4 : vector<512x128xf32>
    %cst_5 = arith.constant 5.000000e-01 : f32
    %6 = vector.broadcast %cst_5 : f32 to vector<512x128xf32>
    %7 = arith.mulf %6, %5 : vector<512x128xf32>
    %cst_6 = arith.constant 4.471500e-02 : f32
    %8 = vector.broadcast %cst_6 : f32 to vector<512x128xf32>
    %9 = arith.mulf %8, %5 : vector<512x128xf32>
    %10 = arith.mulf %9, %5 : vector<512x128xf32>
    %11 = arith.mulf %10, %5 : vector<512x128xf32>
    %12 = arith.addf %5, %11 : vector<512x128xf32>
    %cst_7 = arith.constant 0.797884583 : f32
    %13 = vector.broadcast %cst_7 : f32 to vector<512x128xf32>
    %14 = arith.mulf %13, %12 : vector<512x128xf32>
    %15 = math.tanh %14 : vector<512x128xf32>
    %cst_8 = arith.constant 1.000000e+00 : f32
    %16 = vector.broadcast %cst_8 : f32 to vector<512x128xf32>
    %17 = arith.addf %16, %15 : vector<512x128xf32>
    %18 = arith.mulf %7, %17 : vector<512x128xf32>
    %19 = vector.shape_cast %18 : vector<512x128xf32> to vector<4x128x128xf32>
    %c0_9 = arith.constant 0 : index
    %c0_10 = arith.constant 0 : index
    %c0_11 = arith.constant 0 : index
    %20 = vector.load %arg4[%c0_9, %c0_10, %c0_11] : memref<1x1x128xf32, #tpu.memory_space<vmem>>, vector<1x1x128xf32>
    %21 = vector.broadcast %20 : vector<1x1x128xf32> to vector<4x128x128xf32>
    %22 = arith.mulf %19, %21 : vector<4x128x128xf32>
    %cst_12 = arith.constant dense<0.000000e+00> : vector<4x128xf32>
    %23 = vector.multi_reduction <add>, %22, %cst_12 [2] : vector<4x128x128xf32> to vector<4x128xf32>
    %c0_13 = arith.constant 0 : index
    %c0_14 = arith.constant 0 : index
    %24 = vector.load %arg5[%c0_13, %c0_14] : memref<1x1xf32, #tpu.memory_space<vmem>>, vector<1x1xf32>
    %25 = vector.broadcast %24 : vector<1x1xf32> to vector<4x128xf32>
    %26 = arith.addf %23, %25 : vector<4x128xf32>
    %27 = vector.shape_cast %26 : vector<4x128xf32> to vector<1x4x128xf32>
    %c0_15 = arith.constant 0 : index
    %c0_16 = arith.constant 0 : index
    %c0_17 = arith.constant 0 : index
    %28 = vector.load %arg6[%c0_15, %c0_16, %c0_17] : memref<1x4x128xf32, #tpu.memory_space<vmem>>, vector<1x4x128xf32>
    tpu.vector_store %arg6[%c0_15, %c0_16, %c0_17], %27 {strides = array<i32>} : memref<1x4x128xf32, #tpu.memory_space<vmem>>, vector<1x4x128xf32>,
    return
  }
  func.func @transform_0(%arg0: i32) -> (i32, i32) {
    %c0_i32 = arith.constant 0 : i32
    %c0_i32_0 = arith.constant 0 : i32
    return %arg0, %c0_i32 : i32, i32
  }
  func.func @transform_1(%arg0: i32) -> (i32, i32) {
    %c0_i32 = arith.constant 0 : i32
    %c0_i32_0 = arith.constant 0 : i32
    %c0_i32_1 = arith.constant 0 : i32
    return %c0_i32, %c0_i32_0 : i32, i32
  }
  func.func @transform_2(%arg0: i32) -> (i32, i32) {
    %c0_i32 = arith.constant 0 : i32
    %c0_i32_0 = arith.constant 0 : i32
    %c0_i32_1 = arith.constant 0 : i32
    return %c0_i32, %c0_i32_0 : i32, i32
  }
  func.func @transform_3(%arg0: i32) -> (i32, i32, i32) {
    %c0_i32 = arith.constant 0 : i32
    %c0_i32_0 = arith.constant 0 : i32
    %c0_i32_1 = arith.constant 0 : i32
    %c0_i32_2 = arith.constant 0 : i32
    return %c0_i32, %c0_i32_0, %c0_i32_1 : i32, i32, i32
  }
  func.func @transform_4(%arg0: i32) -> (i32, i32) {
    %c0_i32 = arith.constant 0 : i32
    %c0_i32_0 = arith.constant 0 : i32
    %c0_i32_1 = arith.constant 0 : i32
    return %c0_i32, %c0_i32_0 : i32, i32
  }
  func.func @transform_5(%arg0: i32) -> (i32, i32, i32) {
    %c0_i32 = arith.constant 0 : i32
    %c0_i32_0 = arith.constant 0 : i32
    %c0_i32_1 = arith.constant 0 : i32
    return %arg0, %c0_i32, %c0_i32_0 : i32, i32, i32
  }
}

</mosaic_0001>

<bundles_post_ra>
// kernel: _lambda_.10
= control target key start
LH: loop header
LB: loop body
LE: loop exit
PB: predicated region body
PF: predicated region fallthrough
CT: control target
= control target key end

     0   :  { %vm282_vm0 = vcmask 1043456   ;;  %vm89_vm1 = vcmask 31744   ;;  %vm753_vm2 = vcmask 1041408   ;;  %vm560_vm3 = vcmask 15360   ;;  %s2171_s1 = inlined_call_operand.vmem [shape: f32[4,32], index: 1, kind: input, shape index: {}]   ;;  %s2172_s0 = inlined_call_operand.vmem [shape: f32[512,4], index: 0, kind: input, shape index: {}]   ;;  %s2173_s4 = inlined_call_operand.vmem [shape: f32[2,32], index: 4, kind: input, shape index: {}]   ;;  %s2174_s3 = inlined_call_operand.vmem [shape: f32[512,2], index: 3, kind: input, shape index: {}]   ;;  %s2175_s2 = inlined_call_operand.vmem [shape: f32[1,32], index: 2, kind: input, shape index: {}]   ;;  %s2176_s5 = inlined_call_operand.vmem [shape: bf16[512,32], index: 5, kind: output, shape index: {}]  }
   0x1   :  { %v84_v0 = vld [vmem:[%s2171_s1] sm:$0xf]  ;;  %v53_v6 = vld [vmem:[%s2172_s0 + $0x108] sm:$0xff]  ;;  %v54_v10 = vld [vmem:[%s2172_s0 + $0x110] sm:$0xff]  ;;  %vm1094_vm4 = vcmask 257024  }
   0x2   :  { %v52_v1 = vld [vmem:[%s2172_s0 + $0x100] sm:$0xff]  ;;  %1293 = vmatpush.msk.msra.mxu2 %vm282_vm0, %v84_v0  ;;  %1163 = vmatpush.msk.msra.mxu0 %vm282_vm0, %v84_v0  ;;  %v528_v7 = vld [vmem:[%s2174_s3 + $0x108] sm:$0xff]  ;;  %v529_v11 = vld [vmem:[%s2174_s3 + $0x110] sm:$0xff] }
   0x3   :  { %v559_v2 = vld [vmem:[%s2173_s4] sm:$0x3]  ;;  %1196 = vmatmul.msk.f32.vlgmr.msra.gmra.mxu2 %vm89_vm1, %v52_v1  ;;  %v21_v8 = vld [vmem:[%s2172_s0 + $0x8] sm:$0xff]  ;;  %v22_v12 = vld [vmem:[%s2172_s0 + $0x10] sm:$0xff] }
   0x4   :  { %1294 = vmatpush.msk.msra.mxu3 %vm753_vm2, %v559_v2  ;;  %v527_v3 = vld [vmem:[%s2174_s3 + $0x100] sm:$0xff]  ;;  %1228 = vmatpush.msk.msra.mxu1 %vm753_vm2, %v559_v2  ;;  %v496_v9 = vld [vmem:[%s2174_s3 + $0x8] sm:$0xff]  ;;  %v497_v13 = vld [vmem:[%s2174_s3 + $0x10] sm:$0xff] }
   0x5   :  { %v20_v4 = vld [vmem:[%s2172_s0] sm:$0xff]  ;;  %1261 = vmatmul.msk.f32.vlgmr.msra.gmra.mxu3 %vm560_vm3, %v527_v3  ;;  %v55_v14 = vld [vmem:[%s2172_s0 + $0x118] sm:$0xff]  ;;  %v57_v22 = vld [vmem:[%s2172_s0 + $0x128] sm:$0xff] }
   0x6   :  { %v495_v5 = vld [vmem:[%s2174_s3] sm:$0xff]  ;;  %1164 = vmatmul.msk.f32.vlgmr.msra.gmra.mxu0 %vm89_vm1, %v20_v4  ;;  %v530_v15 = vld [vmem:[%s2174_s3 + $0x118] sm:$0xff]  ;;  %v532_v23 = vld [vmem:[%s2174_s3 + $0x128] sm:$0xff] }
   0x7   :  { %1229 = vmatmul.msk.f32.vlgmr.msra.gmra.mxu1 %vm560_vm3, %v495_v5  ;;  %v23_v16 = vld [vmem:[%s2172_s0 + $0x18] sm:$0xff]  ;;  %v56_v18 = vld [vmem:[%s2172_s0 + $0x120] sm:$0xff]  ;;  %v25_v24 = vld [vmem:[%s2172_s0 + $0x28] sm:$0xff] }
   0x8   :  { %v498_v17 = vld [vmem:[%s2174_s3 + $0x18] sm:$0xff]  ;;  %v531_v19 = vld [vmem:[%s2174_s3 + $0x120] sm:$0xff]  ;;  %v500_v25 = vld [vmem:[%s2174_s3 + $0x28] sm:$0xff] }
   0x9   :  { %v24_v20 = vld [vmem:[%s2172_s0 + $0x20] sm:$0xff]  ;;  %v58_v26 = vld [vmem:[%s2172_s0 + $0x130] sm:$0xff]  ;;  %v59_v30 = vld [vmem:[%s2172_s0 + $0x138] sm:$0xff] }
   0xa   :  { %v499_v21 = vld [vmem:[%s2174_s3 + $0x20] sm:$0xff]  ;;  %v533_v27 = vld [vmem:[%s2174_s3 + $0x130] sm:$0xff]  ;;  %v534_v31 = vld [vmem:[%s2174_s3 + $0x138] sm:$0xff] }
   0xb   :  { %1197 = vmatmul.msk.f32.gmra.mxu2 %vm89_vm1, %v53_v6  ;;  %v26_v28 = vld [vmem:[%s2172_s0 + $0x30] sm:$0xff]  ;;  %v27_v32 = vld [vmem:[%s2172_s0 + $0x38] sm:$0xff]  ;;  %v60_v34 = vld [vmem:[%s2172_s0 + $0x140] sm:$0xff] }
   0xc   :  { %v501_v29 = vld [vmem:[%s2174_s3 + $0x30] sm:$0xff]  ;;  %v502_v33 = vld [vmem:[%s2174_s3 + $0x38] sm:$0xff]  ;;  %v535_v35 = vld [vmem:[%s2174_s3 + $0x140] sm:$0xff] }
   0xd   :  { %1262 = vmatmul.msk.f32.gmra.mxu3 %vm560_vm3, %v528_v7  ;;  %v28_v36 = vld [vmem:[%s2172_s0 + $0x40] sm:$0xff]  ;;  %v61_v38 = vld [vmem:[%s2172_s0 + $0x148] sm:$0xff]  ;;  %v62_v42 = vld [vmem:[%s2172_s0 + $0x150] sm:$0xff] }
   0xe   :  { %1165 = vmatmul.msk.f32.gmra.mxu0 %vm89_vm1, %v21_v8  ;;  %v503_v37 = vld [vmem:[%s2174_s3 + $0x40] sm:$0xff]  ;;  %v536_v39 = vld [vmem:[%s2174_s3 + $0x148] sm:$0xff]  ;;  %v537_v43 = vld [vmem:[%s2174_s3 + $0x150] sm:$0xff] }
   0xf   :  { %1230 = vmatmul.msk.f32.gmra.mxu1 %vm560_vm3, %v496_v9  ;;  %v29_v40 = vld [vmem:[%s2172_s0 + $0x48] sm:$0xff]  ;;  %v30_v44 = vld [vmem:[%s2172_s0 + $0x50] sm:$0xff]  ;;  %v63_v46 = vld [vmem:[%s2172_s0 + $0x158] sm:$0xff] }
  0x10   :  { %v504_v41 = vld [vmem:[%s2174_s3 + $0x48] sm:$0xff]  ;;  %v505_v45 = vld [vmem:[%s2174_s3 + $0x50] sm:$0xff]  ;;  %v538_v47 = vld [vmem:[%s2174_s3 + $0x158] sm:$0xff] }
  0x11   :  { %v31_v48 = vld [vmem:[%s2172_s0 + $0x58] sm:$0xff]  ;;  %v64_v50 = vld [vmem:[%s2172_s0 + $0x160] sm:$0xff]  ;;  %v65_v54 = vld [vmem:[%s2172_s0 + $0x168] sm:$0xff] }
  0x12   :  { %v506_v49 = vld [vmem:[%s2174_s3 + $0x58] sm:$0xff]  ;;  %v539_v51 = vld [vmem:[%s2174_s3 + $0x160] sm:$0xff]  ;;  %v540_v55 = vld [vmem:[%s2174_s3 + $0x168] sm:$0xff] }
  0x13   :  { %1198 = vmatmul.msk.f32.gmra.mxu2 %vm89_vm1, %v54_v10  ;;  %v32_v52 = vld [vmem:[%s2172_s0 + $0x60] sm:$0xff]  ;;  %v33_v56 = vld [vmem:[%s2172_s0 + $0x68] sm:$0xff]  ;;  %v66_v58 = vld [vmem:[%s2172_s0 + $0x170] sm:$0xff] }
  0x14   :  { %v507_v53 = vld [vmem:[%s2174_s3 + $0x60] sm:$0xff]  ;;  %v508_v57 = vld [vmem:[%s2174_s3 + $0x68] sm:$0xff]  ;;  %v541_v59 = vld [vmem:[%s2174_s3 + $0x170] sm:$0xff] }
  0x15   :  { %1263 = vmatmul.msk.f32.gmra.mxu3 %vm560_vm3, %v529_v11  ;;  %v34_v60 = vld [vmem:[%s2172_s0 + $0x70] sm:$0xff]  ;;  %v67_v62 = vld [vmem:[%s2172_s0 + $0x178] sm:$0xff]  ;;  %v1593_v2 = vld [vmem:[%s2175_s2] ss:$0 sm:$0xff] }
  0x16   :  { %1166 = vmatmul.msk.f32.gmra.mxu0 %vm89_vm1, %v22_v12  ;;  %v509_v61 = vld [vmem:[%s2174_s3 + $0x70] sm:$0xff]  ;;  %v542_v63 = vld [vmem:[%s2174_s3 + $0x178] sm:$0xff]  ;;  %v68_v3 = vld [vmem:[%s2172_s0 + $0x180] sm:$0xff] }
  0x17   :  { %1231 = vmatmul.msk.f32.gmra.mxu1 %vm560_vm3, %v497_v13  ;;  %v35_v0 = vld [vmem:[%s2172_s0 + $0x78] sm:$0xff]  ;;  %v543_v4 = vld [vmem:[%s2174_s3 + $0x180] sm:$0xff] }
  0x18   :  { %v510_v1 = vld [vmem:[%s2174_s3 + $0x78] sm:$0xff]  ;;  %v36_v7 = vld [vmem:[%s2172_s0 + $0x80] sm:$0xff] }
  0x19   :  { %v511_v8 = vld [vmem:[%s2174_s3 + $0x80] sm:$0xff] }
  0x1b   :  { %1199 = vmatmul.msk.f32.gmra.mxu2 %vm89_vm1, %v55_v14 }
  0x1d   :  { %1264 = vmatmul.msk.f32.gmra.mxu3 %vm560_vm3, %v530_v15  ;;  %v69_v15 = vld [vmem:[%s2172_s0 + $0x188] sm:$0xff] }
  0x1e   :  { %1167 = vmatmul.msk.f32.gmra.mxu0 %vm89_vm1, %v23_v16  ;;  %v544_v16 = vld [vmem:[%s2174_s3 + $0x188] sm:$0xff] }
  0x1f   :  { %1232 = vmatmul.msk.f32.gmra.mxu1 %vm560_vm3, %v498_v17 }
  0x23   :  { %1200 = vmatmul.msk.f32.gmra.mxu2 %vm89_vm1, %v56_v18 }
  0x25   :  { %1265 = vmatmul.msk.f32.gmra.mxu3 %vm560_vm3, %v531_v19 }
  0x26   :  { %1168 = vmatmul.msk.f32.gmra.mxu0 %vm89_vm1, %v24_v20  ;;  %v37_v20 = vld [vmem:[%s2172_s0 + $0x88] sm:$0xff] }
  0x27   :  { %1233 = vmatmul.msk.f32.gmra.mxu1 %vm560_vm3, %v499_v21  ;;  %v512_v21 = vld [vmem:[%s2174_s3 + $0x88] sm:$0xff] }
  0x2b   :  { %1201 = vmatmul.msk.f32.gmra.mxu2 %vm89_vm1, %v57_v22 }
  0x2d   :  { %1266 = vmatmul.msk.f32.gmra.mxu3 %vm560_vm3, %v532_v23 }
  0x2e   :  { %1169 = vmatmul.msk.f32.gmra.mxu0 %vm89_vm1, %v25_v24 }
  0x2f   :  { %1234 = vmatmul.msk.f32.gmra.mxu1 %vm560_vm3, %v500_v25 }
  0x33   :  { %1202 = vmatmul.msk.f32.gmra.mxu2 %vm89_vm1, %v58_v26 }
  0x35   :  { %1267 = vmatmul.msk.f32.gmra.mxu3 %vm560_vm3, %v533_v27 }
  0x36   :  { %1170 = vmatmul.msk.f32.gmra.mxu0 %vm89_vm1, %v26_v28 }
  0x37   :  { %1235 = vmatmul.msk.f32.gmra.mxu1 %vm560_vm3, %v501_v29  ;;  %v70_v29 = vld [vmem:[%s2172_s0 + $0x190] sm:$0xff] }
  0x3b   :  { %1203 = vmatmul.msk.f32.gmra.mxu2 %vm89_vm1, %v59_v30  ;;  %v545_v30 = vld [vmem:[%s2174_s3 + $0x190] sm:$0xff] }
  0x3d   :  { %1268 = vmatmul.msk.f32.gmra.mxu3 %vm560_vm3, %v534_v31 }
  0x3e   :  { %1171 = vmatmul.msk.f32.gmra.mxu0 %vm89_vm1, %v27_v32 }
  0x3f   :  { %1236 = vmatmul.msk.f32.gmra.mxu1 %vm560_vm3, %v502_v33 }
  0x43   :  { %1204 = vmatmul.msk.f32.gmra.mxu2 %vm89_vm1, %v60_v34  ;;  %v38_v34 = vld [vmem:[%s2172_s0 + $0x90] sm:$0xff] }
  0x45   :  { %1269 = vmatmul.msk.f32.gmra.mxu3 %vm560_vm3, %v535_v35  ;;  %v513_v35 = vld [vmem:[%s2174_s3 + $0x90] sm:$0xff] }
  0x46   :  { %1172 = vmatmul.msk.f32.gmra.mxu0 %vm89_vm1, %v28_v36 }
  0x47   :  { %1237 = vmatmul.msk.f32.gmra.mxu1 %vm560_vm3, %v503_v37 }
  0x4b   :  { %1205 = vmatmul.msk.f32.gmra.mxu2 %vm89_vm1, %v61_v38 }
  0x4d   :  { %1270 = vmatmul.msk.f32.gmra.mxu3 %vm560_vm3, %v536_v39 }
  0x4e   :  { %1173 = vmatmul.msk.f32.gmra.mxu0 %vm89_vm1, %v29_v40 }
  0x4f   :  { %1238 = vmatmul.msk.f32.gmra.mxu1 %vm560_vm3, %v504_v41 }
  0x53   :  { %1206 = vmatmul.msk.f32.gmra.mxu2 %vm89_vm1, %v62_v42 }
  0x55   :  { %1271 = vmatmul.msk.f32.gmra.mxu3 %vm560_vm3, %v537_v43  ;;  %v71_v43 = vld [vmem:[%s2172_s0 + $0x198] sm:$0xff] }
  0x56   :  { %1174 = vmatmul.msk.f32.gmra.mxu0 %vm89_vm1, %v30_v44  ;;  %v546_v44 = vld [vmem:[%s2174_s3 + $0x198] sm:$0xff] }
  0x57   :  { %1239 = vmatmul.msk.f32.gmra.mxu1 %vm560_vm3, %v505_v45 }
  0x5b   :  { %1207 = vmatmul.msk.f32.gmra.mxu2 %vm89_vm1, %v63_v46 }
  0x5d   :  { %1272 = vmatmul.msk.f32.gmra.mxu3 %vm560_vm3, %v538_v47 }
  0x5e   :  { %1175 = vmatmul.msk.f32.gmra.mxu0 %vm89_vm1, %v31_v48  ;;  %v39_v48 = vld [vmem:[%s2172_s0 + $0x98] sm:$0xff] }
  0x5f   :  { %1240 = vmatmul.msk.f32.gmra.mxu1 %vm560_vm3, %v506_v49  ;;  %v514_v49 = vld [vmem:[%s2174_s3 + $0x98] sm:$0xff] }
  0x63   :  { %1208 = vmatmul.msk.f32.gmra.mxu2 %vm89_vm1, %v64_v50 }
  0x65   :  { %1273 = vmatmul.msk.f32.gmra.mxu3 %vm560_vm3, %v539_v51 }
  0x66   :  { %1176 = vmatmul.msk.f32.gmra.mxu0 %vm89_vm1, %v32_v52 }
  0x67   :  { %1241 = vmatmul.msk.f32.gmra.mxu1 %vm560_vm3, %v507_v53 }
  0x6b   :  { %1209 = vmatmul.msk.f32.gmra.mxu2 %vm89_vm1, %v65_v54 }
  0x6d   :  { %1274 = vmatmul.msk.f32.gmra.mxu3 %vm560_vm3, %v540_v55 }
  0x6e   :  { %1177 = vmatmul.msk.f32.gmra.mxu0 %vm89_vm1, %v33_v56 }
  0x6f   :  { %1242 = vmatmul.msk.f32.gmra.mxu1 %vm560_vm3, %v508_v57  ;;  %v72_v57 = vld [vmem:[%s2172_s0 + $0x1a0] sm:$0xff] }
  0x73   :  { %1210 = vmatmul.msk.f32.gmra.mxu2 %vm89_vm1, %v66_v58  ;;  %v547_v58 = vld [vmem:[%s2174_s3 + $0x1a0] sm:$0xff] }
  0x75   :  { %1275 = vmatmul.msk.f32.gmra.mxu3 %vm560_vm3, %v541_v59 }
  0x76   :  { %1178 = vmatmul.msk.f32.gmra.mxu0 %vm89_vm1, %v34_v60 }
  0x77   :  { %1243 = vmatmul.msk.f32.gmra.mxu1 %vm560_vm3, %v509_v61 }
  0x7b   :  { %1211 = vmatmul.msk.f32.gmra.mxu2 %vm89_vm1, %v67_v62  ;;  %v40_v62 = vld [vmem:[%s2172_s0 + $0xa0] sm:$0xff] }
  0x7d   :  { %1276 = vmatmul.msk.f32.gmra.mxu3 %vm560_vm3, %v542_v63  ;;  %v515_v63 = vld [vmem:[%s2174_s3 + $0xa0] sm:$0xff] }
  0x7e   :  { %1179 = vmatmul.msk.f32.gmra.mxu0 %vm89_vm1, %v35_v0 }
  0x7f   :  { %1244 = vmatmul.msk.f32.gmra.mxu1 %vm560_vm3, %v510_v1 }
  0x83   :  { %v303_v5 = vpop.f32.mrf.mxu0  ;;  %1212 = vmatmul.msk.f32.gmra.mxu2 %vm89_vm1, %v68_v3 }
  0x84   :  { %v774_v6 = vpop.f32.mrf.mxu1  ;;  %v304_v9 = vadd.f32 %v1593_v2, %v303_v5 }
  0x85   :  { %1277 = vmatmul.msk.f32.gmra.mxu3 %vm560_vm3, %v543_v4 }
  0x86   :  { %v966_v10 = vadd.f32 %v774_v6, %v304_v9  ;;  %1180 = vmatmul.msk.f32.gmra.mxu0 %vm89_vm1, %v36_v7  ;;  %v399_v11 = vpop.f32.mrf.mxu2  ;;  %v548_v9 = vld [vmem:[%s2174_s3 + $0x1a8] sm:$0xff] }
  0x87   :  { %1245 = vmatmul.msk.f32.gmra.mxu1 %vm560_vm3, %v511_v8  ;;  %v400_v13 = vadd.f32 %v1593_v2, %v399_v11  ;;  %v73_v8 = vld [vmem:[%s2172_s0 + $0x1a8] sm:$0xff] }
  0x88   :  { %v870_v12 = vpop.f32.mrf.mxu3  ;;  %v1030_v14 = vpack.c.bf16 %v966_v10, %v966_v10 }
  0x89   :  { %v998_v17 = vadd.f32 %v870_v12, %v400_v13  ;;  %v41_v13 = vld [vmem:[%s2172_s0 + $0xa8] sm:$0xff] }
  0x8a   :  { %1095 = vst.msk [vmem:[%s2176_s5] sm:$0xf] %vm1094_vm4, %v1030_v14  ;;  %v516_v14 = vld [vmem:[%s2174_s3 + $0xa8] sm:$0xff] }
  0x8b   :  { %v306_v18 = vpop.f32.mrf.mxu0  ;;  %v1062_v22 = vpack.c.bf16 %v998_v17, %v998_v17  ;;  %1213 = vmatmul.msk.f32.gmra.mxu2 %vm89_vm1, %v69_v15 }
  0x8c   :  { %v777_v19 = vpop.f32.mrf.mxu1  ;;  %v307_v23 = vadd.f32 %v1593_v2, %v306_v18 }
  0x8d   :  { %1278 = vmatmul.msk.f32.gmra.mxu3 %vm560_vm3, %v544_v16  ;;  %1127 = vst.msk [vmem:[%s2176_s5 + $0x80] sm:$0xf] %vm1094_vm4, %v1062_v22  ;;  %v74_v22 = vld [vmem:[%s2172_s0 + $0x1b0] sm:$0xff] }
  0x8e   :  { %v967_v24 = vadd.f32 %v777_v19, %v307_v23  ;;  %1181 = vmatmul.msk.f32.gmra.mxu0 %vm89_vm1, %v37_v20  ;;  %v402_v25 = vpop.f32.mrf.mxu2  ;;  %v549_v23 = vld [vmem:[%s2174_s3 + $0x1b0] sm:$0xff] }
  0x8f   :  { %1246 = vmatmul.msk.f32.gmra.mxu1 %vm560_vm3, %v512_v21  ;;  %v403_v27 = vadd.f32 %v1593_v2, %v402_v25 }
  0x90   :  { %v873_v26 = vpop.f32.mrf.mxu3  ;;  %v1031_v28 = vpack.c.bf16 %v967_v24, %v967_v24 }
  0x91   :  { %v999_v31 = vadd.f32 %v873_v26, %v403_v27  ;;  %v42_v27 = vld [vmem:[%s2172_s0 + $0xb0] sm:$0xff] }
  0x92   :  { %1096 = vst.msk [vmem:[%s2176_s5 + $0x4] sm:$0xf] %vm1094_vm4, %v1031_v28  ;;  %v517_v28 = vld [vmem:[%s2174_s3 + $0xb0] sm:$0xff] }
  0x93   :  { %v309_v32 = vpop.f32.mrf.mxu0  ;;  %v1063_v36 = vpack.c.bf16 %v999_v31, %v999_v31  ;;  %1214 = vmatmul.msk.f32.gmra.mxu2 %vm89_vm1, %v70_v29 }
  0x94   :  { %v780_v33 = vpop.f32.mrf.mxu1  ;;  %v310_v37 = vadd.f32 %v1593_v2, %v309_v32 }
  0x95   :  { %1279 = vmatmul.msk.f32.gmra.mxu3 %vm560_vm3, %v545_v30  ;;  %1128 = vst.msk [vmem:[%s2176_s5 + $0x84] sm:$0xf] %vm1094_vm4, %v1063_v36  ;;  %v75_v36 = vld [vmem:[%s2172_s0 + $0x1b8] sm:$0xff] }
  0x96   :  { %v968_v38 = vadd.f32 %v780_v33, %v310_v37  ;;  %1182 = vmatmul.msk.f32.gmra.mxu0 %vm89_vm1, %v38_v34  ;;  %v405_v39 = vpop.f32.mrf.mxu2  ;;  %v550_v37 = vld [vmem:[%s2174_s3 + $0x1b8] sm:$0xff] }
  0x97   :  { %1247 = vmatmul.msk.f32.gmra.mxu1 %vm560_vm3, %v513_v35  ;;  %v406_v41 = vadd.f32 %v1593_v2, %v405_v39 }
  0x98   :  { %v876_v40 = vpop.f32.mrf.mxu3  ;;  %v1032_v42 = vpack.c.bf16 %v968_v38, %v968_v38 }
  0x99   :  { %v1000_v45 = vadd.f32 %v876_v40, %v406_v41  ;;  %v43_v41 = vld [vmem:[%s2172_s0 + $0xb8] sm:$0xff] }
  0x9a   :  { %1097 = vst.msk [vmem:[%s2176_s5 + $0x8] sm:$0xf] %vm1094_vm4, %v1032_v42  ;;  %v518_v42 = vld [vmem:[%s2174_s3 + $0xb8] sm:$0xff] }
  0x9b   :  { %v312_v46 = vpop.f32.mrf.mxu0  ;;  %v1064_v50 = vpack.c.bf16 %v1000_v45, %v1000_v45  ;;  %1215 = vmatmul.msk.f32.gmra.mxu2 %vm89_vm1, %v71_v43 }
  0x9c   :  { %v783_v47 = vpop.f32.mrf.mxu1  ;;  %v313_v51 = vadd.f32 %v1593_v2, %v312_v46 }
  0x9d   :  { %1280 = vmatmul.msk.f32.gmra.mxu3 %vm560_vm3, %v546_v44  ;;  %1129 = vst.msk [vmem:[%s2176_s5 + $0x88] sm:$0xf] %vm1094_vm4, %v1064_v50  ;;  %v76_v50 = vld [vmem:[%s2172_s0 + $0x1c0] sm:$0xff] }
  0x9e   :  { %v969_v52 = vadd.f32 %v783_v47, %v313_v51  ;;  %1183 = vmatmul.msk.f32.gmra.mxu0 %vm89_vm1, %v39_v48  ;;  %v408_v53 = vpop.f32.mrf.mxu2  ;;  %v551_v51 = vld [vmem:[%s2174_s3 + $0x1c0] sm:$0xff] }
  0x9f   :  { %1248 = vmatmul.msk.f32.gmra.mxu1 %vm560_vm3, %v514_v49  ;;  %v409_v55 = vadd.f32 %v1593_v2, %v408_v53 }
  0xa0   :  { %v879_v54 = vpop.f32.mrf.mxu3  ;;  %v1033_v56 = vpack.c.bf16 %v969_v52, %v969_v52 }
  0xa1   :  { %v1001_v59 = vadd.f32 %v879_v54, %v409_v55  ;;  %v44_v55 = vld [vmem:[%s2172_s0 + $0xc0] sm:$0xff] }
  0xa2   :  { %1098 = vst.msk [vmem:[%s2176_s5 + $0xc] sm:$0xf] %vm1094_vm4, %v1033_v56  ;;  %v519_v56 = vld [vmem:[%s2174_s3 + $0xc0] sm:$0xff] }
  0xa3   :  { %v315_v60 = vpop.f32.mrf.mxu0  ;;  %v1065_v0 = vpack.c.bf16 %v1001_v59, %v1001_v59  ;;  %1216 = vmatmul.msk.f32.gmra.mxu2 %vm89_vm1, %v72_v57 }
  0xa4   :  { %v786_v61 = vpop.f32.mrf.mxu1  ;;  %v316_v1 = vadd.f32 %v1593_v2, %v315_v60 }
  0xa5   :  { %1281 = vmatmul.msk.f32.gmra.mxu3 %vm560_vm3, %v547_v58  ;;  %1130 = vst.msk [vmem:[%s2176_s5 + $0x8c] sm:$0xf] %vm1094_vm4, %v1065_v0  ;;  %v77_v0 = vld [vmem:[%s2172_s0 + $0x1c8] sm:$0xff] }
  0xa6   :  { %v970_v3 = vadd.f32 %v786_v61, %v316_v1  ;;  %1184 = vmatmul.msk.f32.gmra.mxu0 %vm89_vm1, %v40_v62  ;;  %v411_v4 = vpop.f32.mrf.mxu2  ;;  %v552_v1 = vld [vmem:[%s2174_s3 + $0x1c8] sm:$0xff] }
  0xa7   :  { %1249 = vmatmul.msk.f32.gmra.mxu1 %vm560_vm3, %v515_v63  ;;  %v412_v6 = vadd.f32 %v1593_v2, %v411_v4 }
  0xa8   :  { %v882_v5 = vpop.f32.mrf.mxu3  ;;  %v1034_v7 = vpack.c.bf16 %v970_v3, %v970_v3 }
  0xa9   :  { %v1002_v10 = vadd.f32 %v882_v5, %v412_v6  ;;  %v45_v6 = vld [vmem:[%s2172_s0 + $0xc8] sm:$0xff] }
  0xaa   :  { %1099 = vst.msk [vmem:[%s2176_s5 + $0x10] sm:$0xf] %vm1094_vm4, %v1034_v7  ;;  %v520_v7 = vld [vmem:[%s2174_s3 + $0xc8] sm:$0xff] }
  0xab   :  { %v318_v11 = vpop.f32.mrf.mxu0  ;;  %v1066_v15 = vpack.c.bf16 %v1002_v10, %v1002_v10  ;;  %1217 = vmatmul.msk.f32.gmra.mxu2 %vm89_vm1, %v73_v8 }
  0xac   :  { %v789_v12 = vpop.f32.mrf.mxu1  ;;  %v319_v16 = vadd.f32 %v1593_v2, %v318_v11 }
  0xad   :  { %1282 = vmatmul.msk.f32.gmra.mxu3 %vm560_vm3, %v548_v9  ;;  %1131 = vst.msk [vmem:[%s2176_s5 + $0x90] sm:$0xf] %vm1094_vm4, %v1066_v15  ;;  %v78_v15 = vld [vmem:[%s2172_s0 + $0x1d0] sm:$0xff] }
  0xae   :  { %v971_v17 = vadd.f32 %v789_v12, %v319_v16  ;;  %1185 = vmatmul.msk.f32.gmra.mxu0 %vm89_vm1, %v41_v13  ;;  %v414_v18 = vpop.f32.mrf.mxu2  ;;  %v553_v16 = vld [vmem:[%s2174_s3 + $0x1d0] sm:$0xff] }
  0xaf   :  { %1250 = vmatmul.msk.f32.gmra.mxu1 %vm560_vm3, %v516_v14  ;;  %v415_v20 = vadd.f32 %v1593_v2, %v414_v18 }
  0xb0   :  { %v885_v19 = vpop.f32.mrf.mxu3  ;;  %v1035_v21 = vpack.c.bf16 %v971_v17, %v971_v17 }
  0xb1   :  { %v1003_v24 = vadd.f32 %v885_v19, %v415_v20  ;;  %v46_v20 = vld [vmem:[%s2172_s0 + $0xd0] sm:$0xff] }
  0xb2   :  { %1100 = vst.msk [vmem:[%s2176_s5 + $0x14] sm:$0xf] %vm1094_vm4, %v1035_v21  ;;  %v521_v21 = vld [vmem:[%s2174_s3 + $0xd0] sm:$0xff] }
  0xb3   :  { %v321_v25 = vpop.f32.mrf.mxu0  ;;  %v1067_v29 = vpack.c.bf16 %v1003_v24, %v1003_v24  ;;  %1218 = vmatmul.msk.f32.gmra.mxu2 %vm89_vm1, %v74_v22 }
  0xb4   :  { %v792_v26 = vpop.f32.mrf.mxu1  ;;  %v322_v30 = vadd.f32 %v1593_v2, %v321_v25 }
  0xb5   :  { %1283 = vmatmul.msk.f32.gmra.mxu3 %vm560_vm3, %v549_v23  ;;  %1132 = vst.msk [vmem:[%s2176_s5 + $0x94] sm:$0xf] %vm1094_vm4, %v1067_v29  ;;  %v79_v29 = vld [vmem:[%s2172_s0 + $0x1d8] sm:$0xff] }
  0xb6   :  { %v972_v31 = vadd.f32 %v792_v26, %v322_v30  ;;  %1186 = vmatmul.msk.f32.gmra.mxu0 %vm89_vm1, %v42_v27  ;;  %v417_v32 = vpop.f32.mrf.mxu2  ;;  %v554_v30 = vld [vmem:[%s2174_s3 + $0x1d8] sm:$0xff] }
  0xb7   :  { %1251 = vmatmul.msk.f32.gmra.mxu1 %vm560_vm3, %v517_v28  ;;  %v418_v34 = vadd.f32 %v1593_v2, %v417_v32 }
  0xb8   :  { %v888_v33 = vpop.f32.mrf.mxu3  ;;  %v1036_v35 = vpack.c.bf16 %v972_v31, %v972_v31 }
  0xb9   :  { %v1004_v38 = vadd.f32 %v888_v33, %v418_v34  ;;  %v47_v34 = vld [vmem:[%s2172_s0 + $0xd8] sm:$0xff] }
  0xba   :  { %1101 = vst.msk [vmem:[%s2176_s5 + $0x18] sm:$0xf] %vm1094_vm4, %v1036_v35  ;;  %v522_v35 = vld [vmem:[%s2174_s3 + $0xd8] sm:$0xff] }
  0xbb   :  { %v324_v39 = vpop.f32.mrf.mxu0  ;;  %v1068_v43 = vpack.c.bf16 %v1004_v38, %v1004_v38  ;;  %1219 = vmatmul.msk.f32.gmra.mxu2 %vm89_vm1, %v75_v36 }
  0xbc   :  { %v795_v40 = vpop.f32.mrf.mxu1  ;;  %v325_v44 = vadd.f32 %v1593_v2, %v324_v39 }
  0xbd   :  { %1284 = vmatmul.msk.f32.gmra.mxu3 %vm560_vm3, %v550_v37  ;;  %1133 = vst.msk [vmem:[%s2176_s5 + $0x98] sm:$0xf] %vm1094_vm4, %v1068_v43  ;;  %v80_v43 = vld [vmem:[%s2172_s0 + $0x1e0] sm:$0xff] }
  0xbe   :  { %v973_v45 = vadd.f32 %v795_v40, %v325_v44  ;;  %1187 = vmatmul.msk.f32.gmra.mxu0 %vm89_vm1, %v43_v41  ;;  %v420_v46 = vpop.f32.mrf.mxu2  ;;  %v555_v44 = vld [vmem:[%s2174_s3 + $0x1e0] sm:$0xff] }
  0xbf   :  { %1252 = vmatmul.msk.f32.gmra.mxu1 %vm560_vm3, %v518_v42  ;;  %v421_v48 = vadd.f32 %v1593_v2, %v420_v46 }
  0xc0   :  { %v891_v47 = vpop.f32.mrf.mxu3  ;;  %v1037_v49 = vpack.c.bf16 %v973_v45, %v973_v45 }
  0xc1   :  { %v1005_v52 = vadd.f32 %v891_v47, %v421_v48  ;;  %v48_v48 = vld [vmem:[%s2172_s0 + $0xe0] sm:$0xff] }
  0xc2   :  { %1102 = vst.msk [vmem:[%s2176_s5 + $0x1c] sm:$0xf] %vm1094_vm4, %v1037_v49  ;;  %v523_v49 = vld [vmem:[%s2174_s3 + $0xe0] sm:$0xff] }
  0xc3   :  { %v327_v53 = vpop.f32.mrf.mxu0  ;;  %v1069_v57 = vpack.c.bf16 %v1005_v52, %v1005_v52  ;;  %1220 = vmatmul.msk.f32.gmra.mxu2 %vm89_vm1, %v76_v50 }
  0xc4   :  { %v798_v54 = vpop.f32.mrf.mxu1  ;;  %v328_v58 = vadd.f32 %v1593_v2, %v327_v53 }
  0xc5   :  { %1285 = vmatmul.msk.f32.gmra.mxu3 %vm560_vm3, %v551_v51  ;;  %1134 = vst.msk [vmem:[%s2176_s5 + $0x9c] sm:$0xf] %vm1094_vm4, %v1069_v57  ;;  %v81_v57 = vld [vmem:[%s2172_s0 + $0x1e8] sm:$0xff] }
  0xc6   :  { %v974_v59 = vadd.f32 %v798_v54, %v328_v58  ;;  %1188 = vmatmul.msk.f32.gmra.mxu0 %vm89_vm1, %v44_v55  ;;  %v423_v60 = vpop.f32.mrf.mxu2  ;;  %v556_v58 = vld [vmem:[%s2174_s3 + $0x1e8] sm:$0xff] }
  0xc7   :  { %1253 = vmatmul.msk.f32.gmra.mxu1 %vm560_vm3, %v519_v56  ;;  %v424_v62 = vadd.f32 %v1593_v2, %v423_v60 }
  0xc8   :  { %v894_v61 = vpop.f32.mrf.mxu3  ;;  %v1038_v63 = vpack.c.bf16 %v974_v59, %v974_v59 }
  0xc9   :  { %v1006_v3 = vadd.f32 %v894_v61, %v424_v62  ;;  %v49_v62 = vld [vmem:[%s2172_s0 + $0xe8] sm:$0xff] }
  0xca   :  { %1103 = vst.msk [vmem:[%s2176_s5 + $0x20] sm:$0xf] %vm1094_vm4, %v1038_v63  ;;  %v524_v63 = vld [vmem:[%s2174_s3 + $0xe8] sm:$0xff] }
  0xcb   :  { %v330_v4 = vpop.f32.mrf.mxu0  ;;  %v1070_v8 = vpack.c.bf16 %v1006_v3, %v1006_v3  ;;  %1221 = vmatmul.msk.f32.gmra.mxu2 %vm89_vm1, %v77_v0 }
  0xcc   :  { %v801_v5 = vpop.f32.mrf.mxu1  ;;  %v331_v9 = vadd.f32 %v1593_v2, %v330_v4 }
  0xcd   :  { %1286 = vmatmul.msk.f32.gmra.mxu3 %vm560_vm3, %v552_v1  ;;  %1135 = vst.msk [vmem:[%s2176_s5 + $0xa0] sm:$0xf] %vm1094_vm4, %v1070_v8  ;;  %v82_v8 = vld [vmem:[%s2172_s0 + $0x1f0] sm:$0xff] }
  0xce   :  { %v975_v10 = vadd.f32 %v801_v5, %v331_v9  ;;  %1189 = vmatmul.msk.f32.gmra.mxu0 %vm89_vm1, %v45_v6  ;;  %v426_v11 = vpop.f32.mrf.mxu2  ;;  %v557_v9 = vld [vmem:[%s2174_s3 + $0x1f0] sm:$0xff] }
  0xcf   :  { %1254 = vmatmul.msk.f32.gmra.mxu1 %vm560_vm3, %v520_v7  ;;  %v427_v13 = vadd.f32 %v1593_v2, %v426_v11 }
  0xd0   :  { %v897_v12 = vpop.f32.mrf.mxu3  ;;  %v1039_v14 = vpack.c.bf16 %v975_v10, %v975_v10 }
  0xd1   :  { %v1007_v17 = vadd.f32 %v897_v12, %v427_v13  ;;  %v50_v13 = vld [vmem:[%s2172_s0 + $0xf0] sm:$0xff] }
  0xd2   :  { %1104 = vst.msk [vmem:[%s2176_s5 + $0x24] sm:$0xf] %vm1094_vm4, %v1039_v14  ;;  %v525_v14 = vld [vmem:[%s2174_s3 + $0xf0] sm:$0xff] }
  0xd3   :  { %v333_v18 = vpop.f32.mrf.mxu0  ;;  %v1071_v22 = vpack.c.bf16 %v1007_v17, %v1007_v17  ;;  %1222 = vmatmul.msk.f32.gmra.mxu2 %vm89_vm1, %v78_v15 }
  0xd4   :  { %v804_v19 = vpop.f32.mrf.mxu1  ;;  %v334_v23 = vadd.f32 %v1593_v2, %v333_v18 }
  0xd5   :  { %1287 = vmatmul.msk.f32.gmra.mxu3 %vm560_vm3, %v553_v16  ;;  %1136 = vst.msk [vmem:[%s2176_s5 + $0xa4] sm:$0xf] %vm1094_vm4, %v1071_v22  ;;  %v83_v22 = vld [vmem:[%s2172_s0 + $0x1f8] sm:$0xff] }
  0xd6   :  { %v976_v24 = vadd.f32 %v804_v19, %v334_v23  ;;  %1190 = vmatmul.msk.f32.gmra.mxu0 %vm89_vm1, %v46_v20  ;;  %v429_v25 = vpop.f32.mrf.mxu2  ;;  %v558_v23 = vld [vmem:[%s2174_s3 + $0x1f8] sm:$0xff] }
  0xd7   :  { %1255 = vmatmul.msk.f32.gmra.mxu1 %vm560_vm3, %v521_v21  ;;  %v430_v27 = vadd.f32 %v1593_v2, %v429_v25 }
  0xd8   :  { %v900_v26 = vpop.f32.mrf.mxu3  ;;  %v1040_v28 = vpack.c.bf16 %v976_v24, %v976_v24 }
  0xd9   :  { %v1008_v31 = vadd.f32 %v900_v26, %v430_v27  ;;  %v51_v27 = vld [vmem:[%s2172_s0 + $0xf8] sm:$0xff] }
  0xda   :  { %1105 = vst.msk [vmem:[%s2176_s5 + $0x28] sm:$0xf] %vm1094_vm4, %v1040_v28  ;;  %v526_v28 = vld [vmem:[%s2174_s3 + $0xf8] sm:$0xff] }
  0xdb   :  { %v336_v32 = vpop.f32.mrf.mxu0  ;;  %v1072_v36 = vpack.c.bf16 %v1008_v31, %v1008_v31  ;;  %1223 = vmatmul.msk.f32.gmra.mxu2 %vm89_vm1, %v79_v29 }
  0xdc   :  { %v807_v33 = vpop.f32.mrf.mxu1  ;;  %v337_v37 = vadd.f32 %v1593_v2, %v336_v32 }
  0xdd   :  { %1288 = vmatmul.msk.f32.gmra.mxu3 %vm560_vm3, %v554_v30  ;;  %1137 = vst.msk [vmem:[%s2176_s5 + $0xa8] sm:$0xf] %vm1094_vm4, %v1072_v36 }
  0xde   :  { %v977_v38 = vadd.f32 %v807_v33, %v337_v37  ;;  %1191 = vmatmul.msk.f32.gmra.mxu0 %vm89_vm1, %v47_v34  ;;  %v432_v39 = vpop.f32.mrf.mxu2 }
  0xdf   :  { %1256 = vmatmul.msk.f32.gmra.mxu1 %vm560_vm3, %v522_v35  ;;  %v433_v41 = vadd.f32 %v1593_v2, %v432_v39 }
  0xe0   :  { %v903_v40 = vpop.f32.mrf.mxu3  ;;  %v1041_v42 = vpack.c.bf16 %v977_v38, %v977_v38 }
  0xe1   :  { %v1009_v45 = vadd.f32 %v903_v40, %v433_v41 }
  0xe2   :  { %1106 = vst.msk [vmem:[%s2176_s5 + $0x2c] sm:$0xf] %vm1094_vm4, %v1041_v42 }
  0xe3   :  { %v339_v46 = vpop.f32.mrf.mxu0  ;;  %v1073_v50 = vpack.c.bf16 %v1009_v45, %v1009_v45  ;;  %1224 = vmatmul.msk.f32.gmra.mxu2 %vm89_vm1, %v80_v43 }
  0xe4   :  { %v810_v47 = vpop.f32.mrf.mxu1  ;;  %v340_v51 = vadd.f32 %v1593_v2, %v339_v46 }
  0xe5   :  { %1289 = vmatmul.msk.f32.gmra.mxu3 %vm560_vm3, %v555_v44  ;;  %1138 = vst.msk [vmem:[%s2176_s5 + $0xac] sm:$0xf] %vm1094_vm4, %v1073_v50 }
  0xe6   :  { %v978_v52 = vadd.f32 %v810_v47, %v340_v51  ;;  %1192 = vmatmul.msk.f32.gmra.mxu0 %vm89_vm1, %v48_v48  ;;  %v435_v53 = vpop.f32.mrf.mxu2 }
  0xe7   :  { %1257 = vmatmul.msk.f32.gmra.mxu1 %vm560_vm3, %v523_v49  ;;  %v436_v55 = vadd.f32 %v1593_v2, %v435_v53 }
  0xe8   :  { %v906_v54 = vpop.f32.mrf.mxu3  ;;  %v1042_v56 = vpack.c.bf16 %v978_v52, %v978_v52 }
  0xe9   :  { %v1010_v59 = vadd.f32 %v906_v54, %v436_v55 }
  0xea   :  { %1107 = vst.msk [vmem:[%s2176_s5 + $0x30] sm:$0xf] %vm1094_vm4, %v1042_v56 }
  0xeb   :  { %v342_v60 = vpop.f32.mrf.mxu0  ;;  %v1074_v0 = vpack.c.bf16 %v1010_v59, %v1010_v59  ;;  %1225 = vmatmul.msk.f32.gmra.mxu2 %vm89_vm1, %v81_v57 }
  0xec   :  { %v813_v61 = vpop.f32.mrf.mxu1  ;;  %v343_v1 = vadd.f32 %v1593_v2, %v342_v60 }
  0xed   :  { %1290 = vmatmul.msk.f32.gmra.mxu3 %vm560_vm3, %v556_v58  ;;  %1139 = vst.msk [vmem:[%s2176_s5 + $0xb0] sm:$0xf] %vm1094_vm4, %v1074_v0 }
  0xee   :  { %v979_v3 = vadd.f32 %v813_v61, %v343_v1  ;;  %1193 = vmatmul.msk.f32.gmra.mxu0 %vm89_vm1, %v49_v62  ;;  %v438_v4 = vpop.f32.mrf.mxu2 }
  0xef   :  { %1258 = vmatmul.msk.f32.gmra.mxu1 %vm560_vm3, %v524_v63  ;;  %v439_v6 = vadd.f32 %v1593_v2, %v438_v4 }
  0xf0   :  { %v909_v5 = vpop.f32.mrf.mxu3  ;;  %v1043_v7 = vpack.c.bf16 %v979_v3, %v979_v3 }
  0xf1   :  { %v1011_v10 = vadd.f32 %v909_v5, %v439_v6 }
  0xf2   :  { %1108 = vst.msk [vmem:[%s2176_s5 + $0x34] sm:$0xf] %vm1094_vm4, %v1043_v7 }
  0xf3   :  { %v345_v11 = vpop.f32.mrf.mxu0  ;;  %v1075_v15 = vpack.c.bf16 %v1011_v10, %v1011_v10  ;;  %1226 = vmatmul.msk.f32.gmra.mxu2 %vm89_vm1, %v82_v8 }
  0xf4   :  { %v816_v12 = vpop.f32.mrf.mxu1  ;;  %v346_v16 = vadd.f32 %v1593_v2, %v345_v11 }
  0xf5   :  { %1291 = vmatmul.msk.f32.gmra.mxu3 %vm560_vm3, %v557_v9  ;;  %1140 = vst.msk [vmem:[%s2176_s5 + $0xb4] sm:$0xf] %vm1094_vm4, %v1075_v15 }
  0xf6   :  { %v980_v17 = vadd.f32 %v816_v12, %v346_v16  ;;  %1194 = vmatmul.msk.f32.gmra.mxu0 %vm89_vm1, %v50_v13  ;;  %v441_v18 = vpop.f32.mrf.mxu2 }
  0xf7   :  { %1259 = vmatmul.msk.f32.gmra.mxu1 %vm560_vm3, %v525_v14  ;;  %v442_v20 = vadd.f32 %v1593_v2, %v441_v18 }
  0xf8   :  { %v912_v19 = vpop.f32.mrf.mxu3  ;;  %v1044_v21 = vpack.c.bf16 %v980_v17, %v980_v17 }
  0xf9   :  { %v1012_v24 = vadd.f32 %v912_v19, %v442_v20 }
  0xfa   :  { %1109 = vst.msk [vmem:[%s2176_s5 + $0x38] sm:$0xf] %vm1094_vm4, %v1044_v21 }
  0xfb   :  { %v348_v25 = vpop.f32.mrf.mxu0  ;;  %v1076_v29 = vpack.c.bf16 %v1012_v24, %v1012_v24  ;;  %1227 = vmatmul.msk.f32.gmra.mxu2 %vm89_vm1, %v83_v22 }
  0xfc   :  { %v819_v26 = vpop.f32.mrf.mxu1  ;;  %v349_v30 = vadd.f32 %v1593_v2, %v348_v25 }
  0xfd   :  { %1292 = vmatmul.msk.f32.gmra.mxu3 %vm560_vm3, %v558_v23  ;;  %1141 = vst.msk [vmem:[%s2176_s5 + $0xb8] sm:$0xf] %vm1094_vm4, %v1076_v29 }
  0xfe   :  { %v981_v31 = vadd.f32 %v819_v26, %v349_v30  ;;  %1195 = vmatmul.msk.f32.gmra.mxu0 %vm89_vm1, %v51_v27  ;;  %v444_v32 = vpop.f32.mrf.mxu2 }
  0xff   :  { %1260 = vmatmul.msk.f32.gmra.mxu1 %vm560_vm3, %v526_v28  ;;  %v445_v34 = vadd.f32 %v1593_v2, %v444_v32 }
 0x100   :  { %v915_v33 = vpop.f32.mrf.mxu3  ;;  %v1045_v35 = vpack.c.bf16 %v981_v31, %v981_v31 }
 0x101   :  { %v1013_v36 = vadd.f32 %v915_v33, %v445_v34 }
 0x102   :  { %1110 = vst.msk [vmem:[%s2176_s5 + $0x3c] sm:$0xf] %vm1094_vm4, %v1045_v35 }
 0x103   :  { %v351_v37 = vpop.f32.mrf.mxu0  ;;  %v1077_v39 = vpack.c.bf16 %v1013_v36, %v1013_v36 }
 0x104   :  { %v822_v38 = vpop.f32.mrf.mxu1  ;;  %v352_v40 = vadd.f32 %v1593_v2, %v351_v37 }
 0x105   :  { %1142 = vst.msk [vmem:[%s2176_s5 + $0xbc] sm:$0xf] %vm1094_vm4, %v1077_v39 }
 0x106   :  { %v982_v41 = vadd.f32 %v822_v38, %v352_v40  ;;  %v447_v42 = vpop.f32.mrf.mxu2 }
 0x107   :  { %v448_v44 = vadd.f32 %v1593_v2, %v447_v42 }
 0x108   :  { %v918_v43 = vpop.f32.mrf.mxu3  ;;  %v1046_v45 = vpack.c.bf16 %v982_v41, %v982_v41 }
 0x109   :  { %v1014_v46 = vadd.f32 %v918_v43, %v448_v44 }
 0x10a   :  { %1111 = vst.msk [vmem:[%s2176_s5 + $0x40] sm:$0xf] %vm1094_vm4, %v1046_v45 }
 0x10b   :  { %v354_v47 = vpop.f32.mrf.mxu0  ;;  %v1078_v49 = vpack.c.bf16 %v1014_v46, %v1014_v46 }
 0x10c   :  { %v825_v48 = vpop.f32.mrf.mxu1  ;;  %v355_v50 = vadd.f32 %v1593_v2, %v354_v47 }
 0x10d   :  { %1143 = vst.msk [vmem:[%s2176_s5 + $0xc0] sm:$0xf] %vm1094_vm4, %v1078_v49 }
 0x10e   :  { %v983_v51 = vadd.f32 %v825_v48, %v355_v50  ;;  %v450_v52 = vpop.f32.mrf.mxu2 }
 0x10f   :  { %v451_v54 = vadd.f32 %v1593_v2, %v450_v52 }
 0x110   :  { %v921_v53 = vpop.f32.mrf.mxu3  ;;  %v1047_v55 = vpack.c.bf16 %v983_v51, %v983_v51 }
 0x111   :  { %v1015_v56 = vadd.f32 %v921_v53, %v451_v54 }
 0x112   :  { %1112 = vst.msk [vmem:[%s2176_s5 + $0x44] sm:$0xf] %vm1094_vm4, %v1047_v55 }
 0x113   :  { %v357_v57 = vpop.f32.mrf.mxu0  ;;  %v1079_v59 = vpack.c.bf16 %v1015_v56, %v1015_v56 }
 0x114   :  { %v828_v58 = vpop.f32.mrf.mxu1  ;;  %v358_v60 = vadd.f32 %v1593_v2, %v357_v57 }
 0x115   :  { %1144 = vst.msk [vmem:[%s2176_s5 + $0xc4] sm:$0xf] %vm1094_vm4, %v1079_v59 }
 0x116   :  { %v984_v61 = vadd.f32 %v828_v58, %v358_v60  ;;  %v453_v62 = vpop.f32.mrf.mxu2 }
 0x117   :  { %v454_v0 = vadd.f32 %v1593_v2, %v453_v62 }
 0x118   :  { %v924_v63 = vpop.f32.mrf.mxu3  ;;  %v1048_v1 = vpack.c.bf16 %v984_v61, %v984_v61 }
 0x119   :  { %v1016_v3 = vadd.f32 %v924_v63, %v454_v0 }
 0x11a   :  { %1113 = vst.msk [vmem:[%s2176_s5 + $0x48] sm:$0xf] %vm1094_vm4, %v1048_v1 }
 0x11b   :  { %v360_v4 = vpop.f32.mrf.mxu0  ;;  %v1080_v6 = vpack.c.bf16 %v1016_v3, %v1016_v3 }
 0x11c   :  { %v831_v5 = vpop.f32.mrf.mxu1  ;;  %v361_v7 = vadd.f32 %v1593_v2, %v360_v4 }
 0x11d   :  { %1145 = vst.msk [vmem:[%s2176_s5 + $0xc8] sm:$0xf] %vm1094_vm4, %v1080_v6 }
 0x11e   :  { %v985_v8 = vadd.f32 %v831_v5, %v361_v7  ;;  %v456_v9 = vpop.f32.mrf.mxu2 }
 0x11f   :  { %v457_v11 = vadd.f32 %v1593_v2, %v456_v9 }
 0x120   :  { %v927_v10 = vpop.f32.mrf.mxu3  ;;  %v1049_v12 = vpack.c.bf16 %v985_v8, %v985_v8 }
 0x121   :  { %v1017_v13 = vadd.f32 %v927_v10, %v457_v11 }
 0x122   :  { %1114 = vst.msk [vmem:[%s2176_s5 + $0x4c] sm:$0xf] %vm1094_vm4, %v1049_v12 }
 0x123   :  { %v363_v14 = vpop.f32.mrf.mxu0  ;;  %v1081_v16 = vpack.c.bf16 %v1017_v13, %v1017_v13 }
 0x124   :  { %v834_v15 = vpop.f32.mrf.mxu1  ;;  %v364_v17 = vadd.f32 %v1593_v2, %v363_v14 }
 0x125   :  { %1146 = vst.msk [vmem:[%s2176_s5 + $0xcc] sm:$0xf] %vm1094_vm4, %v1081_v16 }
 0x126   :  { %v986_v18 = vadd.f32 %v834_v15, %v364_v17  ;;  %v459_v19 = vpop.f32.mrf.mxu2 }
 0x127   :  { %v460_v21 = vadd.f32 %v1593_v2, %v459_v19 }
 0x128   :  { %v930_v20 = vpop.f32.mrf.mxu3  ;;  %v1050_v22 = vpack.c.bf16 %v986_v18, %v986_v18 }
 0x129   :  { %v1018_v23 = vadd.f32 %v930_v20, %v460_v21 }
 0x12a   :  { %1115 = vst.msk [vmem:[%s2176_s5 + $0x50] sm:$0xf] %vm1094_vm4, %v1050_v22 }
 0x12b   :  { %v366_v24 = vpop.f32.mrf.mxu0  ;;  %v1082_v26 = vpack.c.bf16 %v1018_v23, %v1018_v23 }
 0x12c   :  { %v837_v25 = vpop.f32.mrf.mxu1  ;;  %v367_v27 = vadd.f32 %v1593_v2, %v366_v24 }
 0x12d   :  { %1147 = vst.msk [vmem:[%s2176_s5 + $0xd0] sm:$0xf] %vm1094_vm4, %v1082_v26 }
 0x12e   :  { %v987_v28 = vadd.f32 %v837_v25, %v367_v27  ;;  %v462_v29 = vpop.f32.mrf.mxu2 }
 0x12f   :  { %v463_v31 = vadd.f32 %v1593_v2, %v462_v29 }
 0x130   :  { %v933_v30 = vpop.f32.mrf.mxu3  ;;  %v1051_v32 = vpack.c.bf16 %v987_v28, %v987_v28 }
 0x131   :  { %v1019_v33 = vadd.f32 %v933_v30, %v463_v31 }
 0x132   :  { %1116 = vst.msk [vmem:[%s2176_s5 + $0x54] sm:$0xf] %vm1094_vm4, %v1051_v32 }
 0x133   :  { %v369_v34 = vpop.f32.mrf.mxu0  ;;  %v1083_v36 = vpack.c.bf16 %v1019_v33, %v1019_v33 }
 0x134   :  { %v840_v35 = vpop.f32.mrf.mxu1  ;;  %v370_v37 = vadd.f32 %v1593_v2, %v369_v34 }
 0x135   :  { %1148 = vst.msk [vmem:[%s2176_s5 + $0xd4] sm:$0xf] %vm1094_vm4, %v1083_v36 }
 0x136   :  { %v988_v38 = vadd.f32 %v840_v35, %v370_v37  ;;  %v465_v39 = vpop.f32.mrf.mxu2 }
 0x137   :  { %v466_v41 = vadd.f32 %v1593_v2, %v465_v39 }
 0x138   :  { %v936_v40 = vpop.f32.mrf.mxu3  ;;  %v1052_v42 = vpack.c.bf16 %v988_v38, %v988_v38 }
 0x139   :  { %v1020_v43 = vadd.f32 %v936_v40, %v466_v41 }
 0x13a   :  { %1117 = vst.msk [vmem:[%s2176_s5 + $0x58] sm:$0xf] %vm1094_vm4, %v1052_v42 }
 0x13b   :  { %v372_v44 = vpop.f32.mrf.mxu0  ;;  %v1084_v46 = vpack.c.bf16 %v1020_v43, %v1020_v43 }
 0x13c   :  { %v843_v45 = vpop.f32.mrf.mxu1  ;;  %v373_v47 = vadd.f32 %v1593_v2, %v372_v44 }
 0x13d   :  { %1149 = vst.msk [vmem:[%s2176_s5 + $0xd8] sm:$0xf] %vm1094_vm4, %v1084_v46 }
 0x13e   :  { %v989_v48 = vadd.f32 %v843_v45, %v373_v47  ;;  %v468_v49 = vpop.f32.mrf.mxu2 }
 0x13f   :  { %v469_v51 = vadd.f32 %v1593_v2, %v468_v49 }
 0x140   :  { %v939_v50 = vpop.f32.mrf.mxu3  ;;  %v1053_v52 = vpack.c.bf16 %v989_v48, %v989_v48 }
 0x141   :  { %v1021_v53 = vadd.f32 %v939_v50, %v469_v51 }
 0x142   :  { %1118 = vst.msk [vmem:[%s2176_s5 + $0x5c] sm:$0xf] %vm1094_vm4, %v1053_v52 }
 0x143   :  { %v375_v54 = vpop.f32.mrf.mxu0  ;;  %v1085_v56 = vpack.c.bf16 %v1021_v53, %v1021_v53 }
 0x144   :  { %v846_v55 = vpop.f32.mrf.mxu1  ;;  %v376_v57 = vadd.f32 %v1593_v2, %v375_v54 }
 0x145   :  { %1150 = vst.msk [vmem:[%s2176_s5 + $0xdc] sm:$0xf] %vm1094_vm4, %v1085_v56 }
 0x146   :  { %v990_v58 = vadd.f32 %v846_v55, %v376_v57  ;;  %v471_v59 = vpop.f32.mrf.mxu2 }
 0x147   :  { %v472_v61 = vadd.f32 %v1593_v2, %v471_v59 }
 0x148   :  { %v942_v60 = vpop.f32.mrf.mxu3  ;;  %v1054_v62 = vpack.c.bf16 %v990_v58, %v990_v58 }
 0x149   :  { %v1022_v63 = vadd.f32 %v942_v60, %v472_v61 }
 0x14a   :  { %1119 = vst.msk [vmem:[%s2176_s5 + $0x60] sm:$0xf] %vm1094_vm4, %v1054_v62 }
 0x14b   :  { %v378_v0 = vpop.f32.mrf.mxu0  ;;  %v1086_v3 = vpack.c.bf16 %v1022_v63, %v1022_v63 }
 0x14c   :  { %v849_v1 = vpop.f32.mrf.mxu1  ;;  %v379_v4 = vadd.f32 %v1593_v2, %v378_v0 }
 0x14d   :  { %1151 = vst.msk [vmem:[%s2176_s5 + $0xe0] sm:$0xf] %vm1094_vm4, %v1086_v3 }
 0x14e   :  { %v991_v5 = vadd.f32 %v849_v1, %v379_v4  ;;  %v474_v6 = vpop.f32.mrf.mxu2 }
 0x14f   :  { %v475_v8 = vadd.f32 %v1593_v2, %v474_v6 }
 0x150   :  { %v945_v7 = vpop.f32.mrf.mxu3  ;;  %v1055_v9 = vpack.c.bf16 %v991_v5, %v991_v5 }
 0x151   :  { %v1023_v10 = vadd.f32 %v945_v7, %v475_v8 }
 0x152   :  { %1120 = vst.msk [vmem:[%s2176_s5 + $0x64] sm:$0xf] %vm1094_vm4, %v1055_v9 }
 0x153   :  { %v381_v11 = vpop.f32.mrf.mxu0  ;;  %v1087_v13 = vpack.c.bf16 %v1023_v10, %v1023_v10 }
 0x154   :  { %v852_v12 = vpop.f32.mrf.mxu1  ;;  %v382_v14 = vadd.f32 %v1593_v2, %v381_v11 }
 0x155   :  { %1152 = vst.msk [vmem:[%s2176_s5 + $0xe4] sm:$0xf] %vm1094_vm4, %v1087_v13 }
 0x156   :  { %v992_v15 = vadd.f32 %v852_v12, %v382_v14  ;;  %v477_v16 = vpop.f32.mrf.mxu2 }
 0x157   :  { %v478_v18 = vadd.f32 %v1593_v2, %v477_v16 }
 0x158   :  { %v948_v17 = vpop.f32.mrf.mxu3  ;;  %v1056_v19 = vpack.c.bf16 %v992_v15, %v992_v15 }
 0x159   :  { %v1024_v20 = vadd.f32 %v948_v17, %v478_v18 }
 0x15a   :  { %1121 = vst.msk [vmem:[%s2176_s5 + $0x68] sm:$0xf] %vm1094_vm4, %v1056_v19 }
 0x15b   :  { %v384_v21 = vpop.f32.mrf.mxu0  ;;  %v1088_v23 = vpack.c.bf16 %v1024_v20, %v1024_v20 }
 0x15c   :  { %v855_v22 = vpop.f32.mrf.mxu1  ;;  %v385_v24 = vadd.f32 %v1593_v2, %v384_v21 }
 0x15d   :  { %1153 = vst.msk [vmem:[%s2176_s5 + $0xe8] sm:$0xf] %vm1094_vm4, %v1088_v23 }
 0x15e   :  { %v993_v25 = vadd.f32 %v855_v22, %v385_v24  ;;  %v480_v26 = vpop.f32.mrf.mxu2 }
 0x15f   :  { %v481_v28 = vadd.f32 %v1593_v2, %v480_v26 }
 0x160   :  { %v951_v27 = vpop.f32.mrf.mxu3  ;;  %v1057_v29 = vpack.c.bf16 %v993_v25, %v993_v25 }
 0x161   :  { %v1025_v30 = vadd.f32 %v951_v27, %v481_v28 }
 0x162   :  { %1122 = vst.msk [vmem:[%s2176_s5 + $0x6c] sm:$0xf] %vm1094_vm4, %v1057_v29 }
 0x163   :  { %v387_v31 = vpop.f32.mrf.mxu0  ;;  %v1089_v33 = vpack.c.bf16 %v1025_v30, %v1025_v30 }
 0x164   :  { %v858_v32 = vpop.f32.mrf.mxu1  ;;  %v388_v34 = vadd.f32 %v1593_v2, %v387_v31 }
 0x165   :  { %1154 = vst.msk [vmem:[%s2176_s5 + $0xec] sm:$0xf] %vm1094_vm4, %v1089_v33 }
 0x166   :  { %v994_v35 = vadd.f32 %v858_v32, %v388_v34  ;;  %v483_v36 = vpop.f32.mrf.mxu2 }
 0x167   :  { %v484_v38 = vadd.f32 %v1593_v2, %v483_v36 }
 0x168   :  { %v954_v37 = vpop.f32.mrf.mxu3  ;;  %v1058_v39 = vpack.c.bf16 %v994_v35, %v994_v35 }
 0x169   :  { %v1026_v40 = vadd.f32 %v954_v37, %v484_v38 }
 0x16a   :  { %1123 = vst.msk [vmem:[%s2176_s5 + $0x70] sm:$0xf] %vm1094_vm4, %v1058_v39 }
 0x16b   :  { %v390_v41 = vpop.f32.mrf.mxu0  ;;  %v1090_v43 = vpack.c.bf16 %v1026_v40, %v1026_v40 }
 0x16c   :  { %v861_v42 = vpop.f32.mrf.mxu1  ;;  %v391_v44 = vadd.f32 %v1593_v2, %v390_v41 }
 0x16d   :  { %1155 = vst.msk [vmem:[%s2176_s5 + $0xf0] sm:$0xf] %vm1094_vm4, %v1090_v43 }
 0x16e   :  { %v995_v45 = vadd.f32 %v861_v42, %v391_v44  ;;  %v486_v46 = vpop.f32.mrf.mxu2 }
 0x16f   :  { %v487_v48 = vadd.f32 %v1593_v2, %v486_v46 }
 0x170   :  { %v957_v47 = vpop.f32.mrf.mxu3  ;;  %v1059_v49 = vpack.c.bf16 %v995_v45, %v995_v45 }
 0x171   :  { %v1027_v50 = vadd.f32 %v957_v47, %v487_v48 }
 0x172   :  { %1124 = vst.msk [vmem:[%s2176_s5 + $0x74] sm:$0xf] %vm1094_vm4, %v1059_v49 }
 0x173   :  { %v393_v51 = vpop.f32.mrf.mxu0  ;;  %v1091_v53 = vpack.c.bf16 %v1027_v50, %v1027_v50 }
 0x174   :  { %v864_v52 = vpop.f32.mrf.mxu1  ;;  %v394_v54 = vadd.f32 %v1593_v2, %v393_v51 }
 0x175   :  { %1156 = vst.msk [vmem:[%s2176_s5 + $0xf4] sm:$0xf] %vm1094_vm4, %v1091_v53 }
 0x176   :  { %v996_v55 = vadd.f32 %v864_v52, %v394_v54  ;;  %v489_v56 = vpop.f32.mrf.mxu2 }
 0x177   :  { %v490_v58 = vadd.f32 %v1593_v2, %v489_v56 }
 0x178   :  { %v960_v57 = vpop.f32.mrf.mxu3  ;;  %v1060_v59 = vpack.c.bf16 %v996_v55, %v996_v55 }
 0x179   :  { %v1028_v60 = vadd.f32 %v960_v57, %v490_v58 }
 0x17a   :  { %1125 = vst.msk [vmem:[%s2176_s5 + $0x78] sm:$0xf] %vm1094_vm4, %v1060_v59 }
 0x17b   :  { %v396_v61 = vpop.f32.mrf.mxu0  ;;  %v1092_v63 = vpack.c.bf16 %v1028_v60, %v1028_v60 }
 0x17c   :  { %v867_v62 = vpop.f32.mrf.mxu1  ;;  %v397_v0 = vadd.f32 %v1593_v2, %v396_v61 }
 0x17d   :  { %1157 = vst.msk [vmem:[%s2176_s5 + $0xf8] sm:$0xf] %vm1094_vm4, %v1092_v63 }
 0x17e   :  { %v997_v1 = vadd.f32 %v867_v62, %v397_v0  ;;  %v492_v3 = vpop.f32.mrf.mxu2 }
 0x17f   :  { %v493_v5 = vadd.f32 %v1593_v2, %v492_v3 }
 0x180   :  { %v963_v4 = vpop.f32.mrf.mxu3  ;;  %v1061_v6 = vpack.c.bf16 %v997_v1, %v997_v1 }
 0x181   :  { %v1029_v7 = vadd.f32 %v963_v4, %v493_v5 }
 0x182   :  { %1126 = vst.msk [vmem:[%s2176_s5 + $0x7c] sm:$0xf] %vm1094_vm4, %v1061_v6 }
 0x183   :  { %v1093_v8 = vpack.c.bf16 %v1029_v7, %v1029_v7 }
 0x185   :  { %1158 = vst.msk [vmem:[%s2176_s5 + $0xfc] sm:$0xf] %vm1094_vm4, %v1093_v8 }

// kernel: reverse.8
= control target key start
LH: loop header
LB: loop body
LE: loop exit
PB: predicated region body
PF: predicated region fallthrough
CT: control target
= control target key end

     0   :  { %s344_s0 = inlined_call_operand.vmem [shape: f32[2,32,16,7], index: 0, kind: input, shape index: {}]   ;;  %s345_s1 = inlined_call_operand.vmem [shape: f32[2,32,16,7], index: 1, kind: output, shape index: {}]  }
   0x1   :  { %v112_v0 = vld [vmem:[%s344_s0 + $0x60] sm:$0xff]  ;;  %v113_v1 = vld [vmem:[%s344_s0 + $0xd0] sm:$0xff]  ;;  %v138_v14 = vld [vmem:[%s344_s0 + $0x68] sm:$0xff] }
   0x2   :  { %v115_v2 = vld [vmem:[%s344_s0 + $0x50] sm:$0xff]  ;;  %4 = vst [vmem:[%s345_s1] sm:$0xff] %v112_v0  ;;  %v117_v3 = vld [vmem:[%s344_s0 + $0xc0] sm:$0xff]  ;;  %v140_v15 = vld [vmem:[%s344_s0 + $0xd8] sm:$0xff] }
   0x3   :  { %114 = vst [vmem:[%s345_s1 + $0x70] sm:$0xff] %v113_v1  ;;  %v119_v4 = vld [vmem:[%s344_s0 + $0x40] sm:$0xff]  ;;  %v121_v5 = vld [vmem:[%s344_s0 + $0xb0] sm:$0xff]  ;;  %v142_v16 = vld [vmem:[%s344_s0 + $0x58] sm:$0xff] }
   0x4   :  { %116 = vst [vmem:[%s345_s1 + $0x10] sm:$0xff] %v115_v2  ;;  %v123_v6 = vld [vmem:[%s344_s0 + $0x30] sm:$0xff]  ;;  %v125_v7 = vld [vmem:[%s344_s0 + $0xa0] sm:$0xff]  ;;  %v144_v17 = vld [vmem:[%s344_s0 + $0xc8] sm:$0xff] }
   0x5   :  { %118 = vst [vmem:[%s345_s1 + $0x80] sm:$0xff] %v117_v3  ;;  %v127_v8 = vld [vmem:[%s344_s0 + $0x20] sm:$0xff]  ;;  %v129_v9 = vld [vmem:[%s344_s0 + $0x90] sm:$0xff]  ;;  %v146_v18 = vld [vmem:[%s344_s0 + $0x48] sm:$0xff] }
   0x6   :  { %120 = vst [vmem:[%s345_s1 + $0x20] sm:$0xff] %v119_v4  ;;  %v131_v10 = vld [vmem:[%s344_s0 + $0x10] sm:$0xff]  ;;  %v133_v11 = vld [vmem:[%s344_s0 + $0x80] sm:$0xff]  ;;  %v148_v19 = vld [vmem:[%s344_s0 + $0xb8] sm:$0xff] }
   0x7   :  { %122 = vst [vmem:[%s345_s1 + $0x90] sm:$0xff] %v121_v5  ;;  %v49_v12 = vld [vmem:[%s344_s0] sm:$0xff]  ;;  %v136_v13 = vld [vmem:[%s344_s0 + $0x70] sm:$0xff]  ;;  %v150_v20 = vld [vmem:[%s344_s0 + $0x38] sm:$0xff] }
   0x8   :  { %124 = vst [vmem:[%s345_s1 + $0x30] sm:$0xff] %v123_v6  ;;  %v152_v21 = vld [vmem:[%s344_s0 + $0xa8] sm:$0xff]  ;;  %v156_v23 = vld [vmem:[%s344_s0 + $0x98] sm:$0xff] }
   0x9   :  { %126 = vst [vmem:[%s345_s1 + $0xa0] sm:$0xff] %v125_v7  ;;  %v154_v22 = vld [vmem:[%s344_s0 + $0x28] sm:$0xff]  ;;  %v158_v24 = vld [vmem:[%s344_s0 + $0x18] sm:$0xff] }
   0xa   :  { %128 = vst [vmem:[%s345_s1 + $0x40] sm:$0xff] %v127_v8  ;;  %v160_v25 = vld [vmem:[%s344_s0 + $0x88] sm:$0xff]  ;;  %v164_v27 = vld [vmem:[%s344_s0 + $0x78] sm:$0xff] }
   0xb   :  { %130 = vst [vmem:[%s345_s1 + $0xb0] sm:$0xff] %v129_v9  ;;  %v162_v26 = vld [vmem:[%s344_s0 + $0x8] sm:$0xff] }
   0xc   :  { %132 = vst [vmem:[%s345_s1 + $0x50] sm:$0xff] %v131_v10 }
   0xd   :  { %134 = vst [vmem:[%s345_s1 + $0xc0] sm:$0xff] %v133_v11 }
   0xe   :  { %135 = vst [vmem:[%s345_s1 + $0x60] sm:$0xff] %v49_v12 }
   0xf   :  { %137 = vst [vmem:[%s345_s1 + $0xd0] sm:$0xff] %v136_v13 }
  0x10   :  { %139 = vst [vmem:[%s345_s1 + $0x8] sm:$0xff] %v138_v14 }
  0x11   :  { %141 = vst [vmem:[%s345_s1 + $0x78] sm:$0xff] %v140_v15 }
  0x12   :  { %143 = vst [vmem:[%s345_s1 + $0x18] sm:$0xff] %v142_v16 }
  0x13   :  { %145 = vst [vmem:[%s345_s1 + $0x88] sm:$0xff] %v144_v17 }
  0x14   :  { %147 = vst [vmem:[%s345_s1 + $0x28] sm:$0xff] %v146_v18 }
  0x15   :  { %149 = vst [vmem:[%s345_s1 + $0x98] sm:$0xff] %v148_v19 }
  0x16   :  { %151 = vst [vmem:[%s345_s1 + $0x38] sm:$0xff] %v150_v20 }
  0x17   :  { %153 = vst [vmem:[%s345_s1 + $0xa8] sm:$0xff] %v152_v21 }
  0x18   :  { %155 = vst [vmem:[%s345_s1 + $0x48] sm:$0xff] %v154_v22 }
  0x19   :  { %157 = vst [vmem:[%s345_s1 + $0xb8] sm:$0xff] %v156_v23 }
  0x1a   :  { %159 = vst [vmem:[%s345_s1 + $0x58] sm:$0xff] %v158_v24 }
  0x1b   :  { %161 = vst [vmem:[%s345_s1 + $0xc8] sm:$0xff] %v160_v25 }
  0x1c   :  { %163 = vst [vmem:[%s345_s1 + $0x68] sm:$0xff] %v162_v26 }
  0x1d   :  { %165 = vst [vmem:[%s345_s1 + $0xd8] sm:$0xff] %v164_v27 }

// kernel: _lambda_.11
= control target key start
LH: loop header
LB: loop body
LE: loop exit
PB: predicated region body
PF: predicated region fallthrough
CT: control target
= control target key end

     0   :  { %vm299_vm0 = vcmask 523264   ;;  %vm1036_vm1 = vcmask 517120   ;;  %s2144_s1 = inlined_call_operand.vmem [shape: f32[32,64,64], index: 1, kind: input, shape index: {}]   ;;  %s2145_s0 = inlined_call_operand.vmem [shape: f32[32,2,64], index: 0, kind: input, shape index: {}]   ;;  %s2146_s2 = inlined_call_operand.vmem [shape: f32[32,2,64], index: 2, kind: output, shape index: {}]  }
   0x1   :  { %v66_v0 = vld [vmem:[%s2144_s1 + $0xb8] sm:$0xff]  ;;  %v65_v2 = vld [vmem:[%s2144_s1 + $0xb0] sm:$0xff]  ;;  %v64_v4 = vld [vmem:[%s2144_s1 + $0xa8] sm:$0xff] }
   0x2   :  { %v74_v1 = vld [vmem:[%s2144_s1 + $0xf8] sm:$0xff]  ;;  %357 = vmatpush.msra.mxu2 %v66_v0  ;;  %v73_v3 = vld [vmem:[%s2144_s1 + $0xf0] sm:$0xff]  ;;  %v72_v5 = vld [vmem:[%s2144_s1 + $0xe8] sm:$0xff] }
   0x3   :  { %380 = vmatpush.msra.mxu3 %v74_v1  ;;  %v50_v6 = vld [vmem:[%s2144_s1 + $0x38] sm:$0xff]  ;;  %v49_v8 = vld [vmem:[%s2144_s1 + $0x30] sm:$0xff]  ;;  %v63_v10 = vld [vmem:[%s2144_s1 + $0xa0] sm:$0xff] }
   0x4   :  { %v58_v7 = vld [vmem:[%s2144_s1 + $0x78] sm:$0xff]  ;;  %358 = vmatpush.msra.mxu2 %v65_v2  ;;  %v57_v9 = vld [vmem:[%s2144_s1 + $0x70] sm:$0xff]  ;;  %311 = vmatpush.msra.mxu0 %v50_v6  ;;  %v71_v11 = vld [vmem:[%s2144_s1 + $0xe0] sm:$0xff] }
   0x5   :  { %381 = vmatpush.msra.mxu3 %v73_v3  ;;  %334 = vmatpush.msra.mxu1 %v58_v7  ;;  %v48_v12 = vld [vmem:[%s2144_s1 + $0x28] sm:$0xff]  ;;  %v62_v14 = vld [vmem:[%s2144_s1 + $0x98] sm:$0xff]  ;;  %v47_v16 = vld [vmem:[%s2144_s1 + $0x20] sm:$0xff] }
   0x6   :  { %359 = vmatpush.msra.mxu2 %v64_v4  ;;  %v56_v13 = vld [vmem:[%s2144_s1 + $0x68] sm:$0xff]  ;;  %312 = vmatpush.msra.mxu0 %v49_v8  ;;  %v70_v15 = vld [vmem:[%s2144_s1 + $0xd8] sm:$0xff]  ;;  %v55_v17 = vld [vmem:[%s2144_s1 + $0x60] sm:$0xff] }
   0x7   :  { %382 = vmatpush.msra.mxu3 %v72_v5  ;;  %335 = vmatpush.msra.mxu1 %v57_v9  ;;  %v61_v18 = vld [vmem:[%s2144_s1 + $0x90] sm:$0xff]  ;;  %v46_v20 = vld [vmem:[%s2144_s1 + $0x18] sm:$0xff]  ;;  %v60_v22 = vld [vmem:[%s2144_s1 + $0x88] sm:$0xff] }
   0x8   :  { %360 = vmatpush.msra.mxu2 %v63_v10  ;;  %313 = vmatpush.msra.mxu0 %v48_v12  ;;  %v69_v19 = vld [vmem:[%s2144_s1 + $0xd0] sm:$0xff]  ;;  %v54_v21 = vld [vmem:[%s2144_s1 + $0x58] sm:$0xff]  ;;  %v68_v23 = vld [vmem:[%s2144_s1 + $0xc8] sm:$0xff] }
   0x9   :  { %383 = vmatpush.msra.mxu3 %v71_v11  ;;  %336 = vmatpush.msra.mxu1 %v56_v13  ;;  %v45_v24 = vld [vmem:[%s2144_s1 + $0x10] sm:$0xff]  ;;  %v59_v26 = vld [vmem:[%s2144_s1 + $0x80] sm:$0xff]  ;;  %v98_v28 = vld [vmem:[%s2144_s1 + $0x1b8] sm:$0xff] }
   0xa   :  { %361 = vmatpush.msra.mxu2 %v62_v14  ;;  %314 = vmatpush.msra.mxu0 %v47_v16  ;;  %v53_v25 = vld [vmem:[%s2144_s1 + $0x50] sm:$0xff]  ;;  %v67_v27 = vld [vmem:[%s2144_s1 + $0xc0] sm:$0xff]  ;;  %v106_v29 = vld [vmem:[%s2144_s1 + $0x1f8] sm:$0xff] }
   0xb   :  { %384 = vmatpush.msra.mxu3 %v70_v15  ;;  %337 = vmatpush.msra.mxu1 %v55_v17  ;;  %v44_v30 = vld [vmem:[%s2144_s1 + $0x8] sm:$0xff]  ;;  %v97_v32 = vld [vmem:[%s2144_s1 + $0x1b0] sm:$0xff]  ;;  %v43_v34 = vld [vmem:[%s2144_s1] sm:$0xff] }
   0xc   :  { %362 = vmatpush.msra.mxu2 %v61_v18  ;;  %315 = vmatpush.msra.mxu0 %v46_v20  ;;  %v52_v31 = vld [vmem:[%s2144_s1 + $0x48] sm:$0xff]  ;;  %v105_v33 = vld [vmem:[%s2144_s1 + $0x1f0] sm:$0xff]  ;;  %v51_v35 = vld [vmem:[%s2144_s1 + $0x40] sm:$0xff] }
   0xd   :  { %385 = vmatpush.msra.mxu3 %v69_v19  ;;  %338 = vmatpush.msra.mxu1 %v54_v21  ;;  %v96_v36 = vld [vmem:[%s2144_s1 + $0x1a8] sm:$0xff]  ;;  %v82_v38 = vld [vmem:[%s2144_s1 + $0x138] sm:$0xff]  ;;  %v95_v40 = vld [vmem:[%s2144_s1 + $0x1a0] sm:$0xff] }
   0xe   :  { %363 = vmatpush.msra.mxu2 %v60_v22  ;;  %316 = vmatpush.msra.mxu0 %v45_v24  ;;  %v104_v37 = vld [vmem:[%s2144_s1 + $0x1e8] sm:$0xff]  ;;  %v90_v39 = vld [vmem:[%s2144_s1 + $0x178] sm:$0xff]  ;;  %v103_v41 = vld [vmem:[%s2144_s1 + $0x1e0] sm:$0xff] }
   0xf   :  { %386 = vmatpush.msra.mxu3 %v68_v23  ;;  %339 = vmatpush.msra.mxu1 %v53_v25  ;;  %v81_v42 = vld [vmem:[%s2144_s1 + $0x130] sm:$0xff]  ;;  %v94_v44 = vld [vmem:[%s2144_s1 + $0x198] sm:$0xff]  ;;  %v80_v46 = vld [vmem:[%s2144_s1 + $0x128] sm:$0xff] }
  0x10   :  { %364 = vmatpush.msra.mxu2 %v59_v26  ;;  %317 = vmatpush.msra.mxu0 %v44_v30  ;;  %v89_v43 = vld [vmem:[%s2144_s1 + $0x170] sm:$0xff]  ;;  %v102_v45 = vld [vmem:[%s2144_s1 + $0x1d8] sm:$0xff]  ;;  %v88_v47 = vld [vmem:[%s2144_s1 + $0x168] sm:$0xff] }
  0x11   :  { %387 = vmatpush.msra.mxu3 %v67_v27  ;;  %340 = vmatpush.msra.mxu1 %v52_v31  ;;  %v93_v48 = vld [vmem:[%s2144_s1 + $0x190] sm:$0xff]  ;;  %v79_v50 = vld [vmem:[%s2144_s1 + $0x120] sm:$0xff]  ;;  %v92_v52 = vld [vmem:[%s2144_s1 + $0x188] sm:$0xff] }
  0x12   :  { %449 = vmatpush.msrb.mxu2 %v98_v28  ;;  %318 = vmatpush.msra.mxu0 %v43_v34  ;;  %v101_v49 = vld [vmem:[%s2144_s1 + $0x1d0] sm:$0xff]  ;;  %v87_v51 = vld [vmem:[%s2144_s1 + $0x160] sm:$0xff]  ;;  %v100_v53 = vld [vmem:[%s2144_s1 + $0x1c8] sm:$0xff] }
  0x13   :  { %472 = vmatpush.msrb.mxu3 %v106_v29  ;;  %341 = vmatpush.msra.mxu1 %v51_v35  ;;  %v78_v54 = vld [vmem:[%s2144_s1 + $0x118] sm:$0xff]  ;;  %v91_v56 = vld [vmem:[%s2144_s1 + $0x180] sm:$0xff]  ;;  %v77_v62 = vld [vmem:[%s2144_s1 + $0x110] sm:$0xff] }
  0x14   :  { %450 = vmatpush.msrb.mxu2 %v97_v32  ;;  %403 = vmatpush.msrb.mxu0 %v82_v38  ;;  %v86_v55 = vld [vmem:[%s2144_s1 + $0x158] sm:$0xff]  ;;  %v99_v57 = vld [vmem:[%s2144_s1 + $0x1c0] sm:$0xff]  ;;  %v85_v63 = vld [vmem:[%s2144_s1 + $0x150] sm:$0xff] }
  0x15   :  { %473 = vmatpush.msrb.mxu3 %v105_v33  ;;  %426 = vmatpush.msrb.mxu1 %v90_v39  ;;  %v13_v58 = vld [vmem:[%s2145_s0 + $0x4] sm:$0x3]  ;;  %v14_v59 = vld [vmem:[%s2145_s0 + $0x6] sm:$0x3]  ;;  %v130_v60 = vld [vmem:[%s2144_s1 + $0x2b8] sm:$0xff] }
  0x16   :  { %451 = vmatpush.msrb.mxu2 %v96_v36  ;;  %404 = vmatpush.msrb.mxu0 %v81_v42  ;;  %v138_v61 = vld [vmem:[%s2144_s1 + $0x2f8] sm:$0xff]  ;;  %v129_v0 = vld [vmem:[%s2144_s1 + $0x2b0] sm:$0xff]  ;;  %v76_v2 = vld [vmem:[%s2144_s1 + $0x108] sm:$0xff] }
  0x17   :  { %474 = vmatpush.msrb.mxu3 %v104_v37  ;;  %427 = vmatpush.msrb.mxu1 %v89_v43  ;;  %v137_v1 = vld [vmem:[%s2144_s1 + $0x2f0] sm:$0xff]  ;;  %v84_v3 = vld [vmem:[%s2144_s1 + $0x148] sm:$0xff]  ;;  %v75_v6 = vld [vmem:[%s2144_s1 + $0x100] sm:$0xff] }
  0x18   :  { %452 = vmatpush.msrb.mxu2 %v95_v40  ;;  %405 = vmatpush.msrb.mxu0 %v80_v46  ;;  %v128_v4 = vld [vmem:[%s2144_s1 + $0x2a8] sm:$0xff]  ;;  %v83_v7 = vld [vmem:[%s2144_s1 + $0x140] sm:$0xff]  ;;  %v114_v10 = vld [vmem:[%s2144_s1 + $0x238] sm:$0xff] }
  0x19   :  { %475 = vmatpush.msrb.mxu3 %v103_v41  ;;  %428 = vmatpush.msrb.mxu1 %v88_v47  ;;  %v136_v5 = vld [vmem:[%s2144_s1 + $0x2e8] sm:$0xff]  ;;  %v11_v8 = vld [vmem:[%s2145_s0] sm:$0x3]  ;;  %v12_v9 = vld [vmem:[%s2145_s0 + $0x2] sm:$0x3] }
  0x1a   :  { %453 = vmatpush.msrb.mxu2 %v94_v44  ;;  %406 = vmatpush.msrb.mxu0 %v79_v50  ;;  %v122_v11 = vld [vmem:[%s2144_s1 + $0x278] sm:$0xff]  ;;  %v127_v12 = vld [vmem:[%s2144_s1 + $0x2a0] sm:$0xff]  ;;  %v113_v14 = vld [vmem:[%s2144_s1 + $0x230] sm:$0xff] }
  0x1b   :  { %476 = vmatpush.msrb.mxu3 %v102_v45  ;;  %429 = vmatpush.msrb.mxu1 %v87_v51  ;;  %v135_v13 = vld [vmem:[%s2144_s1 + $0x2e0] sm:$0xff]  ;;  %v121_v15 = vld [vmem:[%s2144_s1 + $0x270] sm:$0xff]  ;;  %v126_v16 = vld [vmem:[%s2144_s1 + $0x298] sm:$0xff] }
  0x1c   :  { %454 = vmatpush.msrb.mxu2 %v93_v48  ;;  %407 = vmatpush.msrb.mxu0 %v78_v54  ;;  %v134_v17 = vld [vmem:[%s2144_s1 + $0x2d8] sm:$0xff]  ;;  %v112_v18 = vld [vmem:[%s2144_s1 + $0x228] sm:$0xff]  ;;  %v125_v20 = vld [vmem:[%s2144_s1 + $0x290] sm:$0xff] }
  0x1d   :  { %477 = vmatpush.msrb.mxu3 %v101_v49  ;;  %430 = vmatpush.msrb.mxu1 %v86_v55  ;;  %v120_v19 = vld [vmem:[%s2144_s1 + $0x268] sm:$0xff]  ;;  %v133_v21 = vld [vmem:[%s2144_s1 + $0x2d0] sm:$0xff]  ;;  %v111_v22 = vld [vmem:[%s2144_s1 + $0x220] sm:$0xff] }
  0x1e   :  { %455 = vmatpush.msrb.mxu2 %v92_v52  ;;  %1076 = vmatmul.msk.f32.vlgmr.msra.gmra.mxu3 %vm299_vm0, %v14_v59  ;;  %v119_v23 = vld [vmem:[%s2144_s1 + $0x260] sm:$0xff]  ;;  %v124_v24 = vld [vmem:[%s2144_s1 + $0x288] sm:$0xff]  ;;  %v110_v26 = vld [vmem:[%s2144_s1 + $0x218] sm:$0xff] }
  0x1f   :  { %478 = vmatpush.msrb.mxu3 %v100_v53  ;;  %1075 = vmatmul.msk.f32.vlgmr.msra.gmra.mxu2 %vm299_vm0, %v13_v58  ;;  %v132_v25 = vld [vmem:[%s2144_s1 + $0x2c8] sm:$0xff]  ;;  %v118_v27 = vld [vmem:[%s2144_s1 + $0x258] sm:$0xff]  ;;  %v123_v28 = vld [vmem:[%s2144_s1 + $0x280] sm:$0xff] }
  0x20   :  { %456 = vmatpush.msrb.mxu2 %v91_v56  ;;  %408 = vmatpush.msrb.mxu0 %v77_v62  ;;  %v131_v29 = vld [vmem:[%s2144_s1 + $0x2c0] sm:$0xff]  ;;  %v17_v30 = vld [vmem:[%s2145_s0 + $0xc] sm:$0x3]  ;;  %v18_v31 = vld [vmem:[%s2145_s0 + $0xe] sm:$0x3] }
  0x21   :  { %479 = vmatpush.msrb.mxu3 %v99_v57  ;;  %431 = vmatpush.msrb.mxu1 %v85_v63  ;;  %v162_v32 = vld [vmem:[%s2144_s1 + $0x3b8] sm:$0xff]  ;;  %v109_v34 = vld [vmem:[%s2144_s1 + $0x210] sm:$0xff]  ;;  %v108_v38 = vld [vmem:[%s2144_s1 + $0x208] sm:$0xff] }
  0x22   :  { %541 = vmatpush.msra.mxu2 %v130_v60  ;;  %409 = vmatpush.msrb.mxu0 %v76_v2  ;;  %v170_v33 = vld [vmem:[%s2144_s1 + $0x3f8] sm:$0xff]  ;;  %v117_v35 = vld [vmem:[%s2144_s1 + $0x250] sm:$0xff]  ;;  %v116_v39 = vld [vmem:[%s2144_s1 + $0x248] sm:$0xff] }
  0x23   :  { %564 = vmatpush.msra.mxu3 %v138_v61  ;;  %432 = vmatpush.msrb.mxu1 %v84_v3  ;;  %v161_v36 = vld [vmem:[%s2144_s1 + $0x3b0] sm:$0xff]  ;;  %v160_v40 = vld [vmem:[%s2144_s1 + $0x3a8] sm:$0xff]  ;;  %v107_v42 = vld [vmem:[%s2144_s1 + $0x200] sm:$0xff] }
  0x24   :  { %542 = vmatpush.msra.mxu2 %v129_v0  ;;  %410 = vmatpush.msrb.mxu0 %v75_v6  ;;  %v169_v37 = vld [vmem:[%s2144_s1 + $0x3f0] sm:$0xff]  ;;  %v168_v41 = vld [vmem:[%s2144_s1 + $0x3e8] sm:$0xff]  ;;  %v115_v43 = vld [vmem:[%s2144_s1 + $0x240] sm:$0xff] }
  0x25   :  { %565 = vmatpush.msra.mxu3 %v137_v1  ;;  %433 = vmatpush.msrb.mxu1 %v83_v7  ;;  %v15_v44 = vld [vmem:[%s2145_s0 + $0x8] sm:$0x3]  ;;  %v16_v45 = vld [vmem:[%s2145_s0 + $0xa] sm:$0x3]  ;;  %v146_v46 = vld [vmem:[%s2144_s1 + $0x338] sm:$0xff] }
  0x26   :  { %543 = vmatpush.msra.mxu2 %v128_v4  ;;  %1073 = vmatmul.msk.f32.vlgmr.msra.gmra.mxu0 %vm299_vm0, %v11_v8  ;;  %v154_v47 = vld [vmem:[%s2144_s1 + $0x378] sm:$0xff]  ;;  %v159_v48 = vld [vmem:[%s2144_s1 + $0x3a0] sm:$0xff]  ;;  %v145_v50 = vld [vmem:[%s2144_s1 + $0x330] sm:$0xff] }
  0x27   :  { %566 = vmatpush.msra.mxu3 %v136_v5  ;;  %1074 = vmatmul.msk.f32.vlgmr.msra.gmra.mxu1 %vm299_vm0, %v12_v9  ;;  %v167_v49 = vld [vmem:[%s2144_s1 + $0x3e0] sm:$0xff]  ;;  %v153_v51 = vld [vmem:[%s2144_s1 + $0x370] sm:$0xff]  ;;  %v158_v52 = vld [vmem:[%s2144_s1 + $0x398] sm:$0xff] }
  0x28   :  { %495 = vmatpush.msra.mxu0 %v114_v10  ;;  %518 = vmatpush.msra.mxu1 %v122_v11  ;;  %v166_v53 = vld [vmem:[%s2144_s1 + $0x3d8] sm:$0xff]  ;;  %v144_v54 = vld [vmem:[%s2144_s1 + $0x328] sm:$0xff]  ;;  %v157_v56 = vld [vmem:[%s2144_s1 + $0x390] sm:$0xff] }
  0x29   :  { %544 = vmatpush.msra.mxu2 %v127_v12  ;;  %567 = vmatpush.msra.mxu3 %v135_v13  ;;  %v152_v55 = vld [vmem:[%s2144_s1 + $0x368] sm:$0xff]  ;;  %v165_v57 = vld [vmem:[%s2144_s1 + $0x3d0] sm:$0xff]  ;;  %v143_v58 = vld [vmem:[%s2144_s1 + $0x320] sm:$0xff] }
  0x2a   :  { %496 = vmatpush.msra.mxu0 %v113_v14  ;;  %519 = vmatpush.msra.mxu1 %v121_v15  ;;  %v151_v59 = vld [vmem:[%s2144_s1 + $0x360] sm:$0xff]  ;;  %v156_v60 = vld [vmem:[%s2144_s1 + $0x388] sm:$0xff]  ;;  %v142_v62 = vld [vmem:[%s2144_s1 + $0x318] sm:$0xff] }
  0x2b   :  { %545 = vmatpush.msra.mxu2 %v126_v16  ;;  %568 = vmatpush.msra.mxu3 %v134_v17  ;;  %v164_v61 = vld [vmem:[%s2144_s1 + $0x3c8] sm:$0xff]  ;;  %v150_v63 = vld [vmem:[%s2144_s1 + $0x358] sm:$0xff]  ;;  %v155_v0 = vld [vmem:[%s2144_s1 + $0x380] sm:$0xff] }
  0x2c   :  { %497 = vmatpush.msra.mxu0 %v112_v18  ;;  %520 = vmatpush.msra.mxu1 %v120_v19  ;;  %v163_v1 = vld [vmem:[%s2144_s1 + $0x3c0] sm:$0xff]  ;;  %v21_v2 = vld [vmem:[%s2145_s0 + $0x14] sm:$0x3]  ;;  %v22_v3 = vld [vmem:[%s2145_s0 + $0x16] sm:$0x3] }
  0x2d   :  { %546 = vmatpush.msra.mxu2 %v125_v20  ;;  %569 = vmatpush.msra.mxu3 %v133_v21  ;;  %v194_v4 = vld [vmem:[%s2144_s1 + $0x4b8] sm:$0xff]  ;;  %v141_v6 = vld [vmem:[%s2144_s1 + $0x310] sm:$0xff]  ;;  %v140_v10 = vld [vmem:[%s2144_s1 + $0x308] sm:$0xff] }
  0x2e   :  { %498 = vmatpush.msra.mxu0 %v111_v22  ;;  %521 = vmatpush.msra.mxu1 %v119_v23  ;;  %v202_v5 = vld [vmem:[%s2144_s1 + $0x4f8] sm:$0xff]  ;;  %v149_v7 = vld [vmem:[%s2144_s1 + $0x350] sm:$0xff]  ;;  %v148_v11 = vld [vmem:[%s2144_s1 + $0x348] sm:$0xff] }
  0x2f   :  { %547 = vmatpush.msra.mxu2 %v124_v24  ;;  %570 = vmatpush.msra.mxu3 %v132_v25  ;;  %v193_v8 = vld [vmem:[%s2144_s1 + $0x4b0] sm:$0xff]  ;;  %v192_v12 = vld [vmem:[%s2144_s1 + $0x4a8] sm:$0xff]  ;;  %v139_v14 = vld [vmem:[%s2144_s1 + $0x300] sm:$0xff] }
  0x30   :  { %499 = vmatpush.msra.mxu0 %v110_v26  ;;  %522 = vmatpush.msra.mxu1 %v118_v27  ;;  %v201_v9 = vld [vmem:[%s2144_s1 + $0x4f0] sm:$0xff]  ;;  %v200_v13 = vld [vmem:[%s2144_s1 + $0x4e8] sm:$0xff]  ;;  %v147_v15 = vld [vmem:[%s2144_s1 + $0x340] sm:$0xff] }
  0x31   :  { %548 = vmatpush.msra.mxu2 %v123_v28  ;;  %571 = vmatpush.msra.mxu3 %v131_v29  ;;  %v19_v16 = vld [vmem:[%s2145_s0 + $0x10] sm:$0x3]  ;;  %v20_v17 = vld [vmem:[%s2145_s0 + $0x12] sm:$0x3]  ;;  %v178_v18 = vld [vmem:[%s2144_s1 + $0x438] sm:$0xff] }
  0x32   :  { %1079 = vmatmul.msk.f32.vlgmr.msrb.gmra.mxu2 %vm299_vm0, %v17_v30  ;;  %1080 = vmatmul.msk.f32.vlgmr.msrb.gmra.mxu3 %vm299_vm0, %v18_v31  ;;  %v186_v19 = vld [vmem:[%s2144_s1 + $0x478] sm:$0xff]  ;;  %v191_v20 = vld [vmem:[%s2144_s1 + $0x4a0] sm:$0xff]  ;;  %v177_v22 = vld [vmem:[%s2144_s1 + $0x430] sm:$0xff] }
  0x33   :  { %633 = vmatpush.msrb.mxu2 %v162_v32  ;;  %656 = vmatpush.msrb.mxu3 %v170_v33  ;;  %v199_v21 = vld [vmem:[%s2144_s1 + $0x4e0] sm:$0xff]  ;;  %v185_v23 = vld [vmem:[%s2144_s1 + $0x470] sm:$0xff]  ;;  %v190_v24 = vld [vmem:[%s2144_s1 + $0x498] sm:$0xff] }
  0x34   :  { %500 = vmatpush.msra.mxu0 %v109_v34  ;;  %523 = vmatpush.msra.mxu1 %v117_v35  ;;  %v198_v25 = vld [vmem:[%s2144_s1 + $0x4d8] sm:$0xff]  ;;  %v176_v26 = vld [vmem:[%s2144_s1 + $0x428] sm:$0xff]  ;;  %v189_v28 = vld [vmem:[%s2144_s1 + $0x490] sm:$0xff] }
  0x35   :  { %634 = vmatpush.msrb.mxu2 %v161_v36  ;;  %657 = vmatpush.msrb.mxu3 %v169_v37  ;;  %v184_v27 = vld [vmem:[%s2144_s1 + $0x468] sm:$0xff]  ;;  %v197_v29 = vld [vmem:[%s2144_s1 + $0x4d0] sm:$0xff]  ;;  %v175_v30 = vld [vmem:[%s2144_s1 + $0x420] sm:$0xff] }
  0x36   :  { %501 = vmatpush.msra.mxu0 %v108_v38  ;;  %524 = vmatpush.msra.mxu1 %v116_v39  ;;  %v183_v31 = vld [vmem:[%s2144_s1 + $0x460] sm:$0xff]  ;;  %v188_v32 = vld [vmem:[%s2144_s1 + $0x488] sm:$0xff]  ;;  %v174_v34 = vld [vmem:[%s2144_s1 + $0x418] sm:$0xff] }
  0x37   :  { %635 = vmatpush.msrb.mxu2 %v160_v40  ;;  %658 = vmatpush.msrb.mxu3 %v168_v41  ;;  %v196_v33 = vld [vmem:[%s2144_s1 + $0x4c8] sm:$0xff]  ;;  %v182_v35 = vld [vmem:[%s2144_s1 + $0x458] sm:$0xff]  ;;  %v187_v36 = vld [vmem:[%s2144_s1 + $0x480] sm:$0xff] }
  0x38   :  { %502 = vmatpush.msra.mxu0 %v107_v42  ;;  %525 = vmatpush.msra.mxu1 %v115_v43  ;;  %v195_v37 = vld [vmem:[%s2144_s1 + $0x4c0] sm:$0xff]  ;;  %v25_v38 = vld [vmem:[%s2145_s0 + $0x1c] sm:$0x3]  ;;  %v26_v39 = vld [vmem:[%s2145_s0 + $0x1e] sm:$0x3] }
  0x39   :  { %1077 = vmatmul.msk.f32.vlgmr.msrb.gmra.mxu0 %vm299_vm0, %v15_v44  ;;  %1078 = vmatmul.msk.f32.vlgmr.msrb.gmra.mxu1 %vm299_vm0, %v16_v45  ;;  %v226_v40 = vld [vmem:[%s2144_s1 + $0x5b8] sm:$0xff]  ;;  %v173_v42 = vld [vmem:[%s2144_s1 + $0x410] sm:$0xff] }
  0x3a   :  { %587 = vmatpush.msrb.mxu0 %v146_v46  ;;  %610 = vmatpush.msrb.mxu1 %v154_v47  ;;  %v234_v41 = vld [vmem:[%s2144_s1 + $0x5f8] sm:$0xff]  ;;  %v181_v43 = vld [vmem:[%s2144_s1 + $0x450] sm:$0xff]  ;;  %v172_v46 = vld [vmem:[%s2144_s1 + $0x408] sm:$0xff] }
  0x3b   :  { %636 = vmatpush.msrb.mxu2 %v159_v48  ;;  %659 = vmatpush.msrb.mxu3 %v167_v49  ;;  %v225_v44 = vld [vmem:[%s2144_s1 + $0x5b0] sm:$0xff]  ;;  %v180_v47 = vld [vmem:[%s2144_s1 + $0x448] sm:$0xff] }
  0x3c   :  { %588 = vmatpush.msrb.mxu0 %v145_v50  ;;  %611 = vmatpush.msrb.mxu1 %v153_v51  ;;  %v233_v45 = vld [vmem:[%s2144_s1 + $0x5f0] sm:$0xff]  ;;  %v224_v48 = vld [vmem:[%s2144_s1 + $0x5a8] sm:$0xff]  ;;  %v171_v50 = vld [vmem:[%s2144_s1 + $0x400] sm:$0xff] }
  0x3d   :  { %637 = vmatpush.msrb.mxu2 %v158_v52  ;;  %660 = vmatpush.msrb.mxu3 %v166_v53  ;;  %v232_v49 = vld [vmem:[%s2144_s1 + $0x5e8] sm:$0xff]  ;;  %v179_v51 = vld [vmem:[%s2144_s1 + $0x440] sm:$0xff]  ;;  %v23_v52 = vld [vmem:[%s2145_s0 + $0x18] sm:$0x3] }
  0x3e   :  { %589 = vmatpush.msrb.mxu0 %v144_v54  ;;  %612 = vmatpush.msrb.mxu1 %v152_v55  ;;  %v24_v53 = vld [vmem:[%s2145_s0 + $0x1a] sm:$0x3] }
  0x3f   :  { %638 = vmatpush.msrb.mxu2 %v157_v56  ;;  %661 = vmatpush.msrb.mxu3 %v165_v57  ;;  %v210_v54 = vld [vmem:[%s2144_s1 + $0x538] sm:$0xff]  ;;  %v223_v56 = vld [vmem:[%s2144_s1 + $0x5a0] sm:$0xff] }
  0x40   :  { %590 = vmatpush.msrb.mxu0 %v143_v58  ;;  %613 = vmatpush.msrb.mxu1 %v151_v59  ;;  %v218_v55 = vld [vmem:[%s2144_s1 + $0x578] sm:$0xff]  ;;  %v231_v57 = vld [vmem:[%s2144_s1 + $0x5e0] sm:$0xff]  ;;  %v209_v58 = vld [vmem:[%s2144_s1 + $0x530] sm:$0xff] }
  0x41   :  { %639 = vmatpush.msrb.mxu2 %v156_v60  ;;  %662 = vmatpush.msrb.mxu3 %v164_v61  ;;  %v217_v59 = vld [vmem:[%s2144_s1 + $0x570] sm:$0xff]  ;;  %v222_v60 = vld [vmem:[%s2144_s1 + $0x598] sm:$0xff] }
  0x42   :  { %591 = vmatpush.msrb.mxu0 %v142_v62  ;;  %614 = vmatpush.msrb.mxu1 %v150_v63  ;;  %v230_v61 = vld [vmem:[%s2144_s1 + $0x5d8] sm:$0xff]  ;;  %v208_v62 = vld [vmem:[%s2144_s1 + $0x528] sm:$0xff] }
  0x43   :  { %640 = vmatpush.msrb.mxu2 %v155_v0  ;;  %663 = vmatpush.msrb.mxu3 %v163_v1  ;;  %v216_v63 = vld [vmem:[%s2144_s1 + $0x568] sm:$0xff]  ;;  %v221_v0 = vld [vmem:[%s2144_s1 + $0x590] sm:$0xff] }
  0x44   :  { %1083 = vmatmul.msk.f32.vlgmr.msra.gmra.mxu2 %vm299_vm0, %v21_v2  ;;  %1084 = vmatmul.msk.f32.vlgmr.msra.gmra.mxu3 %vm299_vm0, %v22_v3  ;;  %v229_v1 = vld [vmem:[%s2144_s1 + $0x5d0] sm:$0xff]  ;;  %v207_v2 = vld [vmem:[%s2144_s1 + $0x520] sm:$0xff] }
  0x45   :  { %725 = vmatpush.msra.mxu2 %v194_v4  ;;  %748 = vmatpush.msra.mxu3 %v202_v5  ;;  %v215_v3 = vld [vmem:[%s2144_s1 + $0x560] sm:$0xff]  ;;  %v220_v4 = vld [vmem:[%s2144_s1 + $0x588] sm:$0xff] }
  0x46   :  { %592 = vmatpush.msrb.mxu0 %v141_v6  ;;  %615 = vmatpush.msrb.mxu1 %v149_v7  ;;  %v228_v5 = vld [vmem:[%s2144_s1 + $0x5c8] sm:$0xff]  ;;  %v206_v6 = vld [vmem:[%s2144_s1 + $0x518] sm:$0xff] }
  0x47   :  { %726 = vmatpush.msra.mxu2 %v193_v8  ;;  %749 = vmatpush.msra.mxu3 %v201_v9  ;;  %v214_v7 = vld [vmem:[%s2144_s1 + $0x558] sm:$0xff]  ;;  %v219_v8 = vld [vmem:[%s2144_s1 + $0x580] sm:$0xff] }
  0x48   :  { %593 = vmatpush.msrb.mxu0 %v140_v10  ;;  %616 = vmatpush.msrb.mxu1 %v148_v11  ;;  %v227_v9 = vld [vmem:[%s2144_s1 + $0x5c0] sm:$0xff] }
  0x49   :  { %727 = vmatpush.msra.mxu2 %v192_v12  ;;  %750 = vmatpush.msra.mxu3 %v200_v13  ;;  %v29_v10 = vld [vmem:[%s2145_s0 + $0x24] sm:$0x3]  ;;  %v30_v11 = vld [vmem:[%s2145_s0 + $0x26] sm:$0x3]  ;;  %v258_v12 = vld [vmem:[%s2144_s1 + $0x6b8] sm:$0xff] }
  0x4a   :  { %594 = vmatpush.msrb.mxu0 %v139_v14  ;;  %617 = vmatpush.msrb.mxu1 %v147_v15  ;;  %v266_v13 = vld [vmem:[%s2144_s1 + $0x6f8] sm:$0xff]  ;;  %v205_v14 = vld [vmem:[%s2144_s1 + $0x510] sm:$0xff] }
  0x4b   :  { %1081 = vmatmul.msk.f32.vlgmr.msra.gmra.mxu0 %vm299_vm0, %v19_v16  ;;  %1082 = vmatmul.msk.f32.vlgmr.msra.gmra.mxu1 %vm299_vm0, %v20_v17  ;;  %v213_v15 = vld [vmem:[%s2144_s1 + $0x550] sm:$0xff] }
  0x4c   :  { %679 = vmatpush.msra.mxu0 %v178_v18  ;;  %702 = vmatpush.msra.mxu1 %v186_v19  ;;  %v257_v16 = vld [vmem:[%s2144_s1 + $0x6b0] sm:$0xff]  ;;  %v204_v18 = vld [vmem:[%s2144_s1 + $0x508] sm:$0xff] }
  0x4d   :  { %728 = vmatpush.msra.mxu2 %v191_v20  ;;  %751 = vmatpush.msra.mxu3 %v199_v21  ;;  %v265_v17 = vld [vmem:[%s2144_s1 + $0x6f0] sm:$0xff]  ;;  %v212_v19 = vld [vmem:[%s2144_s1 + $0x548] sm:$0xff] }
  0x4e   :  { %680 = vmatpush.msra.mxu0 %v177_v22  ;;  %703 = vmatpush.msra.mxu1 %v185_v23  ;;  %v256_v20 = vld [vmem:[%s2144_s1 + $0x6a8] sm:$0xff]  ;;  %v203_v22 = vld [vmem:[%s2144_s1 + $0x500] sm:$0xff] }
  0x4f   :  { %729 = vmatpush.msra.mxu2 %v190_v24  ;;  %752 = vmatpush.msra.mxu3 %v198_v25  ;;  %v264_v21 = vld [vmem:[%s2144_s1 + $0x6e8] sm:$0xff]  ;;  %v211_v23 = vld [vmem:[%s2144_s1 + $0x540] sm:$0xff] }
  0x50   :  { %681 = vmatpush.msra.mxu0 %v176_v26  ;;  %704 = vmatpush.msra.mxu1 %v184_v27  ;;  %v27_v24 = vld [vmem:[%s2145_s0 + $0x20] sm:$0x3]  ;;  %v28_v25 = vld [vmem:[%s2145_s0 + $0x22] sm:$0x3]  ;;  %v242_v26 = vld [vmem:[%s2144_s1 + $0x638] sm:$0xff] }
  0x51   :  { %730 = vmatpush.msra.mxu2 %v189_v28  ;;  %753 = vmatpush.msra.mxu3 %v197_v29  ;;  %v250_v27 = vld [vmem:[%s2144_s1 + $0x678] sm:$0xff]  ;;  %v255_v28 = vld [vmem:[%s2144_s1 + $0x6a0] sm:$0xff] }
  0x52   :  { %682 = vmatpush.msra.mxu0 %v175_v30  ;;  %705 = vmatpush.msra.mxu1 %v183_v31  ;;  %v263_v29 = vld [vmem:[%s2144_s1 + $0x6e0] sm:$0xff]  ;;  %v241_v30 = vld [vmem:[%s2144_s1 + $0x630] sm:$0xff] }
  0x53   :  { %731 = vmatpush.msra.mxu2 %v188_v32  ;;  %754 = vmatpush.msra.mxu3 %v196_v33  ;;  %v249_v31 = vld [vmem:[%s2144_s1 + $0x670] sm:$0xff]  ;;  %v254_v32 = vld [vmem:[%s2144_s1 + $0x698] sm:$0xff] }
  0x54   :  { %683 = vmatpush.msra.mxu0 %v174_v34  ;;  %706 = vmatpush.msra.mxu1 %v182_v35  ;;  %v262_v33 = vld [vmem:[%s2144_s1 + $0x6d8] sm:$0xff]  ;;  %v240_v34 = vld [vmem:[%s2144_s1 + $0x628] sm:$0xff] }
  0x55   :  { %732 = vmatpush.msra.mxu2 %v187_v36  ;;  %755 = vmatpush.msra.mxu3 %v195_v37  ;;  %v248_v35 = vld [vmem:[%s2144_s1 + $0x668] sm:$0xff]  ;;  %v253_v36 = vld [vmem:[%s2144_s1 + $0x690] sm:$0xff] }
  0x56   :  { %1087 = vmatmul.msk.f32.vlgmr.msrb.gmra.mxu2 %vm299_vm0, %v25_v38  ;;  %1088 = vmatmul.msk.f32.vlgmr.msrb.gmra.mxu3 %vm299_vm0, %v26_v39  ;;  %v261_v37 = vld [vmem:[%s2144_s1 + $0x6d0] sm:$0xff]  ;;  %v239_v38 = vld [vmem:[%s2144_s1 + $0x620] sm:$0xff] }
  0x57   :  { %817 = vmatpush.msrb.mxu2 %v226_v40  ;;  %840 = vmatpush.msrb.mxu3 %v234_v41  ;;  %v247_v39 = vld [vmem:[%s2144_s1 + $0x660] sm:$0xff]  ;;  %v252_v40 = vld [vmem:[%s2144_s1 + $0x688] sm:$0xff] }
  0x58   :  { %684 = vmatpush.msra.mxu0 %v173_v42  ;;  %707 = vmatpush.msra.mxu1 %v181_v43  ;;  %v260_v41 = vld [vmem:[%s2144_s1 + $0x6c8] sm:$0xff] }
  0x59   :  { %818 = vmatpush.msrb.mxu2 %v225_v44  ;;  %841 = vmatpush.msrb.mxu3 %v233_v45  ;;  %v33_v42 = vld [vmem:[%s2145_s0 + $0x2c] sm:$0x3]  ;;  %v34_v43 = vld [vmem:[%s2145_s0 + $0x2e] sm:$0x3]  ;;  %v238_v44 = vld [vmem:[%s2144_s1 + $0x618] sm:$0xff] }
  0x5a   :  { %685 = vmatpush.msra.mxu0 %v172_v46  ;;  %708 = vmatpush.msra.mxu1 %v180_v47  ;;  %v246_v45 = vld [vmem:[%s2144_s1 + $0x658] sm:$0xff]  ;;  %v251_v46 = vld [vmem:[%s2144_s1 + $0x680] sm:$0xff] }
  0x5b   :  { %819 = vmatpush.msrb.mxu2 %v224_v48  ;;  %842 = vmatpush.msrb.mxu3 %v232_v49  ;;  %v259_v47 = vld [vmem:[%s2144_s1 + $0x6c0] sm:$0xff]  ;;  %v290_v48 = vld [vmem:[%s2144_s1 + $0x7b8] sm:$0xff] }
  0x5c   :  { %686 = vmatpush.msra.mxu0 %v171_v50  ;;  %709 = vmatpush.msra.mxu1 %v179_v51  ;;  %v298_v49 = vld [vmem:[%s2144_s1 + $0x7f8] sm:$0xff]  ;;  %v237_v50 = vld [vmem:[%s2144_s1 + $0x610] sm:$0xff] }
  0x5d   :  { %1085 = vmatmul.msk.f32.vlgmr.msrb.gmra.mxu0 %vm299_vm0, %v23_v52  ;;  %1086 = vmatmul.msk.f32.vlgmr.msrb.gmra.mxu1 %vm299_vm0, %v24_v53  ;;  %v245_v51 = vld [vmem:[%s2144_s1 + $0x650] sm:$0xff] }
  0x5e   :  { %771 = vmatpush.msrb.mxu0 %v210_v54  ;;  %794 = vmatpush.msrb.mxu1 %v218_v55  ;;  %v289_v52 = vld [vmem:[%s2144_s1 + $0x7b0] sm:$0xff]  ;;  %v236_v54 = vld [vmem:[%s2144_s1 + $0x608] sm:$0xff] }
  0x5f   :  { %820 = vmatpush.msrb.mxu2 %v223_v56  ;;  %843 = vmatpush.msrb.mxu3 %v231_v57  ;;  %v297_v53 = vld [vmem:[%s2144_s1 + $0x7f0] sm:$0xff]  ;;  %v244_v55 = vld [vmem:[%s2144_s1 + $0x648] sm:$0xff] }
  0x60   :  { %772 = vmatpush.msrb.mxu0 %v209_v58  ;;  %795 = vmatpush.msrb.mxu1 %v217_v59  ;;  %v288_v56 = vld [vmem:[%s2144_s1 + $0x7a8] sm:$0xff] }
  0x61   :  { %821 = vmatpush.msrb.mxu2 %v222_v60  ;;  %844 = vmatpush.msrb.mxu3 %v230_v61  ;;  %v296_v57 = vld [vmem:[%s2144_s1 + $0x7e8] sm:$0xff]  ;;  %v235_v60 = vld [vmem:[%s2144_s1 + $0x600] sm:$0xff] }
  0x62   :  { %773 = vmatpush.msrb.mxu0 %v208_v62  ;;  %796 = vmatpush.msrb.mxu1 %v216_v63  ;;  %v31_v58 = vld [vmem:[%s2145_s0 + $0x28] sm:$0x3]  ;;  %v32_v59 = vld [vmem:[%s2145_s0 + $0x2a] sm:$0x3]  ;;  %v243_v61 = vld [vmem:[%s2144_s1 + $0x640] sm:$0xff] }
  0x63   :  { %822 = vmatpush.msrb.mxu2 %v221_v0  ;;  %845 = vmatpush.msrb.mxu3 %v229_v1  ;;  %v274_v62 = vld [vmem:[%s2144_s1 + $0x738] sm:$0xff]  ;;  %v287_v0 = vld [vmem:[%s2144_s1 + $0x7a0] sm:$0xff] }
  0x64   :  { %774 = vmatpush.msrb.mxu0 %v207_v2  ;;  %797 = vmatpush.msrb.mxu1 %v215_v3  ;;  %v282_v63 = vld [vmem:[%s2144_s1 + $0x778] sm:$0xff]  ;;  %v295_v1 = vld [vmem:[%s2144_s1 + $0x7e0] sm:$0xff]  ;;  %v37_v2 = vld [vmem:[%s2145_s0 + $0x34] sm:$0x3] }
  0x65   :  { %823 = vmatpush.msrb.mxu2 %v220_v4  ;;  %846 = vmatpush.msrb.mxu3 %v228_v5  ;;  %v38_v3 = vld [vmem:[%s2145_s0 + $0x36] sm:$0x3] }
  0x66   :  { %775 = vmatpush.msrb.mxu0 %v206_v6  ;;  %798 = vmatpush.msrb.mxu1 %v214_v7  ;;  %v273_v4 = vld [vmem:[%s2144_s1 + $0x730] sm:$0xff]  ;;  %v286_v6 = vld [vmem:[%s2144_s1 + $0x798] sm:$0xff] }
  0x67   :  { %824 = vmatpush.msrb.mxu2 %v219_v8  ;;  %847 = vmatpush.msrb.mxu3 %v227_v9  ;;  %v281_v5 = vld [vmem:[%s2144_s1 + $0x770] sm:$0xff]  ;;  %v294_v7 = vld [vmem:[%s2144_s1 + $0x7d8] sm:$0xff]  ;;  %v272_v8 = vld [vmem:[%s2144_s1 + $0x728] sm:$0xff] }
  0x68   :  { %1091 = vmatmul.msk.f32.vlgmr.msra.gmra.mxu2 %vm299_vm0, %v29_v10  ;;  %1092 = vmatmul.msk.f32.vlgmr.msra.gmra.mxu3 %vm299_vm0, %v30_v11  ;;  %v280_v9 = vld [vmem:[%s2144_s1 + $0x768] sm:$0xff]  ;;  %v285_v10 = vld [vmem:[%s2144_s1 + $0x790] sm:$0xff] }
  0x69   :  { %909 = vmatpush.msra.mxu2 %v258_v12  ;;  %932 = vmatpush.msra.mxu3 %v266_v13  ;;  %v293_v11 = vld [vmem:[%s2144_s1 + $0x7d0] sm:$0xff]  ;;  %v271_v12 = vld [vmem:[%s2144_s1 + $0x720] sm:$0xff] }
  0x6a   :  { %776 = vmatpush.msrb.mxu0 %v205_v14  ;;  %799 = vmatpush.msrb.mxu1 %v213_v15  ;;  %v279_v13 = vld [vmem:[%s2144_s1 + $0x760] sm:$0xff]  ;;  %v284_v14 = vld [vmem:[%s2144_s1 + $0x788] sm:$0xff] }
  0x6b   :  { %910 = vmatpush.msra.mxu2 %v257_v16  ;;  %933 = vmatpush.msra.mxu3 %v265_v17  ;;  %v292_v15 = vld [vmem:[%s2144_s1 + $0x7c8] sm:$0xff]  ;;  %v35_v16 = vld [vmem:[%s2145_s0 + $0x30] sm:$0x3]  ;;  %v36_v17 = vld [vmem:[%s2145_s0 + $0x32] sm:$0x3] }
  0x6c   :  { %777 = vmatpush.msrb.mxu0 %v204_v18  ;;  %800 = vmatpush.msrb.mxu1 %v212_v19  ;;  %v270_v18 = vld [vmem:[%s2144_s1 + $0x718] sm:$0xff] }
  0x6d   :  { %911 = vmatpush.msra.mxu2 %v256_v20  ;;  %934 = vmatpush.msra.mxu3 %v264_v21  ;;  %v278_v19 = vld [vmem:[%s2144_s1 + $0x758] sm:$0xff]  ;;  %v283_v20 = vld [vmem:[%s2144_s1 + $0x780] sm:$0xff] }
  0x6e   :  { %778 = vmatpush.msrb.mxu0 %v203_v22  ;;  %801 = vmatpush.msrb.mxu1 %v211_v23  ;;  %v291_v21 = vld [vmem:[%s2144_s1 + $0x7c0] sm:$0xff]  ;;  %v41_v22 = vld [vmem:[%s2145_s0 + $0x3c] sm:$0x3]  ;;  %v42_v23 = vld [vmem:[%s2145_s0 + $0x3e] sm:$0x3] }
  0x6f   :  { %1089 = vmatmul.msk.f32.vlgmr.msra.gmra.mxu0 %vm299_vm0, %v27_v24  ;;  %1090 = vmatmul.msk.f32.vlgmr.msra.gmra.mxu1 %vm299_vm0, %v28_v25  ;;  %v269_v24 = vld [vmem:[%s2144_s1 + $0x710] sm:$0xff] }
  0x70   :  { %863 = vmatpush.msra.mxu0 %v242_v26  ;;  %886 = vmatpush.msra.mxu1 %v250_v27  ;;  %v277_v25 = vld [vmem:[%s2144_s1 + $0x750] sm:$0xff]  ;;  %v268_v26 = vld [vmem:[%s2144_s1 + $0x708] sm:$0xff] }
  0x71   :  { %912 = vmatpush.msra.mxu2 %v255_v28  ;;  %935 = vmatpush.msra.mxu3 %v263_v29  ;;  %v276_v27 = vld [vmem:[%s2144_s1 + $0x748] sm:$0xff]  ;;  %v267_v28 = vld [vmem:[%s2144_s1 + $0x700] sm:$0xff] }
  0x72   :  { %864 = vmatpush.msra.mxu0 %v241_v30  ;;  %887 = vmatpush.msra.mxu1 %v249_v31  ;;  %v275_v29 = vld [vmem:[%s2144_s1 + $0x740] sm:$0xff]  ;;  %v39_v30 = vld [vmem:[%s2145_s0 + $0x38] sm:$0x3]  ;;  %v40_v31 = vld [vmem:[%s2145_s0 + $0x3a] sm:$0x3] }
  0x73   :  { %913 = vmatpush.msra.mxu2 %v254_v32  ;;  %936 = vmatpush.msra.mxu3 %v262_v33 }
  0x74   :  { %865 = vmatpush.msra.mxu0 %v240_v34  ;;  %888 = vmatpush.msra.mxu1 %v248_v35 }
  0x75   :  { %914 = vmatpush.msra.mxu2 %v253_v36  ;;  %937 = vmatpush.msra.mxu3 %v261_v37 }
  0x76   :  { %866 = vmatpush.msra.mxu0 %v239_v38  ;;  %889 = vmatpush.msra.mxu1 %v247_v39 }
  0x77   :  { %915 = vmatpush.msra.mxu2 %v252_v40  ;;  %938 = vmatpush.msra.mxu3 %v260_v41 }
  0x78   :  { %1095 = vmatmul.msk.f32.vlgmr.msrb.gmra.mxu2 %vm299_vm0, %v33_v42  ;;  %1096 = vmatmul.msk.f32.vlgmr.msrb.gmra.mxu3 %vm299_vm0, %v34_v43 }
  0x79   :  { %867 = vmatpush.msra.mxu0 %v238_v44  ;;  %890 = vmatpush.msra.mxu1 %v246_v45 }
  0x7a   :  { %916 = vmatpush.msra.mxu2 %v251_v46  ;;  %939 = vmatpush.msra.mxu3 %v259_v47 }
  0x7b   :  { %868 = vmatpush.msra.mxu0 %v237_v50  ;;  %891 = vmatpush.msra.mxu1 %v245_v51 }
  0x7c   :  { %1001 = vmatpush.msrb.mxu2 %v290_v48  ;;  %1024 = vmatpush.msrb.mxu3 %v298_v49 }
  0x7d   :  { %869 = vmatpush.msra.mxu0 %v236_v54  ;;  %892 = vmatpush.msra.mxu1 %v244_v55 }
  0x7e   :  { %1002 = vmatpush.msrb.mxu2 %v289_v52  ;;  %1025 = vmatpush.msrb.mxu3 %v297_v53 }
  0x7f   :  { %1093 = vmatmul.msk.f32.vlgmr.msrb.gmra.mxu0 %vm299_vm0, %v31_v58  ;;  %1094 = vmatmul.msk.f32.vlgmr.msrb.gmra.mxu1 %vm299_vm0, %v32_v59 }
  0x80   :  { %1003 = vmatpush.msrb.mxu2 %v288_v56  ;;  %1026 = vmatpush.msrb.mxu3 %v296_v57 }
  0x81   :  { %870 = vmatpush.msra.mxu0 %v235_v60  ;;  %893 = vmatpush.msra.mxu1 %v243_v61 }
  0x82   :  { %1004 = vmatpush.msrb.mxu2 %v287_v0  ;;  %1027 = vmatpush.msrb.mxu3 %v295_v1 }
  0x83   :  { %955 = vmatpush.msrb.mxu0 %v274_v62  ;;  %978 = vmatpush.msrb.mxu1 %v282_v63 }
  0x84   :  { %1099 = vmatmul.msk.f32.vlgmr.msra.gmra.mxu2 %vm299_vm0, %v37_v2  ;;  %1100 = vmatmul.msk.f32.vlgmr.msra.gmra.mxu3 %vm299_vm0, %v38_v3 }
  0x85   :  { %956 = vmatpush.msrb.mxu0 %v273_v4  ;;  %979 = vmatpush.msrb.mxu1 %v281_v5 }
  0x86   :  { %1005 = vmatpush.msrb.mxu2 %v286_v6  ;;  %1028 = vmatpush.msrb.mxu3 %v294_v7 }
  0x87   :  { %957 = vmatpush.msrb.mxu0 %v272_v8  ;;  %980 = vmatpush.msrb.mxu1 %v280_v9 }
  0x88   :  { %1006 = vmatpush.msrb.mxu2 %v285_v10  ;;  %1029 = vmatpush.msrb.mxu3 %v293_v11 }
  0x89   :  { %958 = vmatpush.msrb.mxu0 %v271_v12  ;;  %981 = vmatpush.msrb.mxu1 %v279_v13 }
  0x8a   :  { %1007 = vmatpush.msrb.mxu2 %v284_v14  ;;  %1030 = vmatpush.msrb.mxu3 %v292_v15 }
  0x8b   :  { %1097 = vmatmul.msk.f32.vlgmr.msra.gmra.mxu0 %vm299_vm0, %v35_v16  ;;  %1098 = vmatmul.msk.f32.vlgmr.msra.gmra.mxu1 %vm299_vm0, %v36_v17 }
  0x8c   :  { %959 = vmatpush.msrb.mxu0 %v270_v18  ;;  %982 = vmatpush.msrb.mxu1 %v278_v19 }
  0x8d   :  { %1008 = vmatpush.msrb.mxu2 %v283_v20  ;;  %1031 = vmatpush.msrb.mxu3 %v291_v21 }
  0x8e   :  { %1103 = vmatmul.msk.f32.vlgmr.msrb.gmra.mxu2 %vm299_vm0, %v41_v22  ;;  %1104 = vmatmul.msk.f32.vlgmr.msrb.gmra.mxu3 %vm299_vm0, %v42_v23 }
  0x8f   :  { %960 = vmatpush.msrb.mxu0 %v269_v24  ;;  %983 = vmatpush.msrb.mxu1 %v277_v25 }
  0x91   :  { %961 = vmatpush.msrb.mxu0 %v268_v26  ;;  %984 = vmatpush.msrb.mxu1 %v276_v27 }
  0x93   :  { %962 = vmatpush.msrb.mxu0 %v267_v28  ;;  %985 = vmatpush.msrb.mxu1 %v275_v29 }
  0x94   :  { %1101 = vmatmul.msk.f32.vlgmr.msrb.gmra.mxu0 %vm299_vm0, %v39_v30  ;;  %1102 = vmatmul.msk.f32.vlgmr.msrb.gmra.mxu1 %vm299_vm0, %v40_v31 }
  0xa1   :  { %v389_v33 = vpop.f32.mrf.mxu3 }
  0xa2   :  { %v366_v32 = vpop.f32.mrf.mxu2  ;;  %1040 = vst.msk [vmem:[%s2146_s2 + $0x6] sm:$0x3] %vm1036_vm1, %v389_v33 }
  0xa3   :  { %v320_v34 = vpop.f32.mrf.mxu0  ;;  %1039 = vst.msk [vmem:[%s2146_s2 + $0x4] sm:$0x3] %vm1036_vm1, %v366_v32 }
  0xa4   :  { %v343_v35 = vpop.f32.mrf.mxu1  ;;  %1037 = vst.msk [vmem:[%s2146_s2] sm:$0x3] %vm1036_vm1, %v320_v34 }
  0xa5   :  { %1038 = vst.msk [vmem:[%s2146_s2 + $0x2] sm:$0x3] %vm1036_vm1, %v343_v35 }
  0xb5   :  { %v458_v36 = vpop.f32.mrf.mxu2  ;;  %v481_v37 = vpop.f32.mrf.mxu3 }
  0xb6   :  { %v412_v38 = vpop.f32.mrf.mxu0  ;;  %v435_v39 = vpop.f32.mrf.mxu1  ;;  %1043 = vst.msk [vmem:[%s2146_s2 + $0xc] sm:$0x3] %vm1036_vm1, %v458_v36 }
  0xb7   :  { %1041 = vst.msk [vmem:[%s2146_s2 + $0x8] sm:$0x3] %vm1036_vm1, %v412_v38 }
  0xb8   :  { %1042 = vst.msk [vmem:[%s2146_s2 + $0xa] sm:$0x3] %vm1036_vm1, %v435_v39 }
  0xb9   :  { %1044 = vst.msk [vmem:[%s2146_s2 + $0xe] sm:$0x3] %vm1036_vm1, %v481_v37 }
  0xc7   :  { %v550_v40 = vpop.f32.mrf.mxu2  ;;  %v573_v41 = vpop.f32.mrf.mxu3 }
  0xc8   :  { %v504_v42 = vpop.f32.mrf.mxu0  ;;  %v527_v43 = vpop.f32.mrf.mxu1  ;;  %1047 = vst.msk [vmem:[%s2146_s2 + $0x14] sm:$0x3] %vm1036_vm1, %v550_v40 }
  0xc9   :  { %1045 = vst.msk [vmem:[%s2146_s2 + $0x10] sm:$0x3] %vm1036_vm1, %v504_v42 }
  0xca   :  { %1046 = vst.msk [vmem:[%s2146_s2 + $0x12] sm:$0x3] %vm1036_vm1, %v527_v43 }
  0xcb   :  { %1048 = vst.msk [vmem:[%s2146_s2 + $0x16] sm:$0x3] %vm1036_vm1, %v573_v41 }
  0xd9   :  { %v642_v44 = vpop.f32.mrf.mxu2  ;;  %v665_v45 = vpop.f32.mrf.mxu3 }
  0xda   :  { %v596_v46 = vpop.f32.mrf.mxu0  ;;  %v619_v47 = vpop.f32.mrf.mxu1  ;;  %1051 = vst.msk [vmem:[%s2146_s2 + $0x1c] sm:$0x3] %vm1036_vm1, %v642_v44 }
  0xdb   :  { %1049 = vst.msk [vmem:[%s2146_s2 + $0x18] sm:$0x3] %vm1036_vm1, %v596_v46 }
  0xdc   :  { %1050 = vst.msk [vmem:[%s2146_s2 + $0x1a] sm:$0x3] %vm1036_vm1, %v619_v47 }
  0xdd   :  { %1052 = vst.msk [vmem:[%s2146_s2 + $0x1e] sm:$0x3] %vm1036_vm1, %v665_v45 }
  0xeb   :  { %v734_v48 = vpop.f32.mrf.mxu2  ;;  %v757_v49 = vpop.f32.mrf.mxu3 }
  0xec   :  { %v688_v50 = vpop.f32.mrf.mxu0  ;;  %v711_v51 = vpop.f32.mrf.mxu1  ;;  %1055 = vst.msk [vmem:[%s2146_s2 + $0x24] sm:$0x3] %vm1036_vm1, %v734_v48 }
  0xed   :  { %1053 = vst.msk [vmem:[%s2146_s2 + $0x20] sm:$0x3] %vm1036_vm1, %v688_v50 }
  0xee   :  { %1054 = vst.msk [vmem:[%s2146_s2 + $0x22] sm:$0x3] %vm1036_vm1, %v711_v51 }
  0xef   :  { %1056 = vst.msk [vmem:[%s2146_s2 + $0x26] sm:$0x3] %vm1036_vm1, %v757_v49 }
  0xfb   :  { %v826_v52 = vpop.f32.mrf.mxu2  ;;  %v849_v53 = vpop.f32.mrf.mxu3 }
  0xfc   :  { %1059 = vst.msk [vmem:[%s2146_s2 + $0x2c] sm:$0x3] %vm1036_vm1, %v826_v52  ;;  %v780_v54 = vpop.f32.mrf.mxu0  ;;  %v803_v55 = vpop.f32.mrf.mxu1 }
  0xfd   :  { %1060 = vst.msk [vmem:[%s2146_s2 + $0x2e] sm:$0x3] %vm1036_vm1, %v849_v53 }
  0xfe   :  { %1057 = vst.msk [vmem:[%s2146_s2 + $0x28] sm:$0x3] %vm1036_vm1, %v780_v54 }
  0xff   :  { %1058 = vst.msk [vmem:[%s2146_s2 + $0x2a] sm:$0x3] %vm1036_vm1, %v803_v55 }
 0x107   :  { %v918_v56 = vpop.f32.mrf.mxu2  ;;  %v941_v57 = vpop.f32.mrf.mxu3 }
 0x108   :  { %v872_v58 = vpop.f32.mrf.mxu0  ;;  %v895_v59 = vpop.f32.mrf.mxu1  ;;  %1063 = vst.msk [vmem:[%s2146_s2 + $0x34] sm:$0x3] %vm1036_vm1, %v918_v56 }
 0x109   :  { %1061 = vst.msk [vmem:[%s2146_s2 + $0x30] sm:$0x3] %vm1036_vm1, %v872_v58 }
 0x10a   :  { %1062 = vst.msk [vmem:[%s2146_s2 + $0x32] sm:$0x3] %vm1036_vm1, %v895_v59 }
 0x10b   :  { %1064 = vst.msk [vmem:[%s2146_s2 + $0x36] sm:$0x3] %vm1036_vm1, %v941_v57 }
 0x111   :  { %v964_v60 = vpop.f32.mrf.mxu0  ;;  %v987_v61 = vpop.f32.mrf.mxu1 }
 0x112   :  { %1065 = vst.msk [vmem:[%s2146_s2 + $0x38] sm:$0x3] %vm1036_vm1, %v964_v60  ;;  %v1010_v62 = vpop.f32.mrf.mxu2  ;;  %v1033_v63 = vpop.f32.mrf.mxu3 }
 0x113   :  { %1066 = vst.msk [vmem:[%s2146_s2 + $0x3a] sm:$0x3] %vm1036_vm1, %v987_v61 }
 0x114   :  { %1067 = vst.msk [vmem:[%s2146_s2 + $0x3c] sm:$0x3] %vm1036_vm1, %v1010_v62 }
 0x115   :  { %1068 = vst.msk [vmem:[%s2146_s2 + $0x3e] sm:$0x3] %vm1036_vm1, %v1033_v63 }

// kernel: _lambda_.12
= control target key start
LH: loop header
LB: loop body
LE: loop exit
PB: predicated region body
PF: predicated region fallthrough
CT: control target
= control target key end

     0   :  { %vm262_vm0 = vcmask 261120   ;;  %vm1360_vm1 = vcmask 257024   ;;  %s3035_s1 = inlined_call_operand.vmem [shape: bf16[32,32], index: 1, kind: input, shape index: {}]   ;;  %s3036_s0 = inlined_call_operand.vmem [shape: bf16[512,32], index: 0, kind: input, shape index: {}]   ;;  %s3037_s2 = inlined_call_operand.vmem [shape: f32[1,32], index: 2, kind: input, shape index: {}]   ;;  %s3038_s3 = inlined_call_operand.vmem [shape: bf16[512,32], index: 3, kind: input, shape index: {}]   ;;  %s3039_s4 = inlined_call_operand.vmem [shape: bf16[512,32], index: 4, kind: output, shape index: {}]  }
   0x1   :  { %v1630_v0 = vld [vmem:[%s3035_s1 + $0x8] sm:$0xff]  ;;  %v1629_v1 = vld [vmem:[%s3035_s1] sm:$0xff]  ;;  %v1599_v10 = vld [vmem:[%s3036_s0 + $0x10] sm:$0xff] }
   0x2   :  { %365 = vmatpush.bf16.msra.mxu0 %v1630_v0  ;;  %1790 = vmatpush.bf16.msra.mxu1 %v1630_v0  ;;  %v1597_v2 = vld [vmem:[%s3036_s0] sm:$0xff]  ;;  %v1598_v6 = vld [vmem:[%s3036_s0 + $0x8] sm:$0xff]  ;;  %v1607_v11 = vld [vmem:[%s3036_s0 + $0x50] sm:$0xff] }
   0x3   :  { %1791 = vmatpush.bf16.msra.mxu2 %v1630_v0  ;;  %1792 = vmatpush.bf16.msra.mxu3 %v1630_v0  ;;  %v1605_v3 = vld [vmem:[%s3036_s0 + $0x40] sm:$0xff]  ;;  %v1606_v7 = vld [vmem:[%s3036_s0 + $0x48] sm:$0xff]  ;;  %v1615_v12 = vld [vmem:[%s3036_s0 + $0x90] sm:$0xff] }
   0x4   :  { %v1613_v4 = vld [vmem:[%s3036_s0 + $0x80] sm:$0xff]  ;;  %v1614_v8 = vld [vmem:[%s3036_s0 + $0x88] sm:$0xff]  ;;  %v1623_v13 = vld [vmem:[%s3036_s0 + $0xd0] sm:$0xff] }
   0x5   :  { %v1621_v5 = vld [vmem:[%s3036_s0 + $0xc0] sm:$0xff]  ;;  %v1622_v9 = vld [vmem:[%s3036_s0 + $0xc8] sm:$0xff]  ;;  %v1600_v14 = vld [vmem:[%s3036_s0 + $0x18] sm:$0xff] }
   0x6   :  { %366 = vmatpush.bf16.msra.mxu0 %v1629_v1  ;;  %1793 = vmatpush.bf16.msra.mxu1 %v1629_v1  ;;  %v1608_v15 = vld [vmem:[%s3036_s0 + $0x58] sm:$0xff]  ;;  %v1601_v18 = vld [vmem:[%s3036_s0 + $0x20] sm:$0xff]  ;;  %v1602_v22 = vld [vmem:[%s3036_s0 + $0x28] sm:$0xff] }
   0x7   :  { %1794 = vmatpush.bf16.msra.mxu2 %v1629_v1  ;;  %1795 = vmatpush.bf16.msra.mxu3 %v1629_v1  ;;  %v1616_v16 = vld [vmem:[%s3036_s0 + $0x98] sm:$0xff]  ;;  %v1609_v19 = vld [vmem:[%s3036_s0 + $0x60] sm:$0xff]  ;;  %v1610_v23 = vld [vmem:[%s3036_s0 + $0x68] sm:$0xff] }
   0x8   :  { %v1624_v17 = vld [vmem:[%s3036_s0 + $0xd8] sm:$0xff]  ;;  %v1617_v20 = vld [vmem:[%s3036_s0 + $0xa0] sm:$0xff]  ;;  %v1618_v24 = vld [vmem:[%s3036_s0 + $0xa8] sm:$0xff] }
   0x9   :  { %1565 = vmatmul.msk.bf16.vlgmr.msra.gmra.mxu0 %vm262_vm0, %v1597_v2  ;;  %1573 = vmatmul.msk.bf16.vlgmr.msra.gmra.mxu1 %vm262_vm0, %v1605_v3  ;;  %v1625_v21 = vld [vmem:[%s3036_s0 + $0xe0] sm:$0xff]  ;;  %v1626_v25 = vld [vmem:[%s3036_s0 + $0xe8] sm:$0xff]  ;;  %v1603_v26 = vld [vmem:[%s3036_s0 + $0x30] sm:$0xff] }
   0xa   :  { %1581 = vmatmul.msk.bf16.vlgmr.msra.gmra.mxu2 %vm262_vm0, %v1613_v4  ;;  %1589 = vmatmul.msk.bf16.vlgmr.msra.gmra.mxu3 %vm262_vm0, %v1621_v5  ;;  %v1611_v27 = vld [vmem:[%s3036_s0 + $0x70] sm:$0xff]  ;;  %v1604_v30 = vld [vmem:[%s3036_s0 + $0x38] sm:$0xff]  ;;  %v1632_v34 = vld [vmem:[%s3038_s3] sm:$0xff]  }
   0xb   :  { %v1619_v28 = vld [vmem:[%s3036_s0 + $0xb0] sm:$0xff]  ;;  %v1612_v31 = vld [vmem:[%s3036_s0 + $0x78] sm:$0xff]  ;;  %v1766_v35 = vld [vmem:[%s3038_s3 + $0x40] sm:$0xff]   ;;  %v1633_v37 = vunpack.c.l.bf16 %v1632_v34  ;;  %v1634_v53 = vunpack.c.h.bf16 %v1632_v34 }
   0xc   :  { %v1627_v29 = vld [vmem:[%s3036_s0 + $0xf0] sm:$0xff]  ;;  %v1620_v32 = vld [vmem:[%s3036_s0 + $0xb8] sm:$0xff]  ;;  %v2094_v36 = vld [vmem:[%s3037_s2] ss:$0 sm:$0xff]  ;;  %v1665_v38 = vunpack.c.l.bf16 %v1766_v35  ;;  %v1666_v54 = vunpack.c.h.bf16 %v1766_v35 }
   0xd   :  { %v1628_v33 = vld [vmem:[%s3036_s0 + $0xf8] sm:$0xff]  ;;  %v2101_v45 = vld [vmem:[%s3038_s3 + $0x80] sm:$0xff]   ;;  %v2111_v49 = vld [vmem:[%s3038_s3 + $0x8] sm:$0xff]  }
   0xe   :  { %v2106_v46 = vld [vmem:[%s3038_s3 + $0xc0] sm:$0xff]   ;;  %v2116_v50 = vld [vmem:[%s3038_s3 + $0x48] sm:$0xff]   ;;  %v1697_v51 = vunpack.c.l.bf16 %v2101_v45  ;;  %v1698_v59 = vunpack.c.h.bf16 %v2101_v45  ;;  %v1637_v3 = vunpack.c.l.bf16 %v2111_v49 }
   0xf   :  { %v1729_v52 = vunpack.c.l.bf16 %v2106_v46  ;;  %v1730_v60 = vunpack.c.h.bf16 %v2106_v46  ;;  %v2125_v61 = vld [vmem:[%s3038_s3 + $0x88] sm:$0xff]   ;;  %v1669_v4 = vunpack.c.l.bf16 %v2116_v50 }
  0x10   :  { %v2130_v62 = vld [vmem:[%s3038_s3 + $0xc8] sm:$0xff]  }
  0x19   :  { %1566 = vmatmul.msk.bf16.gmra.mxu0 %vm262_vm0, %v1598_v6  ;;  %1574 = vmatmul.msk.bf16.gmra.mxu1 %vm262_vm0, %v1606_v7 }
  0x1a   :  { %1582 = vmatmul.msk.bf16.gmra.mxu2 %vm262_vm0, %v1614_v8  ;;  %1590 = vmatmul.msk.bf16.gmra.mxu3 %vm262_vm0, %v1622_v9 }
  0x29   :  { %1567 = vmatmul.msk.bf16.gmra.mxu0 %vm262_vm0, %v1599_v10  ;;  %1575 = vmatmul.msk.bf16.gmra.mxu1 %vm262_vm0, %v1607_v11  ;;  %v1701_v11 = vunpack.c.l.bf16 %v2125_v61 }
  0x2a   :  { %1583 = vmatmul.msk.bf16.gmra.mxu2 %vm262_vm0, %v1615_v12  ;;  %1591 = vmatmul.msk.bf16.gmra.mxu3 %vm262_vm0, %v1623_v13  ;;  %v1733_v12 = vunpack.c.l.bf16 %v2130_v62 }
  0x39   :  { %1568 = vmatmul.msk.bf16.gmra.mxu0 %vm262_vm0, %v1600_v14  ;;  %1576 = vmatmul.msk.bf16.gmra.mxu1 %vm262_vm0, %v1608_v15 }
  0x3a   :  { %1584 = vmatmul.msk.bf16.gmra.mxu2 %vm262_vm0, %v1616_v16  ;;  %1592 = vmatmul.msk.bf16.gmra.mxu3 %vm262_vm0, %v1624_v17 }
  0x49   :  { %1569 = vmatmul.msk.bf16.gmra.mxu0 %vm262_vm0, %v1601_v18  ;;  %1577 = vmatmul.msk.bf16.gmra.mxu1 %vm262_vm0, %v1609_v19 }
  0x4a   :  { %1585 = vmatmul.msk.bf16.gmra.mxu2 %vm262_vm0, %v1617_v20  ;;  %1593 = vmatmul.msk.bf16.gmra.mxu3 %vm262_vm0, %v1625_v21  ;;  %v1638_v20 = vunpack.c.h.bf16 %v2111_v49 }
  0x59   :  { %1570 = vmatmul.msk.bf16.gmra.mxu0 %vm262_vm0, %v1602_v22  ;;  %1578 = vmatmul.msk.bf16.gmra.mxu1 %vm262_vm0, %v1610_v23 }
  0x5a   :  { %1586 = vmatmul.msk.bf16.gmra.mxu2 %vm262_vm0, %v1618_v24  ;;  %1594 = vmatmul.msk.bf16.gmra.mxu3 %vm262_vm0, %v1626_v25  ;;  %v1670_v24 = vunpack.c.h.bf16 %v2116_v50 }
  0x69   :  { %1571 = vmatmul.msk.bf16.gmra.mxu0 %vm262_vm0, %v1603_v26  ;;  %1579 = vmatmul.msk.bf16.gmra.mxu1 %vm262_vm0, %v1611_v27 }
  0x6a   :  { %1587 = vmatmul.msk.bf16.gmra.mxu2 %vm262_vm0, %v1619_v28  ;;  %1595 = vmatmul.msk.bf16.gmra.mxu3 %vm262_vm0, %v1627_v29 }
  0x79   :  { %1572 = vmatmul.msk.bf16.gmra.mxu0 %vm262_vm0, %v1604_v30  ;;  %1580 = vmatmul.msk.bf16.gmra.mxu1 %vm262_vm0, %v1612_v31 }
  0x7a   :  { %1588 = vmatmul.msk.bf16.gmra.mxu2 %vm262_vm0, %v1620_v32  ;;  %1596 = vmatmul.msk.bf16.gmra.mxu3 %vm262_vm0, %v1628_v33 }
  0x86   :  { %v368_v39 = vpop.f32.mrf.mxu0  ;;  %v408_v40 = vpop.f32.mrf.mxu1 }
  0x87   :  { %v369_v41 = vadd.f32 %v2094_v36, %v368_v39  ;;  %v409_v42 = vadd.f32 %v2094_v36, %v408_v40 }
  0x89   :  { %v656_v43 = vadd.f32 %v1633_v37, %v369_v41  ;;  %v672_v44 = vadd.f32 %v1665_v38, %v409_v42 }
  0x8b   :  { %v784_v47 = vmul.f32 0.044715, %v656_v43  ;;  %v800_v48 = vmul.f32 0.044715, %v672_v44  ;;  %v720_v17 = vmul.f32 0.5, %v656_v43  ;;  %v736_v22 = vmul.f32 0.5, %v672_v44 }
  0x8d   :  { %v848_v55 = vmul.f32 %v784_v47, %v656_v43  ;;  %v864_v56 = vmul.f32 %v800_v48, %v672_v44  ;;  %v448_v57 = vpop.f32.mrf.mxu2  ;;  %v488_v58 = vpop.f32.mrf.mxu3 }
  0x8e   :  { %v449_v63 = vadd.f32 %v2094_v36, %v448_v57  ;;  %v489_v0 = vadd.f32 %v2094_v36, %v488_v58  ;;  %v370_v1 = vpop.f32.mrf.mxu0  ;;  %v410_v2 = vpop.f32.mrf.mxu1  ;;  %v1702_v57 = vunpack.c.h.bf16 %v2125_v61 }
  0x8f   :  { %v912_v5 = vmul.f32 %v848_v55, %v656_v43  ;;  %v928_v6 = vmul.f32 %v864_v56, %v672_v44  ;;  %v371_v7 = vadd.f32 %v2094_v36, %v370_v1  ;;  %v411_v8 = vadd.f32 %v2094_v36, %v410_v2 }
  0x90   :  { %v688_v9 = vadd.f32 %v1697_v51, %v449_v63  ;;  %v704_v10 = vadd.f32 %v1729_v52, %v489_v0 }
  0x91   :  { %v976_v13 = vadd.f32 %v912_v5, %v656_v43  ;;  %v992_v14 = vadd.f32 %v928_v6, %v672_v44  ;;  %v657_v15 = vadd.f32 %v1634_v53, %v371_v7  ;;  %v673_v16 = vadd.f32 %v1666_v54, %v411_v8 }
  0x92   :  { %v816_v18 = vmul.f32 0.044715, %v688_v9  ;;  %v832_v19 = vmul.f32 0.044715, %v704_v10  ;;  %v2142_v29 = vmul.f32 0.5, %v688_v9  ;;  %v2144_v30 = vmul.f32 0.5, %v704_v10 }
  0x93   :  { %v1040_v21 = vmul.f32 0.7978846, %v976_v13  ;;  %v1056_v23 = vmul.f32 0.7978846, %v992_v14  ;;  %v785_v27 = vmul.f32 0.044715, %v657_v15 }
  0x94   :  { %v880_v25 = vmul.f32 %v816_v18, %v688_v9  ;;  %v896_v26 = vmul.f32 %v832_v19, %v704_v10  ;;  %v801_v28 = vmul.f32 0.044715, %v673_v16  ;;  %v2146_v31 = vmul.f32 0.5, %v657_v15 }
  0x95   :  { %1797 = vtanh.f32 %v1040_v21  ;;  %v450_v32 = vpop.f32.mrf.mxu2  ;;  %v490_v33 = vpop.f32.mrf.mxu3  ;;  %v849_v37 = vmul.f32 %v785_v27, %v657_v15  ;;  %v2152_v48 = vmul.f32 0.5, %v673_v16 }
  0x96   :  { %1799 = vtanh.f32 %v1056_v23  ;;  %v944_v34 = vmul.f32 %v880_v25, %v688_v9  ;;  %v960_v35 = vmul.f32 %v896_v26, %v704_v10  ;;  %v373_v38 = vpop.f32.mrf.mxu0  ;;  %v413_v39 = vpop.f32.mrf.mxu1  ;;  %v865_v40 = vmul.f32 %v801_v28, %v673_v16 }
  0x97   :  { %v451_v41 = vadd.f32 %v2094_v36, %v450_v32  ;;  %v491_v42 = vadd.f32 %v2094_v36, %v490_v33  ;;  %v374_v43 = vadd.f32 %v2094_v36, %v373_v38  ;;  %v913_v46 = vmul.f32 %v849_v37, %v657_v15 }
  0x98   :  { %v1008_v44 = vadd.f32 %v944_v34, %v688_v9  ;;  %v1024_v45 = vadd.f32 %v960_v35, %v704_v10  ;;  %v414_v47 = vadd.f32 %v2094_v36, %v413_v39  ;;  %v929_v51 = vmul.f32 %v865_v40, %v673_v16  ;;  %v2169_v10 = vld [vmem:[%s3038_s3 + $0x10] sm:$0xff]  }
  0x99   :  { %v2154_v52 = vadd.f32 %v1698_v59, %v451_v41  ;;  %v2156_v53 = vadd.f32 %v1730_v60, %v491_v42  ;;  %v977_v56 = vadd.f32 %v913_v46, %v657_v15  ;;  %v2160_v1 = vadd.f32 %v1637_v3, %v374_v43 }
  0x9a   :  { %v1072_v54 = vmul.f32 0.7978846, %v1008_v44  ;;  %v1088_v55 = vmul.f32 0.7978846, %v1024_v45  ;;  %v993_v63 = vadd.f32 %v929_v51, %v673_v16  ;;  %v2162_v2 = vadd.f32 %v1669_v4, %v414_v47 }
  0x9b   :  { %v1798_v58 = vpop.eup %1797  ;;  %v817_v0 = vmul.f32 0.044715, %v2154_v52  ;;  %v1041_v59 = vmul.f32 0.7978846, %v977_v56  ;;  %v833_v60 = vmul.f32 0.044715, %v2156_v53  ;;  %v1734_v15 = vunpack.c.h.bf16 %v2130_v62 }
  0x9c   :  { %v1800_v5 = vpop.eup %1799  ;;  %v1168_v6 = vadd.f32 1.0, %v1798_v58  ;;  %1801 = vtanh.f32 %v1072_v54  ;;  %v1057_v8 = vmul.f32 0.7978846, %v993_v63  ;;  %v786_v19 = vmul.f32 0.044715, %v2160_v1 }
  0x9d   :  { %v1184_v7 = vadd.f32 1.0, %v1800_v5  ;;  %1803 = vtanh.f32 %v1088_v55  ;;  %v881_v9 = vmul.f32 %v817_v0, %v2154_v52  ;;  %v897_v4 = vmul.f32 %v833_v60, %v2156_v53  ;;  %v453_v13 = vpop.f32.mrf.mxu2  ;;  %v493_v14 = vpop.f32.mrf.mxu3 }
  0x9e   :  { %v1232_v3 = vmul.f32 %v1168_v6, %v720_v17  ;;  %1805 = vtanh.f32 %v1041_v59  ;;  %v375_v21 = vpop.f32.mrf.mxu0  ;;  %v802_v26 = vmul.f32 0.044715, %v2162_v2  ;;  %v1641_v17 = vunpack.c.l.bf16 %v2169_v10  ;;  %v415_v60 = vpop.f32.mrf.mxu1 }
  0x9f   :  { %v1248_v16 = vmul.f32 %v1184_v7, %v736_v22  ;;  %1807 = vtanh.f32 %v1057_v8  ;;  %v945_v18 = vmul.f32 %v881_v9, %v2154_v52  ;;  %v961_v25 = vmul.f32 %v897_v4, %v2156_v53 }
  0xa0   :  { %v1296_v23 = vpack.c.bf16 %v1232_v3, %v1232_v3  ;;  %v850_v32 = vmul.f32 %v786_v19, %v2160_v1  ;;  %v454_v22 = vadd.f32 %v2094_v36, %v453_v13  ;;  %v866_v35 = vmul.f32 %v802_v26, %v2162_v2 }
  0xa1   :  { %v1312_v27 = vpack.c.bf16 %v1248_v16, %v1248_v16  ;;  %v1009_v28 = vadd.f32 %v945_v18, %v2154_v52  ;;  %v1025_v34 = vadd.f32 %v961_v25, %v2156_v53  ;;  %v494_v37 = vadd.f32 %v2094_v36, %v493_v14 }
  0xa2   :  { %v1802_v33 = vpop.eup %1801  ;;  %1361 = vst.msk [vmem:[%s3039_s4] sm:$0xf] %vm1360_vm1, %v1296_v23  ;;  %v376_v38 = vadd.f32 %v2094_v36, %v375_v21  ;;  %v914_v42 = vmul.f32 %v850_v32, %v2160_v1  ;;  %v2196_v43 = vadd.f32 %v1701_v11, %v454_v22  ;;  %v930_v47 = vmul.f32 %v866_v35, %v2162_v2 }
  0xa3   :  { %v1804_v39 = vpop.eup %1803  ;;  %1377 = vst.msk [vmem:[%s3039_s4 + $0x40] sm:$0xf] %vm1360_vm1, %v1312_v27  ;;  %v1200_v40 = vadd.f32 1.0, %v1802_v33  ;;  %v1073_v41 = vmul.f32 0.7978846, %v1009_v28  ;;  %v2201_v51 = vadd.f32 %v1733_v12, %v494_v37  ;;  %v753_v59 = vmul.f32 0.5, %v2154_v52 }
  0xa4   :  { %v1806_v44 = vpop.eup %1805  ;;  %v1216_v45 = vadd.f32 1.0, %v1804_v39  ;;  %v1089_v46 = vmul.f32 0.7978846, %v1025_v34  ;;  %v978_v58 = vadd.f32 %v914_v42, %v2160_v1  ;;  %v994_v0 = vadd.f32 %v930_v47, %v2162_v2 }
  0xa5   :  { %v1808_v54 = vpop.eup %1807  ;;  %v1264_v55 = vmul.f32 %v1200_v40, %v2142_v29  ;;  %v1169_v56 = vadd.f32 1.0, %v1806_v44  ;;  %1809 = vtanh.f32 %v1073_v41  ;;  %v818_v9 = vmul.f32 0.044715, %v2196_v43  ;;  %v455_v3 = vpop.f32.mrf.mxu2 }
  0xa6   :  { %v1280_v63 = vmul.f32 %v1216_v45, %v2144_v30  ;;  %v1185_v11 = vadd.f32 1.0, %v1808_v54  ;;  %1811 = vtanh.f32 %v1089_v46  ;;  %v1042_v12 = vmul.f32 0.7978846, %v978_v58  ;;  %v495_v4 = vpop.f32.mrf.mxu3  ;;  %v378_v54 = vpop.f32.mrf.mxu0 }
  0xa7   :  { %v1328_v5 = vpack.c.bf16 %v1264_v55, %v1264_v55  ;;  %v1233_v6 = vmul.f32 %v1169_v56, %v2146_v31  ;;  %v1058_v8 = vmul.f32 0.7978846, %v994_v0  ;;  %v769_v31 = vmul.f32 0.5, %v2156_v53 }
  0xa8   :  { %v1344_v7 = vpack.c.bf16 %v1280_v63, %v1280_v63  ;;  %v1249_v29 = vmul.f32 %v1185_v11, %v2152_v48  ;;  %1813 = vtanh.f32 %v1042_v12  ;;  %v834_v52 = vmul.f32 0.044715, %v2201_v51  ;;  %v418_v63 = vpop.f32.mrf.mxu1  ;;  %v2271_v11 = vld [vmem:[%s3038_s3 + $0x50] sm:$0xff]  }
  0xa9   :  { %1393 = vst.msk [vmem:[%s3039_s4 + $0x80] sm:$0xf] %vm1360_vm1, %v1328_v5  ;;  %v1297_v30 = vpack.c.bf16 %v1233_v6, %v1233_v6  ;;  %1815 = vtanh.f32 %v1058_v8  ;;  %v882_v13 = vmul.f32 %v818_v9, %v2196_v43  ;;  %v2224_v14 = vadd.f32 %v1638_v20, %v376_v38  ;;  %v2280_v8 = vld [vmem:[%s3038_s3 + $0x90] sm:$0xff]  }
  0xaa   :  { %1409 = vst.msk [vmem:[%s3039_s4 + $0xc0] sm:$0xf] %vm1360_vm1, %v1344_v7  ;;  %v1313_v48 = vpack.c.bf16 %v1249_v29, %v1249_v29  ;;  %v898_v53 = vmul.f32 %v834_v52, %v2201_v51  ;;  %v416_v18 = vadd.f32 %v2094_v36, %v415_v60  ;;  %v456_v19 = vadd.f32 %v2094_v36, %v455_v3 }
  0xab   :  { %v1810_v16 = vpop.eup %1809  ;;  %1362 = vst.msk [vmem:[%s3039_s4 + $0x4] sm:$0xf] %vm1360_vm1, %v1297_v30  ;;  %v496_v21 = vadd.f32 %v2094_v36, %v495_v4  ;;  %v722_v20 = vmul.f32 0.5, %v2160_v1  ;;  %v946_v25 = vmul.f32 %v882_v13, %v2196_v43  ;;  %v787_v26 = vmul.f32 0.044715, %v2224_v14 }
  0xac   :  { %v1812_v23 = vpop.eup %1811  ;;  %1378 = vst.msk [vmem:[%s3039_s4 + $0x44] sm:$0xf] %vm1360_vm1, %v1313_v48  ;;  %v1201_v49 = vadd.f32 1.0, %v1810_v16  ;;  %v738_v28 = vmul.f32 0.5, %v2162_v2  ;;  %v962_v32 = vmul.f32 %v898_v53, %v2201_v51  ;;  %v675_v22 = vadd.f32 %v1670_v24, %v416_v18 }
  0xad   :  { %v1217_v27 = vadd.f32 1.0, %v1812_v23  ;;  %v1010_v34 = vadd.f32 %v946_v25, %v2196_v43  ;;  %v851_v35 = vmul.f32 %v787_v26, %v2224_v14  ;;  %v2249_v1 = vadd.f32 %v1702_v57, %v456_v19 }
  0xae   :  { %v1265_v33 = vmul.f32 %v1201_v49, %v753_v59  ;;  %v1814_v37 = vpop.eup %1813  ;;  %v1026_v39 = vadd.f32 %v962_v32, %v2201_v51  ;;  %v803_v40 = vmul.f32 0.044715, %v675_v22  ;;  %v2254_v2 = vadd.f32 %v1734_v15, %v496_v21  ;;  %v458_v59 = vpop.f32.mrf.mxu2 }
  0xaf   :  { %v1281_v38 = vmul.f32 %v1217_v27, %v769_v31  ;;  %v1816_v50 = vpop.eup %1815  ;;  %v1170_v41 = vadd.f32 1.0, %v1814_v37  ;;  %v1074_v42 = vmul.f32 0.7978846, %v1010_v34  ;;  %v915_v44 = vmul.f32 %v851_v35, %v2224_v14  ;;  %v498_v48 = vpop.f32.mrf.mxu3 }
  0xb0   :  { %v1329_v24 = vpack.c.bf16 %v1265_v33, %v1265_v33  ;;  %v1186_v46 = vadd.f32 1.0, %v1816_v50  ;;  %v1090_v61 = vmul.f32 0.7978846, %v1026_v39  ;;  %v867_v57 = vmul.f32 %v803_v40, %v675_v22 }
  0xb1   :  { %v1345_v45 = vpack.c.bf16 %v1281_v38, %v1281_v38  ;;  %v1234_v47 = vmul.f32 %v1170_v41, %v722_v20  ;;  %v754_v62 = vmul.f32 0.5, %v2196_v43  ;;  %1817 = vtanh.f32 %v1074_v42  ;;  %v380_v41 = vpop.f32.mrf.mxu0 }
  0xb2   :  { %1394 = vst.msk [vmem:[%s3039_s4 + $0x84] sm:$0xf] %vm1360_vm1, %v1329_v24  ;;  %v979_v15 = vadd.f32 %v915_v44, %v2224_v14  ;;  %v1250_v55 = vmul.f32 %v1186_v46, %v738_v28  ;;  %1819 = vtanh.f32 %v1090_v61  ;;  %v931_v56 = vmul.f32 %v867_v57, %v675_v22 }
  0xb3   :  { %1410 = vst.msk [vmem:[%s3039_s4 + $0xc4] sm:$0xf] %vm1360_vm1, %v1345_v45  ;;  %v819_v58 = vmul.f32 0.044715, %v2249_v1  ;;  %v1298_v43 = vpack.c.bf16 %v1234_v47, %v1234_v47  ;;  %v770_v0 = vmul.f32 0.5, %v2201_v51  ;;  %v379_v29 = vadd.f32 %v2094_v36, %v378_v54 }
  0xb4   :  { %v1043_v5 = vmul.f32 0.7978846, %v979_v15  ;;  %v835_v6 = vmul.f32 0.044715, %v2254_v2  ;;  %v1314_v12 = vpack.c.bf16 %v1250_v55, %v1250_v55  ;;  %v995_v60 = vadd.f32 %v931_v56, %v675_v22  ;;  %v420_v56 = vpop.f32.mrf.mxu1 }
  0xb5   :  { %v883_v7 = vmul.f32 %v819_v58, %v2249_v1  ;;  %1363 = vst.msk [vmem:[%s3039_s4 + $0x8] sm:$0xf] %vm1360_vm1, %v1298_v43  ;;  %v419_v9 = vadd.f32 %v2094_v36, %v418_v63  ;;  %v1673_v3 = vunpack.c.l.bf16 %v2271_v11  ;;  %v2296_v31 = vadd.f32 %v1641_v17, %v379_v29  ;;  %v2308_v17 = vld [vmem:[%s3038_s3 + $0xd0] sm:$0xff]  }
  0xb6   :  { %1821 = vtanh.f32 %v1043_v5  ;;  %v899_v51 = vmul.f32 %v835_v6, %v2254_v2  ;;  %1379 = vst.msk [vmem:[%s3039_s4 + $0x48] sm:$0xf] %vm1360_vm1, %v1314_v12  ;;  %v1059_v4 = vmul.f32 0.7978846, %v995_v60  ;;  %v459_v52 = vadd.f32 %v2094_v36, %v458_v59 }
  0xb7   :  { %v947_v30 = vmul.f32 %v883_v7, %v2249_v1  ;;  %v1818_v13 = vpop.eup %1817  ;;  %v723_v16 = vmul.f32 0.5, %v2224_v14  ;;  %v2301_v18 = vadd.f32 %v1673_v3, %v419_v9  ;;  %v1705_v19 = vunpack.c.l.bf16 %v2280_v8 }
  0xb8   :  { %v963_v53 = vmul.f32 %v899_v51, %v2254_v2  ;;  %v1820_v21 = vpop.eup %1819  ;;  %v1202_v23 = vadd.f32 1.0, %v1818_v13  ;;  %v739_v49 = vmul.f32 0.5, %v675_v22  ;;  %1823 = vtanh.f32 %v1059_v4 }
  0xb9   :  { %v1011_v20 = vadd.f32 %v947_v30, %v2249_v1  ;;  %v1218_v25 = vadd.f32 1.0, %v1820_v21  ;;  %v788_v26 = vmul.f32 0.044715, %v2296_v31  ;;  %v499_v27 = vadd.f32 %v2094_v36, %v498_v48  ;;  %v460_v30 = vpop.f32.mrf.mxu2 }
  0xba   :  { %v1027_v14 = vadd.f32 %v963_v53, %v2254_v2  ;;  %v1266_v28 = vmul.f32 %v1202_v23, %v754_v62  ;;  %v804_v33 = vmul.f32 0.044715, %v2301_v18  ;;  %v2314_v22 = vadd.f32 %v1705_v19, %v459_v52 }
  0xbb   :  { %v1075_v32 = vmul.f32 0.7978846, %v1011_v20  ;;  %v1282_v35 = vmul.f32 %v1218_v25, %v770_v0  ;;  %v852_v38 = vmul.f32 %v788_v26, %v2296_v31  ;;  %v1737_v39 = vunpack.c.l.bf16 %v2308_v17  ;;  %v500_v20 = vpop.f32.mrf.mxu3 }
  0xbc   :  { %v1822_v34 = vpop.eup %1821  ;;  %v1091_v37 = vmul.f32 0.7978846, %v1027_v14  ;;  %v1330_v40 = vpack.c.bf16 %v1266_v28, %v1266_v28  ;;  %v868_v24 = vmul.f32 %v804_v33, %v2301_v18  ;;  %v755_v44 = vmul.f32 0.5, %v2249_v1 }
  0xbd   :  { %v1171_v50 = vadd.f32 1.0, %v1822_v34  ;;  %1825 = vtanh.f32 %v1075_v32  ;;  %v1346_v42 = vpack.c.bf16 %v1282_v35, %v1282_v35  ;;  %v916_v45 = vmul.f32 %v852_v38, %v2296_v31  ;;  %v383_v38 = vpop.f32.mrf.mxu0 }
  0xbe   :  { %1827 = vtanh.f32 %v1091_v37  ;;  %v1824_v46 = vpop.eup %1823  ;;  %1395 = vst.msk [vmem:[%s3039_s4 + $0x88] sm:$0xf] %vm1360_vm1, %v1330_v40  ;;  %v932_v57 = vmul.f32 %v868_v24, %v2301_v18  ;;  %v820_v47 = vmul.f32 0.044715, %v2314_v22  ;;  %v2327_v62 = vadd.f32 %v1737_v39, %v499_v27 }
  0xbf   :  { %v1235_v61 = vmul.f32 %v1171_v50, %v723_v16  ;;  %1411 = vst.msk [vmem:[%s3039_s4 + $0xc8] sm:$0xf] %vm1360_vm1, %v1346_v42  ;;  %v1187_v1 = vadd.f32 1.0, %v1824_v46  ;;  %v980_v15 = vadd.f32 %v916_v45, %v2296_v31  ;;  %v381_v54 = vadd.f32 %v2094_v36, %v380_v41 }
  0xc0   :  { %v1642_v55 = vunpack.c.h.bf16 %v2169_v10  ;;  %v771_v63 = vmul.f32 0.5, %v2254_v2  ;;  %v996_v43 = vadd.f32 %v932_v57, %v2301_v18  ;;  %v884_v0 = vmul.f32 %v820_v47, %v2314_v22 }
  0xc1   :  { %v1299_v58 = vpack.c.bf16 %v1235_v61, %v1235_v61  ;;  %v1251_v5 = vmul.f32 %v1187_v1, %v739_v49  ;;  %v1044_v6 = vmul.f32 0.7978846, %v980_v15  ;;  %v836_v59 = vmul.f32 0.044715, %v2327_v62 }
  0xc2   :  { %v2340_v12 = vadd.f32 %v1642_v55, %v381_v54  ;;  %v1060_v10 = vmul.f32 0.7978846, %v996_v43  ;;  %v948_v7 = vmul.f32 %v884_v0, %v2314_v22  ;;  %v421_v2 = vadd.f32 %v2094_v36, %v420_v56  ;;  %v423_v55 = vpop.f32.mrf.mxu1 }
  0xc3   :  { %v1826_v60 = vpop.eup %1825  ;;  %1364 = vst.msk [vmem:[%s3039_s4 + $0xc] sm:$0xf] %vm1360_vm1, %v1299_v58  ;;  %v1674_v29 = vunpack.c.h.bf16 %v2271_v11  ;;  %v1315_v9 = vpack.c.bf16 %v1251_v5, %v1251_v5  ;;  %1829 = vtanh.f32 %v1044_v6  ;;  %v900_v4 = vmul.f32 %v836_v59, %v2327_v62  ;;  %v2401_v5 = vld [vmem:[%s3038_s3 + $0x58] sm:$0xff]  }
  0xc4   :  { %v1828_v51 = vpop.eup %1827  ;;  %v1203_v3 = vadd.f32 1.0, %v1826_v60  ;;  %v724_v48 = vmul.f32 0.5, %v2296_v31  ;;  %1831 = vtanh.f32 %v1060_v10  ;;  %v1012_v13 = vadd.f32 %v948_v7, %v2314_v22  ;;  %v463_v60 = vpop.f32.mrf.mxu2 }
  0xc5   :  { %v1219_v52 = vadd.f32 1.0, %v1828_v51  ;;  %1380 = vst.msk [vmem:[%s3039_s4 + $0x4c] sm:$0xf] %vm1360_vm1, %v1315_v9  ;;  %v964_v11 = vmul.f32 %v900_v4, %v2327_v62  ;;  %v789_v53 = vmul.f32 0.044715, %v2340_v12  ;;  %v2358_v19 = vadd.f32 %v1674_v29, %v421_v2 }
  0xc6   :  { %v1267_v16 = vmul.f32 %v1203_v3, %v755_v44  ;;  %v1076_v23 = vmul.f32 0.7978846, %v1012_v13  ;;  %v461_v49 = vadd.f32 %v2094_v36, %v460_v30  ;;  %v1706_v31 = vunpack.c.h.bf16 %v2280_v8 }
  0xc7   :  { %v1283_v21 = vmul.f32 %v1219_v52, %v771_v63  ;;  %v740_v14 = vmul.f32 0.5, %v2301_v18  ;;  %v1028_v26 = vadd.f32 %v964_v11, %v2327_v62  ;;  %v853_v27 = vmul.f32 %v789_v53, %v2340_v12  ;;  %v2422_v52 = vld [vmem:[%s3038_s3 + $0x98] sm:$0xff]  }
  0xc8   :  { %v1331_v25 = vpack.c.bf16 %v1267_v16, %v1267_v16  ;;  %1833 = vtanh.f32 %v1076_v23  ;;  %v805_v32 = vmul.f32 0.044715, %v2358_v19  ;;  %v2366_v33 = vadd.f32 %v1706_v31, %v461_v49  ;;  %v2428_v53 = vld [vmem:[%s3038_s3 + $0xd8] sm:$0xff]  }
  0xc9   :  { %v1347_v28 = vpack.c.bf16 %v1283_v21, %v1283_v21  ;;  %v1830_v34 = vpop.eup %1829  ;;  %v1092_v8 = vmul.f32 0.7978846, %v1028_v26  ;;  %v917_v35 = vmul.f32 %v853_v27, %v2340_v12  ;;  %v501_v18 = vadd.f32 %v2094_v36, %v500_v20 }
  0xca   :  { %1396 = vst.msk [vmem:[%s3039_s4 + $0x8c] sm:$0xf] %vm1360_vm1, %v1331_v25  ;;  %v1738_v37 = vunpack.c.h.bf16 %v2308_v17  ;;  %v1832_v39 = vpop.eup %1831  ;;  %v1172_v40 = vadd.f32 1.0, %v1830_v34  ;;  %v756_v50 = vmul.f32 0.5, %v2314_v22  ;;  %v869_v24 = vmul.f32 %v805_v32, %v2358_v19  ;;  %v2388_v17 = vld [vmem:[%s3038_s3 + $0x18] sm:$0xff]   ;;  %v385_v34 = vpop.f32.mrf.mxu0 }
  0xcb   :  { %1412 = vst.msk [vmem:[%s3039_s4 + $0xcc] sm:$0xf] %vm1360_vm1, %v1347_v28  ;;  %v821_v41 = vmul.f32 0.044715, %v2366_v33  ;;  %v1188_v42 = vadd.f32 1.0, %v1832_v39  ;;  %1835 = vtanh.f32 %v1092_v8  ;;  %v981_v44 = vadd.f32 %v917_v35, %v2340_v12 }
  0xcc   :  { %v2383_v45 = vadd.f32 %v1738_v37, %v501_v18  ;;  %v1236_v46 = vmul.f32 %v1172_v40, %v724_v48  ;;  %v933_v61 = vmul.f32 %v869_v24, %v2358_v19  ;;  %v384_v57 = vadd.f32 %v2094_v36, %v383_v38  ;;  %v503_v48 = vpop.f32.mrf.mxu3 }
  0xcd   :  { %v885_v22 = vmul.f32 %v821_v41, %v2366_v33  ;;  %v1252_v47 = vmul.f32 %v1188_v42, %v740_v14  ;;  %v772_v1 = vmul.f32 0.5, %v2327_v62  ;;  %v1045_v15 = vmul.f32 0.7978846, %v981_v44 }
  0xce   :  { %v837_v54 = vmul.f32 0.044715, %v2383_v45  ;;  %v1834_v56 = vpop.eup %1833  ;;  %v1300_v58 = vpack.c.bf16 %v1236_v46, %v1236_v46  ;;  %v997_v63 = vadd.f32 %v933_v61, %v2358_v19  ;;  %v1645_v0 = vunpack.c.l.bf16 %v2388_v17 }
  0xcf   :  { %v949_v43 = vmul.f32 %v885_v22, %v2366_v33  ;;  %v1316_v6 = vpack.c.bf16 %v1252_v47, %v1252_v47  ;;  %v1204_v59 = vadd.f32 1.0, %v1834_v56  ;;  %1837 = vtanh.f32 %v1045_v15  ;;  %v425_v22 = vpop.f32.mrf.mxu1 }
  0xd0   :  { %v901_v62 = vmul.f32 %v837_v54, %v2383_v45  ;;  %1365 = vst.msk [vmem:[%s3039_s4 + $0x10] sm:$0xf] %vm1360_vm1, %v1300_v58  ;;  %v1061_v10 = vmul.f32 0.7978846, %v997_v63  ;;  %v2409_v2 = vadd.f32 %v1645_v0, %v384_v57  ;;  %v424_v29 = vadd.f32 %v2094_v36, %v423_v55 }
  0xd1   :  { %v1013_v7 = vadd.f32 %v949_v43, %v2366_v33  ;;  %v1836_v51 = vpop.eup %1835  ;;  %1381 = vst.msk [vmem:[%s3039_s4 + $0x50] sm:$0xf] %vm1360_vm1, %v1316_v6  ;;  %v1268_v9 = vmul.f32 %v1204_v59, %v756_v50  ;;  %v725_v3 = vmul.f32 0.5, %v2340_v12  ;;  %v1677_v30 = vunpack.c.l.bf16 %v2401_v5 }
  0xd2   :  { %v965_v4 = vmul.f32 %v901_v62, %v2383_v45  ;;  %v1220_v13 = vadd.f32 1.0, %v1836_v51  ;;  %1839 = vtanh.f32 %v1061_v10  ;;  %v464_v11 = vadd.f32 %v2094_v36, %v463_v60  ;;  %v465_v10 = vpop.f32.mrf.mxu2 }
  0xd3   :  { %v1077_v16 = vmul.f32 0.7978846, %v1013_v7  ;;  %v1332_v12 = vpack.c.bf16 %v1268_v9, %v1268_v9  ;;  %v790_v23 = vmul.f32 0.044715, %v2409_v2  ;;  %v2432_v49 = vadd.f32 %v1677_v30, %v424_v29 }
  0xd4   :  { %v1029_v21 = vadd.f32 %v965_v4, %v2383_v45  ;;  %v1284_v31 = vmul.f32 %v1220_v13, %v772_v1  ;;  %v1709_v20 = vunpack.c.l.bf16 %v2422_v52  ;;  %v504_v25 = vadd.f32 %v2094_v36, %v503_v48  ;;  %v505_v13 = vpop.f32.mrf.mxu3 }
  0xd5   :  { %1841 = vtanh.f32 %v1077_v16  ;;  %v1838_v14 = vpop.eup %1837  ;;  %1397 = vst.msk [vmem:[%s3039_s4 + $0x90] sm:$0xf] %vm1360_vm1, %v1332_v12  ;;  %v741_v26 = vmul.f32 0.5, %v2358_v19  ;;  %v854_v28 = vmul.f32 %v790_v23, %v2409_v2  ;;  %v1741_v32 = vunpack.c.l.bf16 %v2428_v53 }
  0xd6   :  { %v1093_v27 = vmul.f32 0.7978846, %v1029_v21  ;;  %v1348_v8 = vpack.c.bf16 %v1284_v31, %v1284_v31  ;;  %v1173_v35 = vadd.f32 1.0, %v1838_v14  ;;  %v806_v18 = vmul.f32 0.044715, %v2432_v49 }
  0xd7   :  { %v2444_v37 = vadd.f32 %v1709_v20, %v464_v11  ;;  %v757_v38 = vmul.f32 0.5, %v2366_v33  ;;  %v918_v39 = vmul.f32 %v854_v28, %v2409_v2  ;;  %v2448_v40 = vadd.f32 %v1741_v32, %v504_v25  ;;  %v388_v20 = vpop.f32.mrf.mxu0 }
  0xd8   :  { %1843 = vtanh.f32 %v1093_v27  ;;  %v1840_v19 = vpop.eup %1839  ;;  %1413 = vst.msk [vmem:[%s3039_s4 + $0xd0] sm:$0xf] %vm1360_vm1, %v1348_v8  ;;  %v1237_v50 = vmul.f32 %v1173_v35, %v725_v3  ;;  %v870_v24 = vmul.f32 %v806_v18, %v2432_v49  ;;  %v386_v42 = vadd.f32 %v2094_v36, %v385_v34  ;;  %v428_v34 = vpop.f32.mrf.mxu1 }
  0xd9   :  { %v822_v41 = vmul.f32 0.044715, %v2444_v37  ;;  %v1189_v44 = vadd.f32 1.0, %v1840_v19  ;;  %v773_v33 = vmul.f32 0.5, %v2383_v45  ;;  %v982_v46 = vadd.f32 %v918_v39, %v2409_v2 }
  0xda   :  { %v838_v61 = vmul.f32 0.044715, %v2448_v40  ;;  %v1301_v47 = vpack.c.bf16 %v1237_v50, %v1237_v50  ;;  %v934_v1 = vmul.f32 %v870_v24, %v2432_v49  ;;  %v1646_v54 = vunpack.c.h.bf16 %v2388_v17  ;;  %v2518_v50 = vld [vmem:[%s3038_s3 + $0x60] sm:$0xff]  }
  0xdb   :  { %v1842_v57 = vpop.eup %1841  ;;  %v886_v15 = vmul.f32 %v822_v41, %v2444_v37  ;;  %v1253_v55 = vmul.f32 %v1189_v44, %v741_v26  ;;  %v1046_v58 = vmul.f32 0.7978846, %v982_v46  ;;  %v426_v6 = vadd.f32 %v2094_v36, %v425_v22  ;;  %v2497_v26 = vld [vmem:[%s3038_s3 + $0x20] sm:$0xff]  }
  0xdc   :  { %v1205_v56 = vadd.f32 1.0, %v1842_v57  ;;  %v902_v63 = vmul.f32 %v838_v61, %v2448_v40  ;;  %1366 = vst.msk [vmem:[%s3039_s4 + $0x14] sm:$0xf] %vm1360_vm1, %v1301_v47  ;;  %v998_v45 = vadd.f32 %v934_v1, %v2432_v49  ;;  %v2470_v0 = vadd.f32 %v1646_v54, %v386_v42 }
  0xdd   :  { %v950_v43 = vmul.f32 %v886_v15, %v2444_v37  ;;  %v1317_v17 = vpack.c.bf16 %v1253_v55, %v1253_v55  ;;  %1845 = vtanh.f32 %v1046_v58  ;;  %v726_v29 = vmul.f32 0.5, %v2409_v2 }
  0xde   :  { %v1844_v59 = vpop.eup %1843  ;;  %v1269_v62 = vmul.f32 %v1205_v56, %v757_v38  ;;  %v966_v60 = vmul.f32 %v902_v63, %v2448_v40  ;;  %v1062_v51 = vmul.f32 0.7978846, %v998_v45  ;;  %v791_v30 = vmul.f32 0.044715, %v2470_v0 }
  0xdf   :  { %v1221_v7 = vadd.f32 1.0, %v1844_v59  ;;  %v1014_v9 = vadd.f32 %v950_v43, %v2444_v37  ;;  %1382 = vst.msk [vmem:[%s3039_s4 + $0x54] sm:$0xf] %vm1360_vm1, %v1317_v17  ;;  %v1678_v48 = vunpack.c.h.bf16 %v2401_v5  ;;  %v466_v2 = vadd.f32 %v2094_v36, %v465_v10 }
  0xe0   :  { %v1333_v3 = vpack.c.bf16 %v1269_v62, %v1269_v62  ;;  %v1030_v4 = vadd.f32 %v966_v60, %v2448_v40  ;;  %1847 = vtanh.f32 %v1062_v51  ;;  %v855_v21 = vmul.f32 %v791_v30, %v2470_v0  ;;  %v2555_v30 = vld [vmem:[%s3037_s2] ss:$0 sm:$0xff] }
  0xe1   :  { %v1285_v16 = vmul.f32 %v1221_v7, %v773_v33  ;;  %v1078_v11 = vmul.f32 0.7978846, %v1014_v9  ;;  %v2489_v23 = vadd.f32 %v1678_v48, %v426_v6  ;;  %v1710_v31 = vunpack.c.h.bf16 %v2422_v52  ;;  %v468_v6 = vpop.f32.mrf.mxu2  ;;  %v508_v9 = vpop.f32.mrf.mxu3 }
  0xe2   :  { %1398 = vst.msk [vmem:[%s3039_s4 + $0x94] sm:$0xf] %vm1360_vm1, %v1333_v3  ;;  %v1094_v12 = vmul.f32 0.7978846, %v1030_v4  ;;  %v506_v25 = vadd.f32 %v2094_v36, %v505_v13  ;;  %v1742_v14 = vunpack.c.h.bf16 %v2428_v53  ;;  %v742_v28 = vmul.f32 0.5, %v2432_v49  ;;  %v2561_v13 = vld [vmem:[%s3038_s3 + $0xe0] sm:$0xff]  }
  0xe3   :  { %v1349_v5 = vpack.c.bf16 %v1285_v16, %v1285_v16  ;;  %1849 = vtanh.f32 %v1078_v11  ;;  %v1846_v27 = vpop.eup %1845  ;;  %v919_v32 = vmul.f32 %v855_v21, %v2470_v0  ;;  %v807_v52 = vmul.f32 0.044715, %v2489_v23  ;;  %v390_v21 = vpop.f32.mrf.mxu0 }
  0xe4   :  { %1851 = vtanh.f32 %v1094_v12  ;;  %v1174_v53 = vadd.f32 1.0, %v1846_v27  ;;  %v2506_v8 = vadd.f32 %v1710_v31, %v466_v2  ;;  %v2508_v35 = vadd.f32 %v1742_v14, %v506_v25 }
  0xe5   :  { %1414 = vst.msk [vmem:[%s3039_s4 + $0xd4] sm:$0xf] %vm1360_vm1, %v1349_v5  ;;  %v389_v18 = vadd.f32 %v2094_v36, %v388_v20  ;;  %v758_v49 = vmul.f32 0.5, %v2444_v37  ;;  %v983_v38 = vadd.f32 %v919_v32, %v2470_v0  ;;  %v871_v39 = vmul.f32 %v807_v52, %v2489_v23 }
  0xe6   :  { %v1649_v19 = vunpack.c.l.bf16 %v2497_v26  ;;  %v1848_v24 = vpop.eup %1847  ;;  %v1238_v41 = vmul.f32 %v1174_v53, %v726_v29  ;;  %v774_v42 = vmul.f32 0.5, %v2448_v40  ;;  %v823_v44 = vmul.f32 0.044715, %v2506_v8 }
  0xe7   :  { %v429_v33 = vadd.f32 %v2094_v36, %v428_v34  ;;  %v1190_v37 = vadd.f32 1.0, %v1848_v24  ;;  %v1047_v46 = vmul.f32 0.7978846, %v983_v38  ;;  %v935_v61 = vmul.f32 %v871_v39, %v2489_v23 }
  0xe8   :  { %v839_v22 = vmul.f32 0.044715, %v2508_v35  ;;  %v1302_v47 = vpack.c.bf16 %v1238_v41, %v1238_v41  ;;  %v887_v1 = vmul.f32 %v823_v44, %v2506_v8  ;;  %v2526_v15 = vadd.f32 %v1649_v19, %v389_v18  ;;  %v430_v44 = vpop.f32.mrf.mxu1 }
  0xe9   :  { %v1850_v57 = vpop.eup %1849  ;;  %v1681_v54 = vunpack.c.l.bf16 %v2518_v50  ;;  %v1254_v40 = vmul.f32 %v1190_v37, %v742_v28  ;;  %1853 = vtanh.f32 %v1047_v46  ;;  %v999_v36 = vadd.f32 %v935_v61, %v2489_v23 }
  0xea   :  { %v1852_v55 = vpop.eup %1851  ;;  %v1206_v56 = vadd.f32 1.0, %v1850_v57  ;;  %1367 = vst.msk [vmem:[%s3039_s4 + $0x18] sm:$0xf] %vm1360_vm1, %v1302_v47  ;;  %v727_v63 = vmul.f32 0.5, %v2470_v0  ;;  %v951_v45 = vmul.f32 %v887_v1, %v2506_v8  ;;  %v903_v43 = vmul.f32 %v839_v22, %v2508_v35  ;;  %v2545_v0 = vld [vmem:[%s3038_s3 + $0xa0] sm:$0xff]  }
  0xeb   :  { %v1222_v58 = vadd.f32 1.0, %v1852_v55  ;;  %v1318_v59 = vpack.c.bf16 %v1254_v40, %v1254_v40  ;;  %v1063_v62 = vmul.f32 0.7978846, %v999_v36  ;;  %v792_v60 = vmul.f32 0.044715, %v2526_v15 }
  0xec   :  { %v1270_v17 = vmul.f32 %v1206_v56, %v758_v49  ;;  %v1015_v7 = vadd.f32 %v951_v45, %v2506_v8  ;;  %v967_v29 = vmul.f32 %v903_v43, %v2508_v35  ;;  %v2540_v51 = vadd.f32 %v1681_v54, %v429_v33 }
  0xed   :  { %v1286_v10 = vmul.f32 %v1222_v58, %v774_v42  ;;  %1383 = vst.msk [vmem:[%s3039_s4 + $0x58] sm:$0xf] %vm1360_vm1, %v1318_v59  ;;  %1855 = vtanh.f32 %v1063_v62  ;;  %v856_v4 = vmul.f32 %v792_v60, %v2526_v15  ;;  %v469_v48 = vadd.f32 %v2555_v30, %v468_v6  ;;  %v470_v59 = vpop.f32.mrf.mxu2 }
  0xee   :  { %v1334_v3 = vpack.c.bf16 %v1270_v17, %v1270_v17  ;;  %v743_v11 = vmul.f32 0.5, %v2489_v23  ;;  %v1079_v2 = vmul.f32 0.7978846, %v1015_v7  ;;  %v1031_v12 = vadd.f32 %v967_v29, %v2508_v35  ;;  %v510_v29 = vpop.f32.mrf.mxu3 }
  0xef   :  { %v1350_v16 = vpack.c.bf16 %v1286_v10, %v1286_v10  ;;  %v1854_v31 = vpop.eup %1853  ;;  %v920_v20 = vmul.f32 %v856_v4, %v2526_v15  ;;  %v808_v5 = vmul.f32 0.044715, %v2540_v51  ;;  %v1713_v25 = vunpack.c.l.bf16 %v2545_v0 }
  0xf0   :  { %1399 = vst.msk [vmem:[%s3039_s4 + $0x98] sm:$0xf] %vm1360_vm1, %v1334_v3  ;;  %v509_v14 = vadd.f32 %v2555_v30, %v508_v9  ;;  %v1175_v23 = vadd.f32 1.0, %v1854_v31  ;;  %1857 = vtanh.f32 %v1079_v2  ;;  %v1095_v27 = vmul.f32 0.7978846, %v1031_v12  ;;  %v2623_v31 = vld [vmem:[%s3038_s3 + $0x28] sm:$0xff]  }
  0xf1   :  { %1415 = vst.msk [vmem:[%s3039_s4 + $0xd8] sm:$0xf] %vm1360_vm1, %v1350_v16  ;;  %v1745_v28 = vunpack.c.l.bf16 %v2561_v13  ;;  %v984_v32 = vadd.f32 %v920_v20, %v2526_v15  ;;  %v872_v52 = vmul.f32 %v808_v5, %v2540_v51  ;;  %v2580_v34 = vadd.f32 %v1713_v25, %v469_v48 }
  0xf2   :  { %v391_v53 = vadd.f32 %v2555_v30, %v390_v21  ;;  %v1239_v18 = vmul.f32 %v1175_v23, %v727_v63  ;;  %1859 = vtanh.f32 %v1095_v27  ;;  %v1650_v38 = vunpack.c.h.bf16 %v2497_v26 }
  0xf3   :  { %v2583_v49 = vadd.f32 %v1745_v28, %v509_v14  ;;  %v1856_v39 = vpop.eup %1855  ;;  %v759_v19 = vmul.f32 0.5, %v2506_v8  ;;  %v1048_v24 = vmul.f32 0.7978846, %v984_v32  ;;  %v936_v41 = vmul.f32 %v872_v52, %v2540_v51 }
  0xf4   :  { %v824_v42 = vmul.f32 0.044715, %v2580_v34  ;;  %v1303_v33 = vpack.c.bf16 %v1239_v18, %v1239_v18  ;;  %v1191_v37 = vadd.f32 1.0, %v1856_v39  ;;  %v775_v46 = vmul.f32 0.5, %v2508_v35 }
  0xf5   :  { %v840_v61 = vmul.f32 0.044715, %v2583_v49  ;;  %1861 = vtanh.f32 %v1048_v24  ;;  %v1000_v22 = vadd.f32 %v936_v41, %v2540_v51  ;;  %v2593_v57 = vadd.f32 %v1650_v38, %v391_v53  ;;  %v433_v24 = vpop.f32.mrf.mxu1 }
  0xf6   :  { %v888_v26 = vmul.f32 %v824_v42, %v2580_v34  ;;  %v1858_v8 = vpop.eup %1857  ;;  %1368 = vst.msk [vmem:[%s3039_s4 + $0x1c] sm:$0xf] %vm1360_vm1, %v1303_v33  ;;  %v1255_v47 = vmul.f32 %v1191_v37, %v743_v11  ;;  %v431_v35 = vadd.f32 %v2555_v30, %v430_v44  ;;  %v1682_v54 = vunpack.c.h.bf16 %v2518_v50 }
  0xf7   :  { %v904_v1 = vmul.f32 %v840_v61, %v2583_v49  ;;  %v1207_v55 = vadd.f32 1.0, %v1858_v8  ;;  %v728_v40 = vmul.f32 0.5, %v2526_v15  ;;  %v1064_v56 = vmul.f32 0.7978846, %v1000_v22  ;;  %v2654_v61 = vld [vmem:[%s3038_s3 + $0x68] sm:$0xff]  }
  0xf8   :  { %v952_v36 = vmul.f32 %v888_v26, %v2580_v34  ;;  %v1860_v58 = vpop.eup %1859  ;;  %v1319_v63 = vpack.c.bf16 %v1255_v47, %v1255_v47  ;;  %v793_v43 = vmul.f32 0.044715, %v2593_v57  ;;  %v2606_v6 = vadd.f32 %v1682_v54, %v431_v35 }
  0xf9   :  { %v968_v45 = vmul.f32 %v904_v1, %v2583_v49  ;;  %v1271_v17 = vmul.f32 %v1207_v55, %v759_v19  ;;  %v1223_v62 = vadd.f32 1.0, %v1860_v58  ;;  %1863 = vtanh.f32 %v1064_v56  ;;  %v473_v1 = vpop.f32.mrf.mxu2 }
  0xfa   :  { %v1016_v50 = vadd.f32 %v952_v36, %v2580_v34  ;;  %1384 = vst.msk [vmem:[%s3039_s4 + $0x5c] sm:$0xf] %vm1360_vm1, %v1319_v63  ;;  %v744_v15 = vmul.f32 0.5, %v2540_v51  ;;  %v857_v10 = vmul.f32 %v793_v43, %v2593_v57  ;;  %v809_v7 = vmul.f32 0.044715, %v2606_v6  ;;  %v393_v51 = vpop.f32.mrf.mxu0 }
  0xfb   :  { %v1032_v60 = vadd.f32 %v968_v45, %v2583_v49  ;;  %v1862_v9 = vpop.eup %1861  ;;  %v1335_v3 = vpack.c.bf16 %v1271_v17, %v1271_v17  ;;  %v1287_v4 = vmul.f32 %v1223_v62, %v775_v46  ;;  %v471_v16 = vadd.f32 %v2555_v30, %v470_v59 }
  0xfc   :  { %v1080_v48 = vmul.f32 0.7978846, %v1016_v50  ;;  %v1176_v11 = vadd.f32 1.0, %v1862_v9  ;;  %v921_v12 = vmul.f32 %v857_v10, %v2593_v57  ;;  %v873_v21 = vmul.f32 %v809_v7, %v2606_v6 }
  0xfd   :  { %v1096_v2 = vmul.f32 0.7978846, %v1032_v60  ;;  %1400 = vst.msk [vmem:[%s3039_s4 + $0x9c] sm:$0xf] %vm1360_vm1, %v1335_v3  ;;  %v1351_v20 = vpack.c.bf16 %v1287_v4, %v1287_v4  ;;  %v1714_v5 = vunpack.c.h.bf16 %v2545_v0  ;;  %v511_v25 = vadd.f32 %v2555_v30, %v510_v29  ;;  %v513_v60 = vpop.f32.mrf.mxu3 }
  0xfe   :  { %1865 = vtanh.f32 %v1080_v48  ;;  %v1240_v14 = vmul.f32 %v1176_v11, %v728_v40  ;;  %v985_v23 = vadd.f32 %v921_v12, %v2593_v57  ;;  %v937_v27 = vmul.f32 %v873_v21, %v2606_v6 }
  0xff   :  { %1867 = vtanh.f32 %v1096_v2  ;;  %v1864_v28 = vpop.eup %1863  ;;  %1416 = vst.msk [vmem:[%s3039_s4 + $0xdc] sm:$0xf] %vm1360_vm1, %v1351_v20  ;;  %v697_v32 = vadd.f32 %v1714_v5, %v471_v16  ;;  %v1746_v52 = vunpack.c.h.bf16 %v2561_v13  ;;  %v394_v53 = vadd.f32 %v2555_v30, %v393_v51  ;;  %v2683_v2 = vld [vmem:[%s3038_s3 + $0xe8] sm:$0xff]  }
 0x100   :  { %v1653_v0 = vunpack.c.l.bf16 %v2623_v31  ;;  %v1304_v18 = vpack.c.bf16 %v1240_v14, %v1240_v14  ;;  %v1192_v38 = vadd.f32 1.0, %v1864_v28  ;;  %v1049_v39 = vmul.f32 0.7978846, %v985_v23 }
 0x101   :  { %v1001_v19 = vadd.f32 %v937_v27, %v2606_v6  ;;  %v760_v41 = vmul.f32 0.5, %v2580_v34  ;;  %v825_v42 = vmul.f32 0.044715, %v697_v32  ;;  %v2642_v44 = vadd.f32 %v1746_v52, %v511_v25 }
 0x102   :  { %v2644_v33 = vadd.f32 %v1653_v0, %v394_v53  ;;  %1369 = vst.msk [vmem:[%s3039_s4 + $0x20] sm:$0xf] %vm1360_vm1, %v1304_v18  ;;  %v1256_v13 = vmul.f32 %v1192_v38, %v744_v15  ;;  %v776_v37 = vmul.f32 0.5, %v2583_v49  ;;  %1869 = vtanh.f32 %v1049_v39  ;;  %v2662_v49 = vld [vmem:[%s3038_s3 + $0xa8] sm:$0xff]   ;;  %v395_v5 = vpop.f32.mrf.mxu0  ;;  %v435_v53 = vpop.f32.mrf.mxu1 }
 0x103   :  { %v1065_v46 = vmul.f32 0.7978846, %v1001_v19  ;;  %v729_v22 = vmul.f32 0.5, %v2593_v57  ;;  %v889_v26 = vmul.f32 %v825_v42, %v697_v32  ;;  %v841_v8 = vmul.f32 0.044715, %v2642_v44 }
 0x104   :  { %v1866_v34 = vpop.eup %1865  ;;  %v434_v47 = vadd.f32 %v2555_v30, %v433_v24  ;;  %v1320_v54 = vpack.c.bf16 %v1256_v13, %v1256_v13  ;;  %v794_v40 = vmul.f32 0.044715, %v2644_v33  ;;  %v1685_v58 = vunpack.c.l.bf16 %v2654_v61 }
 0x105   :  { %v1868_v35 = vpop.eup %1867  ;;  %v1208_v55 = vadd.f32 1.0, %v1866_v34  ;;  %1871 = vtanh.f32 %v1065_v46  ;;  %v953_v36 = vmul.f32 %v889_v26, %v697_v32  ;;  %v905_v57 = vmul.f32 %v841_v8, %v2642_v44 }
 0x106   :  { %v1224_v56 = vadd.f32 1.0, %v1868_v35  ;;  %1385 = vst.msk [vmem:[%s3039_s4 + $0x60] sm:$0xf] %vm1360_vm1, %v1320_v54  ;;  %v858_v45 = vmul.f32 %v794_v40, %v2644_v33  ;;  %v474_v43 = vadd.f32 %v2555_v30, %v473_v1  ;;  %v1717_v59 = vunpack.c.l.bf16 %v2662_v49 }
 0x107   :  { %v1272_v63 = vmul.f32 %v1208_v55, %v760_v41  ;;  %v1017_v62 = vadd.f32 %v953_v36, %v697_v32  ;;  %v969_v50 = vmul.f32 %v905_v57, %v2642_v44  ;;  %v682_v15 = vadd.f32 %v1685_v58, %v434_v47  ;;  %v475_v41 = vpop.f32.mrf.mxu2 }
 0x108   :  { %v1288_v17 = vmul.f32 %v1224_v56, %v776_v37  ;;  %v1870_v10 = vpop.eup %1869  ;;  %v745_v29 = vmul.f32 0.5, %v2606_v6  ;;  %v922_v9 = vmul.f32 %v858_v45, %v2644_v33  ;;  %v2677_v3 = vadd.f32 %v1717_v59, %v474_v43 }
 0x109   :  { %v1336_v7 = vpack.c.bf16 %v1272_v63, %v1272_v63  ;;  %v1177_v48 = vadd.f32 1.0, %v1870_v10  ;;  %v1081_v16 = vmul.f32 0.7978846, %v1017_v62  ;;  %v1033_v11 = vadd.f32 %v969_v50, %v2642_v44  ;;  %v515_v10 = vpop.f32.mrf.mxu3 }
 0x10a   :  { %v1352_v4 = vpack.c.bf16 %v1288_v17, %v1288_v17  ;;  %v761_v6 = vmul.f32 0.5, %v697_v32  ;;  %v986_v21 = vadd.f32 %v922_v9, %v2644_v33  ;;  %v810_v51 = vmul.f32 0.044715, %v682_v15 }
 0x10b   :  { %v1872_v12 = vpop.eup %1871  ;;  %1401 = vst.msk [vmem:[%s3039_s4 + $0xa0] sm:$0xf] %vm1360_vm1, %v1336_v7  ;;  %v514_v20 = vadd.f32 %v2555_v30, %v513_v60  ;;  %v1241_v25 = vmul.f32 %v1177_v48, %v729_v22  ;;  %1873 = vtanh.f32 %v1081_v16  ;;  %v1097_v23 = vmul.f32 0.7978846, %v1033_v11  ;;  %v398_v16 = vpop.f32.mrf.mxu0  ;;  %v2737_v11 = vld [vmem:[%s3038_s3 + $0x30] sm:$0xff]  }
 0x10c   :  { %1417 = vst.msk [vmem:[%s3039_s4 + $0xe0] sm:$0xf] %vm1360_vm1, %v1352_v4  ;;  %v1193_v14 = vadd.f32 1.0, %v1872_v12  ;;  %v1050_v27 = vmul.f32 0.7978846, %v986_v21  ;;  %v874_v28 = vmul.f32 %v810_v51, %v682_v15  ;;  %v1749_v32 = vunpack.c.l.bf16 %v2683_v2 }
 0x10d   :  { %v826_v52 = vmul.f32 0.044715, %v2677_v3  ;;  %v1305_v0 = vpack.c.bf16 %v1241_v25, %v1241_v25  ;;  %1875 = vtanh.f32 %v1097_v23  ;;  %v396_v38 = vadd.f32 %v2555_v30, %v395_v5 }
 0x10e   :  { %v1257_v18 = vmul.f32 %v1193_v14, %v745_v29  ;;  %1877 = vtanh.f32 %v1050_v27  ;;  %v938_v39 = vmul.f32 %v874_v28, %v682_v15  ;;  %v2699_v24 = vadd.f32 %v1749_v32, %v514_v20  ;;  %v438_v20 = vpop.f32.mrf.mxu1 }
 0x10f   :  { %v890_v19 = vmul.f32 %v826_v52, %v2677_v3  ;;  %1370 = vst.msk [vmem:[%s3039_s4 + $0x24] sm:$0xf] %vm1360_vm1, %v1305_v0  ;;  %v1654_v13 = vunpack.c.h.bf16 %v2623_v31  ;;  %v436_v37 = vadd.f32 %v2555_v30, %v435_v53  ;;  %v1686_v46 = vunpack.c.h.bf16 %v2654_v61  ;;  %v2759_v53 = vld [vmem:[%s3038_s3 + $0x70] sm:$0xff]  }
 0x110   :  { %v1321_v42 = vpack.c.bf16 %v1257_v18, %v1257_v18  ;;  %v777_v34 = vmul.f32 0.5, %v2642_v44  ;;  %v1002_v22 = vadd.f32 %v938_v39, %v682_v15  ;;  %v842_v8 = vmul.f32 0.044715, %v2699_v24 }
 0x111   :  { %v954_v26 = vmul.f32 %v890_v19, %v2677_v3  ;;  %v1874_v47 = vpop.eup %1873  ;;  %v2715_v1 = vadd.f32 %v1654_v13, %v396_v38  ;;  %v2717_v31 = vadd.f32 %v1686_v46, %v436_v37  ;;  %v476_v35 = vadd.f32 %v2555_v30, %v475_v41 }
 0x112   :  { %1386 = vst.msk [vmem:[%s3039_s4 + $0x64] sm:$0xf] %vm1360_vm1, %v1321_v42  ;;  %v1718_v61 = vunpack.c.h.bf16 %v2662_v49  ;;  %v1209_v44 = vadd.f32 1.0, %v1874_v47  ;;  %v1066_v54 = vmul.f32 0.7978846, %v1002_v22  ;;  %v906_v40 = vmul.f32 %v842_v8, %v2699_v24  ;;  %v2778_v47 = vld [vmem:[%s3038_s3 + $0xb0] sm:$0xff]  }
 0x113   :  { %v1018_v55 = vadd.f32 %v954_v26, %v2677_v3  ;;  %v1876_v56 = vpop.eup %1875  ;;  %v730_v36 = vmul.f32 0.5, %v2644_v33  ;;  %v746_v57 = vmul.f32 0.5, %v682_v15  ;;  %v795_v58 = vmul.f32 0.044715, %v2715_v1 }
 0x114   :  { %v811_v63 = vmul.f32 0.044715, %v2717_v31  ;;  %v1878_v45 = vpop.eup %1877  ;;  %v1273_v43 = vmul.f32 %v1209_v44, %v761_v6  ;;  %v1225_v59 = vadd.f32 1.0, %v1876_v56  ;;  %1879 = vtanh.f32 %v1066_v54 }
 0x115   :  { %v1082_v17 = vmul.f32 0.7978846, %v1018_v55  ;;  %v1178_v49 = vadd.f32 1.0, %v1878_v45  ;;  %v970_v62 = vmul.f32 %v906_v40, %v2699_v24  ;;  %v859_v50 = vmul.f32 %v795_v58, %v2715_v1  ;;  %v518_v55 = vpop.f32.mrf.mxu3 }
 0x116   :  { %v875_v60 = vmul.f32 %v811_v63, %v2717_v31  ;;  %v1337_v7 = vpack.c.bf16 %v1273_v43, %v1273_v43  ;;  %v1289_v33 = vmul.f32 %v1225_v59, %v777_v34  ;;  %v2729_v15 = vadd.f32 %v1718_v61, %v476_v35  ;;  %v478_v34 = vpop.f32.mrf.mxu2 }
 0x117   :  { %1881 = vtanh.f32 %v1082_v17  ;;  %v1242_v29 = vmul.f32 %v1178_v49, %v730_v36  ;;  %v1034_v9 = vadd.f32 %v970_v62, %v2699_v24  ;;  %v923_v4 = vmul.f32 %v859_v50, %v2715_v1  ;;  %v400_v62 = vpop.f32.mrf.mxu0 }
 0x118   :  { %v939_v48 = vmul.f32 %v875_v60, %v2717_v31  ;;  %1402 = vst.msk [vmem:[%s3039_s4 + $0xa4] sm:$0xf] %vm1360_vm1, %v1337_v7  ;;  %v1353_v12 = vpack.c.bf16 %v1289_v33, %v1289_v33  ;;  %v762_v6 = vmul.f32 0.5, %v2677_v3  ;;  %v827_v21 = vmul.f32 0.044715, %v2729_v15 }
 0x119   :  { %v516_v51 = vadd.f32 %v2555_v30, %v515_v10  ;;  %v1306_v5 = vpack.c.bf16 %v1242_v29, %v1242_v29  ;;  %v1098_v25 = vmul.f32 0.7978846, %v1034_v9  ;;  %v987_v14 = vadd.f32 %v923_v4, %v2715_v1 }
 0x11a   :  { %v1003_v23 = vadd.f32 %v939_v48, %v2717_v31  ;;  %v1880_v27 = vpop.eup %1879  ;;  %1418 = vst.msk [vmem:[%s3039_s4 + $0xe4] sm:$0xf] %vm1360_vm1, %v1353_v12  ;;  %v891_v28 = vmul.f32 %v827_v21, %v2729_v15  ;;  %v1750_v3 = vunpack.c.h.bf16 %v2683_v2  ;;  %v399_v52 = vadd.f32 %v2555_v30, %v398_v16 }
 0x11b   :  { %v1657_v32 = vunpack.c.l.bf16 %v2737_v11  ;;  %1371 = vst.msk [vmem:[%s3039_s4 + $0x28] sm:$0xf] %vm1360_vm1, %v1306_v5  ;;  %v1194_v0 = vadd.f32 1.0, %v1880_v27  ;;  %1883 = vtanh.f32 %v1098_v25  ;;  %v1051_v18 = vmul.f32 0.7978846, %v987_v14 }
 0x11c   :  { %v439_v38 = vadd.f32 %v2555_v30, %v438_v20  ;;  %v1067_v39 = vmul.f32 0.7978846, %v1003_v23  ;;  %v955_v19 = vmul.f32 %v891_v28, %v2729_v15  ;;  %v2767_v41 = vadd.f32 %v1750_v3, %v516_v51 }
 0x11d   :  { %v1882_v2 = vpop.eup %1881  ;;  %v2769_v42 = vadd.f32 %v1657_v32, %v399_v52  ;;  %v1258_v13 = vmul.f32 %v1194_v0, %v746_v57  ;;  %1885 = vtanh.f32 %v1051_v18  ;;  %v1689_v46 = vunpack.c.l.bf16 %v2759_v53  ;;  %v2789_v57 = vld [vmem:[%s3038_s3 + $0xf0] sm:$0xff]   ;;  %v440_v0 = vpop.f32.mrf.mxu1 }
 0x11e   :  { %v1210_v37 = vadd.f32 1.0, %v1882_v2  ;;  %v778_v22 = vmul.f32 0.5, %v2699_v24  ;;  %1887 = vtanh.f32 %v1067_v39  ;;  %v1019_v26 = vadd.f32 %v955_v19, %v2729_v15 }
 0x11f   :  { %v843_v8 = vmul.f32 0.044715, %v2767_v41  ;;  %v1322_v35 = vpack.c.bf16 %v1258_v13, %v1258_v13  ;;  %v731_v44 = vmul.f32 0.5, %v2715_v1  ;;  %v796_v54 = vmul.f32 0.044715, %v2769_v42 }
 0x120   :  { %v1274_v61 = vmul.f32 %v1210_v37, %v762_v6  ;;  %v1083_v40 = vmul.f32 0.7978846, %v1019_v26  ;;  %v2783_v56 = vadd.f32 %v1689_v46, %v439_v38  ;;  %v479_v36 = vadd.f32 %v2555_v30, %v478_v34  ;;  %v480_v37 = vpop.f32.mrf.mxu2 }
 0x121   :  { %v907_v24 = vmul.f32 %v843_v8, %v2767_v41  ;;  %v1884_v58 = vpop.eup %1883  ;;  %1387 = vst.msk [vmem:[%s3039_s4 + $0x68] sm:$0xf] %vm1360_vm1, %v1322_v35  ;;  %v747_v63 = vmul.f32 0.5, %v2717_v31  ;;  %v860_v45 = vmul.f32 %v796_v54, %v2769_v42  ;;  %v1721_v43 = vunpack.c.l.bf16 %v2778_v47 }
 0x122   :  { %v1338_v1 = vpack.c.bf16 %v1274_v61, %v1274_v61  ;;  %v1226_v59 = vadd.f32 1.0, %v1884_v58  ;;  %1889 = vtanh.f32 %v1083_v40  ;;  %v519_v49 = vadd.f32 %v2555_v30, %v518_v55 }
 0x123   :  { %v971_v17 = vmul.f32 %v907_v24, %v2767_v41  ;;  %v1886_v50 = vpop.eup %1885  ;;  %v924_v60 = vmul.f32 %v860_v45, %v2769_v42  ;;  %v812_v31 = vmul.f32 0.044715, %v2783_v56  ;;  %v2806_v10 = vadd.f32 %v1721_v43, %v479_v36 }
 0x124   :  { %1403 = vst.msk [vmem:[%s3039_s4 + $0xa8] sm:$0xf] %vm1360_vm1, %v1338_v1  ;;  %v1753_v7 = vunpack.c.l.bf16 %v2789_v57  ;;  %v1888_v33 = vpop.eup %1887  ;;  %v1290_v29 = vmul.f32 %v1226_v59, %v778_v22  ;;  %v1179_v9 = vadd.f32 1.0, %v1886_v50  ;;  %v763_v4 = vmul.f32 0.5, %v2729_v15 }
 0x125   :  { %v1035_v48 = vadd.f32 %v971_v17, %v2767_v41  ;;  %v1195_v16 = vadd.f32 1.0, %v1888_v33  ;;  %v988_v12 = vadd.f32 %v924_v60, %v2769_v42  ;;  %v876_v6 = vmul.f32 %v812_v31, %v2783_v56 }
 0x126   :  { %v401_v21 = vadd.f32 %v2555_v30, %v400_v62  ;;  %v1354_v51 = vpack.c.bf16 %v1290_v29, %v1290_v29  ;;  %v1243_v20 = vmul.f32 %v1179_v9, %v731_v44  ;;  %v828_v25 = vmul.f32 0.044715, %v2806_v10  ;;  %v520_v44 = vpop.f32.mrf.mxu3 }
 0x127   :  { %v1099_v5 = vmul.f32 0.7978846, %v1035_v48  ;;  %v1259_v14 = vmul.f32 %v1195_v16, %v747_v63  ;;  %v1052_v23 = vmul.f32 0.7978846, %v988_v12  ;;  %v940_v27 = vmul.f32 %v876_v6, %v2783_v56 }
 0x128   :  { %v2816_v28 = vadd.f32 %v1753_v7, %v519_v49  ;;  %v1890_v15 = vpop.eup %1889  ;;  %1419 = vst.msk [vmem:[%s3039_s4 + $0xe8] sm:$0xf] %vm1360_vm1, %v1354_v51  ;;  %v1307_v3 = vpack.c.bf16 %v1243_v20, %v1243_v20  ;;  %v892_v52 = vmul.f32 %v828_v25, %v2806_v10  ;;  %v1658_v32 = vunpack.c.h.bf16 %v2737_v11 }
 0x129   :  { %1891 = vtanh.f32 %v1099_v5  ;;  %v1323_v18 = vpack.c.bf16 %v1259_v14, %v1259_v14  ;;  %v1211_v38 = vadd.f32 1.0, %v1890_v15  ;;  %v1004_v2 = vadd.f32 %v940_v27, %v2783_v56 }
 0x12a   :  { %1893 = vtanh.f32 %v1052_v23  ;;  %1372 = vst.msk [vmem:[%s3039_s4 + $0x2c] sm:$0xf] %vm1360_vm1, %v1307_v3  ;;  %v956_v39 = vmul.f32 %v892_v52, %v2806_v10  ;;  %v844_v19 = vmul.f32 0.044715, %v2816_v28  ;;  %v2831_v13 = vadd.f32 %v1658_v32, %v401_v21 }
 0x12b   :  { %1388 = vst.msk [vmem:[%s3039_s4 + $0x6c] sm:$0xf] %vm1360_vm1, %v1323_v18  ;;  %v1275_v11 = vmul.f32 %v1211_v38, %v763_v4  ;;  %v1068_v46 = vmul.f32 0.7978846, %v1004_v2  ;;  %v441_v34 = vadd.f32 %v2555_v30, %v440_v0  ;;  %v1690_v22 = vunpack.c.h.bf16 %v2759_v53  ;;  %v2867_v4 = vld [vmem:[%s3038_s3 + $0x38] sm:$0xff]  }
 0x12c   :  { %v779_v26 = vmul.f32 0.5, %v2767_v41  ;;  %v1020_v8 = vadd.f32 %v956_v39, %v2806_v10  ;;  %v908_v35 = vmul.f32 %v844_v19, %v2816_v28  ;;  %v797_v61 = vmul.f32 0.044715, %v2831_v13  ;;  %v483_v39 = vpop.f32.mrf.mxu2 }
 0x12d   :  { %v1339_v54 = vpack.c.bf16 %v1275_v11, %v1275_v11  ;;  %1895 = vtanh.f32 %v1068_v46  ;;  %v2843_v55 = vadd.f32 %v1690_v22, %v441_v34  ;;  %v481_v40 = vadd.f32 %v2555_v30, %v480_v37 }
 0x12e   :  { %v1084_v36 = vmul.f32 0.7978846, %v1020_v8  ;;  %v972_v58 = vmul.f32 %v908_v35, %v2816_v28  ;;  %v861_v53 = vmul.f32 %v797_v61, %v2831_v13  ;;  %v1722_v41 = vunpack.c.h.bf16 %v2778_v47  ;;  %v403_v47 = vpop.f32.mrf.mxu0  ;;  %v523_v8 = vpop.f32.mrf.mxu3 }
 0x12f   :  { %v1892_v24 = vpop.eup %1891  ;;  %1404 = vst.msk [vmem:[%s3039_s4 + $0xac] sm:$0xf] %vm1360_vm1, %v1339_v54  ;;  %v732_v45 = vmul.f32 0.5, %v2769_v42  ;;  %v813_v43 = vmul.f32 0.044715, %v2843_v55  ;;  %v521_v59 = vadd.f32 %v2555_v30, %v520_v44  ;;  %v1754_v7 = vunpack.c.h.bf16 %v2789_v57  ;;  %v443_v57 = vpop.f32.mrf.mxu1 }
 0x130   :  { %v1894_v1 = vpop.eup %1893  ;;  %v1227_v63 = vadd.f32 1.0, %v1892_v24  ;;  %1897 = vtanh.f32 %v1084_v36  ;;  %v1036_v49 = vadd.f32 %v972_v58, %v2816_v28  ;;  %v925_v62 = vmul.f32 %v861_v53, %v2831_v13  ;;  %v2918_v53 = vld [vmem:[%s3038_s3 + $0xf8] sm:$0xff]  }
 0x131   :  { %v1180_v17 = vadd.f32 1.0, %v1894_v1  ;;  %v877_v60 = vmul.f32 %v813_v43, %v2843_v55  ;;  %v2859_v31 = vadd.f32 %v1722_v41, %v481_v40  ;;  %v748_v42 = vmul.f32 0.5, %v2783_v56  ;;  %v2875_v56 = vld [vmem:[%s3038_s3 + $0x78] sm:$0xff]  }
 0x132   :  { %v1291_v50 = vmul.f32 %v1227_v63, %v779_v26  ;;  %v1100_v29 = vmul.f32 0.7978846, %v1036_v49  ;;  %v989_v9 = vadd.f32 %v925_v62, %v2831_v13  ;;  %v404_v21 = vadd.f32 %v2555_v30, %v403_v47 }
 0x133   :  { %v1244_v33 = vmul.f32 %v1180_v17, %v732_v45  ;;  %v1896_v48 = vpop.eup %1895  ;;  %v941_v12 = vmul.f32 %v877_v60, %v2843_v55  ;;  %v829_v6 = vmul.f32 0.044715, %v2859_v31  ;;  %v2883_v23 = vadd.f32 %v1754_v7, %v521_v59 }
 0x134   :  { %v1355_v16 = vpack.c.bf16 %v1291_v50, %v1291_v50  ;;  %v1196_v20 = vadd.f32 1.0, %v1896_v48  ;;  %1899 = vtanh.f32 %v1100_v29  ;;  %v1053_v5 = vmul.f32 0.7978846, %v989_v9 }
 0x135   :  { %v1308_v51 = vpack.c.bf16 %v1244_v33, %v1244_v33  ;;  %v1005_v25 = vadd.f32 %v941_v12, %v2843_v55  ;;  %v893_v14 = vmul.f32 %v829_v6, %v2859_v31  ;;  %v1661_v27 = vunpack.c.l.bf16 %v2867_v4 }
 0x136   :  { %1420 = vst.msk [vmem:[%s3039_s4 + $0xec] sm:$0xf] %vm1360_vm1, %v1355_v16  ;;  %v1898_v15 = vpop.eup %1897  ;;  %v1260_v3 = vmul.f32 %v1196_v20, %v748_v42  ;;  %1901 = vtanh.f32 %v1053_v5  ;;  %v444_v52 = vadd.f32 %v2555_v30, %v443_v57  ;;  %v1693_v32 = vunpack.c.l.bf16 %v2875_v56  ;;  %v405_v49 = vpop.f32.mrf.mxu0 }
 0x137   :  { %1373 = vst.msk [vmem:[%s3039_s4 + $0x30] sm:$0xf] %vm1360_vm1, %v1308_v51  ;;  %v764_v0 = vmul.f32 0.5, %v2806_v10  ;;  %v1212_v18 = vadd.f32 1.0, %v1898_v15  ;;  %v1069_v38 = vmul.f32 0.7978846, %v1005_v25  ;;  %v957_v2 = vmul.f32 %v893_v14, %v2859_v31 }
 0x138   :  { %v1324_v19 = vpack.c.bf16 %v1260_v3, %v1260_v3  ;;  %v845_v37 = vmul.f32 0.044715, %v2883_v23  ;;  %v2895_v11 = vadd.f32 %v1661_v27, %v404_v21  ;;  %v2897_v46 = vadd.f32 %v1693_v32, %v444_v52  ;;  %v2904_v10 = vld [vmem:[%s3038_s3 + $0xb8] sm:$0xff]   ;;  %v445_v21 = vpop.f32.mrf.mxu1 }
 0x139   :  { %v1276_v34 = vmul.f32 %v1212_v18, %v764_v0  ;;  %v780_v22 = vmul.f32 0.5, %v2816_v28  ;;  %1903 = vtanh.f32 %v1069_v38  ;;  %v1021_v26 = vadd.f32 %v957_v2, %v2859_v31  ;;  %v485_v0 = vpop.f32.mrf.mxu2 }
 0x13a   :  { %v1900_v35 = vpop.eup %1899  ;;  %1389 = vst.msk [vmem:[%s3039_s4 + $0x70] sm:$0xf] %vm1360_vm1, %v1324_v19  ;;  %v733_v61 = vmul.f32 0.5, %v2831_v13  ;;  %v909_v44 = vmul.f32 %v845_v37, %v2883_v23  ;;  %v798_v28 = vmul.f32 0.044715, %v2895_v11  ;;  %v484_v54 = vadd.f32 %v2555_v30, %v483_v39 }
 0x13b   :  { %v1340_v40 = vpack.c.bf16 %v1276_v34, %v1276_v34  ;;  %v1228_v24 = vadd.f32 1.0, %v1900_v35  ;;  %v1085_v36 = vmul.f32 0.7978846, %v1021_v26  ;;  %v814_v58 = vmul.f32 0.044715, %v2897_v46  ;;  %v525_v26 = vpop.f32.mrf.mxu3 }
 0x13c   :  { %v1902_v41 = vpop.eup %1901  ;;  %v973_v1 = vmul.f32 %v909_v44, %v2883_v23  ;;  %v862_v13 = vmul.f32 %v798_v28, %v2895_v11  ;;  %v1725_v63 = vunpack.c.l.bf16 %v2904_v10  ;;  %v524_v45 = vadd.f32 %v2555_v30, %v523_v8 }
 0x13d   :  { %1405 = vst.msk [vmem:[%s3039_s4 + $0xb0] sm:$0xf] %vm1360_vm1, %v1340_v40  ;;  %v1292_v43 = vmul.f32 %v1228_v24, %v780_v22  ;;  %v1181_v59 = vadd.f32 1.0, %v1902_v41  ;;  %1905 = vtanh.f32 %v1085_v36  ;;  %v878_v17 = vmul.f32 %v814_v58, %v2897_v46 }
 0x13e   :  { %v1037_v62 = vadd.f32 %v973_v1, %v2883_v23  ;;  %v926_v47 = vmul.f32 %v862_v13, %v2895_v11  ;;  %v2931_v50 = vadd.f32 %v1725_v63, %v484_v54  ;;  %v1757_v60 = vunpack.c.l.bf16 %v2918_v53 }
 0x13f   :  { %v1904_v7 = vpop.eup %1903  ;;  %v1356_v33 = vpack.c.bf16 %v1292_v43, %v1292_v43  ;;  %v1245_v42 = vmul.f32 %v1181_v59, %v733_v61  ;;  %v749_v29 = vmul.f32 0.5, %v2843_v55  ;;  %v942_v9 = vmul.f32 %v878_v17, %v2897_v46 }
 0x140   :  { %v1197_v48 = vadd.f32 1.0, %v1904_v7  ;;  %v1101_v16 = vmul.f32 0.7978846, %v1037_v62  ;;  %v990_v12 = vadd.f32 %v926_v47, %v2895_v11  ;;  %v406_v6 = vadd.f32 %v2555_v30, %v405_v49 }
 0x141   :  { %1421 = vst.msk [vmem:[%s3039_s4 + $0xf0] sm:$0xf] %vm1360_vm1, %v1356_v33  ;;  %v1309_v57 = vpack.c.bf16 %v1245_v42, %v1245_v42  ;;  %v1006_v51 = vadd.f32 %v942_v9, %v2897_v46  ;;  %v830_v20 = vmul.f32 0.044715, %v2931_v50  ;;  %v2944_v55 = vadd.f32 %v1757_v60, %v524_v45 }
 0x142   :  { %v1261_v5 = vmul.f32 %v1197_v48, %v749_v29  ;;  %1907 = vtanh.f32 %v1101_v16  ;;  %v1054_v25 = vmul.f32 0.7978846, %v990_v12  ;;  %v1662_v14 = vunpack.c.h.bf16 %v2867_v4 }
 0x143   :  { %v1906_v27 = vpop.eup %1905  ;;  %1374 = vst.msk [vmem:[%s3039_s4 + $0x34] sm:$0xf] %vm1360_vm1, %v1309_v57  ;;  %v765_v15 = vmul.f32 0.5, %v2859_v31  ;;  %v1070_v3 = vmul.f32 0.7978846, %v1006_v51  ;;  %v894_v52 = vmul.f32 %v830_v20, %v2931_v50  ;;  %v446_v32 = vadd.f32 %v2555_v30, %v445_v21 }
 0x144   :  { %v1325_v18 = vpack.c.bf16 %v1261_v5, %v1261_v5  ;;  %v1213_v38 = vadd.f32 1.0, %v1906_v27  ;;  %1909 = vtanh.f32 %v1054_v25  ;;  %v846_v2 = vmul.f32 0.044715, %v2944_v55 }
 0x145   :  { %1911 = vtanh.f32 %v1070_v3  ;;  %v958_v4 = vmul.f32 %v894_v52, %v2931_v50  ;;  %v2956_v39 = vadd.f32 %v1662_v14, %v406_v6  ;;  %v1694_v19 = vunpack.c.h.bf16 %v2875_v56 }
 0x146   :  { %1390 = vst.msk [vmem:[%s3039_s4 + $0x74] sm:$0xf] %vm1360_vm1, %v1325_v18  ;;  %v1277_v31 = vmul.f32 %v1213_v38, %v765_v15  ;;  %v910_v37 = vmul.f32 %v846_v2, %v2944_v55  ;;  %v486_v34 = vadd.f32 %v2555_v30, %v485_v0  ;;  %v1726_v22 = vunpack.c.h.bf16 %v2904_v10 }
 0x147   :  { %v781_v8 = vmul.f32 0.5, %v2883_v23  ;;  %v1022_v35 = vadd.f32 %v958_v4, %v2931_v50  ;;  %v799_v61 = vmul.f32 0.044715, %v2956_v39  ;;  %v2969_v56 = vadd.f32 %v1694_v19, %v446_v32 }
 0x148   :  { %v1908_v44 = vpop.eup %1907  ;;  %v1341_v28 = vpack.c.bf16 %v1277_v31, %v1277_v31  ;;  %v734_v54 = vmul.f32 0.5, %v2895_v11  ;;  %v974_v40 = vmul.f32 %v910_v37, %v2944_v55  ;;  %v2973_v24 = vadd.f32 %v1726_v22, %v486_v34 }
 0x149   :  { %v1229_v36 = vadd.f32 1.0, %v1908_v44  ;;  %v1086_v58 = vmul.f32 0.7978846, %v1022_v35  ;;  %v863_v10 = vmul.f32 %v799_v61, %v2956_v39  ;;  %v526_v23 = vadd.f32 %v2555_v30, %v525_v26 }
 0x14a   :  { %v1910_v41 = vpop.eup %1909  ;;  %1406 = vst.msk [vmem:[%s3039_s4 + $0xb4] sm:$0xf] %vm1360_vm1, %v1341_v28  ;;  %v750_v1 = vmul.f32 0.5, %v2897_v46  ;;  %v1038_v11 = vadd.f32 %v974_v40, %v2944_v55  ;;  %v815_v13 = vmul.f32 0.044715, %v2969_v56  ;;  %v1758_v63 = vunpack.c.h.bf16 %v2918_v53 }
 0x14b   :  { %v1912_v45 = vpop.eup %1911  ;;  %v1293_v43 = vmul.f32 %v1229_v36, %v781_v8  ;;  %v1182_v59 = vadd.f32 1.0, %v1910_v41  ;;  %1913 = vtanh.f32 %v1086_v58  ;;  %v927_v30 = vmul.f32 %v863_v10, %v2956_v39 }
 0x14c   :  { %v1198_v17 = vadd.f32 1.0, %v1912_v45  ;;  %v1102_v49 = vmul.f32 0.7978846, %v1038_v11  ;;  %v879_v62 = vmul.f32 %v815_v13, %v2969_v56  ;;  %v831_v47 = vmul.f32 0.044715, %v2973_v24 }
 0x14d   :  { %v1357_v60 = vpack.c.bf16 %v1293_v43, %v1293_v43  ;;  %v1246_v46 = vmul.f32 %v1182_v59, %v734_v54  ;;  %v991_v7 = vadd.f32 %v927_v30, %v2956_v39  ;;  %v719_v33 = vadd.f32 %v1758_v63, %v526_v23 }
 0x14e   :  { %v1262_v42 = vmul.f32 %v1198_v17, %v750_v1  ;;  %1915 = vtanh.f32 %v1102_v49  ;;  %v943_v53 = vmul.f32 %v879_v62, %v2969_v56  ;;  %v895_v29 = vmul.f32 %v831_v47, %v2973_v24 }
 0x14f   :  { %1422 = vst.msk [vmem:[%s3039_s4 + $0xf4] sm:$0xf] %vm1360_vm1, %v1357_v60  ;;  %v1310_v9 = vpack.c.bf16 %v1246_v46, %v1246_v46  ;;  %v1055_v48 = vmul.f32 0.7978846, %v991_v7  ;;  %v847_v21 = vmul.f32 0.044715, %v719_v33 }
 0x150   :  { %v1326_v16 = vpack.c.bf16 %v1262_v42, %v1262_v42  ;;  %v1007_v12 = vadd.f32 %v943_v53, %v2969_v56  ;;  %v959_v6 = vmul.f32 %v895_v29, %v2973_v24  ;;  %v766_v51 = vmul.f32 0.5, %v2931_v50 }
 0x151   :  { %v1914_v57 = vpop.eup %1913  ;;  %1375 = vst.msk [vmem:[%s3039_s4 + $0x38] sm:$0xf] %vm1360_vm1, %v1310_v9  ;;  %1917 = vtanh.f32 %v1055_v48  ;;  %v911_v14 = vmul.f32 %v847_v21, %v719_v33  ;;  %v782_v32 = vmul.f32 0.5, %v2944_v55  ;;  %v735_v4 = vmul.f32 0.5, %v2956_v39 }
 0x152   :  { %1391 = vst.msk [vmem:[%s3039_s4 + $0x78] sm:$0xf] %vm1360_vm1, %v1326_v16  ;;  %v1214_v20 = vadd.f32 1.0, %v1914_v57  ;;  %v1071_v5 = vmul.f32 0.7978846, %v1007_v12  ;;  %v1023_v25 = vadd.f32 %v959_v6, %v2973_v24  ;;  %v751_v55 = vmul.f32 0.5, %v2969_v56 }
 0x153   :  { %v975_v52 = vmul.f32 %v911_v14, %v719_v33  ;;  %v767_v44 = vmul.f32 0.5, %v2973_v24  ;;  %v783_v36 = vmul.f32 0.5, %v719_v33 }
 0x154   :  { %v1916_v27 = vpop.eup %1915  ;;  %v1278_v15 = vmul.f32 %v1214_v20, %v766_v51  ;;  %1919 = vtanh.f32 %v1071_v5  ;;  %v1087_v3 = vmul.f32 0.7978846, %v1023_v25 }
 0x155   :  { %v1230_v0 = vadd.f32 1.0, %v1916_v27  ;;  %v1039_v18 = vadd.f32 %v975_v52, %v719_v33 }
 0x156   :  { %v1342_v50 = vpack.c.bf16 %v1278_v15, %v1278_v15  ;;  %1921 = vtanh.f32 %v1087_v3 }
 0x157   :  { %v1918_v38 = vpop.eup %1917  ;;  %v1294_v2 = vmul.f32 %v1230_v0, %v782_v32  ;;  %v1103_v31 = vmul.f32 0.7978846, %v1039_v18 }
 0x158   :  { %1407 = vst.msk [vmem:[%s3039_s4 + $0xb8] sm:$0xf] %vm1360_vm1, %v1342_v50  ;;  %v1183_v19 = vadd.f32 1.0, %v1918_v38 }
 0x159   :  { %v1358_v37 = vpack.c.bf16 %v1294_v2, %v1294_v2  ;;  %1923 = vtanh.f32 %v1103_v31 }
 0x15a   :  { %v1920_v34 = vpop.eup %1919  ;;  %v1247_v22 = vmul.f32 %v1183_v19, %v735_v4 }
 0x15b   :  { %1423 = vst.msk [vmem:[%s3039_s4 + $0xf8] sm:$0xf] %vm1360_vm1, %v1358_v37  ;;  %v1199_v26 = vadd.f32 1.0, %v1920_v34 }
 0x15c   :  { %v1922_v8 = vpop.eup %1921  ;;  %v1311_v35 = vpack.c.bf16 %v1247_v22, %v1247_v22 }
 0x15d   :  { %v1263_v61 = vmul.f32 %v1199_v26, %v751_v55  ;;  %v1215_v39 = vadd.f32 1.0, %v1922_v8 }
 0x15e   :  { %1376 = vst.msk [vmem:[%s3039_s4 + $0x3c] sm:$0xf] %vm1360_vm1, %v1311_v35 }
 0x15f   :  { %v1327_v28 = vpack.c.bf16 %v1263_v61, %v1263_v61  ;;  %v1279_v54 = vmul.f32 %v1215_v39, %v767_v44  ;;  %v1924_v40 = vpop.eup %1923 }
 0x160   :  { %v1231_v58 = vadd.f32 1.0, %v1924_v40 }
 0x161   :  { %1392 = vst.msk [vmem:[%s3039_s4 + $0x7c] sm:$0xf] %vm1360_vm1, %v1327_v28  ;;  %v1343_v56 = vpack.c.bf16 %v1279_v54, %v1279_v54 }
 0x162   :  { %v1295_v24 = vmul.f32 %v1231_v58, %v783_v36 }
 0x163   :  { %1408 = vst.msk [vmem:[%s3039_s4 + $0xbc] sm:$0xf] %vm1360_vm1, %v1343_v56 }
 0x164   :  { %v1359_v10 = vpack.c.bf16 %v1295_v24, %v1295_v24 }
 0x166   :  { %1424 = vst.msk [vmem:[%s3039_s4 + $0xfc] sm:$0xf] %vm1360_vm1, %v1359_v10 }

// kernel: _lambda_.18
= control target key start
LH: loop header
LB: loop body
LE: loop exit
PB: predicated region body
PF: predicated region fallthrough
CT: control target
= control target key end

     0   :  { %vm262_vm0 = vcmask 261120   ;;  %vm784_vm1 = vcmask 257024   ;;  %s1801_s1 = inlined_call_operand.vmem [shape: bf16[32,32], index: 1, kind: input, shape index: {}]   ;;  %s1802_s0 = inlined_call_operand.vmem [shape: bf16[512,32], index: 0, kind: input, shape index: {}]   ;;  %s1803_s2 = inlined_call_operand.vmem [shape: f32[1,32], index: 2, kind: input, shape index: {}]   ;;  %s1804_s3 = inlined_call_operand.vmem [shape: bf16[512,32], index: 3, kind: input, shape index: {}]   ;;  %s1805_s4 = inlined_call_operand.vmem [shape: bf16[512,32], index: 4, kind: output, shape index: {}]  }
   0x1   :  { %v1054_v0 = vld [vmem:[%s1801_s1 + $0x8] sm:$0xff]  ;;  %v1053_v1 = vld [vmem:[%s1801_s1] sm:$0xff]  ;;  %v1023_v10 = vld [vmem:[%s1802_s0 + $0x10] sm:$0xff] }
   0x2   :  { %365 = vmatpush.bf16.msra.mxu0 %v1054_v0  ;;  %1214 = vmatpush.bf16.msra.mxu1 %v1054_v0  ;;  %v1021_v2 = vld [vmem:[%s1802_s0] sm:$0xff]  ;;  %v1022_v6 = vld [vmem:[%s1802_s0 + $0x8] sm:$0xff]  ;;  %v1031_v11 = vld [vmem:[%s1802_s0 + $0x50] sm:$0xff] }
   0x3   :  { %1215 = vmatpush.bf16.msra.mxu2 %v1054_v0  ;;  %1216 = vmatpush.bf16.msra.mxu3 %v1054_v0  ;;  %v1029_v3 = vld [vmem:[%s1802_s0 + $0x40] sm:$0xff]  ;;  %v1030_v7 = vld [vmem:[%s1802_s0 + $0x48] sm:$0xff]  ;;  %v1039_v12 = vld [vmem:[%s1802_s0 + $0x90] sm:$0xff] }
   0x4   :  { %v1037_v4 = vld [vmem:[%s1802_s0 + $0x80] sm:$0xff]  ;;  %v1038_v8 = vld [vmem:[%s1802_s0 + $0x88] sm:$0xff]  ;;  %v1047_v13 = vld [vmem:[%s1802_s0 + $0xd0] sm:$0xff] }
   0x5   :  { %v1045_v5 = vld [vmem:[%s1802_s0 + $0xc0] sm:$0xff]  ;;  %v1046_v9 = vld [vmem:[%s1802_s0 + $0xc8] sm:$0xff]  ;;  %v1024_v14 = vld [vmem:[%s1802_s0 + $0x18] sm:$0xff] }
   0x6   :  { %366 = vmatpush.bf16.msra.mxu0 %v1053_v1  ;;  %1217 = vmatpush.bf16.msra.mxu1 %v1053_v1  ;;  %v1032_v15 = vld [vmem:[%s1802_s0 + $0x58] sm:$0xff]  ;;  %v1025_v18 = vld [vmem:[%s1802_s0 + $0x20] sm:$0xff]  ;;  %v1026_v22 = vld [vmem:[%s1802_s0 + $0x28] sm:$0xff] }
   0x7   :  { %1218 = vmatpush.bf16.msra.mxu2 %v1053_v1  ;;  %1219 = vmatpush.bf16.msra.mxu3 %v1053_v1  ;;  %v1040_v16 = vld [vmem:[%s1802_s0 + $0x98] sm:$0xff]  ;;  %v1033_v19 = vld [vmem:[%s1802_s0 + $0x60] sm:$0xff]  ;;  %v1034_v23 = vld [vmem:[%s1802_s0 + $0x68] sm:$0xff] }
   0x8   :  { %v1048_v17 = vld [vmem:[%s1802_s0 + $0xd8] sm:$0xff]  ;;  %v1041_v20 = vld [vmem:[%s1802_s0 + $0xa0] sm:$0xff]  ;;  %v1042_v24 = vld [vmem:[%s1802_s0 + $0xa8] sm:$0xff] }
   0x9   :  { %989 = vmatmul.msk.bf16.vlgmr.msra.gmra.mxu0 %vm262_vm0, %v1021_v2  ;;  %997 = vmatmul.msk.bf16.vlgmr.msra.gmra.mxu1 %vm262_vm0, %v1029_v3  ;;  %v1049_v21 = vld [vmem:[%s1802_s0 + $0xe0] sm:$0xff]  ;;  %v1050_v25 = vld [vmem:[%s1802_s0 + $0xe8] sm:$0xff]  ;;  %v1027_v26 = vld [vmem:[%s1802_s0 + $0x30] sm:$0xff] }
   0xa   :  { %1005 = vmatmul.msk.bf16.vlgmr.msra.gmra.mxu2 %vm262_vm0, %v1037_v4  ;;  %1013 = vmatmul.msk.bf16.vlgmr.msra.gmra.mxu3 %vm262_vm0, %v1045_v5  ;;  %v1035_v27 = vld [vmem:[%s1802_s0 + $0x70] sm:$0xff]  ;;  %v1028_v30 = vld [vmem:[%s1802_s0 + $0x38] sm:$0xff]  ;;  %v1056_v34 = vld [vmem:[%s1804_s3] sm:$0xff]  }
   0xb   :  { %v1043_v28 = vld [vmem:[%s1802_s0 + $0xb0] sm:$0xff]  ;;  %v1036_v31 = vld [vmem:[%s1802_s0 + $0x78] sm:$0xff]  ;;  %v1190_v35 = vld [vmem:[%s1804_s3 + $0x40] sm:$0xff]   ;;  %v1057_v37 = vunpack.c.l.bf16 %v1056_v34  ;;  %v1058_v53 = vunpack.c.h.bf16 %v1056_v34 }
   0xc   :  { %v1051_v29 = vld [vmem:[%s1802_s0 + $0xf0] sm:$0xff]  ;;  %v1044_v32 = vld [vmem:[%s1802_s0 + $0xb8] sm:$0xff]  ;;  %v1389_v36 = vld [vmem:[%s1803_s2] ss:$0 sm:$0xff]  ;;  %v1089_v38 = vunpack.c.l.bf16 %v1190_v35  ;;  %v1090_v54 = vunpack.c.h.bf16 %v1190_v35 }
   0xd   :  { %v1052_v33 = vld [vmem:[%s1802_s0 + $0xf8] sm:$0xff]  ;;  %v1198_v45 = vld [vmem:[%s1804_s3 + $0x80] sm:$0xff]   ;;  %v1183_v3 = vld [vmem:[%s1804_s3 + $0x8] sm:$0xff]  }
   0xe   :  { %v1206_v46 = vld [vmem:[%s1804_s3 + $0xc0] sm:$0xff]   ;;  %v1121_v49 = vunpack.c.l.bf16 %v1198_v45  ;;  %v1191_v4 = vld [vmem:[%s1804_s3 + $0x48] sm:$0xff]  }
   0xf   :  { %v1153_v50 = vunpack.c.l.bf16 %v1206_v46  ;;  %v1094_v34 = vunpack.c.h.bf16 %v1191_v4 }
  0x19   :  { %990 = vmatmul.msk.bf16.gmra.mxu0 %vm262_vm0, %v1022_v6  ;;  %998 = vmatmul.msk.bf16.gmra.mxu1 %vm262_vm0, %v1030_v7  ;;  %v1122_v7 = vunpack.c.h.bf16 %v1198_v45 }
  0x1a   :  { %1006 = vmatmul.msk.bf16.gmra.mxu2 %vm262_vm0, %v1038_v8  ;;  %1014 = vmatmul.msk.bf16.gmra.mxu3 %vm262_vm0, %v1046_v9  ;;  %v1154_v8 = vunpack.c.h.bf16 %v1206_v46 }
  0x29   :  { %991 = vmatmul.msk.bf16.gmra.mxu0 %vm262_vm0, %v1023_v10  ;;  %999 = vmatmul.msk.bf16.gmra.mxu1 %vm262_vm0, %v1031_v11  ;;  %v1061_v11 = vunpack.c.l.bf16 %v1183_v3 }
  0x2a   :  { %1007 = vmatmul.msk.bf16.gmra.mxu2 %vm262_vm0, %v1039_v12  ;;  %1015 = vmatmul.msk.bf16.gmra.mxu3 %vm262_vm0, %v1047_v13  ;;  %v1093_v12 = vunpack.c.l.bf16 %v1191_v4  ;;  %v1200_v4 = vld [vmem:[%s1804_s3 + $0x90] sm:$0xff]  }
  0x39   :  { %992 = vmatmul.msk.bf16.gmra.mxu0 %vm262_vm0, %v1024_v14  ;;  %1000 = vmatmul.msk.bf16.gmra.mxu1 %vm262_vm0, %v1032_v15 }
  0x3a   :  { %1008 = vmatmul.msk.bf16.gmra.mxu2 %vm262_vm0, %v1040_v16  ;;  %1016 = vmatmul.msk.bf16.gmra.mxu3 %vm262_vm0, %v1048_v17 }
  0x49   :  { %993 = vmatmul.msk.bf16.gmra.mxu0 %vm262_vm0, %v1025_v18  ;;  %1001 = vmatmul.msk.bf16.gmra.mxu1 %vm262_vm0, %v1033_v19 }
  0x4a   :  { %1009 = vmatmul.msk.bf16.gmra.mxu2 %vm262_vm0, %v1041_v20  ;;  %1017 = vmatmul.msk.bf16.gmra.mxu3 %vm262_vm0, %v1049_v21 }
  0x59   :  { %994 = vmatmul.msk.bf16.gmra.mxu0 %vm262_vm0, %v1026_v22  ;;  %1002 = vmatmul.msk.bf16.gmra.mxu1 %vm262_vm0, %v1034_v23  ;;  %v1199_v23 = vld [vmem:[%s1804_s3 + $0x88] sm:$0xff]  }
  0x5a   :  { %1010 = vmatmul.msk.bf16.gmra.mxu2 %vm262_vm0, %v1042_v24  ;;  %1018 = vmatmul.msk.bf16.gmra.mxu3 %vm262_vm0, %v1050_v25  ;;  %v1207_v24 = vld [vmem:[%s1804_s3 + $0xc8] sm:$0xff]  }
  0x69   :  { %995 = vmatmul.msk.bf16.gmra.mxu0 %vm262_vm0, %v1027_v26  ;;  %1003 = vmatmul.msk.bf16.gmra.mxu1 %vm262_vm0, %v1035_v27 }
  0x6a   :  { %1011 = vmatmul.msk.bf16.gmra.mxu2 %vm262_vm0, %v1043_v28  ;;  %1019 = vmatmul.msk.bf16.gmra.mxu3 %vm262_vm0, %v1051_v29  ;;  %v1125_v29 = vunpack.c.l.bf16 %v1199_v23 }
  0x79   :  { %996 = vmatmul.msk.bf16.gmra.mxu0 %vm262_vm0, %v1028_v30  ;;  %1004 = vmatmul.msk.bf16.gmra.mxu1 %vm262_vm0, %v1036_v31  ;;  %v1157_v30 = vunpack.c.l.bf16 %v1207_v24 }
  0x7a   :  { %1012 = vmatmul.msk.bf16.gmra.mxu2 %vm262_vm0, %v1044_v32  ;;  %1020 = vmatmul.msk.bf16.gmra.mxu3 %vm262_vm0, %v1052_v33  ;;  %v1062_v33 = vunpack.c.h.bf16 %v1183_v3 }
  0x86   :  { %v368_v39 = vpop.f32.mrf.mxu0  ;;  %v408_v40 = vpop.f32.mrf.mxu1 }
  0x87   :  { %v369_v41 = vadd.f32 %v1389_v36, %v368_v39  ;;  %v409_v42 = vadd.f32 %v1389_v36, %v408_v40 }
  0x89   :  { %v656_v43 = vadd.f32 %v1057_v37, %v369_v41  ;;  %v672_v44 = vadd.f32 %v1089_v38, %v409_v42 }
  0x8b   :  { %v720_v47 = vpack.c.bf16 %v656_v43, %v656_v43  ;;  %v736_v48 = vpack.c.bf16 %v672_v44, %v672_v44 }
  0x8d   :  { %785 = vst.msk [vmem:[%s1805_s4] sm:$0xf] %vm784_vm1, %v720_v47  ;;  %v448_v51 = vpop.f32.mrf.mxu2  ;;  %v488_v52 = vpop.f32.mrf.mxu3 }
  0x8e   :  { %801 = vst.msk [vmem:[%s1805_s4 + $0x40] sm:$0xf] %vm784_vm1, %v736_v48  ;;  %v449_v55 = vadd.f32 %v1389_v36, %v448_v51  ;;  %v489_v56 = vadd.f32 %v1389_v36, %v488_v52  ;;  %v370_v57 = vpop.f32.mrf.mxu0  ;;  %v410_v58 = vpop.f32.mrf.mxu1  ;;  %v1184_v48 = vld [vmem:[%s1804_s3 + $0x10] sm:$0xff]   ;;  %v1126_v52 = vunpack.c.h.bf16 %v1199_v23 }
  0x8f   :  { %v371_v59 = vadd.f32 %v1389_v36, %v370_v57  ;;  %v411_v60 = vadd.f32 %v1389_v36, %v410_v58 }
  0x90   :  { %v688_v61 = vadd.f32 %v1121_v49, %v449_v55  ;;  %v704_v62 = vadd.f32 %v1153_v50, %v489_v56  ;;  %v1192_v49 = vld [vmem:[%s1804_s3 + $0x50] sm:$0xff]   ;;  %v1065_v56 = vunpack.c.l.bf16 %v1184_v48 }
  0x91   :  { %v657_v63 = vadd.f32 %v1058_v53, %v371_v59  ;;  %v673_v0 = vadd.f32 %v1090_v54, %v411_v60  ;;  %v1158_v53 = vunpack.c.h.bf16 %v1207_v24  ;;  %v1097_v57 = vunpack.c.l.bf16 %v1192_v49 }
  0x92   :  { %v752_v1 = vpack.c.bf16 %v688_v61, %v688_v61  ;;  %v768_v2 = vpack.c.bf16 %v704_v62, %v704_v62 }
  0x93   :  { %v721_v5 = vpack.c.bf16 %v657_v63, %v657_v63  ;;  %v737_v6 = vpack.c.bf16 %v673_v0, %v673_v0 }
  0x94   :  { %817 = vst.msk [vmem:[%s1805_s4 + $0x80] sm:$0xf] %vm784_vm1, %v752_v1 }
  0x95   :  { %833 = vst.msk [vmem:[%s1805_s4 + $0xc0] sm:$0xf] %vm784_vm1, %v768_v2  ;;  %v450_v9 = vpop.f32.mrf.mxu2  ;;  %v490_v10 = vpop.f32.mrf.mxu3 }
  0x96   :  { %786 = vst.msk [vmem:[%s1805_s4 + $0x4] sm:$0xf] %vm784_vm1, %v721_v5  ;;  %v451_v13 = vadd.f32 %v1389_v36, %v450_v9  ;;  %v491_v14 = vadd.f32 %v1389_v36, %v490_v10  ;;  %v373_v15 = vpop.f32.mrf.mxu0  ;;  %v413_v16 = vpop.f32.mrf.mxu1  ;;  %v1208_v5 = vld [vmem:[%s1804_s3 + $0xd0] sm:$0xff]   ;;  %v1129_v10 = vunpack.c.l.bf16 %v1200_v4 }
  0x97   :  { %802 = vst.msk [vmem:[%s1805_s4 + $0x44] sm:$0xf] %vm784_vm1, %v737_v6  ;;  %v374_v17 = vadd.f32 %v1389_v36, %v373_v15  ;;  %v414_v18 = vadd.f32 %v1389_v36, %v413_v16  ;;  %v1098_v15 = vunpack.c.h.bf16 %v1192_v49  ;;  %v1201_v49 = vld [vmem:[%s1804_s3 + $0x98] sm:$0xff]  }
  0x98   :  { %v689_v19 = vadd.f32 %v1122_v7, %v451_v13  ;;  %v705_v20 = vadd.f32 %v1154_v8, %v491_v14  ;;  %v1066_v14 = vunpack.c.h.bf16 %v1184_v48 }
  0x99   :  { %v658_v21 = vadd.f32 %v1061_v11, %v374_v17  ;;  %v674_v22 = vadd.f32 %v1093_v12, %v414_v18  ;;  %v1161_v11 = vunpack.c.l.bf16 %v1208_v5 }
  0x9a   :  { %v753_v25 = vpack.c.bf16 %v689_v19, %v689_v19  ;;  %v769_v26 = vpack.c.bf16 %v705_v20, %v705_v20 }
  0x9b   :  { %v722_v27 = vpack.c.bf16 %v658_v21, %v658_v21  ;;  %v738_v28 = vpack.c.bf16 %v674_v22, %v674_v22 }
  0x9c   :  { %818 = vst.msk [vmem:[%s1805_s4 + $0x84] sm:$0xf] %vm784_vm1, %v753_v25 }
  0x9d   :  { %834 = vst.msk [vmem:[%s1805_s4 + $0xc4] sm:$0xf] %vm784_vm1, %v769_v26  ;;  %v453_v31 = vpop.f32.mrf.mxu2  ;;  %v493_v32 = vpop.f32.mrf.mxu3 }
  0x9e   :  { %787 = vst.msk [vmem:[%s1805_s4 + $0x8] sm:$0xf] %vm784_vm1, %v722_v27  ;;  %v454_v35 = vadd.f32 %v1389_v36, %v453_v31  ;;  %v494_v37 = vadd.f32 %v1389_v36, %v493_v32  ;;  %v375_v38 = vpop.f32.mrf.mxu0  ;;  %v415_v39 = vpop.f32.mrf.mxu1  ;;  %v1130_v32 = vunpack.c.h.bf16 %v1200_v4 }
  0x9f   :  { %803 = vst.msk [vmem:[%s1805_s4 + $0x48] sm:$0xf] %vm784_vm1, %v738_v28  ;;  %v376_v40 = vadd.f32 %v1389_v36, %v375_v38  ;;  %v416_v41 = vadd.f32 %v1389_v36, %v415_v39  ;;  %v1185_v28 = vld [vmem:[%s1804_s3 + $0x18] sm:$0xff]  }
  0xa0   :  { %v690_v42 = vadd.f32 %v1125_v29, %v454_v35  ;;  %v706_v43 = vadd.f32 %v1157_v30, %v494_v37  ;;  %v1193_v29 = vld [vmem:[%s1804_s3 + $0x58] sm:$0xff]   ;;  %v1069_v37 = vunpack.c.l.bf16 %v1185_v28 }
  0xa1   :  { %v659_v44 = vadd.f32 %v1062_v33, %v376_v40  ;;  %v675_v45 = vadd.f32 %v1094_v34, %v416_v41  ;;  %v1162_v33 = vunpack.c.h.bf16 %v1208_v5  ;;  %v1101_v38 = vunpack.c.l.bf16 %v1193_v29 }
  0xa2   :  { %v754_v46 = vpack.c.bf16 %v690_v42, %v690_v42  ;;  %v770_v47 = vpack.c.bf16 %v706_v43, %v706_v43 }
  0xa3   :  { %v723_v50 = vpack.c.bf16 %v659_v44, %v659_v44  ;;  %v739_v51 = vpack.c.bf16 %v675_v45, %v675_v45 }
  0xa4   :  { %819 = vst.msk [vmem:[%s1805_s4 + $0x88] sm:$0xf] %vm784_vm1, %v754_v46 }
  0xa5   :  { %835 = vst.msk [vmem:[%s1805_s4 + $0xc8] sm:$0xf] %vm784_vm1, %v770_v47  ;;  %v455_v54 = vpop.f32.mrf.mxu2  ;;  %v495_v55 = vpop.f32.mrf.mxu3 }
  0xa6   :  { %788 = vst.msk [vmem:[%s1805_s4 + $0xc] sm:$0xf] %vm784_vm1, %v723_v50  ;;  %v456_v58 = vadd.f32 %v1389_v36, %v455_v54  ;;  %v496_v59 = vadd.f32 %v1389_v36, %v495_v55  ;;  %v378_v60 = vpop.f32.mrf.mxu0  ;;  %v418_v61 = vpop.f32.mrf.mxu1  ;;  %v1209_v50 = vld [vmem:[%s1804_s3 + $0xd8] sm:$0xff]   ;;  %v1133_v55 = vunpack.c.l.bf16 %v1201_v49 }
  0xa7   :  { %804 = vst.msk [vmem:[%s1805_s4 + $0x4c] sm:$0xf] %vm784_vm1, %v739_v51  ;;  %v379_v62 = vadd.f32 %v1389_v36, %v378_v60  ;;  %v419_v63 = vadd.f32 %v1389_v36, %v418_v61  ;;  %v1102_v60 = vunpack.c.h.bf16 %v1193_v29  ;;  %v1202_v29 = vld [vmem:[%s1804_s3 + $0xa0] sm:$0xff]  }
  0xa8   :  { %v691_v0 = vadd.f32 %v1126_v52, %v456_v58  ;;  %v707_v1 = vadd.f32 %v1158_v53, %v496_v59  ;;  %v1070_v59 = vunpack.c.h.bf16 %v1185_v28 }
  0xa9   :  { %v660_v2 = vadd.f32 %v1065_v56, %v379_v62  ;;  %v676_v3 = vadd.f32 %v1097_v57, %v419_v63  ;;  %v1165_v56 = vunpack.c.l.bf16 %v1209_v50 }
  0xaa   :  { %v755_v6 = vpack.c.bf16 %v691_v0, %v691_v0  ;;  %v771_v7 = vpack.c.bf16 %v707_v1, %v707_v1 }
  0xab   :  { %v724_v8 = vpack.c.bf16 %v660_v2, %v660_v2  ;;  %v740_v9 = vpack.c.bf16 %v676_v3, %v676_v3 }
  0xac   :  { %820 = vst.msk [vmem:[%s1805_s4 + $0x8c] sm:$0xf] %vm784_vm1, %v755_v6 }
  0xad   :  { %836 = vst.msk [vmem:[%s1805_s4 + $0xcc] sm:$0xf] %vm784_vm1, %v771_v7  ;;  %v458_v12 = vpop.f32.mrf.mxu2  ;;  %v498_v13 = vpop.f32.mrf.mxu3 }
  0xae   :  { %789 = vst.msk [vmem:[%s1805_s4 + $0x10] sm:$0xf] %vm784_vm1, %v724_v8  ;;  %v459_v16 = vadd.f32 %v1389_v36, %v458_v12  ;;  %v499_v17 = vadd.f32 %v1389_v36, %v498_v13  ;;  %v380_v18 = vpop.f32.mrf.mxu0  ;;  %v420_v19 = vpop.f32.mrf.mxu1  ;;  %v1134_v13 = vunpack.c.h.bf16 %v1201_v49 }
  0xaf   :  { %805 = vst.msk [vmem:[%s1805_s4 + $0x50] sm:$0xf] %vm784_vm1, %v740_v9  ;;  %v381_v20 = vadd.f32 %v1389_v36, %v380_v18  ;;  %v421_v21 = vadd.f32 %v1389_v36, %v420_v19  ;;  %v1186_v9 = vld [vmem:[%s1804_s3 + $0x20] sm:$0xff]  }
  0xb0   :  { %v692_v22 = vadd.f32 %v1129_v10, %v459_v16  ;;  %v708_v23 = vadd.f32 %v1161_v11, %v499_v17  ;;  %v1194_v10 = vld [vmem:[%s1804_s3 + $0x60] sm:$0xff]   ;;  %v1073_v17 = vunpack.c.l.bf16 %v1186_v9 }
  0xb1   :  { %v661_v24 = vadd.f32 %v1066_v14, %v381_v20  ;;  %v677_v25 = vadd.f32 %v1098_v15, %v421_v21  ;;  %v1166_v14 = vunpack.c.h.bf16 %v1209_v50  ;;  %v1105_v18 = vunpack.c.l.bf16 %v1194_v10 }
  0xb2   :  { %v756_v26 = vpack.c.bf16 %v692_v22, %v692_v22  ;;  %v772_v27 = vpack.c.bf16 %v708_v23, %v708_v23 }
  0xb3   :  { %v725_v30 = vpack.c.bf16 %v661_v24, %v661_v24  ;;  %v741_v31 = vpack.c.bf16 %v677_v25, %v677_v25 }
  0xb4   :  { %821 = vst.msk [vmem:[%s1805_s4 + $0x90] sm:$0xf] %vm784_vm1, %v756_v26 }
  0xb5   :  { %837 = vst.msk [vmem:[%s1805_s4 + $0xd0] sm:$0xf] %vm784_vm1, %v772_v27  ;;  %v460_v34 = vpop.f32.mrf.mxu2  ;;  %v500_v35 = vpop.f32.mrf.mxu3 }
  0xb6   :  { %790 = vst.msk [vmem:[%s1805_s4 + $0x14] sm:$0xf] %vm784_vm1, %v725_v30  ;;  %v461_v39 = vadd.f32 %v1389_v36, %v460_v34  ;;  %v501_v40 = vadd.f32 %v1389_v36, %v500_v35  ;;  %v383_v41 = vpop.f32.mrf.mxu0  ;;  %v423_v42 = vpop.f32.mrf.mxu1  ;;  %v1210_v30 = vld [vmem:[%s1804_s3 + $0xe0] sm:$0xff]   ;;  %v1137_v35 = vunpack.c.l.bf16 %v1202_v29 }
  0xb7   :  { %806 = vst.msk [vmem:[%s1805_s4 + $0x54] sm:$0xf] %vm784_vm1, %v741_v31  ;;  %v384_v43 = vadd.f32 %v1389_v36, %v383_v41  ;;  %v424_v44 = vadd.f32 %v1389_v36, %v423_v42  ;;  %v1106_v41 = vunpack.c.h.bf16 %v1194_v10  ;;  %v1203_v10 = vld [vmem:[%s1804_s3 + $0xa8] sm:$0xff]  }
  0xb8   :  { %v693_v45 = vadd.f32 %v1130_v32, %v461_v39  ;;  %v709_v46 = vadd.f32 %v1162_v33, %v501_v40  ;;  %v1074_v40 = vunpack.c.h.bf16 %v1186_v9 }
  0xb9   :  { %v662_v47 = vadd.f32 %v1069_v37, %v384_v43  ;;  %v678_v48 = vadd.f32 %v1101_v38, %v424_v44  ;;  %v1169_v37 = vunpack.c.l.bf16 %v1210_v30 }
  0xba   :  { %v757_v51 = vpack.c.bf16 %v693_v45, %v693_v45  ;;  %v773_v52 = vpack.c.bf16 %v709_v46, %v709_v46 }
  0xbb   :  { %v726_v53 = vpack.c.bf16 %v662_v47, %v662_v47  ;;  %v742_v54 = vpack.c.bf16 %v678_v48, %v678_v48 }
  0xbc   :  { %822 = vst.msk [vmem:[%s1805_s4 + $0x94] sm:$0xf] %vm784_vm1, %v757_v51 }
  0xbd   :  { %838 = vst.msk [vmem:[%s1805_s4 + $0xd4] sm:$0xf] %vm784_vm1, %v773_v52  ;;  %v463_v57 = vpop.f32.mrf.mxu2  ;;  %v503_v58 = vpop.f32.mrf.mxu3 }
  0xbe   :  { %791 = vst.msk [vmem:[%s1805_s4 + $0x18] sm:$0xf] %vm784_vm1, %v726_v53  ;;  %v464_v61 = vadd.f32 %v1389_v36, %v463_v57  ;;  %v504_v62 = vadd.f32 %v1389_v36, %v503_v58  ;;  %v385_v63 = vpop.f32.mrf.mxu0  ;;  %v425_v0 = vpop.f32.mrf.mxu1  ;;  %v1138_v58 = vunpack.c.h.bf16 %v1202_v29 }
  0xbf   :  { %807 = vst.msk [vmem:[%s1805_s4 + $0x58] sm:$0xf] %vm784_vm1, %v742_v54  ;;  %v386_v1 = vadd.f32 %v1389_v36, %v385_v63  ;;  %v426_v2 = vadd.f32 %v1389_v36, %v425_v0  ;;  %v1187_v54 = vld [vmem:[%s1804_s3 + $0x28] sm:$0xff]  }
  0xc0   :  { %v694_v3 = vadd.f32 %v1133_v55, %v464_v61  ;;  %v710_v4 = vadd.f32 %v1165_v56, %v504_v62  ;;  %v1195_v55 = vld [vmem:[%s1804_s3 + $0x68] sm:$0xff]   ;;  %v1077_v62 = vunpack.c.l.bf16 %v1187_v54 }
  0xc1   :  { %v663_v5 = vadd.f32 %v1070_v59, %v386_v1  ;;  %v679_v6 = vadd.f32 %v1102_v60, %v426_v2  ;;  %v1170_v59 = vunpack.c.h.bf16 %v1210_v30  ;;  %v1109_v63 = vunpack.c.l.bf16 %v1195_v55 }
  0xc2   :  { %v758_v7 = vpack.c.bf16 %v694_v3, %v694_v3  ;;  %v774_v8 = vpack.c.bf16 %v710_v4, %v710_v4 }
  0xc3   :  { %v727_v11 = vpack.c.bf16 %v663_v5, %v663_v5  ;;  %v743_v12 = vpack.c.bf16 %v679_v6, %v679_v6 }
  0xc4   :  { %823 = vst.msk [vmem:[%s1805_s4 + $0x98] sm:$0xf] %vm784_vm1, %v758_v7 }
  0xc5   :  { %839 = vst.msk [vmem:[%s1805_s4 + $0xd8] sm:$0xf] %vm784_vm1, %v774_v8  ;;  %v465_v15 = vpop.f32.mrf.mxu2  ;;  %v505_v16 = vpop.f32.mrf.mxu3 }
  0xc6   :  { %792 = vst.msk [vmem:[%s1805_s4 + $0x1c] sm:$0xf] %vm784_vm1, %v727_v11  ;;  %v466_v19 = vadd.f32 %v1389_v36, %v465_v15  ;;  %v506_v20 = vadd.f32 %v1389_v36, %v505_v16  ;;  %v388_v21 = vpop.f32.mrf.mxu0  ;;  %v428_v22 = vpop.f32.mrf.mxu1  ;;  %v1211_v11 = vld [vmem:[%s1804_s3 + $0xe8] sm:$0xff]   ;;  %v1141_v16 = vunpack.c.l.bf16 %v1203_v10 }
  0xc7   :  { %808 = vst.msk [vmem:[%s1805_s4 + $0x5c] sm:$0xf] %vm784_vm1, %v743_v12  ;;  %v389_v23 = vadd.f32 %v1389_v36, %v388_v21  ;;  %v429_v24 = vadd.f32 %v1389_v36, %v428_v22  ;;  %v1110_v21 = vunpack.c.h.bf16 %v1195_v55  ;;  %v1204_v55 = vld [vmem:[%s1804_s3 + $0xb0] sm:$0xff]  }
  0xc8   :  { %v695_v25 = vadd.f32 %v1134_v13, %v466_v19  ;;  %v711_v26 = vadd.f32 %v1166_v14, %v506_v20  ;;  %v1078_v20 = vunpack.c.h.bf16 %v1187_v54 }
  0xc9   :  { %v664_v27 = vadd.f32 %v1073_v17, %v389_v23  ;;  %v680_v28 = vadd.f32 %v1105_v18, %v429_v24  ;;  %v1173_v17 = vunpack.c.l.bf16 %v1211_v11 }
  0xca   :  { %v759_v31 = vpack.c.bf16 %v695_v25, %v695_v25  ;;  %v775_v32 = vpack.c.bf16 %v711_v26, %v711_v26 }
  0xcb   :  { %v728_v33 = vpack.c.bf16 %v664_v27, %v664_v27  ;;  %v744_v34 = vpack.c.bf16 %v680_v28, %v680_v28 }
  0xcc   :  { %824 = vst.msk [vmem:[%s1805_s4 + $0x9c] sm:$0xf] %vm784_vm1, %v759_v31 }
  0xcd   :  { %840 = vst.msk [vmem:[%s1805_s4 + $0xdc] sm:$0xf] %vm784_vm1, %v775_v32  ;;  %v468_v38 = vpop.f32.mrf.mxu2  ;;  %v508_v39 = vpop.f32.mrf.mxu3 }
  0xce   :  { %793 = vst.msk [vmem:[%s1805_s4 + $0x20] sm:$0xf] %vm784_vm1, %v728_v33  ;;  %v469_v42 = vadd.f32 %v1389_v36, %v468_v38  ;;  %v509_v43 = vadd.f32 %v1389_v36, %v508_v39  ;;  %v390_v44 = vpop.f32.mrf.mxu0  ;;  %v430_v45 = vpop.f32.mrf.mxu1  ;;  %v1142_v39 = vunpack.c.h.bf16 %v1203_v10 }
  0xcf   :  { %809 = vst.msk [vmem:[%s1805_s4 + $0x60] sm:$0xf] %vm784_vm1, %v744_v34  ;;  %v391_v46 = vadd.f32 %v1389_v36, %v390_v44  ;;  %v431_v47 = vadd.f32 %v1389_v36, %v430_v45  ;;  %v1188_v34 = vld [vmem:[%s1804_s3 + $0x30] sm:$0xff]  }
  0xd0   :  { %v696_v48 = vadd.f32 %v1137_v35, %v469_v42  ;;  %v712_v49 = vadd.f32 %v1169_v37, %v509_v43  ;;  %v1196_v35 = vld [vmem:[%s1804_s3 + $0x70] sm:$0xff]   ;;  %v1081_v43 = vunpack.c.l.bf16 %v1188_v34 }
  0xd1   :  { %v665_v50 = vadd.f32 %v1074_v40, %v391_v46  ;;  %v681_v51 = vadd.f32 %v1106_v41, %v431_v47  ;;  %v1174_v40 = vunpack.c.h.bf16 %v1211_v11  ;;  %v1113_v44 = vunpack.c.l.bf16 %v1196_v35 }
  0xd2   :  { %v760_v52 = vpack.c.bf16 %v696_v48, %v696_v48  ;;  %v776_v53 = vpack.c.bf16 %v712_v49, %v712_v49 }
  0xd3   :  { %v729_v56 = vpack.c.bf16 %v665_v50, %v665_v50  ;;  %v745_v57 = vpack.c.bf16 %v681_v51, %v681_v51 }
  0xd4   :  { %825 = vst.msk [vmem:[%s1805_s4 + $0xa0] sm:$0xf] %vm784_vm1, %v760_v52 }
  0xd5   :  { %841 = vst.msk [vmem:[%s1805_s4 + $0xe0] sm:$0xf] %vm784_vm1, %v776_v53  ;;  %v470_v60 = vpop.f32.mrf.mxu2  ;;  %v510_v61 = vpop.f32.mrf.mxu3 }
  0xd6   :  { %794 = vst.msk [vmem:[%s1805_s4 + $0x24] sm:$0xf] %vm784_vm1, %v729_v56  ;;  %v471_v0 = vadd.f32 %v1389_v36, %v470_v60  ;;  %v511_v1 = vadd.f32 %v1389_v36, %v510_v61  ;;  %v393_v2 = vpop.f32.mrf.mxu0  ;;  %v433_v3 = vpop.f32.mrf.mxu1  ;;  %v1212_v56 = vld [vmem:[%s1804_s3 + $0xf0] sm:$0xff]   ;;  %v1145_v61 = vunpack.c.l.bf16 %v1204_v55 }
  0xd7   :  { %810 = vst.msk [vmem:[%s1805_s4 + $0x64] sm:$0xf] %vm784_vm1, %v745_v57  ;;  %v394_v4 = vadd.f32 %v1389_v36, %v393_v2  ;;  %v434_v5 = vadd.f32 %v1389_v36, %v433_v3  ;;  %v1114_v2 = vunpack.c.h.bf16 %v1196_v35  ;;  %v1205_v35 = vld [vmem:[%s1804_s3 + $0xb8] sm:$0xff]  }
  0xd8   :  { %v697_v6 = vadd.f32 %v1138_v58, %v471_v0  ;;  %v713_v7 = vadd.f32 %v1170_v59, %v511_v1  ;;  %v1082_v1 = vunpack.c.h.bf16 %v1188_v34 }
  0xd9   :  { %v666_v8 = vadd.f32 %v1077_v62, %v394_v4  ;;  %v682_v9 = vadd.f32 %v1109_v63, %v434_v5  ;;  %v1177_v62 = vunpack.c.l.bf16 %v1212_v56 }
  0xda   :  { %v761_v12 = vpack.c.bf16 %v697_v6, %v697_v6  ;;  %v777_v13 = vpack.c.bf16 %v713_v7, %v713_v7 }
  0xdb   :  { %v730_v14 = vpack.c.bf16 %v666_v8, %v666_v8  ;;  %v746_v15 = vpack.c.bf16 %v682_v9, %v682_v9 }
  0xdc   :  { %826 = vst.msk [vmem:[%s1805_s4 + $0xa4] sm:$0xf] %vm784_vm1, %v761_v12 }
  0xdd   :  { %842 = vst.msk [vmem:[%s1805_s4 + $0xe4] sm:$0xf] %vm784_vm1, %v777_v13  ;;  %v473_v18 = vpop.f32.mrf.mxu2  ;;  %v513_v19 = vpop.f32.mrf.mxu3 }
  0xde   :  { %795 = vst.msk [vmem:[%s1805_s4 + $0x28] sm:$0xf] %vm784_vm1, %v730_v14  ;;  %v474_v22 = vadd.f32 %v1389_v36, %v473_v18  ;;  %v514_v23 = vadd.f32 %v1389_v36, %v513_v19  ;;  %v395_v24 = vpop.f32.mrf.mxu0  ;;  %v435_v25 = vpop.f32.mrf.mxu1  ;;  %v1146_v19 = vunpack.c.h.bf16 %v1204_v55 }
  0xdf   :  { %811 = vst.msk [vmem:[%s1805_s4 + $0x68] sm:$0xf] %vm784_vm1, %v746_v15  ;;  %v396_v26 = vadd.f32 %v1389_v36, %v395_v24  ;;  %v436_v27 = vadd.f32 %v1389_v36, %v435_v25  ;;  %v1189_v15 = vld [vmem:[%s1804_s3 + $0x38] sm:$0xff]  }
  0xe0   :  { %v698_v28 = vadd.f32 %v1141_v16, %v474_v22  ;;  %v714_v29 = vadd.f32 %v1173_v17, %v514_v23  ;;  %v1197_v16 = vld [vmem:[%s1804_s3 + $0x78] sm:$0xff]   ;;  %v1085_v23 = vunpack.c.l.bf16 %v1189_v15 }
  0xe1   :  { %v667_v30 = vadd.f32 %v1078_v20, %v396_v26  ;;  %v683_v31 = vadd.f32 %v1110_v21, %v436_v27  ;;  %v1178_v20 = vunpack.c.h.bf16 %v1212_v56  ;;  %v1117_v24 = vunpack.c.l.bf16 %v1197_v16 }
  0xe2   :  { %v762_v32 = vpack.c.bf16 %v698_v28, %v698_v28  ;;  %v778_v33 = vpack.c.bf16 %v714_v29, %v714_v29 }
  0xe3   :  { %v731_v37 = vpack.c.bf16 %v667_v30, %v667_v30  ;;  %v747_v38 = vpack.c.bf16 %v683_v31, %v683_v31 }
  0xe4   :  { %827 = vst.msk [vmem:[%s1805_s4 + $0xa8] sm:$0xf] %vm784_vm1, %v762_v32 }
  0xe5   :  { %843 = vst.msk [vmem:[%s1805_s4 + $0xe8] sm:$0xf] %vm784_vm1, %v778_v33  ;;  %v475_v41 = vpop.f32.mrf.mxu2  ;;  %v515_v42 = vpop.f32.mrf.mxu3 }
  0xe6   :  { %796 = vst.msk [vmem:[%s1805_s4 + $0x2c] sm:$0xf] %vm784_vm1, %v731_v37  ;;  %v476_v45 = vadd.f32 %v1389_v36, %v475_v41  ;;  %v516_v46 = vadd.f32 %v1389_v36, %v515_v42  ;;  %v398_v47 = vpop.f32.mrf.mxu0  ;;  %v438_v48 = vpop.f32.mrf.mxu1  ;;  %v1213_v37 = vld [vmem:[%s1804_s3 + $0xf8] sm:$0xff]   ;;  %v1149_v42 = vunpack.c.l.bf16 %v1205_v35 }
  0xe7   :  { %812 = vst.msk [vmem:[%s1805_s4 + $0x6c] sm:$0xf] %vm784_vm1, %v747_v38  ;;  %v399_v49 = vadd.f32 %v1389_v36, %v398_v47  ;;  %v439_v50 = vadd.f32 %v1389_v36, %v438_v48  ;;  %v1118_v47 = vunpack.c.h.bf16 %v1197_v16 }
  0xe8   :  { %v699_v51 = vadd.f32 %v1142_v39, %v476_v45  ;;  %v715_v52 = vadd.f32 %v1174_v40, %v516_v46  ;;  %v1086_v46 = vunpack.c.h.bf16 %v1189_v15 }
  0xe9   :  { %v668_v53 = vadd.f32 %v1081_v43, %v399_v49  ;;  %v684_v54 = vadd.f32 %v1113_v44, %v439_v50  ;;  %v1181_v43 = vunpack.c.l.bf16 %v1213_v37 }
  0xea   :  { %v763_v57 = vpack.c.bf16 %v699_v51, %v699_v51  ;;  %v779_v58 = vpack.c.bf16 %v715_v52, %v715_v52 }
  0xeb   :  { %v732_v59 = vpack.c.bf16 %v668_v53, %v668_v53  ;;  %v748_v60 = vpack.c.bf16 %v684_v54, %v684_v54 }
  0xec   :  { %828 = vst.msk [vmem:[%s1805_s4 + $0xac] sm:$0xf] %vm784_vm1, %v763_v57 }
  0xed   :  { %844 = vst.msk [vmem:[%s1805_s4 + $0xec] sm:$0xf] %vm784_vm1, %v779_v58  ;;  %v478_v63 = vpop.f32.mrf.mxu2  ;;  %v518_v0 = vpop.f32.mrf.mxu3 }
  0xee   :  { %797 = vst.msk [vmem:[%s1805_s4 + $0x30] sm:$0xf] %vm784_vm1, %v732_v59  ;;  %v479_v3 = vadd.f32 %v1389_v36, %v478_v63  ;;  %v519_v4 = vadd.f32 %v1389_v36, %v518_v0  ;;  %v400_v5 = vpop.f32.mrf.mxu0  ;;  %v440_v6 = vpop.f32.mrf.mxu1  ;;  %v1182_v63 = vunpack.c.h.bf16 %v1213_v37 }
  0xef   :  { %813 = vst.msk [vmem:[%s1805_s4 + $0x70] sm:$0xf] %vm784_vm1, %v748_v60  ;;  %v401_v7 = vadd.f32 %v1389_v36, %v400_v5  ;;  %v441_v8 = vadd.f32 %v1389_v36, %v440_v6 }
  0xf0   :  { %v700_v9 = vadd.f32 %v1145_v61, %v479_v3  ;;  %v716_v10 = vadd.f32 %v1177_v62, %v519_v4  ;;  %v1150_v62 = vunpack.c.h.bf16 %v1205_v35 }
  0xf1   :  { %v669_v11 = vadd.f32 %v1082_v1, %v401_v7  ;;  %v685_v12 = vadd.f32 %v1114_v2, %v441_v8 }
  0xf2   :  { %v764_v13 = vpack.c.bf16 %v700_v9, %v700_v9  ;;  %v780_v14 = vpack.c.bf16 %v716_v10, %v716_v10 }
  0xf3   :  { %v733_v17 = vpack.c.bf16 %v669_v11, %v669_v11  ;;  %v749_v18 = vpack.c.bf16 %v685_v12, %v685_v12 }
  0xf4   :  { %829 = vst.msk [vmem:[%s1805_s4 + $0xb0] sm:$0xf] %vm784_vm1, %v764_v13 }
  0xf5   :  { %845 = vst.msk [vmem:[%s1805_s4 + $0xf0] sm:$0xf] %vm784_vm1, %v780_v14  ;;  %v480_v21 = vpop.f32.mrf.mxu2  ;;  %v520_v22 = vpop.f32.mrf.mxu3 }
  0xf6   :  { %798 = vst.msk [vmem:[%s1805_s4 + $0x34] sm:$0xf] %vm784_vm1, %v733_v17  ;;  %v481_v25 = vadd.f32 %v1389_v36, %v480_v21  ;;  %v521_v26 = vadd.f32 %v1389_v36, %v520_v22  ;;  %v403_v27 = vpop.f32.mrf.mxu0  ;;  %v443_v28 = vpop.f32.mrf.mxu1 }
  0xf7   :  { %814 = vst.msk [vmem:[%s1805_s4 + $0x74] sm:$0xf] %vm784_vm1, %v749_v18  ;;  %v404_v29 = vadd.f32 %v1389_v36, %v403_v27  ;;  %v444_v30 = vadd.f32 %v1389_v36, %v443_v28 }
  0xf8   :  { %v701_v31 = vadd.f32 %v1146_v19, %v481_v25  ;;  %v717_v32 = vadd.f32 %v1178_v20, %v521_v26 }
  0xf9   :  { %v670_v33 = vadd.f32 %v1085_v23, %v404_v29  ;;  %v686_v34 = vadd.f32 %v1117_v24, %v444_v30 }
  0xfa   :  { %v765_v38 = vpack.c.bf16 %v701_v31, %v701_v31  ;;  %v781_v39 = vpack.c.bf16 %v717_v32, %v717_v32 }
  0xfb   :  { %v734_v40 = vpack.c.bf16 %v670_v33, %v670_v33  ;;  %v750_v41 = vpack.c.bf16 %v686_v34, %v686_v34 }
  0xfc   :  { %830 = vst.msk [vmem:[%s1805_s4 + $0xb4] sm:$0xf] %vm784_vm1, %v765_v38 }
  0xfd   :  { %846 = vst.msk [vmem:[%s1805_s4 + $0xf4] sm:$0xf] %vm784_vm1, %v781_v39  ;;  %v483_v44 = vpop.f32.mrf.mxu2  ;;  %v523_v45 = vpop.f32.mrf.mxu3 }
  0xfe   :  { %799 = vst.msk [vmem:[%s1805_s4 + $0x38] sm:$0xf] %vm784_vm1, %v734_v40  ;;  %v484_v48 = vadd.f32 %v1389_v36, %v483_v44  ;;  %v524_v49 = vadd.f32 %v1389_v36, %v523_v45  ;;  %v405_v50 = vpop.f32.mrf.mxu0  ;;  %v445_v51 = vpop.f32.mrf.mxu1 }
  0xff   :  { %815 = vst.msk [vmem:[%s1805_s4 + $0x78] sm:$0xf] %vm784_vm1, %v750_v41  ;;  %v406_v52 = vadd.f32 %v1389_v36, %v405_v50  ;;  %v446_v53 = vadd.f32 %v1389_v36, %v445_v51 }
 0x100   :  { %v702_v54 = vadd.f32 %v1149_v42, %v484_v48  ;;  %v718_v55 = vadd.f32 %v1181_v43, %v524_v49 }
 0x101   :  { %v671_v56 = vadd.f32 %v1086_v46, %v406_v52  ;;  %v687_v57 = vadd.f32 %v1118_v47, %v446_v53 }
 0x102   :  { %v766_v58 = vpack.c.bf16 %v702_v54, %v702_v54  ;;  %v782_v59 = vpack.c.bf16 %v718_v55, %v718_v55 }
 0x103   :  { %v735_v60 = vpack.c.bf16 %v671_v56, %v671_v56  ;;  %v751_v61 = vpack.c.bf16 %v687_v57, %v687_v57 }
 0x104   :  { %831 = vst.msk [vmem:[%s1805_s4 + $0xb8] sm:$0xf] %vm784_vm1, %v766_v58 }
 0x105   :  { %847 = vst.msk [vmem:[%s1805_s4 + $0xf8] sm:$0xf] %vm784_vm1, %v782_v59  ;;  %v485_v0 = vpop.f32.mrf.mxu2  ;;  %v525_v1 = vpop.f32.mrf.mxu3 }
 0x106   :  { %800 = vst.msk [vmem:[%s1805_s4 + $0x3c] sm:$0xf] %vm784_vm1, %v735_v60  ;;  %v486_v2 = vadd.f32 %v1389_v36, %v485_v0  ;;  %v526_v3 = vadd.f32 %v1389_v36, %v525_v1 }
 0x107   :  { %816 = vst.msk [vmem:[%s1805_s4 + $0x7c] sm:$0xf] %vm784_vm1, %v751_v61 }
 0x108   :  { %v703_v4 = vadd.f32 %v1150_v62, %v486_v2  ;;  %v719_v5 = vadd.f32 %v1182_v63, %v526_v3 }
 0x10a   :  { %v767_v6 = vpack.c.bf16 %v703_v4, %v703_v4  ;;  %v783_v7 = vpack.c.bf16 %v719_v5, %v719_v5 }
 0x10c   :  { %832 = vst.msk [vmem:[%s1805_s4 + $0xbc] sm:$0xf] %vm784_vm1, %v767_v6 }
 0x10d   :  { %848 = vst.msk [vmem:[%s1805_s4 + $0xfc] sm:$0xf] %vm784_vm1, %v783_v7 }

// kernel: _lambda_.19
= control target key start
LH: loop header
LB: loop body
LE: loop exit
PB: predicated region body
PF: predicated region fallthrough
CT: control target
= control target key end

     0   :  { %vm267_vm0 = vcmask 261120   ;;  %v1952_v23 = vmov 0   ;;  %vm1445_vm1 = vcmask 130112   ;;  %vm1449_vm2 = vcmask 195712   ;;  %s3094_s1 = inlined_call_operand.vmem [shape: bf16[32,128], index: 1, kind: input, shape index: {}]   ;;  %s3095_s0 = inlined_call_operand.vmem [shape: bf16[512,32], index: 0, kind: input, shape index: {}]   ;;  %s3096_s2 = inlined_call_operand.vmem [shape: f32[1,128], index: 2, kind: input, shape index: {}]   ;;  %s3097_s3 = inlined_call_operand.vmem [shape: f32[1,1,128], index: 3, kind: input, shape index: {}]   ;;  %s3098_s4 = inlined_call_operand.<no memory space> [shape: f32[1,1], index: 4, kind: input, shape index: {}]   ;;  %s3099_s5 = inlined_call_operand.vmem [shape: f32[1,4,128], index: 5, kind: output, shape index: {}]  }
   0x1   :  { %v1809_v0 = vld [vmem:[%s3094_s1 + $0x8] sm:$0xff]  ;;  %v1808_v1 = vld [vmem:[%s3094_s1] sm:$0xff]  ;;  %v1778_v10 = vld [vmem:[%s3095_s0 + $0x10] sm:$0xff]  ;;  %v10_v22 = vstv %s3098_s4  ;;  %1817 = vset.pattern.permute.xlu1 %v1952_v23  ;;  %1818 = vset.pattern.permute.xlu0 %v1952_v23  ;;  %vm1453_vm3 = vcmask 261312   ;;  %vm1457_vm4 = vcmask 326912   ;;  %vm1461_vm5 = vcmask 392512  }
   0x2   :  { %370 = vmatpush.bf16.msra.mxu0 %v1809_v0  ;;  %1810 = vmatpush.bf16.msra.mxu1 %v1809_v0  ;;  %v1776_v2 = vld [vmem:[%s3095_s0] sm:$0xff]  ;;  %v1777_v6 = vld [vmem:[%s3095_s0 + $0x8] sm:$0xff]  ;;  %v1786_v11 = vld [vmem:[%s3095_s0 + $0x50] sm:$0xff]  ;;  %11 = vst [vmem:[#allocation2] sm:$0x1] %v10_v22  ;;  %vm1465_vm6 = vcmask 458112  }
   0x3   :  { %1811 = vmatpush.bf16.msra.mxu2 %v1809_v0  ;;  %1812 = vmatpush.bf16.msra.mxu3 %v1809_v0  ;;  %v1784_v3 = vld [vmem:[%s3095_s0 + $0x40] sm:$0xff]  ;;  %v1785_v7 = vld [vmem:[%s3095_s0 + $0x48] sm:$0xff]  ;;  %v1794_v12 = vld [vmem:[%s3095_s0 + $0x90] sm:$0xff]  ;;  %vm1469_vm7 = vcmask 523712   ;;  %vm1473_vm8 = vcmask 589312   ;;  %vm1477_vm9 = vcmask 654912  }
   0x4   :  { %v1792_v4 = vld [vmem:[%s3095_s0 + $0x80] sm:$0xff]  ;;  %v1793_v8 = vld [vmem:[%s3095_s0 + $0x88] sm:$0xff]  ;;  %v1802_v13 = vld [vmem:[%s3095_s0 + $0xd0] sm:$0xff]  ;;  %vm1481_vm10 = vcmask 720512   ;;  %vm1485_vm11 = vcmask 786112   ;;  %vm1489_vm12 = vcmask 851712  }
   0x5   :  { %v1800_v5 = vld [vmem:[%s3095_s0 + $0xc0] sm:$0xff]  ;;  %v1801_v9 = vld [vmem:[%s3095_s0 + $0xc8] sm:$0xff]  ;;  %v1779_v14 = vld [vmem:[%s3095_s0 + $0x18] sm:$0xff]  ;;  %vm1493_vm13 = vcmask 917312   ;;  %vm1497_vm14 = vcmask 982912   ;;  %vm1501_vm15 = vcmask 1048512  }
   0x6   :  { %371 = vmatpush.bf16.msra.mxu0 %v1808_v1  ;;  %1813 = vmatpush.bf16.msra.mxu1 %v1808_v1  ;;  %v1787_v15 = vld [vmem:[%s3095_s0 + $0x58] sm:$0xff]  ;;  %v1780_v18 = vld [vmem:[%s3095_s0 + $0x20] sm:$0xff]  ;;  %v1781_v25 = vld [vmem:[%s3095_s0 + $0x28] sm:$0xff] }
   0x7   :  { %1814 = vmatpush.bf16.msra.mxu2 %v1808_v1  ;;  %1815 = vmatpush.bf16.msra.mxu3 %v1808_v1  ;;  %v1795_v16 = vld [vmem:[%s3095_s0 + $0x98] sm:$0xff]  ;;  %v1788_v19 = vld [vmem:[%s3095_s0 + $0x60] sm:$0xff]  ;;  %v1789_v26 = vld [vmem:[%s3095_s0 + $0x68] sm:$0xff] }
   0x8   :  { %v1803_v17 = vld [vmem:[%s3095_s0 + $0xd8] sm:$0xff]  ;;  %v1796_v20 = vld [vmem:[%s3095_s0 + $0xa0] sm:$0xff]  ;;  %v1797_v27 = vld [vmem:[%s3095_s0 + $0xa8] sm:$0xff] }
   0x9   :  { %1744 = vmatmul.msk.bf16.vlgmr.msra.gmra.mxu0 %vm267_vm0, %v1776_v2  ;;  %1752 = vmatmul.msk.bf16.vlgmr.msra.gmra.mxu1 %vm267_vm0, %v1784_v3  ;;  %v1804_v21 = vld [vmem:[%s3095_s0 + $0xe0] sm:$0xff]  ;;  %v1805_v28 = vld [vmem:[%s3095_s0 + $0xe8] sm:$0xff]  ;;  %v1782_v29 = vld [vmem:[%s3095_s0 + $0x30] sm:$0xff] }
   0xa   :  { %1760 = vmatmul.msk.bf16.vlgmr.msra.gmra.mxu2 %vm267_vm0, %v1792_v4  ;;  %1768 = vmatmul.msk.bf16.vlgmr.msra.gmra.mxu3 %vm267_vm0, %v1800_v5  ;;  %v1819_v24 = vld [vmem:[#allocation2] ss:$0 sm:$0xff]  ;;  %v1790_v30 = vld [vmem:[%s3095_s0 + $0x70] sm:$0xff]  ;;  %v1783_v33 = vld [vmem:[%s3095_s0 + $0x38] sm:$0xff] }
   0xb   :  { %1309 = vperm.xlu1 %1817, %v1819_v24   ;;  %v1798_v31 = vld [vmem:[%s3095_s0 + $0xb0] sm:$0xff]  ;;  %v1791_v34 = vld [vmem:[%s3095_s0 + $0x78] sm:$0xff]  ;;  %v2123_v37 = vld [vmem:[%s3096_s2] ss:$0 sm:$0xff] }
   0xc   :  { %v1806_v32 = vld [vmem:[%s3095_s0 + $0xf0] sm:$0xff]  ;;  %v1799_v35 = vld [vmem:[%s3095_s0 + $0xb8] sm:$0xff] }
   0xd   :  { %v1807_v36 = vld [vmem:[%s3095_s0 + $0xf8] sm:$0xff] }
  0x19   :  { %1745 = vmatmul.msk.bf16.gmra.mxu0 %vm267_vm0, %v1777_v6  ;;  %1753 = vmatmul.msk.bf16.gmra.mxu1 %vm267_vm0, %v1785_v7 }
  0x1a   :  { %1761 = vmatmul.msk.bf16.gmra.mxu2 %vm267_vm0, %v1793_v8  ;;  %1769 = vmatmul.msk.bf16.gmra.mxu3 %vm267_vm0, %v1801_v9 }
  0x29   :  { %1746 = vmatmul.msk.bf16.gmra.mxu0 %vm267_vm0, %v1778_v10  ;;  %1754 = vmatmul.msk.bf16.gmra.mxu1 %vm267_vm0, %v1786_v11 }
  0x2a   :  { %1762 = vmatmul.msk.bf16.gmra.mxu2 %vm267_vm0, %v1794_v12  ;;  %1770 = vmatmul.msk.bf16.gmra.mxu3 %vm267_vm0, %v1802_v13 }
  0x39   :  { %1747 = vmatmul.msk.bf16.gmra.mxu0 %vm267_vm0, %v1779_v14  ;;  %1755 = vmatmul.msk.bf16.gmra.mxu1 %vm267_vm0, %v1787_v15 }
  0x3a   :  { %1763 = vmatmul.msk.bf16.gmra.mxu2 %vm267_vm0, %v1795_v16  ;;  %1771 = vmatmul.msk.bf16.gmra.mxu3 %vm267_vm0, %v1803_v17 }
  0x49   :  { %1748 = vmatmul.msk.bf16.gmra.mxu0 %vm267_vm0, %v1780_v18  ;;  %1756 = vmatmul.msk.bf16.gmra.mxu1 %vm267_vm0, %v1788_v19 }
  0x4a   :  { %1764 = vmatmul.msk.bf16.gmra.mxu2 %vm267_vm0, %v1796_v20  ;;  %1772 = vmatmul.msk.bf16.gmra.mxu3 %vm267_vm0, %v1804_v21 }
  0x59   :  { %1749 = vmatmul.msk.bf16.gmra.mxu0 %vm267_vm0, %v1781_v25  ;;  %1757 = vmatmul.msk.bf16.gmra.mxu1 %vm267_vm0, %v1789_v26 }
  0x5a   :  { %1765 = vmatmul.msk.bf16.gmra.mxu2 %vm267_vm0, %v1797_v27  ;;  %1773 = vmatmul.msk.bf16.gmra.mxu3 %vm267_vm0, %v1805_v28  ;;  %v2169_v27 = vld [vmem:[%s3097_s3] ss:$0 sm:$0xff] }
  0x69   :  { %1750 = vmatmul.msk.bf16.gmra.mxu0 %vm267_vm0, %v1782_v29  ;;  %1758 = vmatmul.msk.bf16.gmra.mxu1 %vm267_vm0, %v1790_v30 }
  0x6a   :  { %1766 = vmatmul.msk.bf16.gmra.mxu2 %vm267_vm0, %v1798_v31  ;;  %1774 = vmatmul.msk.bf16.gmra.mxu3 %vm267_vm0, %v1806_v32 }
  0x79   :  { %1751 = vmatmul.msk.bf16.gmra.mxu0 %vm267_vm0, %v1783_v33  ;;  %1759 = vmatmul.msk.bf16.gmra.mxu1 %vm267_vm0, %v1791_v34 }
  0x7a   :  { %1767 = vmatmul.msk.bf16.gmra.mxu2 %vm267_vm0, %v1799_v35  ;;  %1775 = vmatmul.msk.bf16.gmra.mxu3 %vm267_vm0, %v1807_v36  ;;  %vm1596_vm0 = vcmask 1041409  }
  0x86   :  { %v373_v38 = vpop.f32.mrf.mxu0  ;;  %v413_v39 = vpop.f32.mrf.mxu1 }
  0x87   :  { %v374_v40 = vadd.f32 %v2123_v37, %v373_v38  ;;  %v414_v41 = vadd.f32 %v2123_v37, %v413_v39 }
  0x89   :  { %v613_v42 = vmul.f32 0.044715, %v414_v41  ;;  %v597_v43 = vmul.f32 0.044715, %v374_v40  ;;  %v549_v23 = vmul.f32 0.5, %v414_v41  ;;  %v533_v28 = vmul.f32 0.5, %v374_v40 }
  0x8b   :  { %v677_v44 = vmul.f32 %v613_v42, %v414_v41  ;;  %v661_v45 = vmul.f32 %v597_v43, %v374_v40 }
  0x8d   :  { %v453_v46 = vpop.f32.mrf.mxu2  ;;  %v493_v47 = vpop.f32.mrf.mxu3  ;;  %v741_v48 = vmul.f32 %v677_v44, %v414_v41  ;;  %v725_v49 = vmul.f32 %v661_v45, %v374_v40 }
  0x8e   :  { %v2128_v50 = vadd.f32 %v2123_v37, %v453_v46  ;;  %v2131_v51 = vadd.f32 %v2123_v37, %v493_v47  ;;  %v375_v52 = vpop.f32.mrf.mxu0  ;;  %v415_v53 = vpop.f32.mrf.mxu1 }
  0x8f   :  { %v2134_v54 = vadd.f32 %v2123_v37, %v375_v52  ;;  %v2137_v55 = vadd.f32 %v2123_v37, %v415_v53  ;;  %v805_v56 = vadd.f32 %v741_v48, %v414_v41  ;;  %v789_v57 = vadd.f32 %v725_v49, %v374_v40 }
  0x90   :  { %v645_v58 = vmul.f32 0.044715, %v2131_v51  ;;  %v629_v59 = vmul.f32 0.044715, %v2128_v50  ;;  %v565_v48 = vmul.f32 0.5, %v2128_v50 }
  0x91   :  { %v598_v60 = vmul.f32 0.044715, %v2134_v54  ;;  %v614_v61 = vmul.f32 0.044715, %v2137_v55  ;;  %v869_v62 = vmul.f32 0.7978846, %v805_v56 }
  0x92   :  { %v853_v63 = vmul.f32 0.7978846, %v789_v57  ;;  %v693_v0 = vmul.f32 %v629_v59, %v2128_v50  ;;  %v709_v1 = vmul.f32 %v645_v58, %v2131_v51  ;;  %v581_v56 = vmul.f32 0.5, %v2131_v51 }
  0x93   :  { %1822 = vtanh.f32 %v869_v62  ;;  %v678_v2 = vmul.f32 %v614_v61, %v2137_v55  ;;  %v662_v3 = vmul.f32 %v598_v60, %v2134_v54  ;;  %v550_v57 = vmul.f32 0.5, %v2137_v55 }
  0x94   :  { %1824 = vtanh.f32 %v853_v63  ;;  %v757_v4 = vmul.f32 %v693_v0, %v2128_v50  ;;  %v773_v5 = vmul.f32 %v709_v1, %v2131_v51 }
  0x95   :  { %v455_v6 = vpop.f32.mrf.mxu2  ;;  %v495_v7 = vpop.f32.mrf.mxu3  ;;  %v742_v8 = vmul.f32 %v678_v2, %v2137_v55  ;;  %v726_v9 = vmul.f32 %v662_v3, %v2134_v54 }
  0x96   :  { %v2152_v10 = vadd.f32 %v2123_v37, %v495_v7  ;;  %v378_v11 = vpop.f32.mrf.mxu0  ;;  %v418_v12 = vpop.f32.mrf.mxu1  ;;  %v821_v13 = vadd.f32 %v757_v4, %v2128_v50  ;;  %v837_v14 = vadd.f32 %v773_v5, %v2131_v51  ;;  %v2163_v21 = vadd.f32 %v2123_v37, %v455_v6 }
  0x97   :  { %v2157_v15 = vadd.f32 %v2123_v37, %v378_v11  ;;  %v806_v16 = vadd.f32 %v742_v8, %v2137_v55  ;;  %v790_v17 = vadd.f32 %v726_v9, %v2134_v54  ;;  %v2191_v60 = vadd.f32 %v2123_v37, %v418_v12 }
  0x98   :  { %v646_v18 = vmul.f32 0.044715, %v2152_v10  ;;  %v885_v19 = vmul.f32 0.7978846, %v821_v13  ;;  %v901_v24 = vmul.f32 0.7978846, %v837_v14 }
  0x99   :  { %v1823_v20 = vpop.eup %1822  ;;  %v599_v22 = vmul.f32 0.044715, %v2157_v15  ;;  %v870_v29 = vmul.f32 0.7978846, %v806_v16  ;;  %v854_v32 = vmul.f32 0.7978846, %v790_v17 }
  0x9a   :  { %v1825_v25 = vpop.eup %1824  ;;  %v997_v26 = vadd.f32 1.0, %v1823_v20  ;;  %1826 = vtanh.f32 %v885_v19  ;;  %v710_v34 = vmul.f32 %v646_v18, %v2152_v10  ;;  %v630_v35 = vmul.f32 0.044715, %v2163_v21 }
  0x9b   :  { %v981_v30 = vadd.f32 1.0, %v1825_v25  ;;  %1828 = vtanh.f32 %v901_v24  ;;  %v663_v31 = vmul.f32 %v599_v22, %v2157_v15  ;;  %v534_v50 = vmul.f32 0.5, %v2134_v54 }
  0x9c   :  { %v1061_v33 = vmul.f32 %v997_v26, %v549_v23  ;;  %1830 = vtanh.f32 %v870_v29  ;;  %v774_v45 = vmul.f32 %v710_v34, %v2152_v10  ;;  %v694_v62 = vmul.f32 %v630_v35, %v2163_v21 }
  0x9d   :  { %v458_v36 = vpop.f32.mrf.mxu2  ;;  %v498_v38 = vpop.f32.mrf.mxu3  ;;  %v1045_v39 = vmul.f32 %v981_v30, %v533_v28  ;;  %v727_v41 = vmul.f32 %v663_v31, %v2157_v15  ;;  %1832 = vtanh.f32 %v854_v32  ;;  %v615_v16 = vmul.f32 0.044715, %v2191_v60 }
  0x9e   :  { %v2176_v40 = vadd.f32 %v2123_v37, %v458_v36  ;;  %v380_v42 = vpop.f32.mrf.mxu0  ;;  %v420_v43 = vpop.f32.mrf.mxu1  ;;  %v1129_v44 = vmul.f32 %v2169_v27, %v1061_v33  ;;  %v838_v58 = vadd.f32 %v774_v45, %v2152_v10  ;;  %v2197_v55 = vadd.f32 %v2123_v37, %v498_v38 }
  0x9f   :  { %v2181_v46 = vadd.f32 %v2123_v37, %v380_v42  ;;  %v1113_v47 = vmul.f32 %v2169_v27, %v1045_v39  ;;  %v791_v49 = vadd.f32 %v727_v41, %v2157_v15  ;;  %v758_v6 = vmul.f32 %v694_v62, %v2163_v21 }
  0xa0   :  { %v1827_v52 = vpop.eup %1826  ;;  %v631_v53 = vmul.f32 0.044715, %v2176_v40  ;;  %1209 = vadd.xlane.f32.xlu1 %v1129_v44  ;;  %v902_v2 = vmul.f32 0.7978846, %v838_v58  ;;  %v535_v22 = vmul.f32 0.5, %v2157_v15  ;;  %v582_v24 = vmul.f32 0.5, %v2152_v10 }
  0xa1   :  { %v1829_v59 = vpop.eup %1828  ;;  %1177 = vadd.xlane.f32.xlu0 %v1113_v47  ;;  %v1013_v61 = vadd.f32 1.0, %v1827_v52  ;;  %v855_v1 = vmul.f32 0.7978846, %v791_v49  ;;  %v600_v4 = vmul.f32 0.044715, %v2181_v46  ;;  %v822_v14 = vadd.f32 %v758_v6, %v2163_v21 }
  0xa2   :  { %v1831_v63 = vpop.eup %1830  ;;  %v1029_v0 = vadd.f32 1.0, %v1829_v59  ;;  %v695_v51 = vmul.f32 %v631_v53, %v2176_v40  ;;  %v566_v26 = vmul.f32 0.5, %v2163_v21  ;;  %v647_v28 = vmul.f32 0.044715, %v2197_v55 }
  0xa3   :  { %v1833_v3 = vpop.eup %1832  ;;  %v1077_v5 = vmul.f32 %v1013_v61, %v565_v48  ;;  %v998_v8 = vadd.f32 1.0, %v1831_v63  ;;  %1834 = vtanh.f32 %v855_v1  ;;  %v2216_v29 = vadd.f32 %v2123_v37, %v420_v43 }
  0xa4   :  { %v1093_v7 = vmul.f32 %v1029_v0, %v581_v56  ;;  %v759_v54 = vmul.f32 %v695_v51, %v2176_v40  ;;  %v982_v13 = vadd.f32 1.0, %v1833_v3  ;;  %1836 = vtanh.f32 %v902_v2 }
  0xa5   :  { %v460_v9 = vpop.f32.mrf.mxu2  ;;  %v500_v11 = vpop.f32.mrf.mxu3  ;;  %v1145_v12 = vmul.f32 %v2169_v27, %v1077_v5  ;;  %v886_v31 = vmul.f32 0.7978846, %v822_v14  ;;  %v1062_v32 = vmul.f32 %v998_v8, %v550_v57  ;;  %v664_v34 = vmul.f32 %v600_v4, %v2181_v46 }
  0xa6   :  { %v461_v17 = vadd.f32 %v2123_v37, %v460_v9  ;;  %v2207_v18 = vadd.f32 %v2123_v37, %v500_v11  ;;  %v383_v19 = vpop.f32.mrf.mxu0  ;;  %v423_v20 = vpop.f32.mrf.mxu1  ;;  %v1161_v23 = vmul.f32 %v2169_v27, %v1093_v7  ;;  %v823_v25 = vadd.f32 %v759_v54, %v2176_v40 }
  0xa7   :  { %1241 = vadd.xlane.f32.xlu2 %v1145_v12  ;;  %v1046_v33 = vmul.f32 %v982_v13, %v534_v50  ;;  %v2221_v36 = vadd.f32 %v2123_v37, %v383_v19  ;;  %1838 = vtanh.f32 %v886_v31  ;;  %v728_v41 = vmul.f32 %v664_v34, %v2181_v46 }
  0xa8   :  { %v632_v30 = vmul.f32 0.044715, %v461_v17  ;;  %v887_v15 = vmul.f32 0.7978846, %v823_v25  ;;  %v648_v10 = vmul.f32 0.044715, %v2207_v18  ;;  %v679_v42 = vmul.f32 %v615_v16, %v2191_v60 }
  0xa9   :  { %1273 = vadd.xlane.f32.xlu0 %v1161_v23  ;;  %v1835_v35 = vpop.eup %1834  ;;  %v616_v43 = vmul.f32 0.044715, %v2216_v29  ;;  %v2227_v44 = vadd.f32 %v2123_v37, %v423_v20  ;;  %v567_v45 = vmul.f32 0.5, %v2176_v40  ;;  %v1130_v52 = vmul.f32 %v2169_v27, %v1062_v32 }
  0xaa   :  { %v696_v21 = vmul.f32 %v632_v30, %v461_v17  ;;  %v1837_v38 = vpop.eup %1836  ;;  %v983_v39 = vadd.f32 1.0, %v1835_v35  ;;  %1840 = vtanh.f32 %v887_v15  ;;  %v792_v57 = vadd.f32 %v728_v41, %v2181_v46 }
  0xab   :  { %v1030_v56 = vadd.f32 1.0, %v1837_v38  ;;  %v2233_v50 = vmul.f32 0.5, %v2181_v46  ;;  %v743_v62 = vmul.f32 %v679_v42, %v2191_v60  ;;  %v712_v63 = vmul.f32 %v648_v10, %v2207_v18 }
  0xac   :  { %v760_v47 = vmul.f32 %v696_v21, %v461_v17  ;;  %v1047_v53 = vmul.f32 %v983_v39, %v535_v22  ;;  %v601_v40 = vmul.f32 0.044715, %v2221_v36  ;;  %v1114_v1 = vmul.f32 %v2169_v27, %v1046_v33 }
  0xad   :  { %v463_v48 = vpop.f32.mrf.mxu2  ;;  %v503_v49 = vpop.f32.mrf.mxu3  ;;  %v856_v2 = vmul.f32 0.7978846, %v792_v57  ;;  %v2241_v3 = vmul.f32 0.044715, %v2227_v44  ;;  %v568_v4 = vmul.f32 0.5, %v461_v17  ;;  %v2244_v46 = vmul.f32 0.5, %v2191_v60 }
  0xae   :  { %v425_v58 = vpop.f32.mrf.mxu1  ;;  %v385_v59 = vpop.f32.mrf.mxu0  ;;  %v824_v61 = vadd.f32 %v760_v47, %v461_v17  ;;  %v1115_v0 = vmul.f32 %v2169_v27, %v1047_v53  ;;  %v1094_v7 = vmul.f32 %v1030_v56, %v582_v24  ;;  %v2247_v54 = vmul.f32 0.5, %v2207_v18 }
  0xaf   :  { %1211 = vadd.xlane.f32.xlu2 %v1130_v52  ;;  %v1839_v51 = vpop.eup %1838  ;;  %1842 = vtanh.f32 %v856_v2  ;;  %v807_v11 = vadd.f32 %v743_v62, %v2191_v60  ;;  %v776_v12 = vmul.f32 %v712_v63, %v2207_v18  ;;  %v2252_v14 = vmul.f32 0.5, %v2216_v29 }
  0xb0   :  { %v888_v5 = vmul.f32 0.7978846, %v824_v61  ;;  %v1841_v6 = vpop.eup %1840  ;;  %1181 = vadd.xlane.f32.xlu1 %v1115_v0  ;;  %v1014_v8 = vadd.f32 1.0, %v1839_v51  ;;  %v680_v16 = vmul.f32 %v616_v43, %v2216_v29  ;;  %v711_v17 = vmul.f32 %v647_v28, %v2197_v55 }
  0xb1   :  { %1179 = vadd.xlane.f32.xlu0 %v1114_v1  ;;  %v1015_v9 = vadd.f32 1.0, %v1841_v6  ;;  %v2257_v19 = vadd.f32 %v2123_v37, %v463_v48  ;;  %v871_v22 = vmul.f32 0.7978846, %v807_v11  ;;  %v840_v23 = vadd.f32 %v776_v12, %v2207_v18 }
  0xb2   :  { %1844 = vtanh.f32 %v888_v5  ;;  %v1078_v13 = vmul.f32 %v1014_v8, %v566_v26  ;;  %v2261_v24 = vadd.f32 %v2123_v37, %v503_v49  ;;  %v1162_v25 = vmul.f32 %v2169_v27, %v1094_v7 }
  0xb3   :  { %v1079_v20 = vmul.f32 %v1015_v9, %v567_v45  ;;  %v744_v26 = vmul.f32 %v680_v16, %v2216_v29  ;;  %v775_v30 = vmul.f32 %v711_v17, %v2197_v55  ;;  %v2267_v31 = vadd.f32 %v2123_v37, %v425_v58 }
  0xb4   :  { %1846 = vtanh.f32 %v871_v22  ;;  %v665_v18 = vmul.f32 %v601_v40, %v2221_v36  ;;  %v1146_v10 = vmul.f32 %v2169_v27, %v1078_v13  ;;  %v904_v21 = vmul.f32 0.7978846, %v840_v23 }
  0xb5   :  { %v465_v60 = vpop.f32.mrf.mxu2  ;;  %v1843_v15 = vpop.eup %1842  ;;  %v1147_v35 = vmul.f32 %v2169_v27, %v1079_v20  ;;  %v808_v38 = vadd.f32 %v744_v26, %v2216_v29  ;;  %v633_v41 = vmul.f32 0.044715, %v2257_v19  ;;  %v839_v45 = vadd.f32 %v775_v30, %v2197_v55 }
  0xb6   :  { %v2270_v28 = vadd.f32 %v2123_v37, %v465_v60  ;;  %v388_v32 = vpop.f32.mrf.mxu0  ;;  %v428_v33 = vpop.f32.mrf.mxu1  ;;  %v984_v43 = vadd.f32 1.0, %v1843_v15  ;;  %v2280_v47 = vmul.f32 0.044715, %v2261_v24  ;;  %v2283_v48 = vadd.f32 %v2123_v37, %v385_v59 }
  0xb7   :  { %v505_v34 = vpop.f32.mrf.mxu3  ;;  %1275 = vadd.xlane.f32.xlu2 %v1162_v25  ;;  %1848 = vtanh.f32 %v904_v21  ;;  %v2286_v29 = vmul.f32 0.044715, %v2267_v31  ;;  %v872_v52 = vmul.f32 0.7978846, %v808_v38  ;;  %v903_v53 = vmul.f32 0.7978846, %v839_v45 }
  0xb8   :  { %v1845_v39 = vpop.eup %1844  ;;  %v634_v42 = vmul.f32 0.044715, %v2270_v28  ;;  %1245 = vadd.xlane.f32.xlu1 %v1147_v35  ;;  %v729_v56 = vmul.f32 %v665_v18, %v2221_v36  ;;  %v2290_v57 = vadd.f32 %v2123_v37, %v428_v33  ;;  %v1048_v61 = vmul.f32 %v984_v43, %v2233_v50 }
  0xb9   :  { %1243 = vadd.xlane.f32.xlu0 %v1146_v10  ;;  %v1016_v49 = vadd.f32 1.0, %v1845_v39  ;;  %v2295_v63 = vadd.f32 %v2123_v37, %v505_v34  ;;  %1850 = vtanh.f32 %v872_v52  ;;  %v697_v0 = vmul.f32 %v633_v41, %v2257_v19 }
  0xba   :  { %v698_v59 = vmul.f32 %v634_v42, %v2270_v28  ;;  %v1847_v62 = vpop.eup %1846  ;;  %v793_v40 = vadd.f32 %v729_v56, %v2221_v36  ;;  %1852 = vtanh.f32 %v903_v53  ;;  %v2302_v50 = vmul.f32 0.044715, %v2283_v48 }
  0xbb   :  { %v1080_v58 = vmul.f32 %v1016_v49, %v568_v4  ;;  %v999_v51 = vadd.f32 1.0, %v1847_v62  ;;  %v583_v7 = vmul.f32 0.5, %v2197_v55  ;;  %v761_v9 = vmul.f32 %v697_v0, %v2257_v19 }
  0xbc   :  { %v762_v4 = vmul.f32 %v698_v59, %v2270_v28  ;;  %v857_v8 = vmul.f32 0.7978846, %v793_v40  ;;  %v619_v12 = vmul.f32 0.044715, %v2290_v57  ;;  %v1116_v13 = vmul.f32 %v2169_v27, %v1048_v61 }
  0xbd   :  { %v468_v1 = vpop.f32.mrf.mxu2  ;;  %v1148_v2 = vmul.f32 %v2169_v27, %v1080_v58  ;;  %v1849_v11 = vpop.eup %1848  ;;  %v1063_v16 = vmul.f32 %v999_v51, %v2244_v46  ;;  %v2311_v20 = vadd.f32 %v2123_v37, %v388_v32  ;;  %v537_v23 = vmul.f32 0.5, %v2221_v36 }
  0xbe   :  { %v390_v5 = vpop.f32.mrf.mxu0  ;;  %v430_v6 = vpop.f32.mrf.mxu1  ;;  %v826_v17 = vadd.f32 %v762_v4, %v2270_v28  ;;  %v1032_v22 = vadd.f32 1.0, %v1849_v11  ;;  %1854 = vtanh.f32 %v857_v8  ;;  %v2315_v55 = vmul.f32 0.044715, %v2295_v63 }
  0xbf   :  { %1247 = vadd.xlane.f32.xlu2 %v1148_v2  ;;  %v2318_v60 = vadd.f32 %v2123_v37, %v468_v1  ;;  %v508_v25 = vpop.f32.mrf.mxu3  ;;  %v1131_v26 = vmul.f32 %v2169_v27, %v1063_v16  ;;  %v1851_v30 = vpop.eup %1850  ;;  %v825_v36 = vadd.f32 %v761_v9, %v2257_v19  ;;  %v681_v18 = vmul.f32 %v2241_v3, %v2227_v44 }
  0xc0   :  { %1183 = vadd.xlane.f32.xlu1 %v1116_v13  ;;  %v890_v46 = vmul.f32 0.7978846, %v826_v17  ;;  %v2322_v33 = vadd.f32 %v2123_v37, %v508_v25  ;;  %v1096_v32 = vmul.f32 %v1032_v22, %v2247_v54  ;;  %v1853_v15 = vpop.eup %1852  ;;  %v2329_v34 = vadd.f32 %v2123_v37, %v390_v5 }
  0xc1   :  { %1213 = vadd.xlane.f32.xlu0 %v1131_v26  ;;  %v1000_v35 = vadd.f32 1.0, %v1851_v30  ;;  %v683_v10 = vmul.f32 %v619_v12, %v2290_v57  ;;  %v2333_v21 = vadd.f32 %v2123_v37, %v430_v6  ;;  %v1031_v38 = vadd.f32 1.0, %v1853_v15 }
  0xc2   :  { %1856 = vtanh.f32 %v890_v46  ;;  %v889_v39 = vmul.f32 0.7978846, %v825_v36  ;;  %v745_v54 = vmul.f32 %v681_v18, %v2227_v44  ;;  %v2337_v41 = vmul.f32 0.044715, %v2311_v20 }
  0xc3   :  { %v1164_v42 = vmul.f32 %v2169_v27, %v1096_v32  ;;  %v1064_v43 = vmul.f32 %v1000_v35, %v2252_v14  ;;  %v747_v45 = vmul.f32 %v683_v10, %v2290_v57  ;;  %v1095_v52 = vmul.f32 %v1031_v38, %v583_v7 }
  0xc4   :  { %v1855_v49 = vpop.eup %1854  ;;  %v570_v58 = vmul.f32 0.5, %v2270_v28  ;;  %1858 = vtanh.f32 %v889_v39  ;;  %v713_v61 = vmul.f32 %v2280_v47, %v2261_v24  ;;  %v2346_v59 = vmul.f32 0.044715, %v2318_v60 }
  0xc5   :  { %v470_v3 = vpop.f32.mrf.mxu2  ;;  %v1132_v62 = vmul.f32 %v2169_v27, %v1064_v43  ;;  %v985_v40 = vadd.f32 1.0, %v1855_v49  ;;  %v569_v14 = vmul.f32 0.5, %v2257_v19  ;;  %v2351_v0 = vmul.f32 0.044715, %v2322_v33 }
  0xc6   :  { %v393_v53 = vpop.f32.mrf.mxu0  ;;  %v433_v56 = vpop.f32.mrf.mxu1  ;;  %v604_v1 = vmul.f32 0.044715, %v2329_v34  ;;  %v2355_v28 = vmul.f32 0.044715, %v2333_v21  ;;  %v809_v2 = vadd.f32 %v745_v54, %v2227_v44  ;;  %v1163_v51 = vmul.f32 %v2169_v27, %v1095_v52 }
  0xc7   :  { %1279 = vadd.xlane.f32.xlu2 %v1164_v42  ;;  %v1049_v4 = vmul.f32 %v985_v40, %v537_v23  ;;  %v553_v5 = vmul.f32 0.5, %v2227_v44  ;;  %v811_v6 = vadd.f32 %v747_v45, %v2290_v57  ;;  %v555_v8 = vmul.f32 0.5, %v2290_v57  ;;  %v510_v12 = vpop.f32.mrf.mxu3 }
  0xc8   :  { %v1857_v47 = vpop.eup %1856  ;;  %1215 = vadd.xlane.f32.xlu1 %v1132_v62  ;;  %v873_v7 = vmul.f32 0.7978846, %v809_v2  ;;  %v777_v9 = vmul.f32 %v713_v61, %v2261_v24  ;;  %v2364_v11 = vadd.f32 %v2123_v37, %v470_v3  ;;  %v2367_v16 = vmul.f32 0.5, %v2261_v24 }
  0xc9   :  { %v1018_v19 = vadd.f32 1.0, %v1857_v47  ;;  %1277 = vadd.xlane.f32.xlu0 %v1163_v51  ;;  %v875_v13 = vmul.f32 0.7978846, %v811_v6  ;;  %v666_v44 = vmul.f32 %v2302_v50, %v2283_v48  ;;  %v668_v57 = vmul.f32 %v604_v1, %v2329_v34 }
  0xca   :  { %v1859_v17 = vpop.eup %1858  ;;  %1860 = vtanh.f32 %v873_v7  ;;  %v841_v23 = vadd.f32 %v777_v9, %v2261_v24  ;;  %v1117_v26 = vmul.f32 %v2169_v27, %v1049_v4  ;;  %v2376_v32 = vadd.f32 %v2123_v37, %v510_v12 }
  0xcb   :  { %v1082_v22 = vmul.f32 %v1018_v19, %v570_v58  ;;  %v1017_v46 = vadd.f32 1.0, %v1859_v17  ;;  %1862 = vtanh.f32 %v875_v13  ;;  %v730_v30 = vmul.f32 %v666_v44, %v2283_v48 }
  0xcc   :  { %v905_v15 = vmul.f32 0.7978846, %v841_v23  ;;  %v732_v24 = vmul.f32 %v668_v57, %v2329_v34  ;;  %v2383_v35 = vadd.f32 %v2123_v37, %v393_v53  ;;  %v682_v42 = vmul.f32 %v2286_v29, %v2267_v31 }
  0xcd   :  { %v473_v25 = vpop.f32.mrf.mxu2  ;;  %v1150_v10 = vmul.f32 %v2169_v27, %v1082_v22  ;;  %v1081_v38 = vmul.f32 %v1017_v46, %v569_v14  ;;  %v794_v39 = vadd.f32 %v730_v30, %v2283_v48  ;;  %v2392_v43 = vmul.f32 0.044715, %v2364_v11 }
  0xce   :  { %v2379_v36 = vadd.f32 %v2123_v37, %v473_v25  ;;  %v395_v50 = vpop.f32.mrf.mxu0  ;;  %v435_v18 = vpop.f32.mrf.mxu1  ;;  %1864 = vtanh.f32 %v905_v15  ;;  %v796_v3 = vadd.f32 %v732_v24, %v2329_v34  ;;  %v2395_v45 = vadd.f32 %v2123_v37, %v433_v56 }
  0xcf   :  { %1185 = vadd.xlane.f32.xlu2 %v1117_v26  ;;  %v1149_v49 = vmul.f32 %v2169_v27, %v1081_v38  ;;  %v858_v52 = vmul.f32 0.7978846, %v794_v39  ;;  %v2399_v58 = vmul.f32 0.044715, %v2376_v32  ;;  %v746_v62 = vmul.f32 %v682_v42, %v2267_v31 }
  0xd0   :  { %v637_v54 = vmul.f32 0.044715, %v2379_v36  ;;  %1251 = vadd.xlane.f32.xlu1 %v1150_v10  ;;  %v1861_v53 = vpop.eup %1860  ;;  %v860_v61 = vmul.f32 0.7978846, %v796_v3  ;;  %v714_v29 = vmul.f32 %v2315_v55, %v2295_v63  ;;  %v2405_v14 = vmul.f32 0.044715, %v2383_v35 }
  0xd1   :  { %v1863_v40 = vpop.eup %1862  ;;  %1249 = vadd.xlane.f32.xlu0 %v1149_v49  ;;  %v1001_v56 = vadd.f32 1.0, %v1861_v53  ;;  %1866 = vtanh.f32 %v858_v52  ;;  %v810_v47 = vadd.f32 %v746_v62, %v2267_v31  ;;  %v2411_v4 = vadd.f32 %v2123_v37, %v395_v50  ;;  %v513_v50 = vpop.f32.mrf.mxu3 }
  0xd2   :  { %v701_v1 = vmul.f32 %v637_v54, %v2379_v36  ;;  %v1003_v2 = vadd.f32 1.0, %v1863_v40  ;;  %1868 = vtanh.f32 %v860_v61  ;;  %v778_v51 = vmul.f32 %v714_v29, %v2295_v63 }
  0xd3   :  { %v2414_v55 = vadd.f32 %v2123_v37, %v435_v18  ;;  %v1065_v19 = vmul.f32 %v1001_v56, %v553_v5  ;;  %v874_v17 = vmul.f32 0.7978846, %v810_v47  ;;  %v667_v23 = vmul.f32 %v2337_v41, %v2311_v20 }
  0xd4   :  { %v765_v7 = vmul.f32 %v701_v1, %v2379_v36  ;;  %v1865_v9 = vpop.eup %1864  ;;  %v1067_v12 = vmul.f32 %v1003_v2, %v555_v8  ;;  %v842_v22 = vadd.f32 %v778_v51, %v2295_v63  ;;  %v2421_v57 = vmul.f32 0.044715, %v2395_v45 }
  0xd5   :  { %v475_v6 = vpop.f32.mrf.mxu2  ;;  %v1133_v25 = vmul.f32 %v2169_v27, %v1065_v19  ;;  %v1033_v26 = vadd.f32 1.0, %v1865_v9  ;;  %v538_v5 = vmul.f32 0.5, %v2283_v48  ;;  %v540_v8 = vmul.f32 0.5, %v2329_v34 }
  0xd6   :  { %v398_v13 = vpop.f32.mrf.mxu0  ;;  %v438_v44 = vpop.f32.mrf.mxu1  ;;  %v1135_v46 = vmul.f32 %v2169_v27, %v1067_v12  ;;  %1870 = vtanh.f32 %v874_v17  ;;  %v906_v30 = vmul.f32 0.7978846, %v842_v22  ;;  %v622_v15 = vmul.f32 0.044715, %v2414_v55 }
  0xd7   :  { %v1867_v18 = vpop.eup %1866  ;;  %1217 = vadd.xlane.f32.xlu2 %v1133_v25  ;;  %v1097_v41 = vmul.f32 %v1033_v26, %v2367_v16  ;;  %v554_v24 = vmul.f32 0.5, %v2267_v31  ;;  %v829_v10 = vadd.f32 %v765_v7, %v2379_v36  ;;  %v2432_v48 = vmul.f32 0.044715, %v2411_v4 }
  0xd8   :  { %v1869_v38 = vpop.eup %1868  ;;  %1221 = vadd.xlane.f32.xlu1 %v1135_v46  ;;  %v986_v39 = vadd.f32 1.0, %v1867_v18  ;;  %1872 = vtanh.f32 %v906_v30  ;;  %v731_v34 = vmul.f32 %v667_v23, %v2311_v20  ;;  %v2436_v54 = vadd.f32 %v2123_v37, %v475_v6 }
  0xd9   :  { %v1165_v3 = vmul.f32 %v2169_v27, %v1097_v41  ;;  %v988_v42 = vadd.f32 1.0, %v1869_v38  ;;  %v893_v16 = vmul.f32 0.7978846, %v829_v10  ;;  %v586_v31 = vmul.f32 0.5, %v2295_v63 }
  0xda   :  { %v1050_v49 = vmul.f32 %v986_v39, %v538_v5  ;;  %v795_v52 = vadd.f32 %v731_v34, %v2311_v20  ;;  %v699_v53 = vmul.f32 %v2346_v59, %v2318_v60  ;;  %v2444_v61 = vadd.f32 %v2123_v37, %v398_v13 }
  0xdb   :  { %1281 = vadd.xlane.f32.xlu0 %v1165_v3  ;;  %v1052_v29 = vmul.f32 %v988_v42, %v540_v8  ;;  %1874 = vtanh.f32 %v893_v16  ;;  %v686_v40 = vmul.f32 %v622_v15, %v2414_v55  ;;  %v2448_v1 = vadd.f32 %v2123_v37, %v438_v44  ;;  %v515_v8 = vpop.f32.mrf.mxu3 }
  0xdc   :  { %v1871_v56 = vpop.eup %1870  ;;  %v573_v47 = vmul.f32 0.5, %v2379_v36  ;;  %v859_v51 = vmul.f32 0.7978846, %v795_v52  ;;  %v763_v59 = vmul.f32 %v699_v53, %v2318_v60  ;;  %v2453_v6 = vmul.f32 0.044715, %v2436_v54 }
  0xdd   :  { %v478_v62 = vpop.f32.mrf.mxu2  ;;  %v1118_v19 = vmul.f32 %v2169_v27, %v1050_v49  ;;  %v1002_v7 = vadd.f32 1.0, %v1871_v56  ;;  %v539_v9 = vmul.f32 0.5, %v2311_v20  ;;  %v1120_v13 = vmul.f32 %v2169_v27, %v1052_v29 }
  0xde   :  { %v400_v2 = vpop.f32.mrf.mxu0  ;;  %v440_v63 = vpop.f32.mrf.mxu1  ;;  %1876 = vtanh.f32 %v859_v51  ;;  %v827_v44 = vadd.f32 %v763_v59, %v2318_v60  ;;  %v750_v17 = vmul.f32 %v686_v40, %v2414_v55  ;;  %v607_v36 = vmul.f32 0.044715, %v2444_v61 }
  0xdf   :  { %v1873_v12 = vpop.eup %1872  ;;  %1187 = vadd.xlane.f32.xlu2 %v1118_v19  ;;  %v1066_v22 = vmul.f32 %v1002_v7, %v554_v24  ;;  %v2462_v25 = vadd.f32 %v2123_v37, %v513_v50  ;;  %v2465_v26 = vmul.f32 0.044715, %v2448_v1  ;;  %v715_v46 = vmul.f32 %v2351_v0, %v2322_v33 }
  0xe0   :  { %v1034_v23 = vadd.f32 1.0, %v1873_v12  ;;  %1191 = vadd.xlane.f32.xlu1 %v1120_v13  ;;  %v891_v20 = vmul.f32 0.7978846, %v827_v44  ;;  %v814_v5 = vadd.f32 %v750_v17, %v2414_v55  ;;  %v2471_v18 = vadd.f32 %v2123_v37, %v478_v62 }
  0xe1   :  { %v1875_v30 = vpop.eup %1874  ;;  %v1134_v15 = vmul.f32 %v2169_v27, %v1066_v22  ;;  %v2475_v50 = vadd.f32 %v2123_v37, %v400_v2  ;;  %v779_v38 = vmul.f32 %v715_v46, %v2322_v33  ;;  %v2479_v39 = vadd.f32 %v2123_v37, %v440_v63 }
  0xe2   :  { %v1098_v41 = vmul.f32 %v1034_v23, %v586_v31  ;;  %v1021_v24 = vadd.f32 1.0, %v1875_v30  ;;  %1878 = vtanh.f32 %v891_v20  ;;  %v878_v10 = vmul.f32 0.7978846, %v814_v5 }
  0xe3   :  { %1219 = vadd.xlane.f32.xlu0 %v1134_v15  ;;  %v2482_v34 = vmul.f32 0.044715, %v2462_v25  ;;  %v571_v3 = vmul.f32 0.5, %v2318_v60  ;;  %v684_v42 = vmul.f32 %v2355_v28, %v2333_v21  ;;  %v558_v53 = vmul.f32 0.5, %v2414_v55  ;;  %v518_v46 = vpop.f32.mrf.mxu3 }
  0xe4   :  { %v1877_v16 = vpop.eup %1876  ;;  %v1085_v49 = vmul.f32 %v1021_v24, %v573_v47  ;;  %1880 = vtanh.f32 %v878_v10  ;;  %v843_v62 = vadd.f32 %v779_v38, %v2322_v33  ;;  %v2490_v29 = vmul.f32 0.044715, %v2471_v18 }
  0xe5   :  { %v480_v0 = vpop.f32.mrf.mxu2  ;;  %v1166_v40 = vmul.f32 %v2169_v27, %v1098_v41  ;;  %v987_v56 = vadd.f32 1.0, %v1877_v16  ;;  %v748_v60 = vmul.f32 %v684_v42, %v2333_v21  ;;  %v2495_v2 = vmul.f32 0.044715, %v2475_v50 }
  0xe6   :  { %v403_v31 = vpop.f32.mrf.mxu0  ;;  %v443_v52 = vpop.f32.mrf.mxu1  ;;  %v1153_v28 = vmul.f32 %v2169_v27, %v1085_v49  ;;  %v907_v63 = vmul.f32 0.7978846, %v843_v62  ;;  %v671_v47 = vmul.f32 %v607_v36, %v2444_v61  ;;  %v2500_v55 = vmul.f32 0.044715, %v2479_v39 }
  0xe7   :  { %1283 = vadd.xlane.f32.xlu2 %v1166_v40  ;;  %v1051_v51 = vmul.f32 %v987_v56, %v539_v9  ;;  %v587_v59 = vmul.f32 0.5, %v2322_v33  ;;  %v812_v19 = vadd.f32 %v748_v60, %v2333_v21  ;;  %v2505_v12 = vadd.f32 %v2123_v37, %v480_v0 }
  0xe8   :  { %v1879_v7 = vpop.eup %1878  ;;  %1257 = vadd.xlane.f32.xlu1 %v1153_v28  ;;  %1882 = vtanh.f32 %v907_v63  ;;  %v735_v13 = vmul.f32 %v671_v47, %v2444_v61  ;;  %v700_v44 = vmul.f32 %v2392_v43, %v2364_v11  ;;  %v2512_v9 = vadd.f32 %v2123_v37, %v515_v8 }
  0xe9   :  { %v1119_v17 = vmul.f32 %v2169_v27, %v1051_v51  ;;  %v1019_v36 = vadd.f32 1.0, %v1879_v7  ;;  %v876_v33 = vmul.f32 0.7978846, %v812_v19  ;;  %v2515_v23 = vadd.f32 %v2123_v37, %v403_v31 }
  0xea   :  { %v1881_v22 = vpop.eup %1880  ;;  %v799_v20 = vadd.f32 %v735_v13, %v2444_v61  ;;  %v764_v5 = vmul.f32 %v700_v44, %v2364_v11  ;;  %v716_v30 = vmul.f32 %v2399_v58, %v2376_v32  ;;  %v2522_v43 = vadd.f32 %v2123_v37, %v443_v52  ;;  %v2549_v13 = vld [vmem:[%s3096_s2] ss:$0 sm:$0xff] }
  0xeb   :  { %1189 = vadd.xlane.f32.xlu0 %v1119_v17  ;;  %v1083_v8 = vmul.f32 %v1019_v36, %v571_v3  ;;  %v1006_v41 = vadd.f32 1.0, %v1881_v22  ;;  %1884 = vtanh.f32 %v876_v33  ;;  %v640_v24 = vmul.f32 0.044715, %v2505_v12 }
  0xec   :  { %v863_v38 = vmul.f32 0.7978846, %v799_v20  ;;  %v828_v0 = vadd.f32 %v764_v5, %v2364_v11  ;;  %v780_v42 = vmul.f32 %v716_v30, %v2376_v32  ;;  %v2529_v58 = vmul.f32 0.044715, %v2512_v9 }
  0xed   :  { %v483_v15 = vpop.f32.mrf.mxu2  ;;  %v1151_v16 = vmul.f32 %v2169_v27, %v1083_v8  ;;  %v1070_v49 = vmul.f32 %v1006_v41, %v558_v53  ;;  %v556_v31 = vmul.f32 0.5, %v2333_v21  ;;  %v543_v62 = vmul.f32 0.5, %v2444_v61 }
  0xee   :  { %v405_v10 = vpop.f32.mrf.mxu0  ;;  %v1883_v52 = vpop.eup %1882  ;;  %1886 = vtanh.f32 %v863_v38  ;;  %v892_v40 = vmul.f32 0.7978846, %v828_v0  ;;  %v844_v56 = vadd.f32 %v780_v42, %v2376_v32  ;;  %v2535_v60 = vmul.f32 0.044715, %v2515_v23 }
  0xef   :  { %v445_v3 = vpop.f32.mrf.mxu1  ;;  %v625_v28 = vmul.f32 0.044715, %v2522_v43  ;;  %1253 = vadd.xlane.f32.xlu2 %v1151_v16  ;;  %v1138_v53 = vmul.f32 %v2169_v27, %v1070_v49  ;;  %v1035_v63 = vadd.f32 1.0, %v1883_v52  ;;  %v2540_v21 = vadd.f32 %v2123_v37, %v518_v46 }
  0xf0   :  { %1888 = vtanh.f32 %v892_v40  ;;  %v908_v47 = vmul.f32 0.7978846, %v844_v56  ;;  %v704_v61 = vmul.f32 %v640_v24, %v2505_v12  ;;  %v2544_v19 = vadd.f32 %v2123_v37, %v483_v15  ;;  %v520_v24 = vpop.f32.mrf.mxu3 }
  0xf1   :  { %v1885_v51 = vpop.eup %1884  ;;  %1227 = vadd.xlane.f32.xlu1 %v1138_v53  ;;  %v1099_v7 = vmul.f32 %v1035_v63, %v587_v59  ;;  %v2552_v44 = vadd.f32 %v2549_v13, %v405_v10  ;;  %v685_v17 = vmul.f32 %v2421_v57, %v2395_v45  ;;  %v2557_v36 = vadd.f32 %v2549_v13, %v445_v3 }
  0xf2   :  { %v1004_v33 = vadd.f32 1.0, %v1885_v51  ;;  %1890 = vtanh.f32 %v908_v47  ;;  %v768_v37 = vmul.f32 %v704_v61, %v2505_v12  ;;  %v572_v20 = vmul.f32 0.5, %v2364_v11 }
  0xf3   :  { %v1167_v59 = vmul.f32 %v2169_v27, %v1099_v7  ;;  %v749_v5 = vmul.f32 %v685_v17, %v2395_v45  ;;  %v669_v46 = vmul.f32 %v2405_v14, %v2383_v35  ;;  %v2566_v57 = vmul.f32 0.044715, %v2540_v21 }
  0xf4   :  { %v1887_v30 = vpop.eup %1886  ;;  %v1068_v15 = vmul.f32 %v1004_v33, %v556_v31  ;;  %v588_v8 = vmul.f32 0.5, %v2376_v32  ;;  %v832_v41 = vadd.f32 %v768_v37, %v2505_v12  ;;  %v2571_v10 = vmul.f32 0.044715, %v2544_v19 }
  0xf5   :  { %v485_v22 = vpop.f32.mrf.mxu2  ;;  %1285 = vadd.xlane.f32.xlu0 %v1167_v59  ;;  %v610_v11 = vmul.f32 0.044715, %v2552_v44  ;;  %v991_v38 = vadd.f32 1.0, %v1887_v30  ;;  %v813_v14 = vadd.f32 %v749_v5, %v2395_v45  ;;  %v2576_v16 = vmul.f32 0.044715, %v2557_v36 }
  0xf6   :  { %v408_v0 = vpop.f32.mrf.mxu0  ;;  %v1889_v42 = vpop.eup %1888  ;;  %v1136_v49 = vmul.f32 %v2169_v27, %v1068_v15  ;;  %v896_v32 = vmul.f32 0.7978846, %v832_v41  ;;  %v733_v31 = vmul.f32 %v669_v46, %v2383_v35  ;;  %v576_v40 = vmul.f32 0.5, %v2505_v12 }
  0xf7   :  { %v1055_v52 = vmul.f32 %v991_v38, %v543_v62  ;;  %v1020_v3 = vadd.f32 1.0, %v1889_v42  ;;  %v2582_v56 = vadd.f32 %v2549_v13, %v520_v24  ;;  %v448_v63 = vpop.f32.mrf.mxu1  ;;  %v877_v47 = vmul.f32 0.7978846, %v813_v14 }
  0xf8   :  { %v1891_v53 = vpop.eup %1890  ;;  %1223 = vadd.xlane.f32.xlu2 %v1136_v49  ;;  %1892 = vtanh.f32 %v896_v32  ;;  %v797_v61 = vadd.f32 %v733_v31, %v2383_v35  ;;  %v689_v51 = vmul.f32 %v625_v28, %v2522_v43  ;;  %v2587_v7 = vadd.f32 %v2549_v13, %v485_v22 }
  0xf9   :  { %v1123_v62 = vmul.f32 %v2169_v27, %v1055_v52  ;;  %v1084_v17 = vmul.f32 %v1020_v3, %v572_v20  ;;  %v1036_v33 = vadd.f32 1.0, %v1891_v53  ;;  %1894 = vtanh.f32 %v877_v47 }
  0xfa   :  { %v861_v12 = vmul.f32 0.7978846, %v797_v61  ;;  %v753_v37 = vmul.f32 %v689_v51, %v2522_v43  ;;  %v670_v59 = vmul.f32 %v2432_v48, %v2411_v4  ;;  %v2595_v46 = vadd.f32 %v2549_v13, %v408_v0 }
  0xfb   :  { %1197 = vadd.xlane.f32.xlu1 %v1123_v62  ;;  %v1152_v5 = vmul.f32 %v2169_v27, %v1084_v17  ;;  %v2598_v28 = vadd.f32 %v2549_v13, %v448_v63  ;;  %v1100_v22 = vmul.f32 %v1036_v33, %v588_v8  ;;  %v557_v20 = vmul.f32 0.5, %v2395_v45  ;;  %v2614_v45 = vld [vmem:[%s3097_s3] ss:$0 sm:$0xff]  ;;  %v523_v63 = vpop.f32.mrf.mxu3 }
  0xfc   :  { %1896 = vtanh.f32 %v861_v12  ;;  %v817_v15 = vadd.f32 %v753_v37, %v2522_v43  ;;  %v734_v41 = vmul.f32 %v670_v59, %v2411_v4  ;;  %v2604_v48 = vmul.f32 0.044715, %v2587_v7 }
  0xfd   :  { %v488_v30 = vpop.f32.mrf.mxu2  ;;  %1255 = vadd.xlane.f32.xlu0 %v1152_v5  ;;  %v2607_v27 = vmul.f32 0.044715, %v2582_v56  ;;  %v541_v24 = vmul.f32 0.5, %v2383_v35  ;;  %v561_v38 = vmul.f32 0.5, %v2522_v43  ;;  %v1168_v0 = vmul.f32 %v2614_v45, %v1100_v22 }
  0xfe   :  { %v1893_v8 = vpop.eup %1892  ;;  %v881_v14 = vmul.f32 0.7978846, %v817_v15  ;;  %v798_v42 = vadd.f32 %v734_v41, %v2411_v4  ;;  %v702_v49 = vmul.f32 %v2453_v6, %v2436_v54  ;;  %v2621_v32 = vmul.f32 0.044715, %v2595_v46  ;;  %v410_v52 = vpop.f32.mrf.mxu0 }
  0xff   :  { %v2624_v35 = vmul.f32 0.044715, %v2598_v28  ;;  %v2627_v43 = vadd.f32 %v2549_v13, %v488_v30  ;;  %v1024_v31 = vadd.f32 1.0, %v1893_v8  ;;  %v1895_v3 = vpop.eup %1894  ;;  %v674_v6 = vmul.f32 %v610_v11, %v2552_v44  ;;  %v450_v37 = vpop.f32.mrf.mxu1 }
 0x100   :  { %1287 = vadd.xlane.f32.xlu2 %v1168_v0  ;;  %1898 = vtanh.f32 %v881_v14  ;;  %v862_v53 = vmul.f32 0.7978846, %v798_v42  ;;  %v766_v47 = vmul.f32 %v702_v49, %v2436_v54  ;;  %v1005_v51 = vadd.f32 1.0, %v1895_v3 }
 0x101   :  { %v1088_v61 = vmul.f32 %v1024_v31, %v576_v40  ;;  %v2632_v62 = vadd.f32 %v2549_v13, %v523_v63  ;;  %v703_v17 = vmul.f32 %v2490_v29, %v2471_v18  ;;  %v2637_v12 = vadd.f32 %v2549_v13, %v410_v52 }
 0x102   :  { %v1897_v33 = vpop.eup %1896  ;;  %1900 = vtanh.f32 %v862_v53  ;;  %v830_v59 = vadd.f32 %v766_v47, %v2436_v54  ;;  %v738_v5 = vmul.f32 %v674_v6, %v2552_v44  ;;  %v1069_v40 = vmul.f32 %v1005_v51, %v557_v20  ;;  %v2659_v47 = vpop.permute.xlu1 %1309 }
 0x103   :  { %v1156_v11 = vmul.f32 %v2614_v45, %v1088_v61  ;;  %v989_v22 = vadd.f32 1.0, %v1897_v33  ;;  %v767_v30 = vmul.f32 %v703_v17, %v2471_v18  ;;  %v643_v15 = vmul.f32 0.044715, %v2627_v43 }
 0x104   :  { %v542_v29 = vmul.f32 0.5, %v2411_v4  ;;  %v894_v41 = vmul.f32 0.7978846, %v830_v59  ;;  %v802_v8 = vadd.f32 %v738_v5, %v2552_v44  ;;  %v1137_v0 = vmul.f32 %v2614_v45, %v1069_v40  ;;  %v525_v5 = vpop.f32.mrf.mxu3 }
 0x105   :  { %1263 = vadd.xlane.f32.xlu1 %v1156_v11  ;;  %v2648_v14 = vadd.f32 %v2549_v13, %v450_v37  ;;  %v1053_v42 = vmul.f32 %v989_v22, %v541_v24  ;;  %v831_v49 = vadd.f32 %v767_v30, %v2471_v18  ;;  %v2652_v31 = vmul.f32 0.044715, %v2632_v62 }
 0x106   :  { %v1899_v20 = vpop.eup %1898  ;;  %v574_v52 = vmul.f32 0.5, %v2436_v54  ;;  %1902 = vtanh.f32 %v894_v41  ;;  %v866_v4 = vmul.f32 0.7978846, %v802_v8  ;;  %1225 = vadd.xlane.f32.xlu0 %v1137_v0  ;;  %v2656_v3 = vmul.f32 0.044715, %v2637_v12 }
 0x107   :  { %v1121_v53 = vmul.f32 %v2614_v45, %v1053_v42  ;;  %v1009_v63 = vadd.f32 1.0, %v1899_v20  ;;  %v895_v24 = vmul.f32 0.7978846, %v831_v49  ;;  %v1440_v61 = vlaneseq }
 0x108   :  { %v1901_v6 = vpop.eup %1900  ;;  %1904 = vtanh.f32 %v866_v4  ;;  %v687_v51 = vmul.f32 %v2465_v26, %v2448_v1  ;;  %v707_v54 = vmul.f32 %v643_v15, %v2627_v43  ;;  %v628_v17 = vmul.f32 0.044715, %v2648_v14 }
 0x109   :  { %1193 = vadd.xlane.f32.xlu2 %v1121_v53  ;;  %v1073_v33 = vmul.f32 %v1009_v63, %v561_v38  ;;  %v990_v37 = vadd.f32 1.0, %v1901_v6  ;;  %1906 = vtanh.f32 %v895_v24  ;;  %v546_v59 = vmul.f32 0.5, %v2552_v44  ;;  %v490_v44 = vpop.f32.mrf.mxu2 }
 0x10a   :  { %v751_v11 = vmul.f32 %v687_v51, %v2448_v1  ;;  %v771_v40 = vmul.f32 %v707_v54, %v2627_v43  ;;  %v688_v22 = vmul.f32 %v2500_v55, %v2479_v39  ;;  %v575_v15 = vmul.f32 0.5, %v2471_v18 }
 0x10b   :  { %v1141_v26 = vmul.f32 %v2614_v45, %v1073_v33  ;;  %v1054_v30 = vmul.f32 %v990_v37, %v542_v29  ;;  %v672_v38 = vmul.f32 %v2495_v2, %v2475_v50  ;;  %v2674_v8 = vand.u32 127, %v1440_v61 }
 0x10c   :  { %v1903_v41 = vpop.eup %1902  ;;  %v815_v0 = vadd.f32 %v751_v11, %v2448_v1  ;;  %v835_v42 = vadd.f32 %v771_v40, %v2627_v43  ;;  %v752_v49 = vmul.f32 %v688_v22, %v2479_v39  ;;  %v2681_v29 = vadd.f32 %v2549_v13, %v525_v5 }
 0x10d   :  { %1233 = vadd.xlane.f32.xlu1 %v1141_v26  ;;  %v1122_v55 = vmul.f32 %v2614_v45, %v1054_v30  ;;  %v1022_v20 = vadd.f32 1.0, %v1903_v41  ;;  %v736_v18 = vmul.f32 %v672_v38, %v2475_v50  ;;  %v692_v24 = vmul.f32 %v628_v17, %v2648_v14 }
 0x10e   :  { %v1905_v2 = vpop.eup %1904  ;;  %v879_v4 = vmul.f32 0.7978846, %v815_v0  ;;  %v899_v53 = vmul.f32 0.7978846, %v835_v42  ;;  %v816_v63 = vadd.f32 %v752_v49, %v2479_v39  ;;  %v2687_v54 = vadd.f32 %v2549_v13, %v490_v44 }
 0x10f   :  { %v1907_v6 = vpop.eup %1906  ;;  %1195 = vadd.xlane.f32.xlu0 %v1122_v55  ;;  %v1086_v61 = vmul.f32 %v1022_v20, %v574_v52  ;;  %v994_v51 = vadd.f32 1.0, %v1905_v2  ;;  %v800_v33 = vadd.f32 %v736_v18, %v2475_v50  ;;  %v756_v11 = vmul.f32 %v692_v24, %v2648_v14  ;;  %v528_v55 = vpop.f32.mrf.mxu3 }
 0x110   :  { %v1023_v37 = vadd.f32 1.0, %v1907_v6  ;;  %1908 = vtanh.f32 %v879_v4  ;;  %v880_v5 = vmul.f32 0.7978846, %v816_v63  ;;  %v2693_v52 = vmul.f32 0.044715, %v2681_v29 }
 0x111   :  { %v1154_v40 = vmul.f32 %v2614_v45, %v1086_v61  ;;  %v1058_v22 = vmul.f32 %v994_v51, %v546_v59  ;;  %1910 = vtanh.f32 %v899_v53  ;;  %v864_v17 = vmul.f32 0.7978846, %v800_v33 }
 0x112   :  { %v1087_v30 = vmul.f32 %v1023_v37, %v575_v15  ;;  %1912 = vtanh.f32 %v880_v5  ;;  %v820_v41 = vadd.f32 %v756_v11, %v2648_v14  ;;  %v559_v0 = vmul.f32 0.5, %v2448_v1 }
 0x113   :  { %v1210_v26 = vpop.xlane.xlu1 %1209  ;;  %1259 = vadd.xlane.f32.xlu2 %v1154_v40  ;;  %v1126_v44 = vmul.f32 %v2614_v45, %v1058_v22  ;;  %1914 = vtanh.f32 %v864_v17  ;;  %v673_v59 = vmul.f32 %v2535_v60, %v2515_v23  ;;  %v579_v15 = vmul.f32 0.5, %v2627_v43 }
 0x114   :  { %v1178_v38 = vpop.xlane.xlu0 %1177  ;;  %v2701_v42 = vadd.f32 %v2659_v47, %v1210_v26  ;;  %v560_v49 = vmul.f32 0.5, %v2479_v39  ;;  %v884_v20 = vmul.f32 0.7978846, %v820_v41  ;;  %v1155_v18 = vmul.f32 %v2614_v45, %v1087_v30 }
 0x115   :  { %1203 = vadd.xlane.f32.xlu1 %v1126_v44  ;;  %v2707_v2 = vadd.f32 %v2659_v47, %v1178_v38  ;;  %v2710_v1 = vadd.f32 %v2549_v13, %v528_v55  ;;  %v737_v60 = vmul.f32 %v673_v59, %v2515_v23  ;;  %v544_v53 = vmul.f32 0.5, %v2475_v50 }
 0x116   :  { %v1909_v4 = vpop.eup %1908  ;;  %v564_v43 = vmul.f32 0.5, %v2648_v14  ;;  %1916 = vtanh.f32 %v884_v20  ;;  %v705_v39 = vmul.f32 %v2571_v10, %v2544_v19  ;;  %v2718_v6 = vmul.f32 0.5, %v2515_v23 }
 0x117   :  { %v1911_v63 = vpop.eup %1910  ;;  %1261 = vadd.xlane.f32.xlu0 %v1155_v18  ;;  %v1007_v24 = vadd.f32 1.0, %v1909_v4  ;;  %v801_v61 = vadd.f32 %v737_v60, %v2515_v23  ;;  %v717_v51 = vmul.f32 %v2482_v34, %v2462_v25  ;;  %v1503_v50 = vperm.slane %v2701_v42, %v2674_v8 }
 0x118   :  { %v1913_v33 = vpop.eup %1912  ;;  %v1027_v14 = vadd.f32 1.0, %v1911_v63  ;;  %v2726_v5 = vadd.s32 4294967288, %v2674_v8  ;;  %v769_v10 = vmul.f32 %v705_v39, %v2544_v19  ;;  %v1442_v40 = vperm.slane %v2707_v2, %v2674_v8 }
 0x119   :  { %v1915_v11 = vpop.eup %1914  ;;  %v1071_v22 = vmul.f32 %v1007_v24, %v559_v0  ;;  %v1008_v23 = vadd.f32 1.0, %v1913_v33  ;;  %v865_v26 = vmul.f32 0.7978846, %v801_v61  ;;  %v781_v41 = vmul.f32 %v717_v51, %v2462_v25 }
 0x11a   :  { %v1242_v37 = vpop.xlane.xlu2 %1241  ;;  %v1091_v17 = vmul.f32 %v1027_v14, %v579_v15  ;;  %v992_v30 = vadd.f32 1.0, %v1915_v11  ;;  %v833_v38 = vadd.f32 %v769_v10, %v2544_v19  ;;  %v2735_v55 = vadd.s32 4294967280, %v2674_v8 }
 0x11b   :  { %v1139_v44 = vmul.f32 %v2614_v45, %v1071_v22  ;;  %v1072_v59 = vmul.f32 %v1008_v23, %v560_v49  ;;  %v2739_v0 = vadd.f32 %v2659_v47, %v1242_v37  ;;  %1918 = vtanh.f32 %v865_v26 }
 0x11c   :  { %v1274_v34 = vpop.xlane.xlu0 %1273  ;;  %v1917_v20 = vpop.eup %1916  ;;  %v1159_v18 = vmul.f32 %v2614_v45, %v1091_v17  ;;  %v897_v15 = vmul.f32 0.7978846, %v833_v38  ;;  %v1056_v4 = vmul.f32 %v992_v30, %v544_v53  ;;  %v845_v63 = vadd.f32 %v781_v41, %v2462_v25 }
 0x11d   :  { %1229 = vadd.xlane.f32.xlu2 %v1139_v44  ;;  %v1140_v60 = vmul.f32 %v2614_v45, %v1072_v59  ;;  %v1012_v39 = vadd.f32 1.0, %v1917_v20  ;;  %v577_v49 = vmul.f32 0.5, %v2544_v19  ;;  %v589_v24 = vmul.f32 0.5, %v2462_v25 }
 0x11e   :  { %1269 = vadd.xlane.f32.xlu1 %v1159_v18  ;;  %1920 = vtanh.f32 %v897_v15  ;;  %v706_v61 = vmul.f32 %v2604_v48, %v2587_v7  ;;  %v909_v33 = vmul.f32 0.7978846, %v845_v63  ;;  %v2748_v14 = vmul.f32 0.5, %v2587_v7 }
 0x11f   :  { %1231 = vadd.xlane.f32.xlu0 %v1140_v60  ;;  %v1076_v51 = vmul.f32 %v1012_v39, %v564_v43  ;;  %v690_v53 = vmul.f32 %v2576_v16, %v2557_v36  ;;  %v1534_v37 = vperm.slane %v2739_v0, %v2674_v8  ;;  %v2755_v19 = vadd.f32 %v2659_v47, %v1274_v34 }
 0x120   :  { %v770_v25 = vmul.f32 %v706_v61, %v2587_v7  ;;  %v691_v48 = vmul.f32 %v2624_v35, %v2598_v28  ;;  %v1124_v43 = vmul.f32 %v2614_v45, %v1056_v4  ;;  %1922 = vtanh.f32 %v909_v33 }
 0x121   :  { %v754_v22 = vmul.f32 %v690_v53, %v2557_v36  ;;  %v1919_v16 = vpop.eup %1918  ;;  %v1144_v23 = vmul.f32 %v2614_v45, %v1076_v51  ;;  %v675_v60 = vmul.f32 %v2621_v32, %v2595_v46  ;;  %v1565_v32 = vperm.slane %v2755_v19, %v2674_v8 }
 0x122   :  { %v1212_v10 = vpop.xlane.xlu2 %1211  ;;  %v834_v34 = vadd.f32 %v770_v25, %v2587_v7  ;;  %v755_v30 = vmul.f32 %v691_v48, %v2598_v28  ;;  %v993_v38 = vadd.f32 1.0, %v1919_v16  ;;  %v676_v2 = vmul.f32 %v2656_v3, %v2637_v12 }
 0x123   :  { %v1329_v11 = vadd.f32 %v2659_v47, %v1212_v10  ;;  %v1182_v26 = vpop.xlane.xlu1 %1181  ;;  %v818_v18 = vadd.f32 %v754_v22, %v2557_v36 }
 0x124   :  { %v1180_v17 = vpop.xlane.xlu0 %1179  ;;  %v1314_v41 = vadd.f32 %v2659_v47, %v1182_v26  ;;  %v1921_v59 = vpop.eup %1920  ;;  %v898_v20 = vmul.f32 0.7978846, %v834_v34  ;;  %v819_v15 = vadd.f32 %v755_v30, %v2598_v28  ;;  %v1057_v7 = vmul.f32 %v993_v38, %v2718_v6 }
 0x125   :  { %v1504_v35 = vperm.slane %v1329_v11, %v2726_v5  ;;  %v1313_v44 = vadd.f32 %v2659_v47, %v1180_v17  ;;  %1199 = vadd.xlane.f32.xlu2 %v1124_v43  ;;  %v1025_v61 = vadd.f32 1.0, %v1921_v59  ;;  %v882_v51 = vmul.f32 0.7978846, %v818_v18 }
 0x126   :  { %v1448_v39 = vperm.slane %v1314_v41, %v2735_v55  ;;  %1239 = vadd.xlane.f32.xlu1 %v1144_v23  ;;  %1924 = vtanh.f32 %v898_v20  ;;  %v883_v33 = vmul.f32 0.7978846, %v819_v15  ;;  %v1923_v53 = vpop.eup %1922  ;;  %v1125_v6 = vmul.f32 %v2614_v45, %v1057_v7 }
 0x127   :  { %v2778_v4 = vsel %vm1445_vm1, %v1504_v35, %v1503_v50  ;;  %v1444_v63 = vperm.slane %v1313_v44, %v2726_v5  ;;  %v739_v50 = vmul.f32 %v675_v60, %v2595_v46  ;;  %v1089_v10 = vmul.f32 %v1025_v61, %v577_v49 }
 0x128   :  { %v1037_v25 = vadd.f32 1.0, %v1923_v53  ;;  %1926 = vtanh.f32 %v882_v51  ;;  %1201 = vadd.xlane.f32.xlu0 %v1125_v6  ;;  %v562_v23 = vmul.f32 0.5, %v2557_v36  ;;  %v719_v26 = vmul.f32 %v2566_v57, %v2540_v21 }
 0x129   :  { %v1446_v42 = vsel %vm1445_vm1, %v1444_v63, %v1442_v40  ;;  %1928 = vtanh.f32 %v883_v33  ;;  %v803_v19 = vadd.f32 %v739_v50, %v2595_v46  ;;  %v1157_v40 = vmul.f32 %v2614_v45, %v1089_v10 }
 0x12a   :  { %v1276_v48 = vpop.xlane.xlu2 %1275  ;;  %v2791_v43 = vsel %vm1449_vm2, %v1448_v39, %v1446_v42  ;;  %v1101_v22 = vmul.f32 %v1037_v25, %v589_v24  ;;  %v563_v41 = vmul.f32 0.5, %v2598_v28  ;;  %v740_v24 = vmul.f32 %v676_v2, %v2637_v12  ;;  %v530_v39 = vpop.f32.mrf.mxu3 }
 0x12b   :  { %v1361_v11 = vadd.f32 %v2659_v47, %v1276_v48  ;;  %v1246_v16 = vpop.xlane.xlu1 %1245  ;;  %v867_v38 = vmul.f32 0.7978846, %v803_v19  ;;  %v783_v44 = vmul.f32 %v719_v26, %v2540_v21  ;;  %v718_v60 = vmul.f32 %v2529_v58, %v2512_v9 }
 0x12c   :  { %v1244_v49 = vpop.xlane.xlu0 %1243  ;;  %v1346_v34 = vadd.f32 %v2659_v47, %v1246_v16  ;;  %v1925_v35 = vpop.eup %1924  ;;  %v1169_v3 = vmul.f32 %v2614_v45, %v1101_v22  ;;  %v804_v15 = vadd.f32 %v740_v24, %v2637_v12  ;;  %v2823_v51 = vadd.s32 4294967272, %v2674_v8 }
 0x12d   :  { %v1566_v17 = vperm.slane %v1361_v11, %v2726_v5  ;;  %v1345_v30 = vadd.f32 %v2659_v47, %v1244_v49  ;;  %1265 = vadd.xlane.f32.xlu2 %v1157_v40  ;;  %v1026_v36 = vadd.f32 1.0, %v1925_v35  ;;  %1930 = vtanh.f32 %v867_v38 }
 0x12e   :  { %v1537_v59 = vperm.slane %v1346_v34, %v2735_v55  ;;  %v1927_v18 = vpop.eup %1926  ;;  %1289 = vadd.xlane.f32.xlu1 %v1169_v3  ;;  %v847_v28 = vadd.f32 %v783_v44, %v2540_v21  ;;  %v868_v6 = vmul.f32 0.7978846, %v804_v15  ;;  %v782_v10 = vmul.f32 %v718_v60, %v2512_v9 }
 0x12f   :  { %v2809_v57 = vsel %vm1445_vm1, %v1566_v17, %v1565_v32  ;;  %v1535_v20 = vperm.slane %v1345_v30, %v2726_v5  ;;  %v1929_v7 = vpop.eup %1928  ;;  %v1090_v63 = vmul.f32 %v1026_v36, %v2748_v14  ;;  %v1010_v5 = vadd.f32 1.0, %v1927_v18 }
 0x130   :  { %v1011_v33 = vadd.f32 1.0, %v1929_v7  ;;  %v911_v42 = vmul.f32 0.7978846, %v847_v28  ;;  %v2830_v0 = vadd.f32 %v2549_v13, %v530_v39  ;;  %v547_v25 = vmul.f32 0.5, %v2595_v46 }
 0x131   :  { %v1536_v61 = vsel %vm1445_vm1, %v1535_v20, %v1534_v37  ;;  %v1158_v58 = vmul.f32 %v2614_v45, %v1090_v63  ;;  %v1074_v50 = vmul.f32 %v1010_v5, %v562_v23  ;;  %1932 = vtanh.f32 %v868_v6 }
 0x132   :  { %v1248_v53 = vpop.xlane.xlu2 %1247  ;;  %v1538_v32 = vsel %vm1449_vm2, %v1537_v59, %v1536_v61  ;;  %1934 = vtanh.f32 %v911_v42  ;;  %v644_v40 = vmul.f32 0.044715, %v2687_v54  ;;  %v1075_v22 = vmul.f32 %v1011_v33, %v563_v41 }
 0x133   :  { %v1347_v14 = vadd.f32 %v2659_v47, %v1248_v53  ;;  %v1184_v37 = vpop.xlane.xlu1 %1183  ;;  %1267 = vadd.xlane.f32.xlu0 %v1158_v58  ;;  %v1142_v48 = vmul.f32 %v2614_v45, %v1074_v50  ;;  %v1931_v2 = vpop.eup %1930  ;;  %v846_v13 = vadd.f32 %v782_v10, %v2512_v9  ;;  %v721_v49 = vmul.f32 %v2652_v31, %v2632_v62 }
 0x134   :  { %v1315_v19 = vadd.f32 %v2659_v47, %v1184_v37  ;;  %v1214_v16 = vpop.xlane.xlu0 %1213  ;;  %v995_v17 = vadd.f32 1.0, %v1931_v2  ;;  %v659_v34 = vmul.f32 0.044715, %v2710_v1  ;;  %v720_v35 = vmul.f32 %v2607_v27, %v2582_v56 }
 0x135   :  { %v1539_v11 = vperm.slane %v1347_v14, %v2823_v51  ;;  %1235 = vadd.xlane.f32.xlu2 %v1142_v48  ;;  %v1330_v26 = vadd.f32 %v2659_v47, %v1214_v16  ;;  %v910_v30 = vmul.f32 0.7978846, %v846_v13  ;;  %v785_v38 = vmul.f32 %v721_v49, %v2632_v62 }
 0x136   :  { %v1452_v23 = vperm.slane %v1315_v19, %v2823_v51  ;;  %v2850_v3 = vmul.f32 0.044715, %v2830_v0  ;;  %v1059_v24 = vmul.f32 %v995_v17, %v547_v25  ;;  %v548_v36 = vmul.f32 0.5, %v2637_v12 }
 0x137   :  { %v2841_v46 = vsel %vm1453_vm3, %v1539_v11, %v1538_v32  ;;  %v1506_v41 = vperm.slane %v1330_v26, %v2735_v55  ;;  %v1933_v44 = vpop.eup %1932  ;;  %1936 = vtanh.f32 %v910_v30  ;;  %v849_v20 = vadd.f32 %v785_v38, %v2632_v62 }
 0x138   :  { %v2854_v31 = vsel %vm1453_vm3, %v1452_v23, %v2791_v43  ;;  %v784_v18 = vmul.f32 %v720_v35, %v2582_v56  ;;  %v1935_v27 = vpop.eup %1934  ;;  %v1143_v15 = vmul.f32 %v2614_v45, %v1075_v22  ;;  %v996_v43 = vadd.f32 1.0, %v1933_v44 }
 0x139   :  { %v1507_v28 = vsel %vm1449_vm2, %v1506_v41, %v2778_v4  ;;  %v591_v60 = vmul.f32 0.5, %v2540_v21  ;;  %v913_v63 = vmul.f32 0.7978846, %v849_v20  ;;  %v708_v61 = vmul.f32 %v644_v40, %v2687_v54 }
 0x13a   :  { %v1280_v59 = vpop.xlane.xlu2 %1279  ;;  %v848_v12 = vadd.f32 %v784_v18, %v2582_v56  ;;  %v1127_v5 = vmul.f32 %v2614_v45, %v1059_v24  ;;  %v1039_v53 = vadd.f32 1.0, %v1935_v27  ;;  %v590_v32 = vmul.f32 0.5, %v2512_v9 }
 0x13b   :  { %v1363_v7 = vadd.f32 %v2659_v47, %v1280_v59  ;;  %v1216_v39 = vpop.xlane.xlu1 %1215  ;;  %1237 = vadd.xlane.f32.xlu0 %v1143_v15  ;;  %v1060_v4 = vmul.f32 %v996_v43, %v548_v36  ;;  %1938 = vtanh.f32 %v913_v63  ;;  %v772_v42 = vmul.f32 %v708_v61, %v2687_v54 }
 0x13c   :  { %v1331_v33 = vadd.f32 %v2659_v47, %v1216_v39  ;;  %v1278_v6 = vpop.xlane.xlu0 %1277  ;;  %v912_v21 = vmul.f32 0.7978846, %v848_v12  ;;  %v2874_v14 = vadd.s32 4294967264, %v2674_v8  ;;  %v722_v10 = vmul.f32 %v2693_v52, %v2681_v29 }
 0x13d   :  { %1205 = vadd.xlane.f32.xlu2 %v1127_v5  ;;  %v1362_v50 = vadd.f32 %v2659_v47, %v1278_v6  ;;  %v1937_v37 = vpop.eup %1936  ;;  %v1570_v9 = vperm.slane %v1363_v7, %v2823_v51  ;;  %v2880_v25 = vadd.s32 4294967256, %v2674_v8  ;;  %v836_v48 = vadd.f32 %v772_v42, %v2687_v54 }
 0x13e   :  { %v1508_v58 = vperm.slane %v1331_v33, %v2823_v51  ;;  %v1103_v2 = vmul.f32 %v1039_v53, %v591_v60  ;;  %v786_v40 = vmul.f32 %v722_v10, %v2681_v29  ;;  %v1128_v22 = vmul.f32 %v2614_v45, %v1060_v4 }
 0x13f   :  { %v1568_v19 = vperm.slane %v1362_v50, %v2735_v55  ;;  %1940 = vtanh.f32 %v912_v21  ;;  %v900_v52 = vmul.f32 0.7978846, %v836_v48  ;;  %v723_v51 = vmul.f32 %v659_v34, %v2710_v1 }
 0x140   :  { %v1509_v11 = vsel %vm1453_vm3, %v1508_v58, %v1507_v28  ;;  %v1038_v49 = vadd.f32 1.0, %v1937_v37  ;;  %v850_v26 = vadd.f32 %v786_v40, %v2681_v29  ;;  %v593_v30 = vmul.f32 0.5, %v2632_v62 }
 0x141   :  { %v1569_v13 = vsel %vm1449_vm2, %v1568_v19, %v2809_v57  ;;  %v1939_v17 = vpop.eup %1938  ;;  %1942 = vtanh.f32 %v900_v52  ;;  %v787_v35 = vmul.f32 %v723_v51, %v2710_v1  ;;  %v1171_v34 = vmul.f32 %v2614_v45, %v1103_v2 }
 0x142   :  { %v1186_v16 = vpop.xlane.xlu2 %1185  ;;  %v1571_v38 = vsel %vm1453_vm3, %v1570_v9, %v1569_v13  ;;  %v1041_v24 = vadd.f32 1.0, %v1939_v17  ;;  %v914_v36 = vmul.f32 0.7978846, %v850_v26  ;;  %v724_v62 = vmul.f32 %v2850_v3, %v2830_v0 }
 0x143   :  { %v1316_v23 = vadd.f32 %v2659_v47, %v1186_v16  ;;  %v1252_v55 = vpop.xlane.xlu1 %1251  ;;  %1207 = vadd.xlane.f32.xlu0 %v1128_v22  ;;  %v851_v59 = vadd.f32 %v787_v35, %v2710_v1  ;;  %v1102_v20 = vmul.f32 %v1038_v49, %v590_v32  ;;  %v592_v61 = vmul.f32 0.5, %v2582_v56 }
 0x144   :  { %v1349_v57 = vadd.f32 %v2659_v47, %v1252_v55  ;;  %v1250_v44 = vpop.xlane.xlu0 %1249  ;;  %v788_v60 = vmul.f32 %v724_v62, %v2830_v0  ;;  %v1105_v39 = vmul.f32 %v1041_v24, %v593_v30  ;;  %1944 = vtanh.f32 %v914_v36 }
 0x145   :  { %v1456_v41 = vperm.slane %v1316_v23, %v2874_v14  ;;  %1293 = vadd.xlane.f32.xlu2 %v1171_v34  ;;  %v1348_v27 = vadd.f32 %v2659_v47, %v1250_v44  ;;  %v1941_v15 = vpop.eup %1940  ;;  %v915_v43 = vmul.f32 0.7978846, %v851_v59  ;;  %v1170_v12 = vmul.f32 %v2614_v45, %v1102_v20 }
 0x146   :  { %v1543_v28 = vperm.slane %v1349_v57, %v2880_v25  ;;  %v852_v3 = vadd.f32 %v788_v60, %v2830_v0  ;;  %v1040_v5 = vadd.f32 1.0, %v1941_v15  ;;  %v1173_v32 = vmul.f32 %v2614_v45, %v1105_v39 }
 0x147   :  { %v1458_v18 = vsel %vm1457_vm4, %v1456_v41, %v2854_v31  ;;  %v1541_v7 = vperm.slane %v1348_v27, %v2874_v14  ;;  %v1943_v63 = vpop.eup %1942  ;;  %1946 = vtanh.f32 %v915_v43  ;;  %v580_v6 = vmul.f32 0.5, %v2687_v54 }
 0x148   :  { %v1028_v21 = vadd.f32 1.0, %v1943_v63  ;;  %v916_v42 = vmul.f32 0.7978846, %v852_v3  ;;  %v1104_v58 = vmul.f32 %v1040_v5, %v592_v61  ;;  %v594_v40 = vmul.f32 0.5, %v2681_v29 }
 0x149   :  { %v1542_v31 = vsel %vm1457_vm4, %v1541_v7, %v2841_v46  ;;  %v595_v52 = vmul.f32 0.5, %v2710_v1  ;;  %v596_v35 = vmul.f32 0.5, %v2830_v0  ;;  %v1467_v15 = vadd.s32 4294967240, %v2674_v8 }
 0x14a   :  { %v1218_v33 = vpop.xlane.xlu2 %1217  ;;  %v2913_v53 = vsel %vm1461_vm5, %v1543_v28, %v1542_v31  ;;  %v1945_v56 = vpop.eup %1944  ;;  %v1092_v9 = vmul.f32 %v1028_v21, %v580_v6  ;;  %1948 = vtanh.f32 %v916_v42  ;;  %v1172_v19 = vmul.f32 %v2614_v45, %v1104_v58 }
 0x14b   :  { %1291 = vadd.xlane.f32.xlu0 %v1170_v12  ;;  %v1332_v4 = vadd.f32 %v2659_v47, %v1218_v33  ;;  %v1222_v2 = vpop.xlane.xlu1 %1221  ;;  %v1042_v22 = vadd.f32 1.0, %v1945_v56  ;;  %vm1598_vm1 = vcmask 1042434   ;;  %vm1600_vm2 = vcmask 1043459  }
 0x14c   :  { %v1334_v29 = vadd.f32 %v2659_v47, %v1222_v2 }
 0x14d   :  { %1297 = vadd.xlane.f32.xlu2 %v1173_v32  ;;  %v1510_v46 = vperm.slane %v1332_v4, %v2874_v14  ;;  %v1947_v48 = vpop.eup %1946  ;;  %v1106_v23 = vmul.f32 %v1042_v22, %v594_v40  ;;  %v2962_v22 = vadd.s32 4294967232, %v2674_v8 }
 0x14e   :  { %v1282_v50 = vpop.xlane.xlu0 %1281  ;;  %v1043_v49 = vadd.f32 1.0, %v1947_v48 }
 0x14f   :  { %v1511_v10 = vsel %vm1457_vm4, %v1510_v46, %v1509_v11  ;;  %v1364_v37 = vadd.f32 %v2659_v47, %v1282_v50  ;;  %v1160_v11 = vmul.f32 %v2614_v45, %v1092_v9  ;;  %v1174_v34 = vmul.f32 %v2614_v45, %v1106_v23 }
 0x150   :  { %v1949_v17 = vpop.eup %1948 }
 0x151   :  { %v1572_v54 = vperm.slane %v1364_v37, %v2874_v14  ;;  %v1463_v14 = vadd.s32 4294967248, %v2674_v8  ;;  %v1044_v57 = vadd.f32 1.0, %v1949_v17 }
 0x152   :  { %v1188_v16 = vpop.xlane.xlu2 %1187 }
 0x153   :  { %1295 = vadd.xlane.f32.xlu0 %v1172_v19  ;;  %v1573_v51 = vsel %vm1457_vm4, %v1572_v54, %v1571_v38  ;;  %v1317_v13 = vadd.f32 %v2659_v47, %v1188_v16  ;;  %v1107_v38 = vmul.f32 %v1043_v49, %v595_v52  ;;  %v1514_v24 = vperm.slane %v1334_v29, %v1463_v14  ;;  %v1192_v36 = vpop.xlane.xlu1 %1191 }
 0x154   :  { %v1108_v0 = vmul.f32 %v1044_v57, %v596_v35  ;;  %v1319_v28 = vadd.f32 %v2659_v47, %v1192_v36  ;;  %v2984_v36 = vadd.s32 4294967216, %v2674_v8 }
 0x155   :  { %1271 = vadd.xlane.f32.xlu2 %v1160_v11  ;;  %v1460_v26 = vperm.slane %v1317_v13, %v2880_v25  ;;  %v1175_v62 = vmul.f32 %v2614_v45, %v1107_v38 }
 0x156   :  { %v1220_v55 = vpop.xlane.xlu0 %1219  ;;  %v1176_v39 = vmul.f32 %v2614_v45, %v1108_v0  ;;  %v1468_v3 = vperm.slane %v1319_v28, %v1467_v15 }
 0x157   :  { %v1462_v1 = vsel %vm1461_vm5, %v1460_v26, %v1458_v18  ;;  %v1333_v30 = vadd.f32 %v2659_v47, %v1220_v55 }
 0x159   :  { %v1512_v41 = vperm.slane %v1333_v30, %v2880_v25 }
 0x15a   :  { %v1284_v44 = vpop.xlane.xlu2 %1283 }
 0x15b   :  { %1299 = vadd.xlane.f32.xlu0 %v1174_v34  ;;  %v1513_v59 = vsel %vm1461_vm5, %v1512_v41, %v1511_v10  ;;  %v1365_v20 = vadd.f32 %v2659_v47, %v1284_v44  ;;  %v1258_v21 = vpop.xlane.xlu1 %1257 }
 0x15c   :  { %v1515_v18 = vsel %vm1465_vm6, %v1514_v24, %v1513_v59  ;;  %v1352_v55 = vadd.f32 %v2659_v47, %v1258_v21 }
 0x15d   :  { %1301 = vadd.xlane.f32.xlu2 %v1175_v62  ;;  %v1574_v27 = vperm.slane %v1365_v20, %v2880_v25 }
 0x15e   :  { %v1190_v43 = vpop.xlane.xlu0 %1189  ;;  %v1549_v34 = vperm.slane %v1352_v55, %v2962_v22 }
 0x15f   :  { %v1575_v60 = vsel %vm1461_vm5, %v1574_v27, %v1573_v51  ;;  %v1318_v7 = vadd.f32 %v2659_v47, %v1190_v43 }
 0x161   :  { %v1464_v63 = vperm.slane %v1318_v7, %v1463_v14 }
 0x162   :  { %v1254_v12 = vpop.xlane.xlu2 %1253 }
 0x163   :  { %1303 = vadd.xlane.f32.xlu0 %v1176_v39  ;;  %v1466_v31 = vsel %vm1465_vm6, %v1464_v63, %v1462_v1  ;;  %v1350_v25 = vadd.f32 %v2659_v47, %v1254_v12 }
 0x164   :  { %v1470_v61 = vsel %vm1469_vm7, %v1468_v3, %v1466_v31  ;;  %v1228_v19 = vpop.xlane.xlu1 %1227 }
 0x165   :  { %v1545_v5 = vperm.slane %v1350_v25, %v1463_v14  ;;  %v1337_v3 = vadd.f32 %v2659_v47, %v1228_v19 }
 0x167   :  { %v1546_v33 = vsel %vm1465_vm6, %v1545_v5, %v2913_v53 }
 0x168   :  { %v1286_v32 = vpop.xlane.xlu0 %1285 }
 0x169   :  { %v1366_v4 = vadd.f32 %v2659_v47, %v1286_v32 }
 0x16b   :  { %v1576_v6 = vperm.slane %v1366_v4, %v1463_v14  ;;  %v1224_v45 = vpop.xlane.xlu2 %1223  ;;  %v2971_v14 = vadd.s32 4294967224, %v2674_v8  ;;  %v3002_v4 = vadd.s32 4294967208, %v2674_v8 }
 0x16c   :  { %v1335_v42 = vadd.f32 %v2659_v47, %v1224_v45 }
 0x16d   :  { %v1577_v58 = vsel %vm1465_vm6, %v1576_v6, %v1575_v60  ;;  %v1520_v32 = vperm.slane %v1337_v3, %v2971_v14 }
 0x16e   :  { %v1516_v46 = vperm.slane %v1335_v42, %v1467_v15  ;;  %v1198_v23 = vpop.xlane.xlu1 %1197 }
 0x16f   :  { %v1322_v5 = vadd.f32 %v2659_v47, %v1198_v23 }
 0x170   :  { %v1517_v56 = vsel %vm1469_vm7, %v1516_v46, %v1515_v18  ;;  %v1256_v50 = vpop.xlane.xlu0 %1255 }
 0x171   :  { %v1351_v10 = vadd.f32 %v2659_v47, %v1256_v50  ;;  %v1480_v46 = vperm.slane %v1322_v5, %v2984_v36 }
 0x173   :  { %v1547_v37 = vperm.slane %v1351_v10, %v1467_v15  ;;  %v1288_v9 = vpop.xlane.xlu2 %1287 }
 0x174   :  { %v1367_v53 = vadd.f32 %v2659_v47, %v1288_v9  ;;  %v3016_v9 = vadd.s32 4294967192, %v2674_v8 }
 0x175   :  { %v1548_v48 = vsel %vm1469_vm7, %v1547_v37, %v1546_v33 }
 0x176   :  { %v1578_v2 = vperm.slane %v1367_v53, %v1467_v15  ;;  %v1550_v24 = vsel %vm1473_vm8, %v1549_v34, %v1548_v48 }
 0x178   :  { %v2959_v54 = vsel %vm1469_vm7, %v1578_v2, %v1577_v58  ;;  %v2980_v57 = vpop.xlane.xlu1 %1263 }
 0x179   :  { %v1226_v40 = vpop.xlane.xlu0 %1225 }
 0x17a   :  { %v1336_v16 = vadd.f32 %v2659_v47, %v1226_v40 }
 0x17c   :  { %v1194_v52 = vpop.xlane.xlu2 %1193  ;;  %v1518_v51 = vperm.slane %v1336_v16, %v2962_v22 }
 0x17d   :  { %v1320_v11 = vadd.f32 %v2659_v47, %v1194_v52 }
 0x17e   :  { %v1519_v13 = vsel %vm1473_vm8, %v1518_v51, %v1517_v56  ;;  %v3011_v56 = vadd.s32 4294967200, %v2674_v8 }
 0x17f   :  { %v1472_v49 = vperm.slane %v1320_v11, %v2962_v22  ;;  %v1521_v45 = vsel %vm1477_vm9, %v1520_v32, %v1519_v13 }
 0x180   :  { %v1234_v15 = vpop.xlane.xlu1 %1233 }
 0x181   :  { %v1474_v26 = vsel %vm1473_vm8, %v1472_v49, %v1470_v61  ;;  %v1340_v50 = vadd.f32 %v2659_v47, %v1234_v15  ;;  %v3028_v49 = vadd.s32 4294967184, %v2674_v8 }
 0x182   :  { %v1196_v17 = vpop.xlane.xlu0 %1195 }
 0x183   :  { %v1321_v29 = vadd.f32 %v2659_v47, %v1196_v17  ;;  %v1526_v13 = vperm.slane %v1340_v50, %v3011_v56 }
 0x185   :  { %v1476_v1 = vperm.slane %v1321_v29, %v2971_v14 }
 0x186   :  { %v1260_v30 = vpop.xlane.xlu2 %1259 }
 0x187   :  { %v1478_v38 = vsel %vm1477_vm9, %v1476_v1, %v1474_v26  ;;  %v1353_v35 = vadd.f32 %v2659_v47, %v1260_v30  ;;  %v3036_v30 = vadd.s32 4294967176, %v2674_v8 }
 0x188   :  { %v1204_v60 = vpop.xlane.xlu1 %1203  ;;  %v1482_v48 = vsel %vm1481_vm10, %v1480_v46, %v1478_v38 }
 0x189   :  { %v1551_v41 = vperm.slane %v1353_v35, %v2971_v14  ;;  %v1325_v53 = vadd.f32 %v2659_v47, %v1204_v60  ;;  %v1355_v60 = vadd.f32 %v2659_v47, %v2980_v57 }
 0x18a   :  { %v1262_v44 = vpop.xlane.xlu0 %1261 }
 0x18b   :  { %v1552_v59 = vsel %vm1477_vm9, %v1551_v41, %v1550_v24  ;;  %v1354_v62 = vadd.f32 %v2659_v47, %v1262_v44  ;;  %v1492_v1 = vperm.slane %v1325_v53, %v3016_v9 }
 0x18d   :  { %v1553_v20 = vperm.slane %v1354_v62, %v2984_v36 }
 0x18f   :  { %v2990_v18 = vsel %vm1481_vm10, %v1553_v20, %v1552_v59 }
 0x190   :  { %v1230_v0 = vpop.xlane.xlu2 %1229 }
 0x191   :  { %v1338_v39 = vadd.f32 %v2659_v47, %v1230_v0  ;;  %v2994_v12 = vpop.xlane.xlu1 %1269 }
 0x192   :  { %v1232_v27 = vpop.xlane.xlu0 %1231 }
 0x193   :  { %v1339_v25 = vadd.f32 %v2659_v47, %v1232_v27  ;;  %v1522_v33 = vperm.slane %v1338_v39, %v2984_v36 }
 0x195   :  { %v1524_v21 = vperm.slane %v1339_v25, %v3002_v4  ;;  %v1523_v10 = vsel %vm1481_vm10, %v1522_v33, %v1521_v45  ;;  %v1555_v25 = vperm.slane %v1355_v60, %v3002_v4 }
 0x197   :  { %v1525_v16 = vsel %vm1485_vm11, %v1524_v21, %v1523_v10  ;;  %v1556_v5 = vsel %vm1485_vm11, %v1555_v25, %v2990_v18 }
 0x198   :  { %v1200_v28 = vpop.xlane.xlu2 %1199  ;;  %v1527_v17 = vsel %vm1489_vm12, %v1526_v13, %v1525_v16 }
 0x199   :  { %v1323_v61 = vadd.f32 %v2659_v47, %v1200_v28  ;;  %v1240_v23 = vpop.xlane.xlu1 %1239 }
 0x19a   :  { %v1343_v38 = vadd.f32 %v2659_v47, %v1240_v23 }
 0x19b   :  { %v1202_v43 = vpop.xlane.xlu0 %1201  ;;  %v1484_v42 = vperm.slane %v1323_v61, %v3002_v4 }
 0x19c   :  { %v1324_v6 = vadd.f32 %v2659_v47, %v1202_v43  ;;  %v1532_v20 = vperm.slane %v1343_v38, %v3036_v30 }
 0x19d   :  { %v1486_v52 = vsel %vm1485_vm11, %v1484_v42, %v1482_v48 }
 0x19e   :  { %v1488_v19 = vperm.slane %v1324_v6, %v3011_v56 }
 0x1a0   :  { %v1266_v7 = vpop.xlane.xlu2 %1265  ;;  %v1490_v26 = vsel %vm1489_vm12, %v1488_v19, %v1486_v52 }
 0x1a1   :  { %v1494_v41 = vsel %vm1493_vm13, %v1492_v1, %v1490_v26  ;;  %v1356_v28 = vadd.f32 %v2659_v47, %v1266_v7  ;;  %v1290_v61 = vpop.xlane.xlu1 %1289  ;;  %v1358_v7 = vadd.f32 %v2659_v47, %v2994_v12 }
 0x1a2   :  { %v1368_v57 = vadd.f32 %v2659_v47, %v1290_v61 }
 0x1a4   :  { %v1580_v18 = vperm.slane %v1368_v57, %v2962_v22 }
 0x1a6   :  { %v1268_v63 = vpop.xlane.xlu0 %1267  ;;  %v1581_v48 = vsel %vm1473_vm8, %v1580_v18, %v2959_v54 }
 0x1a7   :  { %v1357_v3 = vadd.f32 %v2659_v47, %v1268_v63 }
 0x1a8   :  { %v1236_v31 = vpop.xlane.xlu2 %1235 }
 0x1a9   :  { %v1341_v58 = vadd.f32 %v2659_v47, %v1236_v31  ;;  %v1557_v31 = vperm.slane %v1356_v28, %v3011_v56  ;;  %v1559_v33 = vperm.slane %v1357_v3, %v3016_v9 }
 0x1ab   :  { %v1528_v51 = vperm.slane %v1341_v58, %v3016_v9  ;;  %v1558_v32 = vsel %vm1489_vm12, %v1557_v31, %v1556_v5  ;;  %v1561_v58 = vperm.slane %v1358_v7, %v3028_v49 }
 0x1ac   :  { %v1560_v21 = vsel %vm1493_vm13, %v1559_v33, %v1558_v32 }
 0x1ad   :  { %v1529_v35 = vsel %vm1493_vm13, %v1528_v51, %v1527_v17 }
 0x1ae   :  { %v1238_v37 = vpop.xlane.xlu0 %1237 }
 0x1af   :  { %v1342_v2 = vadd.f32 %v2659_v47, %v1238_v37  ;;  %v1562_v37 = vsel %vm1497_vm14, %v1561_v58, %v1560_v21 }
 0x1b0   :  { %v1206_v40 = vpop.xlane.xlu2 %1205 }
 0x1b1   :  { %v1326_v11 = vadd.f32 %v2659_v47, %v1206_v40  ;;  %v1530_v29 = vperm.slane %v1342_v2, %v3028_v49 }
 0x1b3   :  { %v1496_v55 = vperm.slane %v1326_v11, %v3028_v49  ;;  %v1531_v44 = vsel %vm1497_vm14, %v1530_v29, %v1529_v35 }
 0x1b4   :  { %v1533_v0 = vsel %vm1501_vm15, %v1532_v20, %v1531_v44 }
 0x1b5   :  { %v1498_v59 = vsel %vm1497_vm14, %v1496_v55, %v1494_v41 }
 0x1b6   :  { %v1208_v34 = vpop.xlane.xlu0 %1207 }
 0x1b7   :  { %v1327_v24 = vadd.f32 %v2659_v47, %v1208_v34 }
 0x1b8   :  { %v1294_v62 = vpop.xlane.xlu2 %1293 }
 0x1b9   :  { %v1500_v8 = vperm.slane %v1327_v24, %v3036_v30  ;;  %v1370_v10 = vadd.f32 %v2659_v47, %v1294_v62 }
 0x1bb   :  { %v1502_v27 = vsel %vm1501_vm15, %v1500_v8, %v1498_v59  ;;  %v1584_v16 = vperm.slane %v1370_v10, %v2984_v36 }
 0x1bc   :  { %v1597_v15 = vsel %vm1596_vm0, %v1533_v0, %v1502_v27 }
 0x1be   :  { %v1292_v43 = vpop.xlane.xlu0 %1291 }
 0x1bf   :  { %v1369_v63 = vadd.f32 %v2659_v47, %v1292_v43 }
 0x1c0   :  { %v1298_v39 = vpop.xlane.xlu2 %1297 }
 0x1c1   :  { %v1582_v46 = vperm.slane %v1369_v63, %v2971_v14  ;;  %v1372_v52 = vadd.f32 %v2659_v47, %v1298_v39 }
 0x1c3   :  { %v1583_v22 = vsel %vm1477_vm9, %v1582_v46, %v1581_v48  ;;  %v1588_v26 = vperm.slane %v1372_v52, %v3011_v56 }
 0x1c4   :  { %v1585_v13 = vsel %vm1481_vm10, %v1584_v16, %v1583_v22 }
 0x1c6   :  { %v1296_v6 = vpop.xlane.xlu0 %1295 }
 0x1c7   :  { %v1371_v12 = vadd.f32 %v2659_v47, %v1296_v6 }
 0x1c8   :  { %v1272_v45 = vpop.xlane.xlu2 %1271 }
 0x1c9   :  { %v1359_v42 = vadd.f32 %v2659_v47, %v1272_v45  ;;  %v1586_v14 = vperm.slane %v1371_v12, %v3002_v4 }
 0x1cb   :  { %v1563_v50 = vperm.slane %v1359_v42, %v3036_v30  ;;  %v1587_v23 = vsel %vm1485_vm11, %v1586_v14, %v1585_v13 }
 0x1cc   :  { %v1589_v4 = vsel %vm1489_vm12, %v1588_v26, %v1587_v23 }
 0x1cd   :  { %v1564_v53 = vsel %vm1501_vm15, %v1563_v50, %v1562_v37 }
 0x1ce   :  { %v1599_v19 = vsel %vm1598_vm1, %v1564_v53, %v1597_v15  ;;  %v1300_v2 = vpop.xlane.xlu0 %1299 }
 0x1cf   :  { %v1373_v40 = vadd.f32 %v2659_v47, %v1300_v2 }
 0x1d0   :  { %v1302_v51 = vpop.xlane.xlu2 %1301 }
 0x1d1   :  { %v1374_v11 = vadd.f32 %v2659_v47, %v1302_v51  ;;  %v1590_v54 = vperm.slane %v1373_v40, %v3016_v9 }
 0x1d3   :  { %v1592_v17 = vperm.slane %v1374_v11, %v3028_v49  ;;  %v1591_v36 = vsel %vm1493_vm13, %v1590_v54, %v1589_v4 }
 0x1d5   :  { %v1593_v1 = vsel %vm1497_vm14, %v1592_v17, %v1591_v36 }
 0x1d6   :  { %v1304_v29 = vpop.xlane.xlu0 %1303 }
 0x1d7   :  { %v1375_v55 = vadd.f32 %v2659_v47, %v1304_v29 }
 0x1d9   :  { %v1594_v38 = vperm.slane %v1375_v55, %v3036_v30 }
 0x1db   :  { %v1595_v35 = vsel %vm1501_vm15, %v1594_v38, %v1593_v1 }
 0x1dc   :  { %v1601_v34 = vsel %vm1600_vm2, %v1595_v35, %v1599_v19 }
 0x1dd   :  { %1603 = vst [vmem:[%s3099_s5] sm:$0xf] %v1601_v34 }

</bundles_post_ra>
